<compile_context>
chip_gen: v6e
topology: v6e:2x2x1
jax: 0.10.0
libtpu: 0.0.40
codegen_flags: <defaults>
</compile_context>

<pallas_src>
import functools

import jax
import jax.numpy as jnp
from jax import lax
from jax.experimental import pallas as pl
from jax.experimental.pallas import tpu as pltpu


def _round_up(x, m):
    return (x + m - 1) // m * m


def basic_block_kernel(x_hbm, w1_ref, b1_ref, w2_ref, b2_ref, o_ref,
                       xbuf, sem, patch_ref, mid_ref,
                       *, TH, H, W, Wp, Wm, CP, nS):
    """One (batch, H-strip) grid step of the fused BasicBlock forward.

    x_hbm     : (N, H_pad+4, Win, CP) bf16  padded input, stays in HBM (pl.ANY)
    w1_ref    : (3, 3*CP, CP) bf16          conv1 weight, BN1 scale folded, kh-major
    b1_ref    : (1, CP) f32                 folded BN1 bias
    w2_ref    : (3, 3*CP, CP) bf16          conv2 weight, BN2 scale folded
    b2_ref    : (1, CP) f32                 folded BN2 bias
    o_ref     : (1, TH, Wp, CP) bf16        output strip
    xbuf      : (2, TH+4, Win, CP) bf16     input-strip double buffer (VMEM)
    sem       : DMA semaphores (2,)
    patch_ref : (TH2*Wm, 3*CP) bf16         per-kh im2col scratch (shared)
    mid_ref   : (TH2, Wm, CP) bf16          bn1+relu output, zero-framed
    """
    n = pl.program_id(0)
    s = pl.program_id(1)
    TH2 = TH + 2
    M1 = TH2 * Wm
    M0 = TH * Wp

    def start_fetch(strip, slot):
        pltpu.make_async_copy(
            x_hbm.at[n, pl.ds(strip * TH, TH + 4)],
            xbuf.at[slot], sem.at[slot]).start()

    # Manual double-buffered halo fetch.  The strip axis is sequential
    # ("arbitrary"), so within a batch item the chain below always issues a
    # strip's DMA one step before it is consumed (except the first strip).
    @pl.when(s == 0)
    def _():
        start_fetch(0, 0)

    @pl.when(s + 1 < nS)
    def _():
        start_fetch(s + 1, (s + 1) % 2)

    slot = s % 2
    pltpu.make_async_copy(
        x_hbm.at[n, pl.ds(s * TH, TH + 4)],
        xbuf.at[slot], sem.at[slot]).wait()
    win = xbuf.at[slot]                                   # (TH+4, Win, CP)

    # ---- conv1 (BN1 scale folded): kh-split im2col, K = 3*CP per dot -------
    acc1 = None
    for kh in range(3):
        for kw in range(3):
            slab = win[kh:kh + TH2, kw:kw + Wm, :]
            patch_ref[:, kw * CP:(kw + 1) * CP] = slab.reshape(M1, CP)
        d = jnp.dot(patch_ref[...], w1_ref[kh],
                    preferred_element_type=jnp.float32)
        acc1 = d if acc1 is None else acc1 + d            # (M1, CP) f32

    # ---- bias + relu; zero the 1px frame conv2 expects as zero padding -----
    y1 = jnp.maximum(acc1 + b1_ref[...], 0.0).reshape(TH2, Wm, CP)
    r1 = lax.broadcasted_iota(jnp.int32, (TH2, Wm, 1), 0)
    c1 = lax.broadcasted_iota(jnp.int32, (TH2, Wm, 1), 1)
    g_row = s * TH + r1 - 1                # global image row of this mid row
    inside = (g_row >= 0) & (g_row < H) & (c1 >= 1) & (c1 <= W)
    mid_ref[...] = jnp.where(inside, y1, 0.0).astype(mid_ref.dtype)

    # ---- conv2 (BN2 scale folded): kh-split im2col over mid ----------------
    acc2 = None
    for kh in range(3):
        for kw in range(3):
            slab = mid_ref[kh:kh + TH, kw:kw + Wp, :]
            patch_ref[0:M0, kw * CP:(kw + 1) * CP] = slab.reshape(M0, CP)
        d = jnp.dot(patch_ref[0:M0, :], w2_ref[kh],
                    preferred_element_type=jnp.float32)
        acc2 = d if acc2 is None else acc2 + d            # (M0, CP) f32

    # ---- bias + residual add + relu (f32 epilogue), store bf16 -------------
    residual = win[2:2 + TH, 2:2 + Wp, :].astype(jnp.float32).reshape(M0, CP)
    y2 = acc2 + b2_ref[...] + residual
    o_ref[0] = jnp.maximum(y2, 0.0).reshape(TH, Wp, CP).astype(o_ref.dtype)
    # TODO(synk): stride>1 / downsample / no_relu BasicBlock variants not handled.


def basic_block_pallas(x_nchw, w1, g1, beta1, m1, v1, w2, g2, beta2, m2, v2,
                       eps=1e-5, strip_h=8):
    """x_nchw: (N, Cin, H, W); conv weights in PyTorch layout (Cout, Cin, 3, 3).

    Default BasicBlock configuration only (stride=1, no downsample, no_relu=False),
    eval-mode BatchNorm folded into per-channel (scale, bias).
    strip_h: output rows per grid step (8 is safe everywhere; 16 is a good
    choice on v5e/v6e's 128 MiB VMEM).
    """
    N, Cin, H, W = x_nchw.shape
    C = w1.shape[0]
    assert Cin == C, "residual add requires inplanes == planes (downsample=None)"

    CP = _round_up(C, 128)          # lane-dense channel dim
    # TODO(synk): per-tap channel padding to 128 wastes MXU/HBM work for C<128
    # blocks (early PIDNet stages); pack K = 9*C rounded to 128 if that matters.
    TH = max(1, min(strip_h, H))    # output rows per grid step
    H_pad = _round_up(H, TH)        # masked rows handle H % TH != 0
    nS = H_pad // TH
    Wp = _round_up(W, 16)           # tile-aligned output width
    Wm = Wp + 16                    # mid (conv1 output) width, >= W + 2
    Win = Wm + 16                   # padded input width, >= Wm + 2
    TH2 = TH + 2

    # NCHW -> NHWC bf16; 2px top/left halo, bottom pad to H_pad+2, right pad
    # to Win, channel pad to CP.  Single padded copy in HBM; halo strips are
    # fetched by in-kernel DMA (no overlapping-strip materialization).
    x_nhwc = jnp.transpose(x_nchw, (0, 2, 3, 1)).astype(jnp.bfloat16)
    xp = jnp.pad(x_nhwc, ((0, 0), (2, 2 + H_pad - H), (2, Win - 2 - W),
                          (0, CP - C)))                    # (N, H_pad+4, Win, CP)

    def fold_bn(g, b, m, v):        # eval-mode BN -> (scale, bias)
        sc = g / jnp.sqrt(v + eps)
        return sc, b - m * sc

    def pack_w(w, sc):              # (Cout,Cin,3,3) -> (3, 3*CP, CP), scale folded
        wt = jnp.transpose(w, (2, 3, 1, 0)) * sc[None, None, None, :]
        wt = jnp.pad(wt, ((0, 0), (0, 0), (0, CP - Cin), (0, CP - C)))
        return wt.reshape(3, 3 * CP, CP).astype(jnp.bfloat16)

    s1, bias1 = fold_bn(g1, beta1, m1, v1)
    s2, bias2 = fold_bn(g2, beta2, m2, v2)
    w1k = pack_w(w1, s1)
    w2k = pack_w(w2, s2)
    b1 = jnp.pad(bias1, (0, CP - C)).reshape(1, CP).astype(jnp.float32)
    b2 = jnp.pad(bias2, (0, CP - C)).reshape(1, CP).astype(jnp.float32)

    kernel = functools.partial(basic_block_kernel, TH=TH, H=H, W=W, Wp=Wp,
                               Wm=Wm, CP=CP, nS=nS)

    out = pl.pallas_call(
        kernel,
        out_shape=jax.ShapeDtypeStruct((N, H_pad, Wp, CP), jnp.bfloat16),
        grid_spec=pltpu.PrefetchScalarGridSpec(
            num_scalar_prefetch=0,
            grid=(N, nS),
            in_specs=[
                pl.BlockSpec(memory_space=pl.ANY),          # x stays in HBM
                pl.BlockSpec((3, 3 * CP, CP), lambda n, s: (0, 0, 0)),
                pl.BlockSpec((1, CP), lambda n, s: (0, 0)),
                pl.BlockSpec((3, 3 * CP, CP), lambda n, s: (0, 0, 0)),
                pl.BlockSpec((1, CP), lambda n, s: (0, 0)),
            ],
            out_specs=pl.BlockSpec((1, TH, Wp, CP), lambda n, s: (n, s, 0, 0)),
            scratch_shapes=[
                pltpu.VMEM((2, TH + 4, Win, CP), jnp.bfloat16),  # input strips
                pltpu.SemaphoreType.DMA((2,)),
                pltpu.VMEM((TH2 * Wm, 3 * CP), jnp.bfloat16),    # per-kh im2col
                pltpu.VMEM((TH2, Wm, CP), jnp.bfloat16),         # bn1+relu output
            ],
        ),
        # Strip axis must be sequential for the in-kernel halo prefetch chain;
        # batch axis is parallel (megacore sharding on v7x).
        # TODO(synk): weights/biases could be single-buffered (grid-invariant).
        compiler_params=pltpu.CompilerParams(
            dimension_semantics=("parallel", "arbitrary")),
    )(xp, w1k, b1, w2k, b2)

    # The kernel emits padded NHWC bf16 (keep that layout if the consumer is
    # the next BasicBlock); convert back to NCHW f32 here for the reference
    # comparison only.
    return jnp.transpose(out[:, :H, :W, :C].astype(jnp.float32), (0, 3, 1, 2))


def basic_block_reference(x, w1, g1, beta1, m1, v1, w2, g2, beta2, m2, v2,
                          eps=1e-5):
    """Pure-JAX NCHW reference mirroring the PyTorch forward (eval-mode BN)."""
    def conv(x, w):
        return lax.conv_general_dilated(
            x, w, window_strides=(1, 1), padding=((1, 1), (1, 1)),
            dimension_numbers=("NCHW", "OIHW", "NCHW"))

    def bn(x, g, b, m, v):
        g = g.reshape(1, -1, 1, 1); b = b.reshape(1, -1, 1, 1)
        m = m.reshape(1, -1, 1, 1); v = v.reshape(1, -1, 1, 1)
        return (x - m) / jnp.sqrt(v + eps) * g + b

    out = jax.nn.relu(bn(conv(x, w1), g1, beta1, m1, v1))
    out = bn(conv(out, w2), g2, beta2, m2, v2)
    return jax.nn.relu(out + x)


if __name__ == "__main__":
    key = jax.random.PRNGKey(0)
    N, C, H, W = 2, 4, 16, 16  # inplanes == planes == 4, stride=1

    keys = jax.random.split(key, 8)
    x = jax.random.normal(keys[0], (N, C, H, W), dtype=jnp.float32)

    w1 = jax.random.normal(keys[1], (C, C, 3, 3), dtype=jnp.float32) * 0.2
    w2 = jax.random.normal(keys[2], (C, C, 3, 3), dtype=jnp.float32) * 0.2
    g1 = 1.0 + 0.1 * jax.random.normal(keys[3], (C,), dtype=jnp.float32)
    beta1 = 0.1 * jax.random.normal(keys[4], (C,), dtype=jnp.float32)
    m1 = 0.05 * jax.random.normal(keys[5], (C,), dtype=jnp.float32)
    v1 = 1.0 + 0.1 * jnp.abs(jax.random.normal(keys[6], (C,), dtype=jnp.float32))
    g2 = jnp.ones((C,), jnp.float32)
    beta2 = jnp.zeros((C,), jnp.float32)
    m2 = 0.05 * jax.random.normal(keys[7], (C,), dtype=jnp.float32)
    v2 = jnp.ones((C,), jnp.float32) * 1.2

    fused = jax.jit(basic_block_pallas)   # strip_h=8 -> 2 strips at H=16
    out = jax.block_until_ready(
        fused(x, w1, g1, beta1, m1, v1, w2, g2, beta2, m2, v2))

    ref = basic_block_reference(x, w1, g1, beta1, m1, v1, w2, g2, beta2, m2, v2)
    assert out.shape == (N, C, H, W)
    # bf16 conv inputs/weights with f32 accumulation -> looser tolerance than f32.
    assert jnp.allclose(out, ref, atol=5e-2, rtol=5e-2), (
        f"max abs err = {jnp.max(jnp.abs(out - ref))}")

    print("KERNEL_OK")
</pallas_src>

<mosaic_0001>
module attributes {stable_mosaic.version = 11 : i64} {
  func.func @basic_block_kernel(%arg0: i32, %arg1: i32, %arg2: memref<2x20x48x128xbf16, #tpu.memory_space<any>>, %arg3: memref<3x384x128xbf16, #tpu.memory_space<vmem>>, %arg4: memref<1x128xf32, #tpu.memory_space<vmem>>, %arg5: memref<3x384x128xbf16, #tpu.memory_space<vmem>>, %arg6: memref<1x128xf32, #tpu.memory_space<vmem>>, %arg7: memref<1x8x16x128xbf16, #tpu.memory_space<vmem>>, %arg8: memref<2x12x48x128xbf16, #tpu.memory_space<vmem>>, %arg9: memref<2x!tpu.dma_semaphore, #tpu.memory_space<semaphore_mem>>, %arg10: memref<320x384xbf16, #tpu.memory_space<vmem>>, %arg11: memref<10x32x128xbf16, #tpu.memory_space<vmem>>) attributes {dimension_semantics = [#tpu.dimension_semantics<parallel>, #tpu.dimension_semantics<arbitrary>], iteration_bounds = array<i64: 2, 2>, scalar_prefetch = 0 : i64, scratch_operands = 4 : i64, tpu.core_type = #tpu.core_type<tc>, window_params = [{}, {pipeline_mode = #tpu.pipeline_mode<synchronous>, transform_indices = @transform_1, window_bounds = array<i64: 3, 384, 128>}, {pipeline_mode = #tpu.pipeline_mode<synchronous>, transform_indices = @transform_2, window_bounds = array<i64: 1, 128>}, {pipeline_mode = #tpu.pipeline_mode<synchronous>, transform_indices = @transform_3, window_bounds = array<i64: 3, 384, 128>}, {pipeline_mode = #tpu.pipeline_mode<synchronous>, transform_indices = @transform_4, window_bounds = array<i64: 1, 128>}, {transform_indices = @transform_5, window_bounds = array<i64: 1, 8, 16, 128>}]} {
    %c0_i32 = arith.constant 0 : i32
    %0 = arith.cmpi eq, %arg1, %c0_i32 : i32
    %1 = arith.extui %0 : i1 to i32
    %c0_i32_0 = arith.constant 0 : i32
    %2 = arith.cmpi ne, %1, %c0_i32_0 : i32
    scf.if %2 {
      %c0_i32_185 = arith.constant 0 : i32
      %c0_i32_186 = arith.constant 0 : i32
      %c0_i32_187 = arith.constant 0 : i32
      %c0_i32_188 = arith.constant 0 : i32
      %c0_i32_189 = arith.constant 0 : i32
      %170 = tpu.memref_slice %arg2[%arg0, %c0_i32_187, %c0_i32_188, %c0_i32_189] : memref<2x20x48x128xbf16, #tpu.memory_space<any>> -> memref<1x12x48x128xbf16, #tpu.memory_space<any>>
      %171 = tpu.memref_squeeze %170 : memref<1x12x48x128xbf16, #tpu.memory_space<any>> -> memref<12x48x128xbf16, #tpu.memory_space<any>>
      %c0_i32_190 = arith.constant 0 : i32
      %c0_i32_191 = arith.constant 0 : i32
      %c0_i32_192 = arith.constant 0 : i32
      %172 = tpu.memref_slice %arg8[%c0_i32_185, %c0_i32_190, %c0_i32_191, %c0_i32_192] : memref<2x12x48x128xbf16, #tpu.memory_space<vmem>> -> memref<1x12x48x128xbf16, #tpu.memory_space<vmem>>
      %173 = tpu.memref_squeeze %172 : memref<1x12x48x128xbf16, #tpu.memory_space<vmem>> -> memref<12x48x128xbf16, #tpu.memory_space<vmem>>
      %174 = tpu.memref_slice %arg9[%c0_i32_186] : memref<2x!tpu.dma_semaphore, #tpu.memory_space<semaphore_mem>> -> memref<1x!tpu.dma_semaphore, #tpu.memory_space<semaphore_mem>>
      %175 = tpu.memref_squeeze %174 : memref<1x!tpu.dma_semaphore, #tpu.memory_space<semaphore_mem>> -> memref<!tpu.dma_semaphore, #tpu.memory_space<semaphore_mem>>
      tpu.enqueue_dma source(%171 : memref<12x48x128xbf16, #tpu.memory_space<any>>) target(%173 : memref<12x48x128xbf16, #tpu.memory_space<vmem>>) target_semaphore(%175 : memref<!tpu.dma_semaphore, #tpu.memory_space<semaphore_mem>>)
    } else {
    }
    %c1_i32 = arith.constant 1 : i32
    %3 = arith.addi %arg1, %c1_i32 : i32
    %c2_i32 = arith.constant 2 : i32
    %4 = arith.cmpi slt, %3, %c2_i32 : i32
    %5 = arith.extui %4 : i1 to i32
    %c0_i32_1 = arith.constant 0 : i32
    %6 = arith.cmpi ne, %5, %c0_i32_1 : i32
    scf.if %6 {
      %c1_i32_185 = arith.constant 1 : i32
      %170 = arith.addi %arg1, %c1_i32_185 : i32
      %c1_i32_186 = arith.constant 1 : i32
      %171 = arith.addi %arg1, %c1_i32_186 : i32
      %c2_i32_187 = arith.constant 2 : i32
      %c0_i32_188 = arith.constant 0 : i32
      %172 = arith.cmpi eq, %c2_i32_187, %c0_i32_188 : i32
      %c1_i32_189 = arith.constant 1 : i32
      %173 = arith.select %172, %c1_i32_189, %c2_i32_187 : i32
      %174 = arith.remsi %171, %173 : i32
      %c0_i32_190 = arith.constant 0 : i32
      %175 = arith.cmpi ne, %174, %c0_i32_190 : i32
      %c0_i32_191 = arith.constant 0 : i32
      %176 = arith.cmpi slt, %174, %c0_i32_191 : i32
      %c0_i32_192 = arith.constant 0 : i32
      %177 = arith.cmpi slt, %173, %c0_i32_192 : i32
      %178 = arith.xori %176, %177 : i1
      %179 = arith.andi %178, %175 : i1
      %180 = arith.addi %174, %173 : i32
      %181 = arith.select %179, %180, %174 : i32
      %c8_i32_193 = arith.constant 8 : i32
      %182 = arith.muli %170, %c8_i32_193 : i32
      %c0_i32_194 = arith.constant 0 : i32
      %c0_i32_195 = arith.constant 0 : i32
      %183 = tpu.memref_slice %arg2[%arg0, %182, %c0_i32_194, %c0_i32_195] : memref<2x20x48x128xbf16, #tpu.memory_space<any>> -> memref<1x12x48x128xbf16, #tpu.memory_space<any>>
      %184 = tpu.memref_squeeze %183 : memref<1x12x48x128xbf16, #tpu.memory_space<any>> -> memref<12x48x128xbf16, #tpu.memory_space<any>>
      %c0_i32_196 = arith.constant 0 : i32
      %c0_i32_197 = arith.constant 0 : i32
      %c0_i32_198 = arith.constant 0 : i32
      %185 = tpu.memref_slice %arg8[%181, %c0_i32_196, %c0_i32_197, %c0_i32_198] : memref<2x12x48x128xbf16, #tpu.memory_space<vmem>> -> memref<1x12x48x128xbf16, #tpu.memory_space<vmem>>
      %186 = tpu.memref_squeeze %185 : memref<1x12x48x128xbf16, #tpu.memory_space<vmem>> -> memref<12x48x128xbf16, #tpu.memory_space<vmem>>
      %187 = tpu.memref_slice %arg9[%181] : memref<2x!tpu.dma_semaphore, #tpu.memory_space<semaphore_mem>> -> memref<1x!tpu.dma_semaphore, #tpu.memory_space<semaphore_mem>>
      %188 = tpu.memref_squeeze %187 : memref<1x!tpu.dma_semaphore, #tpu.memory_space<semaphore_mem>> -> memref<!tpu.dma_semaphore, #tpu.memory_space<semaphore_mem>>
      tpu.enqueue_dma source(%184 : memref<12x48x128xbf16, #tpu.memory_space<any>>) target(%186 : memref<12x48x128xbf16, #tpu.memory_space<vmem>>) target_semaphore(%188 : memref<!tpu.dma_semaphore, #tpu.memory_space<semaphore_mem>>)
    } else {
    }
    %c2_i32_2 = arith.constant 2 : i32
    %c0_i32_3 = arith.constant 0 : i32
    %7 = arith.cmpi eq, %c2_i32_2, %c0_i32_3 : i32
    %c1_i32_4 = arith.constant 1 : i32
    %8 = arith.select %7, %c1_i32_4, %c2_i32_2 : i32
    %9 = arith.remsi %arg1, %8 : i32
    %c0_i32_5 = arith.constant 0 : i32
    %10 = arith.cmpi ne, %9, %c0_i32_5 : i32
    %c0_i32_6 = arith.constant 0 : i32
    %11 = arith.cmpi slt, %9, %c0_i32_6 : i32
    %c0_i32_7 = arith.constant 0 : i32
    %12 = arith.cmpi slt, %8, %c0_i32_7 : i32
    %13 = arith.xori %11, %12 : i1
    %14 = arith.andi %13, %10 : i1
    %15 = arith.addi %9, %8 : i32
    %16 = arith.select %14, %15, %9 : i32
    %c8_i32 = arith.constant 8 : i32
    %17 = arith.muli %arg1, %c8_i32 : i32
    %c0_i32_8 = arith.constant 0 : i32
    %c0_i32_9 = arith.constant 0 : i32
    %18 = tpu.memref_slice %arg2[%arg0, %17, %c0_i32_8, %c0_i32_9] : memref<2x20x48x128xbf16, #tpu.memory_space<any>> -> memref<1x12x48x128xbf16, #tpu.memory_space<any>>
    %19 = tpu.memref_squeeze %18 : memref<1x12x48x128xbf16, #tpu.memory_space<any>> -> memref<12x48x128xbf16, #tpu.memory_space<any>>
    %c0_i32_10 = arith.constant 0 : i32
    %c0_i32_11 = arith.constant 0 : i32
    %c0_i32_12 = arith.constant 0 : i32
    %20 = tpu.memref_slice %arg8[%16, %c0_i32_10, %c0_i32_11, %c0_i32_12] : memref<2x12x48x128xbf16, #tpu.memory_space<vmem>> -> memref<1x12x48x128xbf16, #tpu.memory_space<vmem>>
    %21 = tpu.memref_squeeze %20 : memref<1x12x48x128xbf16, #tpu.memory_space<vmem>> -> memref<12x48x128xbf16, #tpu.memory_space<vmem>>
    %22 = tpu.memref_slice %arg9[%16] : memref<2x!tpu.dma_semaphore, #tpu.memory_space<semaphore_mem>> -> memref<1x!tpu.dma_semaphore, #tpu.memory_space<semaphore_mem>>
    %23 = tpu.memref_squeeze %22 : memref<1x!tpu.dma_semaphore, #tpu.memory_space<semaphore_mem>> -> memref<!tpu.dma_semaphore, #tpu.memory_space<semaphore_mem>>
    tpu.wait_dma2 semaphore(%23 : memref<!tpu.dma_semaphore, #tpu.memory_space<semaphore_mem>>) src(%19 : memref<12x48x128xbf16, #tpu.memory_space<any>>) dst(%21 : memref<12x48x128xbf16, #tpu.memory_space<vmem>>)
    %c0_i32_13 = arith.constant 0 : i32
    %c0_i32_14 = arith.constant 0 : i32
    %c0_i32_15 = arith.constant 0 : i32
    %24 = tpu.memref_slice %arg8[%16, %c0_i32_13, %c0_i32_14, %c0_i32_15] : memref<2x12x48x128xbf16, #tpu.memory_space<vmem>> -> memref<1x12x48x128xbf16, #tpu.memory_space<vmem>>
    %25 = tpu.memref_squeeze %24 : memref<1x12x48x128xbf16, #tpu.memory_space<vmem>> -> memref<12x48x128xbf16, #tpu.memory_space<vmem>>
    %c0 = arith.constant 0 : index
    %c0_16 = arith.constant 0 : index
    %c0_17 = arith.constant 0 : index
    %26 = vector.load %25[%c0, %c0_16, %c0_17] : memref<12x48x128xbf16, #tpu.memory_space<vmem>>, vector<10x32x128xbf16>
    %27 = vector.shape_cast %26 : vector<10x32x128xbf16> to vector<320x128xbf16>
    %c0_18 = arith.constant 0 : index
    %c0_19 = arith.constant 0 : index
    %28 = vector.load %arg10[%c0_18, %c0_19] : memref<320x384xbf16, #tpu.memory_space<vmem>>, vector<320x128xbf16>
    tpu.vector_store %arg10[%c0_18, %c0_19], %27 {strides = array<i32>} : memref<320x384xbf16, #tpu.memory_space<vmem>>, vector<320x128xbf16>,
    %c0_i32_20 = arith.constant 0 : i32
    %c0_i32_21 = arith.constant 0 : i32
    %c0_i32_22 = arith.constant 0 : i32
    %29 = tpu.memref_slice %arg8[%16, %c0_i32_20, %c0_i32_21, %c0_i32_22] : memref<2x12x48x128xbf16, #tpu.memory_space<vmem>> -> memref<1x12x48x128xbf16, #tpu.memory_space<vmem>>
    %30 = tpu.memref_squeeze %29 : memref<1x12x48x128xbf16, #tpu.memory_space<vmem>> -> memref<12x48x128xbf16, #tpu.memory_space<vmem>>
    %c0_23 = arith.constant 0 : index
    %c1 = arith.constant 1 : index
    %c0_24 = arith.constant 0 : index
    %31 = vector.load %30[%c0_23, %c1, %c0_24] : memref<12x48x128xbf16, #tpu.memory_space<vmem>>, vector<10x32x128xbf16>
    %32 = vector.shape_cast %31 : vector<10x32x128xbf16> to vector<320x128xbf16>
    %c0_25 = arith.constant 0 : index
    %c128 = arith.constant 128 : index
    %33 = vector.load %arg10[%c0_25, %c128] : memref<320x384xbf16, #tpu.memory_space<vmem>>, vector<320x128xbf16>
    tpu.vector_store %arg10[%c0_25, %c128], %32 {strides = array<i32>} : memref<320x384xbf16, #tpu.memory_space<vmem>>, vector<320x128xbf16>,
    %c0_i32_26 = arith.constant 0 : i32
    %c0_i32_27 = arith.constant 0 : i32
    %c0_i32_28 = arith.constant 0 : i32
    %34 = tpu.memref_slice %arg8[%16, %c0_i32_26, %c0_i32_27, %c0_i32_28] : memref<2x12x48x128xbf16, #tpu.memory_space<vmem>> -> memref<1x12x48x128xbf16, #tpu.memory_space<vmem>>
    %35 = tpu.memref_squeeze %34 : memref<1x12x48x128xbf16, #tpu.memory_space<vmem>> -> memref<12x48x128xbf16, #tpu.memory_space<vmem>>
    %c0_29 = arith.constant 0 : index
    %c2 = arith.constant 2 : index
    %c0_30 = arith.constant 0 : index
    %36 = vector.load %35[%c0_29, %c2, %c0_30] : memref<12x48x128xbf16, #tpu.memory_space<vmem>>, vector<10x32x128xbf16>
    %37 = vector.shape_cast %36 : vector<10x32x128xbf16> to vector<320x128xbf16>
    %c0_31 = arith.constant 0 : index
    %c256 = arith.constant 256 : index
    %38 = vector.load %arg10[%c0_31, %c256] : memref<320x384xbf16, #tpu.memory_space<vmem>>, vector<320x128xbf16>
    tpu.vector_store %arg10[%c0_31, %c256], %37 {strides = array<i32>} : memref<320x384xbf16, #tpu.memory_space<vmem>>, vector<320x128xbf16>,
    %c0_32 = arith.constant 0 : index
    %c0_33 = arith.constant 0 : index
    %39 = vector.load %arg10[%c0_32, %c0_33] : memref<320x384xbf16, #tpu.memory_space<vmem>>, vector<320x384xbf16>
    %c0_34 = arith.constant 0 : index
    %c0_35 = arith.constant 0 : index
    %c0_36 = arith.constant 0 : index
    %40 = vector.load %arg3[%c0_34, %c0_35, %c0_36] : memref<3x384x128xbf16, #tpu.memory_space<vmem>>, vector<1x384x128xbf16>
    %41 = vector.shape_cast %40 : vector<1x384x128xbf16> to vector<384x128xbf16>
    %cst = arith.constant dense<0.000000e+00> : vector<320x128xf32>
    %42 = tpu.matmul %39, %41, %cst {dimension_numbers = #tpu.dot_dimension_numbers<[1], [0], [0], [1], [0, 0, 1, 1], [], []>} : vector<320x384xbf16>, vector<384x128xbf16>, vector<320x128xf32> -> vector<320x128xf32>
    %c0_i32_37 = arith.constant 0 : i32
    %c0_i32_38 = arith.constant 0 : i32
    %c0_i32_39 = arith.constant 0 : i32
    %43 = tpu.memref_slice %arg8[%16, %c0_i32_37, %c0_i32_38, %c0_i32_39] : memref<2x12x48x128xbf16, #tpu.memory_space<vmem>> -> memref<1x12x48x128xbf16, #tpu.memory_space<vmem>>
    %44 = tpu.memref_squeeze %43 : memref<1x12x48x128xbf16, #tpu.memory_space<vmem>> -> memref<12x48x128xbf16, #tpu.memory_space<vmem>>
    %c1_40 = arith.constant 1 : index
    %c0_41 = arith.constant 0 : index
    %c0_42 = arith.constant 0 : index
    %45 = vector.load %44[%c1_40, %c0_41, %c0_42] : memref<12x48x128xbf16, #tpu.memory_space<vmem>>, vector<10x32x128xbf16>
    %46 = vector.shape_cast %45 : vector<10x32x128xbf16> to vector<320x128xbf16>
    %c0_43 = arith.constant 0 : index
    %c0_44 = arith.constant 0 : index
    %47 = vector.load %arg10[%c0_43, %c0_44] : memref<320x384xbf16, #tpu.memory_space<vmem>>, vector<320x128xbf16>
    tpu.vector_store %arg10[%c0_43, %c0_44], %46 {strides = array<i32>} : memref<320x384xbf16, #tpu.memory_space<vmem>>, vector<320x128xbf16>,
    %c0_i32_45 = arith.constant 0 : i32
    %c0_i32_46 = arith.constant 0 : i32
    %c0_i32_47 = arith.constant 0 : i32
    %48 = tpu.memref_slice %arg8[%16, %c0_i32_45, %c0_i32_46, %c0_i32_47] : memref<2x12x48x128xbf16, #tpu.memory_space<vmem>> -> memref<1x12x48x128xbf16, #tpu.memory_space<vmem>>
    %49 = tpu.memref_squeeze %48 : memref<1x12x48x128xbf16, #tpu.memory_space<vmem>> -> memref<12x48x128xbf16, #tpu.memory_space<vmem>>
    %c1_48 = arith.constant 1 : index
    %c1_49 = arith.constant 1 : index
    %c0_50 = arith.constant 0 : index
    %50 = vector.load %49[%c1_48, %c1_49, %c0_50] : memref<12x48x128xbf16, #tpu.memory_space<vmem>>, vector<10x32x128xbf16>
    %51 = vector.shape_cast %50 : vector<10x32x128xbf16> to vector<320x128xbf16>
    %c0_51 = arith.constant 0 : index
    %c128_52 = arith.constant 128 : index
    %52 = vector.load %arg10[%c0_51, %c128_52] : memref<320x384xbf16, #tpu.memory_space<vmem>>, vector<320x128xbf16>
    tpu.vector_store %arg10[%c0_51, %c128_52], %51 {strides = array<i32>} : memref<320x384xbf16, #tpu.memory_space<vmem>>, vector<320x128xbf16>,
    %c0_i32_53 = arith.constant 0 : i32
    %c0_i32_54 = arith.constant 0 : i32
    %c0_i32_55 = arith.constant 0 : i32
    %53 = tpu.memref_slice %arg8[%16, %c0_i32_53, %c0_i32_54, %c0_i32_55] : memref<2x12x48x128xbf16, #tpu.memory_space<vmem>> -> memref<1x12x48x128xbf16, #tpu.memory_space<vmem>>
    %54 = tpu.memref_squeeze %53 : memref<1x12x48x128xbf16, #tpu.memory_space<vmem>> -> memref<12x48x128xbf16, #tpu.memory_space<vmem>>
    %c1_56 = arith.constant 1 : index
    %c2_57 = arith.constant 2 : index
    %c0_58 = arith.constant 0 : index
    %55 = vector.load %54[%c1_56, %c2_57, %c0_58] : memref<12x48x128xbf16, #tpu.memory_space<vmem>>, vector<10x32x128xbf16>
    %56 = vector.shape_cast %55 : vector<10x32x128xbf16> to vector<320x128xbf16>
    %c0_59 = arith.constant 0 : index
    %c256_60 = arith.constant 256 : index
    %57 = vector.load %arg10[%c0_59, %c256_60] : memref<320x384xbf16, #tpu.memory_space<vmem>>, vector<320x128xbf16>
    tpu.vector_store %arg10[%c0_59, %c256_60], %56 {strides = array<i32>} : memref<320x384xbf16, #tpu.memory_space<vmem>>, vector<320x128xbf16>,
    %c0_61 = arith.constant 0 : index
    %c0_62 = arith.constant 0 : index
    %58 = vector.load %arg10[%c0_61, %c0_62] : memref<320x384xbf16, #tpu.memory_space<vmem>>, vector<320x384xbf16>
    %c1_63 = arith.constant 1 : index
    %c0_64 = arith.constant 0 : index
    %c0_65 = arith.constant 0 : index
    %59 = vector.load %arg3[%c1_63, %c0_64, %c0_65] : memref<3x384x128xbf16, #tpu.memory_space<vmem>>, vector<1x384x128xbf16>
    %60 = vector.shape_cast %59 : vector<1x384x128xbf16> to vector<384x128xbf16>
    %cst_66 = arith.constant dense<0.000000e+00> : vector<320x128xf32>
    %61 = tpu.matmul %58, %60, %cst_66 {dimension_numbers = #tpu.dot_dimension_numbers<[1], [0], [0], [1], [0, 0, 1, 1], [], []>} : vector<320x384xbf16>, vector<384x128xbf16>, vector<320x128xf32> -> vector<320x128xf32>
    %62 = arith.addf %42, %61 : vector<320x128xf32>
    %c0_i32_67 = arith.constant 0 : i32
    %c0_i32_68 = arith.constant 0 : i32
    %c0_i32_69 = arith.constant 0 : i32
    %63 = tpu.memref_slice %arg8[%16, %c0_i32_67, %c0_i32_68, %c0_i32_69] : memref<2x12x48x128xbf16, #tpu.memory_space<vmem>> -> memref<1x12x48x128xbf16, #tpu.memory_space<vmem>>
    %64 = tpu.memref_squeeze %63 : memref<1x12x48x128xbf16, #tpu.memory_space<vmem>> -> memref<12x48x128xbf16, #tpu.memory_space<vmem>>
    %c2_70 = arith.constant 2 : index
    %c0_71 = arith.constant 0 : index
    %c0_72 = arith.constant 0 : index
    %65 = vector.load %64[%c2_70, %c0_71, %c0_72] : memref<12x48x128xbf16, #tpu.memory_space<vmem>>, vector<10x32x128xbf16>
    %66 = vector.shape_cast %65 : vector<10x32x128xbf16> to vector<320x128xbf16>
    %c0_73 = arith.constant 0 : index
    %c0_74 = arith.constant 0 : index
    %67 = vector.load %arg10[%c0_73, %c0_74] : memref<320x384xbf16, #tpu.memory_space<vmem>>, vector<320x128xbf16>
    tpu.vector_store %arg10[%c0_73, %c0_74], %66 {strides = array<i32>} : memref<320x384xbf16, #tpu.memory_space<vmem>>, vector<320x128xbf16>,
    %c0_i32_75 = arith.constant 0 : i32
    %c0_i32_76 = arith.constant 0 : i32
    %c0_i32_77 = arith.constant 0 : i32
    %68 = tpu.memref_slice %arg8[%16, %c0_i32_75, %c0_i32_76, %c0_i32_77] : memref<2x12x48x128xbf16, #tpu.memory_space<vmem>> -> memref<1x12x48x128xbf16, #tpu.memory_space<vmem>>
    %69 = tpu.memref_squeeze %68 : memref<1x12x48x128xbf16, #tpu.memory_space<vmem>> -> memref<12x48x128xbf16, #tpu.memory_space<vmem>>
    %c2_78 = arith.constant 2 : index
    %c1_79 = arith.constant 1 : index
    %c0_80 = arith.constant 0 : index
    %70 = vector.load %69[%c2_78, %c1_79, %c0_80] : memref<12x48x128xbf16, #tpu.memory_space<vmem>>, vector<10x32x128xbf16>
    %71 = vector.shape_cast %70 : vector<10x32x128xbf16> to vector<320x128xbf16>
    %c0_81 = arith.constant 0 : index
    %c128_82 = arith.constant 128 : index
    %72 = vector.load %arg10[%c0_81, %c128_82] : memref<320x384xbf16, #tpu.memory_space<vmem>>, vector<320x128xbf16>
    tpu.vector_store %arg10[%c0_81, %c128_82], %71 {strides = array<i32>} : memref<320x384xbf16, #tpu.memory_space<vmem>>, vector<320x128xbf16>,
    %c0_i32_83 = arith.constant 0 : i32
    %c0_i32_84 = arith.constant 0 : i32
    %c0_i32_85 = arith.constant 0 : i32
    %73 = tpu.memref_slice %arg8[%16, %c0_i32_83, %c0_i32_84, %c0_i32_85] : memref<2x12x48x128xbf16, #tpu.memory_space<vmem>> -> memref<1x12x48x128xbf16, #tpu.memory_space<vmem>>
    %74 = tpu.memref_squeeze %73 : memref<1x12x48x128xbf16, #tpu.memory_space<vmem>> -> memref<12x48x128xbf16, #tpu.memory_space<vmem>>
    %c2_86 = arith.constant 2 : index
    %c2_87 = arith.constant 2 : index
    %c0_88 = arith.constant 0 : index
    %75 = vector.load %74[%c2_86, %c2_87, %c0_88] : memref<12x48x128xbf16, #tpu.memory_space<vmem>>, vector<10x32x128xbf16>
    %76 = vector.shape_cast %75 : vector<10x32x128xbf16> to vector<320x128xbf16>
    %c0_89 = arith.constant 0 : index
    %c256_90 = arith.constant 256 : index
    %77 = vector.load %arg10[%c0_89, %c256_90] : memref<320x384xbf16, #tpu.memory_space<vmem>>, vector<320x128xbf16>
    tpu.vector_store %arg10[%c0_89, %c256_90], %76 {strides = array<i32>} : memref<320x384xbf16, #tpu.memory_space<vmem>>, vector<320x128xbf16>,
    %c0_91 = arith.constant 0 : index
    %c0_92 = arith.constant 0 : index
    %78 = vector.load %arg10[%c0_91, %c0_92] : memref<320x384xbf16, #tpu.memory_space<vmem>>, vector<320x384xbf16>
    %c2_93 = arith.constant 2 : index
    %c0_94 = arith.constant 0 : index
    %c0_95 = arith.constant 0 : index
    %79 = vector.load %arg3[%c2_93, %c0_94, %c0_95] : memref<3x384x128xbf16, #tpu.memory_space<vmem>>, vector<1x384x128xbf16>
    %80 = vector.shape_cast %79 : vector<1x384x128xbf16> to vector<384x128xbf16>
    %cst_96 = arith.constant dense<0.000000e+00> : vector<320x128xf32>
    %81 = tpu.matmul %78, %80, %cst_96 {dimension_numbers = #tpu.dot_dimension_numbers<[1], [0], [0], [1], [0, 0, 1, 1], [], []>} : vector<320x384xbf16>, vector<384x128xbf16>, vector<320x128xf32> -> vector<320x128xf32>
    %82 = arith.addf %62, %81 : vector<320x128xf32>
    %c0_97 = arith.constant 0 : index
    %c0_98 = arith.constant 0 : index
    %83 = vector.load %arg4[%c0_97, %c0_98] : memref<1x128xf32, #tpu.memory_space<vmem>>, vector<1x128xf32>
    %84 = vector.broadcast %83 : vector<1x128xf32> to vector<320x128xf32>
    %85 = arith.addf %82, %84 : vector<320x128xf32>
    %cst_99 = arith.constant 0.000000e+00 : f32
    %86 = vector.broadcast %cst_99 : f32 to vector<320x128xf32>
    %87 = arith.maximumf %85, %86 : vector<320x128xf32>
    %88 = vector.shape_cast %87 : vector<320x128xf32> to vector<10x32x128xf32>
    %89 = tpu.iota {dimensions = array<i32: 0>} : vector<10x32x1xi32>
    %90 = tpu.iota {dimensions = array<i32: 1>} : vector<10x32x1xi32>
    %c8_i32_100 = arith.constant 8 : i32
    %91 = arith.muli %arg1, %c8_i32_100 : i32
    %92 = vector.broadcast %91 : i32 to vector<10x32x1xi32>
    %93 = arith.addi %92, %89 : vector<10x32x1xi32>
    %c1_i32_101 = arith.constant 1 : i32
    %94 = vector.broadcast %c1_i32_101 : i32 to vector<10x32x1xi32>
    %95 = arith.subi %93, %94 : vector<10x32x1xi32>
    %c0_i32_102 = arith.constant 0 : i32
    %96 = vector.broadcast %c0_i32_102 : i32 to vector<10x32x1xi32>
    %97 = arith.cmpi sge, %95, %96 : vector<10x32x1xi32>
    %c16_i32 = arith.constant 16 : i32
    %98 = vector.broadcast %c16_i32 : i32 to vector<10x32x1xi32>
    %99 = arith.cmpi slt, %95, %98 : vector<10x32x1xi32>
    %100 = arith.andi %97, %99 : vector<10x32x1xi1>
    %c1_i32_103 = arith.constant 1 : i32
    %101 = vector.broadcast %c1_i32_103 : i32 to vector<10x32x1xi32>
    %102 = arith.cmpi sge, %90, %101 : vector<10x32x1xi32>
    %103 = arith.andi %100, %102 : vector<10x32x1xi1>
    %c16_i32_104 = arith.constant 16 : i32
    %104 = vector.broadcast %c16_i32_104 : i32 to vector<10x32x1xi32>
    %105 = arith.cmpi sle, %90, %104 : vector<10x32x1xi32>
    %106 = arith.andi %103, %105 : vector<10x32x1xi1>
    %cst_105 = arith.constant 0.000000e+00 : f32
    %107 = vector.shape_cast %106 : vector<10x32x1xi1> to vector<10x32x1xi1>
    %108 = vector.broadcast %107 : vector<10x32x1xi1> to vector<10x32x128xi1>
    %109 = vector.broadcast %cst_105 : f32 to vector<10x32x128xf32>
    %110 = arith.select %108, %88, %109 : vector<10x32x128xi1>, vector<10x32x128xf32>
    %111 = arith.truncf %110 : vector<10x32x128xf32> to vector<10x32x128xbf16>
    %c0_106 = arith.constant 0 : index
    %c0_107 = arith.constant 0 : index
    %c0_108 = arith.constant 0 : index
    %112 = vector.load %arg11[%c0_106, %c0_107, %c0_108] : memref<10x32x128xbf16, #tpu.memory_space<vmem>>, vector<10x32x128xbf16>
    tpu.vector_store %arg11[%c0_106, %c0_107, %c0_108], %111 {strides = array<i32>} : memref<10x32x128xbf16, #tpu.memory_space<vmem>>, vector<10x32x128xbf16>,
    %c0_109 = arith.constant 0 : index
    %c0_110 = arith.constant 0 : index
    %c0_111 = arith.constant 0 : index
    %113 = vector.load %arg11[%c0_109, %c0_110, %c0_111] : memref<10x32x128xbf16, #tpu.memory_space<vmem>>, vector<8x16x128xbf16>
    %114 = vector.shape_cast %113 : vector<8x16x128xbf16> to vector<128x128xbf16>
    %c0_112 = arith.constant 0 : index
    %c0_113 = arith.constant 0 : index
    %115 = vector.load %arg10[%c0_112, %c0_113] : memref<320x384xbf16, #tpu.memory_space<vmem>>, vector<128x128xbf16>
    tpu.vector_store %arg10[%c0_112, %c0_113], %114 {strides = array<i32>} : memref<320x384xbf16, #tpu.memory_space<vmem>>, vector<128x128xbf16>,
    %c0_114 = arith.constant 0 : index
    %c1_115 = arith.constant 1 : index
    %c0_116 = arith.constant 0 : index
    %116 = vector.load %arg11[%c0_114, %c1_115, %c0_116] : memref<10x32x128xbf16, #tpu.memory_space<vmem>>, vector<8x16x128xbf16>
    %117 = vector.shape_cast %116 : vector<8x16x128xbf16> to vector<128x128xbf16>
    %c0_117 = arith.constant 0 : index
    %c128_118 = arith.constant 128 : index
    %118 = vector.load %arg10[%c0_117, %c128_118] : memref<320x384xbf16, #tpu.memory_space<vmem>>, vector<128x128xbf16>
    tpu.vector_store %arg10[%c0_117, %c128_118], %117 {strides = array<i32>} : memref<320x384xbf16, #tpu.memory_space<vmem>>, vector<128x128xbf16>,
    %c0_119 = arith.constant 0 : index
    %c2_120 = arith.constant 2 : index
    %c0_121 = arith.constant 0 : index
    %119 = vector.load %arg11[%c0_119, %c2_120, %c0_121] : memref<10x32x128xbf16, #tpu.memory_space<vmem>>, vector<8x16x128xbf16>
    %120 = vector.shape_cast %119 : vector<8x16x128xbf16> to vector<128x128xbf16>
    %c0_122 = arith.constant 0 : index
    %c256_123 = arith.constant 256 : index
    %121 = vector.load %arg10[%c0_122, %c256_123] : memref<320x384xbf16, #tpu.memory_space<vmem>>, vector<128x128xbf16>
    tpu.vector_store %arg10[%c0_122, %c256_123], %120 {strides = array<i32>} : memref<320x384xbf16, #tpu.memory_space<vmem>>, vector<128x128xbf16>,
    %c0_124 = arith.constant 0 : index
    %c0_125 = arith.constant 0 : index
    %122 = vector.load %arg10[%c0_124, %c0_125] : memref<320x384xbf16, #tpu.memory_space<vmem>>, vector<128x384xbf16>
    %c0_126 = arith.constant 0 : index
    %c0_127 = arith.constant 0 : index
    %c0_128 = arith.constant 0 : index
    %123 = vector.load %arg5[%c0_126, %c0_127, %c0_128] : memref<3x384x128xbf16, #tpu.memory_space<vmem>>, vector<1x384x128xbf16>
    %124 = vector.shape_cast %123 : vector<1x384x128xbf16> to vector<384x128xbf16>
    %cst_129 = arith.constant dense<0.000000e+00> : vector<128x128xf32>
    %125 = tpu.matmul %122, %124, %cst_129 {dimension_numbers = #tpu.dot_dimension_numbers<[1], [0], [0], [1], [0, 0, 1, 1], [], []>} : vector<128x384xbf16>, vector<384x128xbf16>, vector<128x128xf32> -> vector<128x128xf32>
    %c1_130 = arith.constant 1 : index
    %c0_131 = arith.constant 0 : index
    %c0_132 = arith.constant 0 : index
    %126 = vector.load %arg11[%c1_130, %c0_131, %c0_132] : memref<10x32x128xbf16, #tpu.memory_space<vmem>>, vector<8x16x128xbf16>
    %127 = vector.shape_cast %126 : vector<8x16x128xbf16> to vector<128x128xbf16>
    %c0_133 = arith.constant 0 : index
    %c0_134 = arith.constant 0 : index
    %128 = vector.load %arg10[%c0_133, %c0_134] : memref<320x384xbf16, #tpu.memory_space<vmem>>, vector<128x128xbf16>
    tpu.vector_store %arg10[%c0_133, %c0_134], %127 {strides = array<i32>} : memref<320x384xbf16, #tpu.memory_space<vmem>>, vector<128x128xbf16>,
    %c1_135 = arith.constant 1 : index
    %c1_136 = arith.constant 1 : index
    %c0_137 = arith.constant 0 : index
    %129 = vector.load %arg11[%c1_135, %c1_136, %c0_137] : memref<10x32x128xbf16, #tpu.memory_space<vmem>>, vector<8x16x128xbf16>
    %130 = vector.shape_cast %129 : vector<8x16x128xbf16> to vector<128x128xbf16>
    %c0_138 = arith.constant 0 : index
    %c128_139 = arith.constant 128 : index
    %131 = vector.load %arg10[%c0_138, %c128_139] : memref<320x384xbf16, #tpu.memory_space<vmem>>, vector<128x128xbf16>
    tpu.vector_store %arg10[%c0_138, %c128_139], %130 {strides = array<i32>} : memref<320x384xbf16, #tpu.memory_space<vmem>>, vector<128x128xbf16>,
    %c1_140 = arith.constant 1 : index
    %c2_141 = arith.constant 2 : index
    %c0_142 = arith.constant 0 : index
    %132 = vector.load %arg11[%c1_140, %c2_141, %c0_142] : memref<10x32x128xbf16, #tpu.memory_space<vmem>>, vector<8x16x128xbf16>
    %133 = vector.shape_cast %132 : vector<8x16x128xbf16> to vector<128x128xbf16>
    %c0_143 = arith.constant 0 : index
    %c256_144 = arith.constant 256 : index
    %134 = vector.load %arg10[%c0_143, %c256_144] : memref<320x384xbf16, #tpu.memory_space<vmem>>, vector<128x128xbf16>
    tpu.vector_store %arg10[%c0_143, %c256_144], %133 {strides = array<i32>} : memref<320x384xbf16, #tpu.memory_space<vmem>>, vector<128x128xbf16>,
    %c0_145 = arith.constant 0 : index
    %c0_146 = arith.constant 0 : index
    %135 = vector.load %arg10[%c0_145, %c0_146] : memref<320x384xbf16, #tpu.memory_space<vmem>>, vector<128x384xbf16>
    %c1_147 = arith.constant 1 : index
    %c0_148 = arith.constant 0 : index
    %c0_149 = arith.constant 0 : index
    %136 = vector.load %arg5[%c1_147, %c0_148, %c0_149] : memref<3x384x128xbf16, #tpu.memory_space<vmem>>, vector<1x384x128xbf16>
    %137 = vector.shape_cast %136 : vector<1x384x128xbf16> to vector<384x128xbf16>
    %cst_150 = arith.constant dense<0.000000e+00> : vector<128x128xf32>
    %138 = tpu.matmul %135, %137, %cst_150 {dimension_numbers = #tpu.dot_dimension_numbers<[1], [0], [0], [1], [0, 0, 1, 1], [], []>} : vector<128x384xbf16>, vector<384x128xbf16>, vector<128x128xf32> -> vector<128x128xf32>
    %139 = arith.addf %125, %138 : vector<128x128xf32>
    %c2_151 = arith.constant 2 : index
    %c0_152 = arith.constant 0 : index
    %c0_153 = arith.constant 0 : index
    %140 = vector.load %arg11[%c2_151, %c0_152, %c0_153] : memref<10x32x128xbf16, #tpu.memory_space<vmem>>, vector<8x16x128xbf16>
    %141 = vector.shape_cast %140 : vector<8x16x128xbf16> to vector<128x128xbf16>
    %c0_154 = arith.constant 0 : index
    %c0_155 = arith.constant 0 : index
    %142 = vector.load %arg10[%c0_154, %c0_155] : memref<320x384xbf16, #tpu.memory_space<vmem>>, vector<128x128xbf16>
    tpu.vector_store %arg10[%c0_154, %c0_155], %141 {strides = array<i32>} : memref<320x384xbf16, #tpu.memory_space<vmem>>, vector<128x128xbf16>,
    %c2_156 = arith.constant 2 : index
    %c1_157 = arith.constant 1 : index
    %c0_158 = arith.constant 0 : index
    %143 = vector.load %arg11[%c2_156, %c1_157, %c0_158] : memref<10x32x128xbf16, #tpu.memory_space<vmem>>, vector<8x16x128xbf16>
    %144 = vector.shape_cast %143 : vector<8x16x128xbf16> to vector<128x128xbf16>
    %c0_159 = arith.constant 0 : index
    %c128_160 = arith.constant 128 : index
    %145 = vector.load %arg10[%c0_159, %c128_160] : memref<320x384xbf16, #tpu.memory_space<vmem>>, vector<128x128xbf16>
    tpu.vector_store %arg10[%c0_159, %c128_160], %144 {strides = array<i32>} : memref<320x384xbf16, #tpu.memory_space<vmem>>, vector<128x128xbf16>,
    %c2_161 = arith.constant 2 : index
    %c2_162 = arith.constant 2 : index
    %c0_163 = arith.constant 0 : index
    %146 = vector.load %arg11[%c2_161, %c2_162, %c0_163] : memref<10x32x128xbf16, #tpu.memory_space<vmem>>, vector<8x16x128xbf16>
    %147 = vector.shape_cast %146 : vector<8x16x128xbf16> to vector<128x128xbf16>
    %c0_164 = arith.constant 0 : index
    %c256_165 = arith.constant 256 : index
    %148 = vector.load %arg10[%c0_164, %c256_165] : memref<320x384xbf16, #tpu.memory_space<vmem>>, vector<128x128xbf16>
    tpu.vector_store %arg10[%c0_164, %c256_165], %147 {strides = array<i32>} : memref<320x384xbf16, #tpu.memory_space<vmem>>, vector<128x128xbf16>,
    %c0_166 = arith.constant 0 : index
    %c0_167 = arith.constant 0 : index
    %149 = vector.load %arg10[%c0_166, %c0_167] : memref<320x384xbf16, #tpu.memory_space<vmem>>, vector<128x384xbf16>
    %c2_168 = arith.constant 2 : index
    %c0_169 = arith.constant 0 : index
    %c0_170 = arith.constant 0 : index
    %150 = vector.load %arg5[%c2_168, %c0_169, %c0_170] : memref<3x384x128xbf16, #tpu.memory_space<vmem>>, vector<1x384x128xbf16>
    %151 = vector.shape_cast %150 : vector<1x384x128xbf16> to vector<384x128xbf16>
    %cst_171 = arith.constant dense<0.000000e+00> : vector<128x128xf32>
    %152 = tpu.matmul %149, %151, %cst_171 {dimension_numbers = #tpu.dot_dimension_numbers<[1], [0], [0], [1], [0, 0, 1, 1], [], []>} : vector<128x384xbf16>, vector<384x128xbf16>, vector<128x128xf32> -> vector<128x128xf32>
    %153 = arith.addf %139, %152 : vector<128x128xf32>
    %c0_i32_172 = arith.constant 0 : i32
    %c0_i32_173 = arith.constant 0 : i32
    %c0_i32_174 = arith.constant 0 : i32
    %154 = tpu.memref_slice %arg8[%16, %c0_i32_172, %c0_i32_173, %c0_i32_174] : memref<2x12x48x128xbf16, #tpu.memory_space<vmem>> -> memref<1x12x48x128xbf16, #tpu.memory_space<vmem>>
    %155 = tpu.memref_squeeze %154 : memref<1x12x48x128xbf16, #tpu.memory_space<vmem>> -> memref<12x48x128xbf16, #tpu.memory_space<vmem>>
    %c2_175 = arith.constant 2 : index
    %c2_176 = arith.constant 2 : index
    %c0_177 = arith.constant 0 : index
    %156 = vector.load %155[%c2_175, %c2_176, %c0_177] : memref<12x48x128xbf16, #tpu.memory_space<vmem>>, vector<8x16x128xbf16>
    %157 = arith.extf %156 : vector<8x16x128xbf16> to vector<8x16x128xf32>
    %158 = vector.shape_cast %157 : vector<8x16x128xf32> to vector<128x128xf32>
    %c0_178 = arith.constant 0 : index
    %c0_179 = arith.constant 0 : index
    %159 = vector.load %arg6[%c0_178, %c0_179] : memref<1x128xf32, #tpu.memory_space<vmem>>, vector<1x128xf32>
    %160 = vector.broadcast %159 : vector<1x128xf32> to vector<128x128xf32>
    %161 = arith.addf %153, %160 : vector<128x128xf32>
    %162 = arith.addf %161, %158 : vector<128x128xf32>
    %cst_180 = arith.constant 0.000000e+00 : f32
    %163 = vector.broadcast %cst_180 : f32 to vector<128x128xf32>
    %164 = arith.maximumf %162, %163 : vector<128x128xf32>
    %165 = vector.shape_cast %164 : vector<128x128xf32> to vector<8x16x128xf32>
    %166 = arith.truncf %165 : vector<8x16x128xf32> to vector<8x16x128xbf16>
    %c0_181 = arith.constant 0 : index
    %c0_182 = arith.constant 0 : index
    %c0_183 = arith.constant 0 : index
    %c0_184 = arith.constant 0 : index
    %167 = vector.load %arg7[%c0_181, %c0_182, %c0_183, %c0_184] : memref<1x8x16x128xbf16, #tpu.memory_space<vmem>>, vector<1x8x16x128xbf16>
    %168 = vector.shape_cast %167 : vector<1x8x16x128xbf16> to vector<8x16x128xbf16>
    %169 = vector.shape_cast %166 : vector<8x16x128xbf16> to vector<1x8x16x128xbf16>
    tpu.vector_store %arg7[%c0_181, %c0_182, %c0_183, %c0_184], %169 {strides = array<i32>} : memref<1x8x16x128xbf16, #tpu.memory_space<vmem>>, vector<1x8x16x128xbf16>,
    return
  }
  func.func @transform_1(%arg0: i32, %arg1: i32) -> (i32, i32, i32) {
    %c0_i32 = arith.constant 0 : i32
    %c0_i32_0 = arith.constant 0 : i32
    %c0_i32_1 = arith.constant 0 : i32
    %c0_i32_2 = arith.constant 0 : i32
    return %c0_i32, %c0_i32_0, %c0_i32_1 : i32, i32, i32
  }
  func.func @transform_2(%arg0: i32, %arg1: i32) -> (i32, i32) {
    %c0_i32 = arith.constant 0 : i32
    %c0_i32_0 = arith.constant 0 : i32
    %c0_i32_1 = arith.constant 0 : i32
    return %c0_i32, %c0_i32_0 : i32, i32
  }
  func.func @transform_3(%arg0: i32, %arg1: i32) -> (i32, i32, i32) {
    %c0_i32 = arith.constant 0 : i32
    %c0_i32_0 = arith.constant 0 : i32
    %c0_i32_1 = arith.constant 0 : i32
    %c0_i32_2 = arith.constant 0 : i32
    return %c0_i32, %c0_i32_0, %c0_i32_1 : i32, i32, i32
  }
  func.func @transform_4(%arg0: i32, %arg1: i32) -> (i32, i32) {
    %c0_i32 = arith.constant 0 : i32
    %c0_i32_0 = arith.constant 0 : i32
    %c0_i32_1 = arith.constant 0 : i32
    return %c0_i32, %c0_i32_0 : i32, i32
  }
  func.func @transform_5(%arg0: i32, %arg1: i32) -> (i32, i32, i32, i32) {
    %c0_i32 = arith.constant 0 : i32
    %c0_i32_0 = arith.constant 0 : i32
    %c0_i32_1 = arith.constant 0 : i32
    return %arg0, %arg1, %c0_i32, %c0_i32_0 : i32, i32, i32, i32
  }
}

</mosaic_0001>

<bundles_post_ra>
// kernel: basic_block_pallas.1
= control target key start
LH: loop header
LB: loop body
LE: loop exit
PB: predicated region body
PF: predicated region fallthrough
CT: control target
= control target key end

     0   :  { %s12535_s18 = smov 0   ;;  %s12537_s19 = smov 0   ;;  %s16937_s0 = inlined_call_operand.vmem [shape: bf16[2,20,48,128], index: 0, kind: input, shape index: {}]   ;;  %s16938_s1 = inlined_call_operand.vmem [shape: bf16[3,384,128], index: 1, kind: input, shape index: {}]   ;;  %s16939_s2 = inlined_call_operand.vmem [shape: f32[1,128], index: 2, kind: input, shape index: {}]   ;;  %s16940_s3 = inlined_call_operand.vmem [shape: bf16[3,384,128], index: 3, kind: input, shape index: {}]   ;;  %s16941_s4 = inlined_call_operand.vmem [shape: f32[1,128], index: 4, kind: input, shape index: {}]   ;;  %s16942_s5 = inlined_call_operand.vmem [shape: bf16[2,16,16,128], index: 5, kind: output, shape index: {}]  }
   0x1   :  { %s12539_s20 = smov 0   ;;  %s12541_s21 = smov 0  }
   0x2   :  { %s12543_s22 = smov 0  }
   0x3 LB: > { %s24_s23 = sadd.s32 1, %s12493_s20  ;;  %s27_s24 = sadd.s32 1, %s12497_s21  ;;  %s12501_s22 = sphi %s12543_s22, %s15_s22   ;;  %s12497_s21 = sphi %s12541_s21, %s17236_s21   ;;  %s12493_s20 = sphi %s12539_s20, %s17235_s20   ;;  %s12489_s19 = sphi %s12537_s19, %s17234_s19   ;;  %s12485_s18 = sphi %s12535_s18, %s17233_s18  }
   0x4   : > { %p25_p0 = scmp.ge.s32.totalorder %s24_s23, 2  ;;  %p10193_p1 = scmp.ge.s32.totalorder %s12501_s22, 1 }
   0x5   : > { %p167_p2 = scmp.lt.s32.totalorder %s12501_s22, 5 }
   0x6   : > { %s17238_s23 = smov (%p25_p0, %s24_s23), 0  ;;  %s17240_s24 = smov (!%p25_p0, %s27_s24), %s12497_s21 }
   0x7   : > { %p168_p3 = pnand %p10193_p1, %p167_p2  ;;  %p29_p4 = scmp.ge.s32.totalorder %s17240_s24, 2 }
   0x9   : > { %s17242_s24 = smov (%p29_p4, %s17240_s24), 0  ;;  %171 = sbr.rel (%p168_p3) target bundleno = 1393 (0x571), region = 36 }
   0xe   : > { %s12570_s25 = sshll.u32 %s12485_s18, 3  ;;  %p194_p5 = scmp.lt.s32.totalorder %s12489_s19, 1 }
   0xf   : > { %p196_p6 = scmp.lt.s32.totalorder %s12570_s25, 15  ;;  %p10198_p7 = scmp.ne.s32.totalorder %s12485_s18, 0 }
  0x10   : > { %s195_s26 = scalar_select %p194_p5, %s12489_s19, 1 }
  0x11   : > { %s197_s27 = scalar_select %p196_p6, %s12570_s25, 15 }
  0x12   : > { %s10196_s28 = sshll.u32 %s195_s26, 5  ;;  %208 = sbr.rel (%p10198_p7) target bundleno = 43 (0x2b), region = 40 }
  0x13   : > { %s10195_s29 = sshll.u32 %s197_s27, 1  ;;  %s11265_s10 = smul.u32 (!%p10198_p7), 480, %s12489_s19 }
  0x14   : > { %s200_s30 = sadd.s32 %s10196_s28, %s10195_s29 }
  0x15   : > { %s10197_s6 = sshll.u32 %s200_s30, 2  ;;  %s12586_s13 = scalar_lea.vmem (!%p10198_p7), %s16937_s0, %s11265_s10 }
  0x16   : > { %s12579_s9 = scalar_lea.vmem %s16942_s5, %s10197_s6 }
  0x17   : > { %v245_v0 = vld [vmem:[%s12586_s13] sm:$0xff]  ;;  %v247_v1 = vld [vmem:[%s12586_s13 + $0x8] sm:$0xff]  ;;  %v249_v2 = vld [vmem:[%s12586_s13 + $0x10] sm:$0xff] }
  0x18   : > { %246 = vst [vmem:[#allocation2] sm:$0xff] %v245_v0  ;;  %248 = vst [vmem:[#allocation2 + $0x8] sm:$0xff] %v247_v1  ;;  %v251_v3 = vld [vmem:[%s12586_s13 + $0x18] sm:$0xff]  ;;  %v253_v4 = vld [vmem:[%s12586_s13 + $0x20] sm:$0xff] }
  0x19   : > { %250 = vst [vmem:[#allocation2 + $0x10] sm:$0xff] %v249_v2  ;;  %v255_v5 = vld [vmem:[%s12586_s13 + $0x28] sm:$0xff]  ;;  %252 = vst [vmem:[#allocation2 + $0x18] sm:$0xff] %v251_v3  ;;  %v257_v6 = vld [vmem:[%s12586_s13 + $0x30] sm:$0xff] }
  0x1a   : > { %254 = vst [vmem:[#allocation2 + $0x20] sm:$0xff] %v253_v4  ;;  %256 = vst [vmem:[#allocation2 + $0x28] sm:$0xff] %v255_v5  ;;  %v259_v7 = vld [vmem:[%s12586_s13 + $0x38] sm:$0xff]  ;;  %v261_v8 = vld [vmem:[%s12586_s13 + $0x40] sm:$0xff] }
  0x1b   : > { %258 = vst [vmem:[#allocation2 + $0x30] sm:$0xff] %v257_v6  ;;  %260 = vst [vmem:[#allocation2 + $0x38] sm:$0xff] %v259_v7  ;;  %v263_v9 = vld [vmem:[%s12586_s13 + $0x48] sm:$0xff]  ;;  %v265_v10 = vld [vmem:[%s12586_s13 + $0x50] sm:$0xff] }
  0x1c   : > { %262 = vst [vmem:[#allocation2 + $0x40] sm:$0xff] %v261_v8  ;;  %v267_v11 = vld [vmem:[%s12586_s13 + $0x58] sm:$0xff]  ;;  %264 = vst [vmem:[#allocation2 + $0x48] sm:$0xff] %v263_v9  ;;  %v269_v12 = vld [vmem:[%s12586_s13 + $0x60] sm:$0xff] }
  0x1d   : > { %266 = vst [vmem:[#allocation2 + $0x50] sm:$0xff] %v265_v10  ;;  %268 = vst [vmem:[#allocation2 + $0x58] sm:$0xff] %v267_v11  ;;  %v271_v13 = vld [vmem:[%s12586_s13 + $0x68] sm:$0xff]  ;;  %v273_v14 = vld [vmem:[%s12586_s13 + $0x70] sm:$0xff] }
  0x1e   : > { %270 = vst [vmem:[#allocation2 + $0x60] sm:$0xff] %v269_v12  ;;  %272 = vst [vmem:[#allocation2 + $0x68] sm:$0xff] %v271_v13  ;;  %v275_v15 = vld [vmem:[%s12586_s13 + $0x78] sm:$0xff]  ;;  %v277_v16 = vld [vmem:[%s12586_s13 + $0x80] sm:$0xff] }
  0x1f   : > { %274 = vst [vmem:[#allocation2 + $0x70] sm:$0xff] %v273_v14  ;;  %v279_v17 = vld [vmem:[%s12586_s13 + $0x88] sm:$0xff]  ;;  %276 = vst [vmem:[#allocation2 + $0x78] sm:$0xff] %v275_v15  ;;  %v281_v18 = vld [vmem:[%s12586_s13 + $0x90] sm:$0xff] }
  0x20   : > { %278 = vst [vmem:[#allocation2 + $0x80] sm:$0xff] %v277_v16  ;;  %280 = vst [vmem:[#allocation2 + $0x88] sm:$0xff] %v279_v17  ;;  %v283_v19 = vld [vmem:[%s12586_s13 + $0x98] sm:$0xff]  ;;  %v285_v20 = vld [vmem:[%s12586_s13 + $0xa0] sm:$0xff] }
  0x21   : > { %282 = vst [vmem:[#allocation2 + $0x90] sm:$0xff] %v281_v18  ;;  %284 = vst [vmem:[#allocation2 + $0x98] sm:$0xff] %v283_v19  ;;  %v287_v21 = vld [vmem:[%s12586_s13 + $0xa8] sm:$0xff]  ;;  %v289_v22 = vld [vmem:[%s12586_s13 + $0xb0] sm:$0xff] }
  0x22   : > { %286 = vst [vmem:[#allocation2 + $0xa0] sm:$0xff] %v285_v20  ;;  %v291_v23 = vld [vmem:[%s12586_s13 + $0xb8] sm:$0xff]  ;;  %288 = vst [vmem:[#allocation2 + $0xa8] sm:$0xff] %v287_v21  ;;  %v293_v24 = vld [vmem:[%s12586_s13 + $0xc0] sm:$0xff] }
  0x23   : > { %290 = vst [vmem:[#allocation2 + $0xb0] sm:$0xff] %v289_v22  ;;  %292 = vst [vmem:[#allocation2 + $0xb8] sm:$0xff] %v291_v23  ;;  %v295_v25 = vld [vmem:[%s12586_s13 + $0xc8] sm:$0xff]  ;;  %v297_v26 = vld [vmem:[%s12586_s13 + $0xd0] sm:$0xff] }
  0x24   : > { %294 = vst [vmem:[#allocation2 + $0xc0] sm:$0xff] %v293_v24  ;;  %296 = vst [vmem:[#allocation2 + $0xc8] sm:$0xff] %v295_v25  ;;  %v299_v27 = vld [vmem:[%s12586_s13 + $0xd8] sm:$0xff]  ;;  %v301_v28 = vld [vmem:[%s12586_s13 + $0xe0] sm:$0xff] }
  0x25   : > { %298 = vst [vmem:[#allocation2 + $0xd0] sm:$0xff] %v297_v26  ;;  %v303_v29 = vld [vmem:[%s12586_s13 + $0xe8] sm:$0xff]  ;;  %300 = vst [vmem:[#allocation2 + $0xd8] sm:$0xff] %v299_v27  ;;  %v305_v30 = vld [vmem:[%s12586_s13 + $0xf0] sm:$0xff] }
  0x26   : > { %302 = vst [vmem:[#allocation2 + $0xe0] sm:$0xff] %v301_v28  ;;  %304 = vst [vmem:[#allocation2 + $0xe8] sm:$0xff] %v303_v29  ;;  %v307_v31 = vld [vmem:[%s12586_s13 + $0xf8] sm:$0xff]  ;;  %v309_v32 = vld [vmem:[%s12586_s13 + $0x100] sm:$0xff] }
  0x27   : > { %306 = vst [vmem:[#allocation2 + $0xf0] sm:$0xff] %v305_v30  ;;  %308 = vst [vmem:[#allocation2 + $0xf8] sm:$0xff] %v307_v31  ;;  %v311_v33 = vld [vmem:[%s12586_s13 + $0x108] sm:$0xff]  ;;  %v313_v34 = vld [vmem:[%s12586_s13 + $0x110] sm:$0xff] }
  0x28   : > { %310 = vst [vmem:[#allocation2 + $0x100] sm:$0xff] %v309_v32  ;;  %v315_v35 = vld [vmem:[%s12586_s13 + $0x118] sm:$0xff]  ;;  %312 = vst [vmem:[#allocation2 + $0x108] sm:$0xff] %v311_v33 }
  0x29   : > { %314 = vst [vmem:[#allocation2 + $0x110] sm:$0xff] %v313_v34  ;;  %316 = vst [vmem:[#allocation2 + $0x118] sm:$0xff] %v315_v35 }
  0x2a   : > { %324 = vsyncadd [#allocation3], 4608 }
  0x2b PF: > { %s325_s14 = sadd.s32 1, %s12485_s18 }
  0x2c   : > { %p10200_p8 = scmp.ge.s32.totalorder %s325_s14, 2 }
  0x2d   : > { %p330_p9 = scmp.lt.s32.totalorder (!%p10200_p8), %s325_s14, 0  ;;  %s331_s15 = ssub.s32 (!%p10200_p8), 0, %s325_s14 }
  0x2e   : > { %329 = sbr.rel (%p10200_p8) target bundleno = 77 (0x4d), region = 78  ;;  %s10201_s16 = smin.u32 (!%p10200_p8), %s331_s15, %s325_s14 }
  0x2f   : > { %s10126_s17 = smul.u32 (!%p10200_p8), 48, %s12485_s18  ;;  %s333_s26 = sand.u32 (!%p10200_p8), 1, %s10201_s16  }
  0x30   : > { %s10127_s27 = smul.u32 (!%p10200_p8), 120, %s12489_s19  ;;  %s334_s28 = ssub.s32 (!%p10200_p8), 0, %s333_s26 }
  0x32   : > { %s10128_s29 = sadd.s32 (!%p10200_p8), %s10127_s27, %s10126_s17 }
  0x33   : > { %s17244_s28 = smov (!%p330_p9, %s334_s28), %s333_s26  ;;  %s10204_s6 = sshll.u32 %s10128_s29, 2 }
  0x34   : > { %p10203_p10 = scmp.lt.s32.totalorder %s17244_s28, 0  ;;  %s340_s30 = sadd.s32 2, %s17244_s28 }
  0x35   : > { %s12632_s10 = scalar_lea.vmem %s16937_s0, %s10204_s6 }
  0x36   : > { %s17246_s30 = smov (!%p10203_p10, %s340_s30), %s17244_s28  ;;  %v10206_v36 = vld [vmem:[%s12632_s10 + $0xc0] sm:$0xff]  ;;  %v10207_v37 = vld [vmem:[%s12632_s10 + $0xc8] sm:$0xff]  ;;  %v10208_v38 = vld [vmem:[%s12632_s10 + $0xd0] sm:$0xff] }
  0x37   : > { %s11266_s19 = smul.u32 288, %s17246_s30  ;;  %v10209_v39 = vld [vmem:[%s12632_s10 + $0xd8] sm:$0xff]  ;;  %v10210_v40 = vld [vmem:[%s12632_s10 + $0xe0] sm:$0xff]  ;;  %v10211_v41 = vld [vmem:[%s12632_s10 + $0xe8] sm:$0xff]  ;;  %s351_s12 = scalar_lea.sflag [#allocation3], %s17246_s30 }
  0x38   : > { %v10212_v42 = vld [vmem:[%s12632_s10 + $0xf0] sm:$0xff]  ;;  %v10213_v43 = vld [vmem:[%s12632_s10 + $0xf8] sm:$0xff]  ;;  %v10214_v44 = vld [vmem:[%s12632_s10 + $0x100] sm:$0xff] }
  0x39   : > { %s12644_s11 = scalar_lea.vmem [#allocation2], %s11266_s19  ;;  %v10215_v45 = vld [vmem:[%s12632_s10 + $0x108] sm:$0xff]  ;;  %v10216_v46 = vld [vmem:[%s12632_s10 + $0x110] sm:$0xff]  ;;  %v10217_v47 = vld [vmem:[%s12632_s10 + $0x118] sm:$0xff] }
  0x3a   : > { %386 = vst [vmem:[%s12644_s11] sm:$0xff] %v10206_v36  ;;  %388 = vst [vmem:[%s12644_s11 + $0x8] sm:$0xff] %v10207_v37  ;;  %v10218_v48 = vld [vmem:[%s12632_s10 + $0x120] sm:$0xff]  ;;  %v10219_v49 = vld [vmem:[%s12632_s10 + $0x128] sm:$0xff] }
  0x3b   : > { %390 = vst [vmem:[%s12644_s11 + $0x10] sm:$0xff] %v10208_v38  ;;  %392 = vst [vmem:[%s12644_s11 + $0x18] sm:$0xff] %v10209_v39  ;;  %v10220_v50 = vld [vmem:[%s12632_s10 + $0x130] sm:$0xff]  ;;  %v10221_v51 = vld [vmem:[%s12632_s10 + $0x138] sm:$0xff] }
  0x3c   : > { %394 = vst [vmem:[%s12644_s11 + $0x20] sm:$0xff] %v10210_v40  ;;  %396 = vst [vmem:[%s12644_s11 + $0x28] sm:$0xff] %v10211_v41  ;;  %v10222_v52 = vld [vmem:[%s12632_s10 + $0x140] sm:$0xff]  ;;  %v10223_v53 = vld [vmem:[%s12632_s10 + $0x148] sm:$0xff] }
  0x3d   : > { %398 = vst [vmem:[%s12644_s11 + $0x30] sm:$0xff] %v10212_v42  ;;  %400 = vst [vmem:[%s12644_s11 + $0x38] sm:$0xff] %v10213_v43  ;;  %v10224_v54 = vld [vmem:[%s12632_s10 + $0x150] sm:$0xff]  ;;  %v10225_v55 = vld [vmem:[%s12632_s10 + $0x158] sm:$0xff] }
  0x3e   : > { %402 = vst [vmem:[%s12644_s11 + $0x40] sm:$0xff] %v10214_v44  ;;  %404 = vst [vmem:[%s12644_s11 + $0x48] sm:$0xff] %v10215_v45  ;;  %v10226_v56 = vld [vmem:[%s12632_s10 + $0x160] sm:$0xff]  ;;  %v10227_v57 = vld [vmem:[%s12632_s10 + $0x168] sm:$0xff] }
  0x3f   : > { %406 = vst [vmem:[%s12644_s11 + $0x50] sm:$0xff] %v10216_v46  ;;  %408 = vst [vmem:[%s12644_s11 + $0x58] sm:$0xff] %v10217_v47  ;;  %v10228_v58 = vld [vmem:[%s12632_s10 + $0x170] sm:$0xff]  ;;  %v10229_v59 = vld [vmem:[%s12632_s10 + $0x178] sm:$0xff] }
  0x40   : > { %410 = vst [vmem:[%s12644_s11 + $0x60] sm:$0xff] %v10218_v48  ;;  %412 = vst [vmem:[%s12644_s11 + $0x68] sm:$0xff] %v10219_v49  ;;  %v10230_v60 = vld [vmem:[%s12632_s10 + $0x180] sm:$0xff]  ;;  %v10231_v61 = vld [vmem:[%s12632_s10 + $0x188] sm:$0xff] }
  0x41   : > { %414 = vst [vmem:[%s12644_s11 + $0x70] sm:$0xff] %v10220_v50  ;;  %416 = vst [vmem:[%s12644_s11 + $0x78] sm:$0xff] %v10221_v51  ;;  %v10232_v62 = vld [vmem:[%s12632_s10 + $0x190] sm:$0xff]  ;;  %v10233_v63 = vld [vmem:[%s12632_s10 + $0x198] sm:$0xff] }
  0x42   : > { %418 = vst [vmem:[%s12644_s11 + $0x80] sm:$0xff] %v10222_v52  ;;  %420 = vst [vmem:[%s12644_s11 + $0x88] sm:$0xff] %v10223_v53  ;;  %v10234_v0 = vld [vmem:[%s12632_s10 + $0x1a0] sm:$0xff]  ;;  %v10235_v1 = vld [vmem:[%s12632_s10 + $0x1a8] sm:$0xff] }
  0x43   : > { %422 = vst [vmem:[%s12644_s11 + $0x90] sm:$0xff] %v10224_v54  ;;  %424 = vst [vmem:[%s12644_s11 + $0x98] sm:$0xff] %v10225_v55  ;;  %v10236_v2 = vld [vmem:[%s12632_s10 + $0x1b0] sm:$0xff]  ;;  %v10237_v3 = vld [vmem:[%s12632_s10 + $0x1b8] sm:$0xff] }
  0x44   : > { %426 = vst [vmem:[%s12644_s11 + $0xa0] sm:$0xff] %v10226_v56  ;;  %428 = vst [vmem:[%s12644_s11 + $0xa8] sm:$0xff] %v10227_v57  ;;  %v10238_v4 = vld [vmem:[%s12632_s10 + $0x1c0] sm:$0xff]  ;;  %v10239_v5 = vld [vmem:[%s12632_s10 + $0x1c8] sm:$0xff] }
  0x45   : > { %430 = vst [vmem:[%s12644_s11 + $0xb0] sm:$0xff] %v10228_v58  ;;  %432 = vst [vmem:[%s12644_s11 + $0xb8] sm:$0xff] %v10229_v59  ;;  %v10240_v6 = vld [vmem:[%s12632_s10 + $0x1d0] sm:$0xff]  ;;  %v10241_v7 = vld [vmem:[%s12632_s10 + $0x1d8] sm:$0xff] }
  0x46   : > { %434 = vst [vmem:[%s12644_s11 + $0xc0] sm:$0xff] %v10230_v60  ;;  %436 = vst [vmem:[%s12644_s11 + $0xc8] sm:$0xff] %v10231_v61 }
  0x47   : > { %438 = vst [vmem:[%s12644_s11 + $0xd0] sm:$0xff] %v10232_v62  ;;  %440 = vst [vmem:[%s12644_s11 + $0xd8] sm:$0xff] %v10233_v63 }
  0x48   : > { %442 = vst [vmem:[%s12644_s11 + $0xe0] sm:$0xff] %v10234_v0  ;;  %444 = vst [vmem:[%s12644_s11 + $0xe8] sm:$0xff] %v10235_v1 }
  0x49   : > { %446 = vst [vmem:[%s12644_s11 + $0xf0] sm:$0xff] %v10236_v2  ;;  %448 = vst [vmem:[%s12644_s11 + $0xf8] sm:$0xff] %v10237_v3 }
  0x4a   : > { %450 = vst [vmem:[%s12644_s11 + $0x100] sm:$0xff] %v10238_v4  ;;  %452 = vst [vmem:[%s12644_s11 + $0x108] sm:$0xff] %v10239_v5 }
  0x4b   : > { %454 = vst [vmem:[%s12644_s11 + $0x110] sm:$0xff] %v10240_v6  ;;  %456 = vst [vmem:[%s12644_s11 + $0x118] sm:$0xff] %v10241_v7 }
  0x4c   : > { %464 = vsyncadd %s351_s12, 4608 }
  0x4d PF: > { %p465_p11 = scmp.lt.s32.totalorder %s12485_s18, 0  ;;  %s466_s13 = ssub.s32 0, %s12485_s18 }
  0x4e   : > { %s10243_s14 = smin.u32 %s12485_s18, %s466_s13 }
  0x4f   : > { %s468_s15 = sand.u32 1, %s10243_s14  }
  0x50   : > { %s469_s16 = ssub.s32 0, %s468_s15 }
  0x51   : > { %s17248_s16 = smov (!%p465_p11, %s469_s16), %s468_s15 }
  0x52   : > { %p10245_p12 = scmp.lt.s32.totalorder %s17248_s16, 0  ;;  %s475_s17 = sadd.s32 2, %s17248_s16 }
  0x54   : > { %s17250_s17 = smov (!%p10245_p12, %s475_s17), %s17248_s16 }
  0x55   : > { %s11267_s26 = smul.u32 288, %s17250_s17  ;;  %s481_s28 = scalar_lea.sflag [#allocation3], %s17250_s17 }
  0x57   : > { %s12713_s27 = scalar_lea.vmem [#allocation2], %s11267_s26 }
  0x58   : > { %12481 = dma.done.wait %s481_s28, 4608 }
  0x59   : > { %12482 = vsyncadd %s481_s28, 4294962688  ;;  %v16943_v8 = vmov 0   ;;  %v12110_v9 = vld [vmem:[%s16938_s1 + $0xf8] sm:$0xff]   ;;  %v12112_v11 = vld [vmem:[%s16938_s1 + $0xf0] sm:$0xff]   ;;  %vm1240_vm0 = vcmask 1042432   ;;  %vm1241_vm1 = vcmask 1046532  }
  0x5a   : > { %3135 = vmatprep.subr.bf16.mxu0 %v16943_v8  ;;  %v12111_v10 = vld [vmem:[%s16938_s1 + $0x178] sm:$0xff]   ;;  %v12113_v12 = vld [vmem:[%s16938_s1 + $0x170] sm:$0xff]   ;;  %v12115_v13 = vld [vmem:[%s16938_s1 + $0x168] sm:$0xff]   ;;  %v16966_v19 = vmov 0  ;;  %vm617_vm3 = vsmask.f32 3328 }
  0x5b   : > { %3136 = vmatpush1.bf16.msra.mxu0 %v12110_v9  ;;  %11804 = vmatprep.subr.bf16.mxu1 %v12111_v10  ;;  %v12114_v14 = vld [vmem:[%s16938_s1 + $0xe8] sm:$0xff]   ;;  %v12117_v15 = vld [vmem:[%s16938_s1 + $0x160] sm:$0xff]   ;;  %v12119_v17 = vld [vmem:[%s16938_s1 + $0x158] sm:$0xff]   ;;  %vm618_vm4 = vsmask.f32 7440 }
  0x5c   : > { %3137 = vmatprep.subr.bf16.mxu0 %v16943_v8  ;;  %11805 = vmatpush3.bf16.msra.mxu1 %v12111_v10  ;;  %v12116_v16 = vld [vmem:[%s16938_s1 + $0xe0] sm:$0xff]   ;;  %v12118_v18 = vld [vmem:[%s16938_s1 + $0xd8] sm:$0xff]   ;;  %vm12750_vm2 = vmor %vm1240_vm0, %vm1241_vm1 }
  0x5d   : > { %11806 = vmatprep.subr.bf16.mxu1 %v12113_v12  ;;  %v16967_v19 = vsel %vm12750_vm2, 4294967295, %v16966_v19  ;;  %v1140_v20 = vld [vmem:[%s12713_s27] sm:$0xe]  ;;  %v1141_v21 = vld [vmem:[%s12713_s27 + $0x4] sm:$0xf]  ;;  %v12121_v23 = vld [vmem:[%s16938_s1 + $0x150] sm:$0xff]  }
  0x5e   : > { %16968 = vst [vmem:[#allocation9_spill] sm:$0xff] %v16967_v19  ;;  %v1142_v22 = vld [vmem:[%s12713_s27 + $0x8] sm:$0xf]  ;;  %v10248_v24 = vrot.slane %v1140_v20, 9  ;;  %v1245_v25 = vrot.slane %v1141_v21, 5  ;;  %v12120_v28 = vld [vmem:[%s16938_s1 + $0xd0] sm:$0xff]   ;;  %vm13159_vm5 = vmor %vm617_vm3, %vm618_vm4 }
  0x5f   : > { %3138 = vmatpush1.bf16.msra.mxu0 %v12112_v11  ;;  %v1248_v26 = vrot.slane %v1142_v22, 5  ;;  %v10348_v27 = vld [vmem:[%s12713_s27 + $0x18] sm:$0xe]  ;;  %v10349_v29 = vld [vmem:[%s12713_s27 + $0x1c] sm:$0xf]  ;;  %v12122_v36 = vld [vmem:[%s16938_s1 + $0xc8] sm:$0xff]  }
  0x60   : > { %3139 = vmatprep.subr.bf16.mxu0 %v16943_v8  ;;  %11807 = vmatpush3.bf16.msra.mxu1 %v12113_v12  ;;  %v10350_v30 = vld [vmem:[%s12713_s27 + $0x20] sm:$0xf]  ;;  %v1246_v31 = vsel %vm12750_vm2, %v10248_v24, %v1245_v25  ;;  %v1247_v32 = vrot.slane %v1245_v25, 4  ;;  %v10398_v33 = vrot.slane %v10348_v27, 9  ;;  %v2334_v34 = vrot.slane %v10349_v29, 5  ;;  %v12123_v37 = vld [vmem:[%s16938_s1 + $0x148] sm:$0xff]  }
  0x61   : > { %11808 = vmatprep.subr.bf16.mxu1 %v12115_v13  ;;  %v12770_v35 = vld [vmem:[%s12713_s27 + $0x30] sm:$0xe]  ;;  %1413 = vst [vmem:[#allocation4 + $0x8] sm:$0xf] %v1246_v31  ;;  %v2337_v38 = vrot.slane %v10350_v30, 5  ;;  %v1250_v42 = vrot.slane %v1248_v26, 4 }
  0x62   : > { %v12779_v39 = vld [vmem:[%s12713_s27 + $0x34] sm:$0xf]  ;;  %v12782_v40 = vld [vmem:[%s12713_s27 + $0x38] sm:$0xf]  ;;  %v1249_v41 = vsel %vm12750_vm2, %v1247_v32, %v1248_v26  ;;  %v10764_v44 = vrot.slane %v12770_v35, 9  ;;  %v2335_v48 = vsel %vm12750_vm2, %v10398_v33, %v2334_v34  ;;  %v2336_v49 = vrot.slane %v2334_v34, 4 }
  0x63   : > { %3140 = vmatpush1.bf16.msra.mxu0 %v12114_v14  ;;  %v5124_v43 = vrot.slane %v12779_v39, 5  ;;  %1414 = vst [vmem:[#allocation4 + $0x14] sm:$0xf] %v1249_v41  ;;  %v5127_v45 = vrot.slane %v12782_v40, 5  ;;  %v1143_v46 = vld [vmem:[%s12713_s27 + $0xc] sm:$0xf] }
  0x64   : > { %3141 = vmatprep.subr.bf16.mxu0 %v16943_v8  ;;  %11809 = vmatpush3.bf16.msra.mxu1 %v12115_v13  ;;  %v1144_v47 = vld [vmem:[%s12713_s27 + $0x10] sm:$0x1]  ;;  %v1251_v50 = vrot.slane %v1143_v46, 5  ;;  %v10351_v51 = vld [vmem:[%s12713_s27 + $0x24] sm:$0xf]  ;;  %v2339_v54 = vrot.slane %v2337_v38, 4  ;;  %v2338_v2 = vsel %vm12750_vm2, %v2336_v49, %v2337_v38 }
  0x65   : > { %11810 = vmatprep.subr.bf16.mxu1 %v12117_v15  ;;  %v10352_v52 = vld [vmem:[%s12713_s27 + $0x28] sm:$0x1]  ;;  %v12124_v53 = vld [vmem:[%s16938_s1 + $0xc0] sm:$0xff]   ;;  %v5126_v55 = vrot.slane %v5124_v43, 4  ;;  %v1254_v56 = vrot.slane %v1144_v47, 5  ;;  %v2340_v57 = vrot.slane %v10351_v51, 5  ;;  %v5125_v34 = vsel %vm12750_vm2, %v10764_v44, %v5124_v43 }
  0x66   : > { %v12802_v58 = vld [vmem:[%s12713_s27 + $0x3c] sm:$0xf]  ;;  %v12125_v59 = vld [vmem:[%s16938_s1 + $0x140] sm:$0xff]   ;;  %v12809_v60 = vrot.slane %v5127_v45, 4  ;;  %v1252_v61 = vsel %vm12750_vm2, %v1250_v42, %v1251_v50  ;;  %v1253_v62 = vrot.slane %v1251_v50, 4  ;;  %v2343_v63 = vrot.slane %v10352_v52, 5 }
  0x67   : > { %3142 = vmatpush1.bf16.msra.mxu0 %v12116_v16  ;;  %1415 = vst [vmem:[#allocation4 + $0x20] sm:$0xf] %v1252_v61  ;;  %v12814_v0 = vld [vmem:[%s12713_s27 + $0x40] sm:$0x1]  ;;  %v2342_v4 = vrot.slane %v2340_v57, 4  ;;  %v5130_v5 = vrot.slane %v12802_v58, 5 }
  0x68   : > { %3143 = vmatprep.subr.bf16.mxu0 %v16943_v8  ;;  %11811 = vmatpush3.bf16.msra.mxu1 %v12117_v15  ;;  %v12817_v1 = vld [vmem:[#allocation4 + $0x8] sm:$0xf]  ;;  %v1255_v3 = vsel %vm12750_vm2, %v1253_v62, %v1254_v56  ;;  %v12127_v6 = vld [vmem:[%s16938_s1 + $0x138] sm:$0xff]   ;;  %v1147_v11 = vld [vmem:[%s12713_s27 + $0x20] sm:$0xf]  ;;  %v5133_v12 = vrot.slane %v12814_v0, 5 }
  0x69   : > { %11812 = vmatprep.subr.bf16.mxu1 %v12119_v17  ;;  %2502 = vst [vmem:[#allocation4 + $0x8] sm:$0xf] %v2335_v48  ;;  %1416 = vst [vmem:[#allocation4 + $0x2c] sm:$0xf] %v1255_v3  ;;  %v1145_v7 = vld [vmem:[%s12713_s27 + $0x18] sm:$0xe]  ;;  %v2344_v29 = vsel %vm12750_vm2, %v2342_v4, %v2343_v63  ;;  %v5131_v51 = vsel %vm12750_vm2, %v12809_v60, %v5130_v5 }
  0x6a   : > { %v12828_v9 = vld [vmem:[#allocation4 + $0x14] sm:$0xf]  ;;  %v1146_v10 = vld [vmem:[%s12713_s27 + $0x1c] sm:$0xf]  ;;  %v10249_v13 = vrot.slane %v1145_v7, 9  ;;  %v1261_v15 = vrot.slane %v1147_v11, 5 }
  0x6b   : > { %3144 = vmatpush1.bf16.msra.mxu0 %v12118_v18  ;;  %2503 = vst [vmem:[#allocation4 + $0x14] sm:$0xf] %v2338_v2  ;;  %v1258_v14 = vrot.slane %v1146_v10, 5  ;;  %v10353_v16 = vld [vmem:[%s12713_s27 + $0x30] sm:$0xe]  ;;  %v5132_v18 = vrot.slane %v5130_v5, 4 }
  0x6c   : > { %3145 = vmatprep.subr.bf16.mxu0 %v16943_v8  ;;  %11813 = vmatpush3.bf16.msra.mxu1 %v12119_v17  ;;  %v2341_v17 = vsel %vm12750_vm2, %v2339_v54, %v2340_v57  ;;  %v10354_v20 = vld [vmem:[%s12713_s27 + $0x34] sm:$0xf]  ;;  %v10355_v21 = vld [vmem:[%s12713_s27 + $0x38] sm:$0xf]  ;;  %v10399_v22 = vrot.slane %v10353_v16, 9  ;;  %v1263_v43 = vrot.slane %v1261_v15, 4 }
  0x6d   : > { %11814 = vmatprep.subr.bf16.mxu1 %v12121_v23  ;;  %v1259_v24 = vsel %vm12750_vm2, %v10249_v13, %v1258_v14  ;;  %v1260_v25 = vrot.slane %v1258_v14, 4  ;;  %v2347_v26 = vrot.slane %v10354_v20, 5  ;;  %v2350_v27 = vrot.slane %v10355_v21, 5  ;;  %v12852_v30 = vld [vmem:[%s12713_s27 + $0x4c] sm:$0xf]  ;;  %v12129_v57 = vld [vmem:[%s16938_s1 + $0x38] sm:$0xff]  }
  0x6e   : > { %1417 = vst [vmem:[#allocation4 + $0x38] sm:$0xf] %v1259_v24  ;;  %v12855_v31 = vld [vmem:[%s12713_s27 + $0x50] sm:$0xf]  ;;  %v12860_v33 = vld [vmem:[%s12713_s27 + $0x48] sm:$0xe]  ;;  %v5134_v2 = vsel %vm12750_vm2, %v5132_v18, %v5133_v12 }
  0x6f   : > { %3146 = vmatpush1.bf16.msra.mxu0 %v12120_v28  ;;  %v12846_v28 = vld [vmem:[#allocation4 + $0x20] sm:$0xf]  ;;  %v1262_v32 = vsel %vm12750_vm2, %v1260_v25, %v1261_v15  ;;  %v2349_v38 = vrot.slane %v2347_v26, 4  ;;  %v5137_v41 = vrot.slane %v12852_v30, 5  ;;  %v5140_v35 = vrot.slane %v12855_v31, 5  ;;  %v12133_v44 = vld [vmem:[%s16938_s1 + $0x128] sm:$0xff]  }
  0x70   : > { %3147 = vmatprep.subr.bf16.mxu0 %v16943_v8  ;;  %11815 = vmatpush3.bf16.msra.mxu1 %v12121_v23  ;;  %v12130_v23 = vld [vmem:[%s16938_s1 + $0x130] sm:$0xff]   ;;  %2504 = vst [vmem:[#allocation4 + $0x20] sm:$0xf] %v2341_v17  ;;  %1418 = vst [vmem:[#allocation4 + $0x44] sm:$0xf] %v1262_v32  ;;  %v2348_v46 = vsel %vm12750_vm2, %v10399_v22, %v2347_v26  ;;  %v10765_v47 = vrot.slane %v12860_v33, 9 }
  0x71   : > { %11816 = vmatprep.subr.bf16.mxu1 %v12123_v37  ;;  %v1148_v39 = vld [vmem:[%s12713_s27 + $0x24] sm:$0xf]  ;;  %v1149_v42 = vld [vmem:[%s12713_s27 + $0x28] sm:$0x1]  ;;  %v10356_v49 = vld [vmem:[%s12713_s27 + $0x3c] sm:$0xf] }
  0x72   : > { %v12126_v40 = vld [vmem:[#allocation4 + $0x8] ss:$12 sps:$4 sm:$0xff]   ;;  %v1267_v48 = vrot.slane %v1149_v42, 5  ;;  %v10357_v50 = vld [vmem:[%s12713_s27 + $0x40] sm:$0x1]  ;;  %v2353_v54 = vrot.slane %v10356_v49, 5  ;;  %v5138_v33 = vsel %vm12750_vm2, %v10765_v47, %v5137_v41 }
  0x73   : > { %3148 = vmatpush1.bf16.msra.mxu0 %v12122_v36  ;;  %v5128_v36 = vsel %vm12750_vm2, %v5126_v55, %v5127_v45  ;;  %v1264_v45 = vrot.slane %v1148_v39, 5  ;;  %5292 = vst [vmem:[#allocation4 + $0x8] sm:$0xf] %v5125_v34  ;;  %11820 = vmatprep.mubr.bf16.mxu1 %v12126_v40  ;;  %v12896_v55 = vld [vmem:[%s12713_s27 + $0x54] sm:$0xf]  ;;  %v5139_v60 = vrot.slane %v5137_v41, 4 }
  0x74   : > { %3149 = vmatprep.subr.bf16.mxu0 %v16943_v8  ;;  %11817 = vmatpush3.bf16.msra.mxu1 %v12123_v37  ;;  %v12872_v37 = vld [vmem:[#allocation4 + $0x2c] sm:$0xf]  ;;  %5293 = vst [vmem:[#allocation4 + $0x14] sm:$0xf] %v5128_v36  ;;  %v12899_v56 = vld [vmem:[%s12713_s27 + $0x58] sm:$0x1] }
  0x75   : > { %11818 = vmatprep.subr.bf16.mxu1 %v12125_v59  ;;  %2505 = vst [vmem:[#allocation4 + $0x2c] sm:$0xf] %v2344_v29  ;;  %v1265_v52 = vsel %vm12750_vm2, %v1263_v43, %v1264_v45  ;;  %v12904_v58 = vld [vmem:[#allocation4 + $0x38] sm:$0xf]  ;;  %v2352_v61 = vrot.slane %v2350_v27, 4  ;;  %v12912_v62 = vrot.slane %v5140_v35, 4  ;;  %v5141_v34 = vsel %vm12750_vm2, %v5139_v60, %v5140_v35 }
  0x76   : > { %1419 = vst [vmem:[#allocation4 + $0x50] sm:$0xf] %v1265_v52  ;;  %v12136_v63 = vld [vmem:[%s16938_s1 + $0x120] sm:$0xff]   ;;  %2506 = vst [vmem:[#allocation4 + $0x38] sm:$0xf] %v2348_v46  ;;  %v2356_v4 = vrot.slane %v10357_v50, 5 }
  0x77   : > { %3150 = vmatpush1.bf16.msra.mxu0 %v12124_v53  ;;  %v1266_v53 = vrot.slane %v1264_v45, 4  ;;  %v5143_v5 = vrot.slane %v12896_v55, 5  ;;  %v2355_v7 = vrot.slane %v2353_v54, 4  ;;  %v5146_v0 = vrot.slane %v12899_v56, 5  ;;  %v12131_v11 = vld [vmem:[%s16938_s1 + $0x30] sm:$0xff]   ;;  %v12138_v14 = vld [vmem:[%s16938_s1 + $0x118] sm:$0xff]  }
  0x78   : > { %3151 = vmatprep.subr.bf16.mxu0 %v16943_v8  ;;  %11819 = vmatpush3.bf16.msra.mxu1 %v12125_v59  ;;  %v2351_v59 = vsel %vm12750_vm2, %v2349_v38, %v2350_v27  ;;  %v1150_v12 = vld [vmem:[%s12713_s27 + $0x30] sm:$0xe]  ;;  %v1151_v13 = vld [vmem:[%s12713_s27 + $0x34] sm:$0xf]  ;;  %v2354_v15 = vsel %vm12750_vm2, %v2352_v61, %v2353_v54  ;;  %v1152_v16 = vld [vmem:[%s12713_s27 + $0x38] sm:$0xf] }
  0x79   : > { %3985 = vmatprep.subr.bf16.mxu1 %v16943_v8  ;;  %v1268_v3 = vsel %vm12750_vm2, %v1266_v53, %v1267_v48  ;;  %v10250_v17 = vrot.slane %v1150_v12, 9  ;;  %v1271_v18 = vrot.slane %v1151_v13, 5  ;;  %v10358_v20 = vld [vmem:[%s12713_s27 + $0x48] sm:$0xe]  ;;  %v5145_v21 = vrot.slane %v5143_v5, 4  ;;  %v12141_v30 = vld [vmem:[%s16938_s1 + $0x110] sm:$0xff]  }
  0x7a   : > { %1420 = vst [vmem:[#allocation4 + $0x5c] sm:$0xf] %v1268_v3  ;;  %v1274_v22 = vrot.slane %v1152_v16, 5  ;;  %v10360_v24 = vld [vmem:[%s12713_s27 + $0x50] sm:$0xf]  ;;  %v2357_v26 = vsel %vm12750_vm2, %v2355_v7, %v2356_v4  ;;  %v12135_v36 = vld [vmem:[%s16938_s1 + $0x28] sm:$0xff]   ;;  %v5144_v52 = vsel %vm12750_vm2, %v12912_v62, %v5143_v5 }
  0x7b   : > { %3152 = vmatpush2.bf16.msra.mxu0 %v12127_v6  ;;  %v12924_v6 = vld [vmem:[#allocation4 + $0x44] sm:$0xf]  ;;  %v1272_v27 = vsel %vm12750_vm2, %v10250_v17, %v1271_v18  ;;  %v1273_v29 = vrot.slane %v1271_v18, 4  ;;  %v10400_v38 = vrot.slane %v10358_v20, 9  ;;  %v2363_v39 = vrot.slane %v10360_v24, 5  ;;  %v12144_v62 = vld [vmem:[%s16938_s1 + $0x108] sm:$0xff]  }
  0x7c   : > { %3153 = vmatprep.subr.bf16.mxu0 %v16943_v8  ;;  %v12128_v10 = vld [vmem:[#allocation4 + $0x20] ss:$12 sps:$4 sm:$0xff]   ;;  %2507 = vst [vmem:[#allocation4 + $0x44] sm:$0xf] %v2351_v59  ;;  %1421 = vst [vmem:[#allocation4 + $0x68] sm:$0xf] %v1272_v27  ;;  %v5147_v4 = vsel %vm12750_vm2, %v5145_v21, %v5146_v0 }
  0x7d   : > { %5294 = vst [vmem:[#allocation4 + $0x20] sm:$0xf] %v5131_v51  ;;  %5295 = vst [vmem:[#allocation4 + $0x2c] sm:$0xf] %v5134_v2  ;;  %11821 = vmatmul.mubr.bf16.vlgmr.msra.gmra.mxu1 %v12128_v10  ;;  %v12945_v25 = vld [vmem:[#allocation4 + $0x50] sm:$0xf]  ;;  %v1275_v31 = vsel %vm12750_vm2, %v1273_v29, %v1274_v22 }
  0x7e   : > { %3986 = vmatpush1.bf16.msra.mxu1 %v12129_v57  ;;  %2508 = vst [vmem:[#allocation4 + $0x50] sm:$0xf] %v2354_v15  ;;  %v12964_v42 = vld [vmem:[%s12713_s27 + $0x64] sm:$0xf]  ;;  %v12974_v35 = vld [vmem:[%s12713_s27 + $0x60] sm:$0xe] }
  0x7f   : > { %3154 = vmatpush2.bf16.msra.mxu0 %v12130_v23  ;;  %v10359_v23 = vld [vmem:[%s12713_s27 + $0x4c] sm:$0xf]  ;;  %3987 = vmatprep.subr.bf16.mxu1 %v16943_v8  ;;  %v12977_v43 = vld [vmem:[%s12713_s27 + $0x68] sm:$0xf]  ;;  %1422 = vst [vmem:[#allocation4 + $0x74] sm:$0xf] %v1275_v31 }
  0x80   : > { %3155 = vmatprep.subr.bf16.mxu0 %v16943_v8  ;;  %v2360_v32 = vrot.slane %v10359_v23, 5  ;;  %v5150_v45 = vrot.slane %v12964_v42, 5  ;;  %v1153_v46 = vld [vmem:[%s12713_s27 + $0x3c] sm:$0xf]  ;;  %v5153_v47 = vrot.slane %v12977_v43, 5  ;;  %v1276_v49 = vrot.slane %v1274_v22, 4 }
  0x81   : > { %v12969_v41 = vld [vmem:[#allocation4 + $0x5c] sm:$0xf]  ;;  %v1154_v48 = vld [vmem:[%s12713_s27 + $0x40] sm:$0x1]  ;;  %v1277_v50 = vrot.slane %v1153_v46, 5  ;;  %v10766_v54 = vrot.slane %v12974_v35, 9 }
  0x82   : > { %3988 = vmatpush1.bf16.msra.mxu1 %v12131_v11  ;;  %2509 = vst [vmem:[#allocation4 + $0x5c] sm:$0xf] %v2357_v26  ;;  %v12140_v51 = vld [vmem:[%s16938_s1 + $0x20] sm:$0xff]   ;;  %v2361_v53 = vsel %vm12750_vm2, %v10400_v38, %v2360_v32  ;;  %v1280_v57 = vrot.slane %v1154_v48, 5  ;;  %v10361_v59 = vld [vmem:[%s12713_s27 + $0x54] sm:$0xf] }
  0x83   : > { %3156 = vmatpush2.bf16.msra.mxu0 %v12133_v44  ;;  %v12132_v40 = vld [vmem:[#allocation4 + $0x38] ss:$12 sps:$4 sm:$0xff]   ;;  %v2362_v44 = vrot.slane %v2360_v32, 4  ;;  %3989 = vmatprep.subr.bf16.mxu1 %v16943_v8  ;;  %v5152_v61 = vrot.slane %v5150_v45, 4  ;;  %v1278_v55 = vsel %vm12750_vm2, %v1276_v49, %v1277_v50  ;;  %v2366_v2 = vrot.slane %v10361_v59, 5  ;;  %v12146_v31 = vld [vmem:[%s16938_s1 + $0x10] sm:$0xff]  }
  0x84   : > { %3157 = vmatprep.subr.bf16.mxu0 %v16943_v8  ;;  %5296 = vst [vmem:[#allocation4 + $0x38] sm:$0xf] %v5138_v33  ;;  %5297 = vst [vmem:[#allocation4 + $0x44] sm:$0xf] %v5141_v34  ;;  %11824 = vmatprep.mubr.bf16.mxu1 %v12132_v40  ;;  %v10362_v60 = vld [vmem:[%s12713_s27 + $0x58] sm:$0x1]  ;;  %v5151_v34 = vsel %vm12750_vm2, %v10766_v54, %v5150_v45 }
  0x85   : > { %v13003_v3 = vld [vmem:[%s12713_s27 + $0x6c] sm:$0xf]  ;;  %v13012_v5 = vld [vmem:[#allocation4 + $0x68] sm:$0xf]  ;;  %v2364_v7 = vsel %vm12750_vm2, %v2362_v44, %v2363_v39  ;;  %1423 = vst [vmem:[#allocation4 + $0x80] sm:$0xf] %v1278_v55  ;;  %v5154_v42 = vsel %vm12750_vm2, %v5152_v61, %v5153_v47 }
  0x86   : > { %3990 = vmatpush1.bf16.msra.mxu1 %v12135_v36  ;;  %v2365_v10 = vrot.slane %v2363_v39, 4  ;;  %v2369_v11 = vrot.slane %v10362_v60, 5  ;;  %v13018_v12 = vld [vmem:[%s12713_s27 + $0x70] sm:$0x1]  ;;  %2510 = vst [vmem:[#allocation4 + $0x68] sm:$0xf] %v2361_v53 }
  0x87   : > { %3158 = vmatpush2.bf16.msra.mxu0 %v12136_v63  ;;  %v1279_v63 = vrot.slane %v1277_v50, 4  ;;  %3991 = vmatprep.subr.bf16.mxu1 %v16943_v8  ;;  %v13025_v0 = vrot.slane %v5153_v47, 4  ;;  %v5156_v13 = vrot.slane %v13003_v3, 5  ;;  %v13031_v16 = vld [vmem:[#allocation4 + $0x74] sm:$0xf]  ;;  %v2368_v17 = vrot.slane %v2366_v2, 4 }
  0x88   : > { %3159 = vmatprep.subr.bf16.mxu0 %v16943_v8  ;;  %2511 = vst [vmem:[#allocation4 + $0x74] sm:$0xf] %v2364_v7  ;;  %v1155_v20 = vld [vmem:[%s12713_s27 + $0x48] sm:$0xe]  ;;  %v2367_v21 = vsel %vm12750_vm2, %v2365_v10, %v2366_v2  ;;  %v5159_v22 = vrot.slane %v13018_v12, 5 }
  0x89   : > { %v1281_v56 = vsel %vm12750_vm2, %v1279_v63, %v1280_v57  ;;  %v12134_v15 = vld [vmem:[#allocation4 + $0x50] ss:$12 sps:$4 sm:$0xff]   ;;  %v13035_v18 = vrot.slane %v5156_v13, 4  ;;  %v1156_v23 = vld [vmem:[%s12713_s27 + $0x4c] sm:$0xf]  ;;  %v10251_v26 = vrot.slane %v1155_v20, 9  ;;  %v2370_v38 = vsel %vm12750_vm2, %v2368_v17, %v2369_v11 }
  0x8a   : > { %1424 = vst [vmem:[#allocation4 + $0x8c] sm:$0xf] %v1281_v56  ;;  %5298 = vst [vmem:[#allocation4 + $0x50] sm:$0xf] %v5144_v52  ;;  %3992 = vmatpush1.bf16.msra.mxu1 %v12140_v51  ;;  %v1157_v24 = vld [vmem:[%s12713_s27 + $0x50] sm:$0xf] }
  0x8b   : > { %3160 = vmatpush2.bf16.msra.mxu0 %v12138_v14  ;;  %v12142_v14 = vld [vmem:[%s16938_s1 + $0x18] sm:$0xff]   ;;  %5299 = vst [vmem:[#allocation4 + $0x5c] sm:$0xf] %v5147_v4  ;;  %11825 = vmatmul.mubr.bf16.gmra.mxu1 %v12134_v15  ;;  %v1284_v27 = vrot.slane %v1156_v23, 5  ;;  %v1287_v29 = vrot.slane %v1157_v24, 5  ;;  %v5157_v4 = vsel %vm12750_vm2, %v13025_v0, %v5156_v13  ;;  %v12151_v23 = vld [vmem:[%s16938_s1 + $0x8] sm:$0xff]  }
  0x8c   : > { %3161 = vmatprep.subr.bf16.mxu0 %v16943_v8  ;;  %3993 = vmatprep.subr.bf16.mxu1 %v16943_v8  ;;  %v10363_v32 = vld [vmem:[%s12713_s27 + $0x60] sm:$0xe]  ;;  %v10364_v33 = vld [vmem:[%s12713_s27 + $0x64] sm:$0xf]  ;;  %v10365_v39 = vld [vmem:[%s12713_s27 + $0x68] sm:$0xf] }
  0x8d   : > { %v13051_v36 = vld [vmem:[#allocation4 + $0x80] sm:$0xf]  ;;  %v1285_v35 = vsel %vm12750_vm2, %v10251_v26, %v1284_v27  ;;  %v1286_v40 = vrot.slane %v1284_v27, 4  ;;  %v10401_v44 = vrot.slane %v10363_v32, 9  ;;  %v13066_v45 = vld [vmem:[%s12713_s27 + $0x78] sm:$0xe] }
  0x8e   : > { %3994 = vmatpush1.bf16.msra.mxu1 %v12142_v14  ;;  %2512 = vst [vmem:[#allocation4 + $0x80] sm:$0xf] %v2367_v21  ;;  %1425 = vst [vmem:[#allocation4 + $0x98] sm:$0xf] %v1285_v35  ;;  %v2376_v43 = vrot.slane %v10365_v39, 5  ;;  %v10767_v54 = vrot.slane %v13066_v45, 9  ;;  %v5160_v14 = vsel %vm12750_vm2, %v13035_v18, %v5159_v22 }
  0x8f   : > { %3162 = vmatpush2.bf16.msra.mxu0 %v12141_v30  ;;  %v2373_v30 = vrot.slane %v10364_v33, 5  ;;  %3995 = vmatprep.subr.bf16.mxu1 %v16943_v8  ;;  %v13072_v49 = vld [vmem:[%s12713_s27 + $0x7c] sm:$0xf]  ;;  %v12137_v47 = vld [vmem:[#allocation4 + $0x68] ss:$12 sps:$4 sm:$0xff]   ;;  %v1288_v50 = vsel %vm12750_vm2, %v1286_v40, %v1287_v29  ;;  %v1289_v60 = vrot.slane %v1287_v29, 4 }
  0x90   : > { %3163 = vmatprep.subr.bf16.mxu0 %v16943_v8  ;;  %v13077_v51 = vld [vmem:[%s12713_s27 + $0x80] sm:$0xf]  ;;  %5300 = vst [vmem:[#allocation4 + $0x68] sm:$0xf] %v5151_v34  ;;  %5301 = vst [vmem:[#allocation4 + $0x74] sm:$0xf] %v5154_v42  ;;  %11828 = vmatprep.mubr.bf16.mxu1 %v12137_v47 }
  0x91   : > { %v13069_v46 = vld [vmem:[#allocation4 + $0x8c] sm:$0xf]  ;;  %v2375_v48 = vrot.slane %v2373_v30, 4  ;;  %1426 = vst [vmem:[#allocation4 + $0xa4] sm:$0xf] %v1288_v50  ;;  %v5163_v52 = vrot.slane %v13072_v49, 5  ;;  %v2374_v7 = vsel %vm12750_vm2, %v10401_v44, %v2373_v30 }
  0x92   : > { %2513 = vst [vmem:[#allocation4 + $0x8c] sm:$0xf] %v2370_v38  ;;  %v5166_v53 = vrot.slane %v13077_v51, 5  ;;  %3996 = vmatpush1.bf16.msra.mxu1 %v12146_v31  ;;  %v1158_v57 = vld [vmem:[%s12713_s27 + $0x54] sm:$0xf]  ;;  %v2378_v2 = vrot.slane %v2376_v43, 4 }
  0x93   : > { %3164 = vmatpush2.bf16.msra.mxu0 %v12144_v62  ;;  %v1159_v59 = vld [vmem:[%s12713_s27 + $0x58] sm:$0x1]  ;;  %3997 = vmatprep.subr.bf16.mxu1 %v16943_v8  ;;  %v1290_v61 = vrot.slane %v1158_v57, 5  ;;  %v10366_v63 = vld [vmem:[%s12713_s27 + $0x6c] sm:$0xf]  ;;  %v12147_v62 = vld [vmem:[%s16938_s1 + $0x100] sm:$0xff]   ;;  %v2377_v20 = vsel %vm12750_vm2, %v2375_v48, %v2376_v43 }
  0x94   : > { %3165 = vmatprep.subr.bf16.mxu0 %v16943_v8  ;;  %v1293_v55 = vrot.slane %v1159_v59, 5  ;;  %v5165_v10 = vrot.slane %v5163_v52, 4  ;;  %v10367_v11 = vld [vmem:[%s12713_s27 + $0x70] sm:$0x1]  ;;  %v2379_v12 = vrot.slane %v10366_v63, 5  ;;  %v5168_v0 = vrot.slane %v5166_v53, 4 }
  0x95   : > { %v10732_v56 = vld [vmem:[%s12713_s27 + $0x84] sm:$0xf]  ;;  %v1291_v3 = vsel %vm12750_vm2, %v1289_v60, %v1290_v61  ;;  %v1292_v15 = vrot.slane %v1290_v61, 4  ;;  %v13106_v17 = vld [vmem:[%s12713_s27 + $0x88] sm:$0x1]  ;;  %v2382_v18 = vrot.slane %v10367_v11, 5  ;;  %v5164_v63 = vsel %vm12750_vm2, %v10767_v54, %v5163_v52 }
  0x96   : > { %v13110_v13 = vld [vmem:[#allocation4 + $0x98] sm:$0xf]  ;;  %1427 = vst [vmem:[#allocation4 + $0xb0] sm:$0xf] %v1291_v3  ;;  %v2381_v21 = vrot.slane %v2379_v12, 4  ;;  %v5169_v22 = vrot.slane %v10732_v56, 5  ;;  %3998 = vmatpush1.bf16.msra.mxu1 %v12151_v23  ;;  %v2380_v34 = vsel %vm12750_vm2, %v2378_v2, %v2379_v12  ;;  %v5167_v2 = vsel %vm12750_vm2, %v5165_v10, %v5166_v53 }
  0x97   : > { %3166 = vmatpush2.bf16.msra.mxu0 %v12147_v62  ;;  %2514 = vst [vmem:[#allocation4 + $0x98] sm:$0xf] %v2374_v7  ;;  %v1294_v26 = vsel %vm12750_vm2, %v1292_v15, %v1293_v55  ;;  %v5172_v29 = vrot.slane %v13106_v17, 5  ;;  %v12153_v32 = vld [vmem:[%s16938_s1] sm:$0xff]   ;;  %3999 = vmatprep.subr.bf16.mxu1 %v16943_v8  ;;  %v569_v31 = vld [vmem:[%s12713_s27 + $0x8] sm:$0xf] }
  0x98   : > { %v13119_v27 = vld [vmem:[#allocation4 + $0xa4] sm:$0xf]  ;;  %1428 = vst [vmem:[#allocation4 + $0xbc] sm:$0xf] %v1294_v26  ;;  %v487_v33 = vld [vmem:[%s12713_s27] sm:$0xf]  ;;  %v2383_v48 = vsel %vm12750_vm2, %v2381_v21, %v2382_v18  ;;  %v5170_v12 = vsel %vm12750_vm2, %v5168_v0, %v5169_v22 }
  0x99   : > { %v12139_v24 = vld [vmem:[#allocation4 + $0x80] ss:$12 sps:$4 sm:$0xff]   ;;  %2515 = vst [vmem:[#allocation4 + $0xa4] sm:$0xf] %v2377_v20  ;;  %v488_v38 = vld [vmem:[%s12713_s27 + $0x4] sm:$0xf] }
  0x9a   : > { %5302 = vst [vmem:[#allocation4 + $0x80] sm:$0xf] %v5157_v4  ;;  %5303 = vst [vmem:[#allocation4 + $0x8c] sm:$0xf] %v5160_v14  ;;  %11829 = vmatmul.mubr.bf16.gmra.mxu1 %v12139_v24  ;;  %v567_v39 = vld [vmem:[%s12713_s27] sm:$0xf] }
  0x9b   : > { %527 = vst [vmem:[#allocation4] sm:$0xf] %v487_v33  ;;  %v568_v30 = vld [vmem:[%s12713_s27 + $0x4] sm:$0xf]  ;;  %528 = vst [vmem:[#allocation4 + $0xc] sm:$0xf] %v488_v38  ;;  %4000 = vmatpush1.bf16.msra.mxu1 %v12153_v32 }
  0x9c   : > { %v621_v42 = vshrl.u32 %v567_v39, 16  ;;  %v624_v35 = vshll.u32 %v567_v39, 16  ;;  %v630_v40 = vshll.u32 %v568_v30, 16  ;;  %v634_v44 = vshrl.u32 %v568_v30, 16  ;;  %4001 = vmatprep.subr.bf16.mxu1 %v16943_v8  ;;  %v10298_v7 = vld [vmem:[%s12713_s27 + $0x18] sm:$0xf] }
  0x9d   : > { %v5171_v43 = vrot.slane %v5169_v22, 4  ;;  %v640_v47 = vshll.u32 %v569_v31, 16  ;;  %v644_v50 = vshrl.u32 %v569_v31, 16  ;;  %v13135_v57 = vld [vmem:[#allocation4 + $0xb0] sm:$0xf]  ;;  %v1713_v54 = vshrl.u32 %v10298_v7, 16 }
  0x9e   : > { %16969 = vst [vmem:[#allocation10_spill] sm:$0xff] %v13135_v57  ;;  %v623_v59 = vrot.slane %v621_v42, 4  ;;  %v626_v60 = vrot.slane %v624_v35, 5  ;;  %v632_v61 = vrot.slane %v630_v40, 5  ;;  %v636_v55 = vrot.slane %v634_v44, 4  ;;  %v12159_v35 = vld [vmem:[%s16938_s1 + $0x78] sm:$0xff]  }
  0x9f   : > { %2516 = vst [vmem:[#allocation4 + $0xb0] sm:$0xf] %v2380_v34  ;;  %v642_v62 = vrot.slane %v640_v47, 5  ;;  %v646_v4 = vrot.slane %v644_v50, 4  ;;  %v13149_v11 = vld [vmem:[#allocation4 + $0xbc] sm:$0xf]  ;;  %v5173_v51 = vsel %vm12750_vm2, %v5171_v43, %v5172_v29  ;;  %4002 = vmatpush2.bf16.msra.mxu1 %v12159_v35 }
  0xa0   : > { %v627_v49 = vor.u32 %v626_v60, %v623_v59  ;;  %v637_v56 = vor.u32 %v636_v55, %v632_v61  ;;  %v10299_v45 = vld [vmem:[%s12713_s27 + $0x1c] sm:$0xf]  ;;  %v10300_v14 = vld [vmem:[%s12713_s27 + $0x20] sm:$0xf]  ;;  %v12143_v3 = vld [vmem:[#allocation4 + $0x98] ss:$12 sps:$4 sm:$0xff]   ;;  %4003 = vmatprep.subr.bf16.mxu1 %v16943_v8 }
  0xa1   : > { %2517 = vst [vmem:[#allocation4 + $0xbc] sm:$0xf] %v2383_v48  ;;  %v647_v53 = vor.u32 %v646_v4, %v642_v62  ;;  %v1716_v10 = vshll.u32 %v10298_v7, 16  ;;  %5304 = vst [vmem:[#allocation4 + $0x98] sm:$0xf] %v5164_v63  ;;  %v1722_v0 = vshll.u32 %v10299_v45, 16  ;;  %11832 = vmatprep.mubr.bf16.mxu1 %v12143_v3 }
  0xa2   : > { %5305 = vst [vmem:[#allocation4 + $0xa4] sm:$0xf] %v5167_v2  ;;  %v628_v15 = vrot.slane %v627_v49, 4  ;;  %v638_v17 = vrot.slane %v637_v56, 4  ;;  %v1726_v20 = vshrl.u32 %v10299_v45, 16  ;;  %v1715_v18 = vrot.slane %v1713_v54, 4 }
  0xa3   : > { %v13163_v21 = vrot.slane %v647_v53, 4  ;;  %v1718_v22 = vrot.slane %v1716_v10, 5  ;;  %v1732_v23 = vshll.u32 %v10300_v14, 16  ;;  %v1724_v29 = vrot.slane %v1722_v0, 5  ;;  %v10664_v33 = vld [vmem:[%s12713_s27 + $0x30] sm:$0xf] }
  0xa4   : > { %v633_v24 = vsel %vm13159_vm5, %v628_v15, %v632_v61  ;;  %v643_v26 = vsel %vm13159_vm5, %v638_v17, %v642_v62  ;;  %v1728_v32 = vrot.slane %v1726_v20, 4  ;;  %v10665_v34 = vld [vmem:[%s12713_s27 + $0x34] sm:$0xf]  ;;  %v1736_v30 = vshrl.u32 %v10300_v14, 16  ;;  %v10666_v31 = vld [vmem:[%s12713_s27 + $0x38] sm:$0xf] }
  0xa5   : > { %1100 = vst [vmem:[#allocation4 + $0x4] sm:$0xf] %v633_v24  ;;  %1101 = vst [vmem:[#allocation4 + $0x10] sm:$0xf] %v643_v26  ;;  %v1719_v38 = vor.u32 %v1718_v22, %v1715_v18  ;;  %v1734_v39 = vrot.slane %v1732_v23, 5  ;;  %v4503_v42 = vshrl.u32 %v10664_v33, 16 }
  0xa6   : > { %v1729_v40 = vor.u32 %v1728_v32, %v1724_v29  ;;  %v4506_v44 = vshll.u32 %v10664_v33, 16  ;;  %v4512_v48 = vshll.u32 %v10665_v34, 16  ;;  %v4516_v43 = vshrl.u32 %v10665_v34, 16  ;;  %v12162_v47 = vld [vmem:[%s16938_s1 + $0x70] sm:$0xff]   ;;  %v1160_v55 = vld [vmem:[%s12713_s27 + $0x60] sm:$0xe] }
  0xa7   : > { %v1720_v50 = vrot.slane %v1719_v38, 4  ;;  %v1738_v59 = vrot.slane %v1736_v30, 4  ;;  %v4505_v60 = vrot.slane %v4503_v42, 4  ;;  %v4522_v61 = vshll.u32 %v10666_v31, 16  ;;  %v10258_v2 = vld [vmem:[%s12713_s27 + $0x18] sm:$0xf]  ;;  %4004 = vmatpush2.bf16.msra.mxu1 %v12162_v47 }
  0xa8   : > { %v12145_v63 = vld [vmem:[#allocation4 + $0xb0] ss:$12 sps:$4 sm:$0xff]   ;;  %v1730_v4 = vrot.slane %v1729_v40, 4  ;;  %v4508_v7 = vrot.slane %v4506_v44, 5  ;;  %v13182_v56 = vrot.slane %v4512_v48, 5  ;;  %v4518_v45 = vrot.slane %v4516_v43, 4  ;;  %4005 = vmatprep.subr.bf16.mxu1 %v16943_v8 }
  0xa9   : > { %v10259_v62 = vld [vmem:[%s12713_s27 + $0x1c] sm:$0xf]  ;;  %5306 = vst [vmem:[#allocation4 + $0xb0] sm:$0xf] %v5170_v12  ;;  %5307 = vst [vmem:[#allocation4 + $0xbc] sm:$0xf] %v5173_v51  ;;  %v1739_v49 = vor.u32 %v1738_v59, %v1734_v39  ;;  %11833 = vmatmul.mubr.bf16.gmra.mxu1 %v12145_v63  ;;  %v1725_v53 = vsel %vm13159_vm5, %v1720_v50, %v1724_v29 }
  0xaa   : > { %v1161_v14 = vld [vmem:[%s12713_s27 + $0x64] sm:$0xf]  ;;  %v1162_v3 = vld [vmem:[%s12713_s27 + $0x68] sm:$0xf]  ;;  %v1735_v54 = vsel %vm13159_vm5, %v1730_v4, %v1734_v39  ;;  %v4509_v10 = vor.u32 %v4508_v7, %v4505_v60  ;;  %v4526_v15 = vshrl.u32 %v10666_v31, 16  ;;  %v4519_v12 = vor.u32 %v4518_v45, %v13182_v56  ;;  %v12176_v7 = vld [vmem:[%s16938_s1 + $0xb8] sm:$0xff]  }
  0xab   : > { %v10368_v17 = vld [vmem:[%s12713_s27 + $0x78] sm:$0xe]  ;;  %v10369_v0 = vld [vmem:[%s12713_s27 + $0x7c] sm:$0xf]  ;;  %v13193_v51 = vrot.slane %v4522_v61, 5  ;;  %v10252_v20 = vrot.slane %v1160_v55, 9  ;;  %11860 = vmatprep.subr.bf16.mxu0 %v12176_v7 }
  0xac   : > { %v1297_v18 = vrot.slane %v1161_v14, 5  ;;  %v12166_v22 = vld [vmem:[%s16938_s1 + $0x68] sm:$0xff]   ;;  %v13198_v23 = vld [vmem:[#allocation4] sm:$0xff]  ;;  %v13202_v26 = vrot.slane %v1739_v49, 4  ;;  %v4510_v29 = vrot.slane %v4509_v10, 4  ;;  %v13204_v32 = vrot.slane %v4526_v15, 4 }
  0xad   : > { %v13200_v24 = vld [vmem:[#allocation4 + $0xc] sm:$0xff]  ;;  %v1300_v33 = vrot.slane %v1162_v3, 5  ;;  %1622 = vst [vmem:[#allocation4] sm:$0xf] %v10258_v2  ;;  %2192 = vst [vmem:[#allocation4 + $0x4] sm:$0xf] %v1725_v53  ;;  %4006 = vmatpush2.bf16.msra.mxu1 %v12166_v22 }
  0xae   : > { %1623 = vst [vmem:[#allocation4 + $0xc] sm:$0xf] %v10259_v62  ;;  %2193 = vst [vmem:[#allocation4 + $0x10] sm:$0xf] %v1735_v54  ;;  %v1298_v34 = vsel %vm12750_vm2, %v10252_v20, %v1297_v18  ;;  %v1299_v38 = vrot.slane %v1297_v18, 4  ;;  %v10402_v30 = vrot.slane %v10368_v17, 9  ;;  %4007 = vmatprep.subr.bf16.mxu1 %v16943_v8  ;;  %v4515_v45 = vsel %vm13159_vm5, %v4510_v29, %v13182_v56 }
  0xaf   : > { %v10370_v39 = vld [vmem:[%s12713_s27 + $0x80] sm:$0xf]  ;;  %v2386_v31 = vrot.slane %v10369_v0, 5  ;;  %v4520_v42 = vrot.slane %v4519_v12, 4  ;;  %1429 = vst [vmem:[#allocation4 + $0xc8] sm:$0xf] %v1298_v34 }
  0xb0   : > { %v13213_v40 = vld [vmem:[%s12713_s27 + $0x90] sm:$0xe]  ;;  %v13216_v44 = vld [vmem:[%s12713_s27 + $0x94] sm:$0xf]  ;;  %v12172_v48 = vld [vmem:[%s16938_s1 + $0x60] sm:$0xff]   ;;  %v1301_v43 = vsel %vm12750_vm2, %v1299_v38, %v1300_v33  ;;  %v2389_v60 = vrot.slane %v10370_v39, 5 }
  0xb1   : > { %v13224_v47 = vld [vmem:[%s12713_s27 + $0x98] sm:$0xf]  ;;  %v10624_v50 = vld [vmem:[%s12713_s27 + $0x30] sm:$0xf]  ;;  %1430 = vst [vmem:[#allocation4 + $0xd4] sm:$0xf] %v1301_v43  ;;  %v4525_v14 = vsel %vm13159_vm5, %v4520_v42, %v13193_v51  ;;  %v2387_v10 = vsel %vm12750_vm2, %v10402_v30, %v2386_v31  ;;  %4008 = vmatpush2.bf16.msra.mxu1 %v12172_v48 }
  0xb2   : > { %v2388_v59 = vrot.slane %v2386_v31, 4  ;;  %v1163_v61 = vld [vmem:[%s12713_s27 + $0x6c] sm:$0xf]  ;;  %v1164_v55 = vld [vmem:[%s12713_s27 + $0x70] sm:$0x1]  ;;  %v1302_v63 = vrot.slane %v1300_v33, 4  ;;  %4009 = vmatprep.subr.bf16.mxu1 %v16943_v8 }
  0xb3   : > { %v1303_v2 = vrot.slane %v1163_v61, 5  ;;  %v1306_v62 = vrot.slane %v1164_v55, 5  ;;  %v10371_v4 = vld [vmem:[%s12713_s27 + $0x84] sm:$0xf]  ;;  %v10625_v49 = vld [vmem:[%s12713_s27 + $0x34] sm:$0xf] }
  0xb4   : > { %v10768_v3 = vrot.slane %v13213_v40, 9  ;;  %v5176_v53 = vrot.slane %v13216_v44, 5  ;;  %v12173_v54 = vld [vmem:[%s16938_s1 + $0x58] sm:$0xff]   ;;  %v10372_v17 = vld [vmem:[%s12713_s27 + $0x88] sm:$0x1]  ;;  %v2392_v0 = vrot.slane %v10371_v4, 5  ;;  %v2390_v30 = vsel %vm12750_vm2, %v2388_v59, %v2389_v60 }
  0xb5   : > { %v1304_v15 = vsel %vm12750_vm2, %v1302_v63, %v1303_v2  ;;  %v1305_v56 = vrot.slane %v1303_v2, 4  ;;  %v13252_v12 = vld [vmem:[%s12713_s27 + $0x9c] sm:$0xf]  ;;  %v2542_v20 = vld [vmem:[#allocation4] sm:$0xff]  ;;  %v2544_v18 = vld [vmem:[#allocation4 + $0xc] sm:$0xff]  ;;  %v5179_v29 = vrot.slane %v13224_v47, 5  ;;  %4010 = vmatpush2.bf16.msra.mxu1 %v12173_v54 }
  0xb6   : > { %v12148_v22 = vld [vmem:[#allocation4 + $0x4] ss:$12 sps:$4 sm:$0xff]   ;;  %1431 = vst [vmem:[#allocation4 + $0xe0] sm:$0xf] %v1304_v15  ;;  %v2391_v33 = vrot.slane %v2389_v60, 4  ;;  %v10456_v38 = vcombine.low %v2542_v20, %v2544_v18  ;;  %v5182_v42 = vrot.slane %v13252_v12, 5  ;;  %4011 = vmatprep.subr.bf16.mxu1 %v16943_v8 }
  0xb7   : > { %v13256_v34 = vld [vmem:[%s12713_s27 + $0xa0] sm:$0x1]  ;;  %4412 = vst [vmem:[#allocation4] sm:$0xf] %v10624_v50  ;;  %4413 = vst [vmem:[#allocation4 + $0xc] sm:$0xf] %v10625_v49  ;;  %v1307_v31 = vsel %vm12750_vm2, %v1305_v56, %v1306_v62  ;;  %3167 = vmatprep.mubr.bf16.mxu0 %v12148_v22 }
  0xb8   : > { %4982 = vst [vmem:[#allocation4 + $0x4] sm:$0xf] %v4515_v45  ;;  %4983 = vst [vmem:[#allocation4 + $0x10] sm:$0xf] %v4525_v14  ;;  %v13259_v39 = vld [vmem:[#allocation4 + $0xc8] sm:$0xf]  ;;  %3168 = vmatmul.mubr.bf16.vlgmr.msra.gmra.mxu0 %v10456_v38  ;;  %v2393_v45 = vsel %vm12750_vm2, %v2391_v33, %v2392_v0 }
  0xb9   : > { %16972 = vst [vmem:[#allocation11_spill] sm:$0xff] %v13259_v39  ;;  %v12180_v48 = vld [vmem:[%s16938_s1 + $0x50] sm:$0xff]   ;;  %2518 = vst [vmem:[#allocation4 + $0xc8] sm:$0xf] %v2387_v10  ;;  %v489_v43 = vld [vmem:[%s12713_s27 + $0x8] sm:$0xf]  ;;  %11861 = vmatpush3.bf16.msra.mxu0 %v12176_v7 }
  0xba   : > { %1432 = vst [vmem:[#allocation4 + $0xec] sm:$0xf] %v1307_v31  ;;  %v490_v50 = vld [vmem:[%s12713_s27 + $0xc] sm:$0xf]  ;;  %v13271_v61 = vld [vmem:[#allocation4 + $0xd4] sm:$0xf]  ;;  %4012 = vmatpush2.bf16.msra.mxu1 %v12180_v48  ;;  %v5177_v48 = vsel %vm12750_vm2, %v10768_v3, %v5176_v53 }
  0xbb   : > { %16973 = vst [vmem:[#allocation12_spill] sm:$0xff] %v13271_v61  ;;  %v2394_v55 = vrot.slane %v2392_v0, 4  ;;  %v2395_v59 = vrot.slane %v10372_v17, 5  ;;  %529 = vst [vmem:[#allocation4 + $0x18] sm:$0xf] %v489_v43  ;;  %v5178_v63 = vrot.slane %v5176_v53, 4  ;;  %4013 = vmatprep.subr.bf16.mxu1 %v16943_v8 }
  0xbc   : > { %530 = vst [vmem:[#allocation4 + $0x24] sm:$0xf] %v490_v50  ;;  %v570_v60 = vld [vmem:[%s12713_s27 + $0xc] sm:$0xf]  ;;  %2519 = vst [vmem:[#allocation4 + $0xd4] sm:$0xf] %v2390_v30 }
  0xbd   : > { %v13278_v2 = vrot.slane %v5179_v29, 4  ;;  %v571_v62 = vld [vmem:[%s12713_s27 + $0x10] sm:$0x1]  ;;  %v650_v4 = vshll.u32 %v570_v60, 16  ;;  %v654_v49 = vshrl.u32 %v570_v60, 16  ;;  %v5184_v14 = vrot.slane %v5182_v42, 4 }
  0xbe   : > { %v5185_v54 = vrot.slane %v13256_v34, 5  ;;  %v660_v10 = vshll.u32 %v571_v62, 16  ;;  %v10301_v15 = vld [vmem:[%s12713_s27 + $0x24] sm:$0xf]  ;;  %v12185_v56 = vld [vmem:[%s16938_s1 + $0x48] sm:$0xff]   ;;  %v2396_v0 = vsel %vm12750_vm2, %v2394_v55, %v2395_v59  ;;  %v12403_v52 = vld [vmem:[%s16940_s3 + $0x1b8] sm:$0xff]  }
  0xbf   : > { %v652_v17 = vrot.slane %v650_v4, 5  ;;  %v656_v7 = vrot.slane %v654_v49, 4  ;;  %v10302_v20 = vld [vmem:[%s12713_s27 + $0x28] sm:$0x1]  ;;  %v1742_v18 = vshll.u32 %v10301_v15, 16  ;;  %v1746_v22 = vshrl.u32 %v10301_v15, 16  ;;  %4014 = vmatpush2.bf16.msra.mxu1 %v12185_v56 }
  0xc0   : > { %v13292_v38 = vld [vmem:[#allocation4 + $0xe0] sm:$0xf]  ;;  %v662_v33 = vrot.slane %v660_v10, 5  ;;  %v1752_v34 = vshll.u32 %v10302_v20, 16  ;;  %v1165_v30 = vld [vmem:[%s12713_s27 + $0x78] sm:$0xe]  ;;  %4015 = vmatprep.subr.bf16.mxu1 %v16943_v8 }
  0xc1   : > { %16974 = vst [vmem:[#allocation13_spill] sm:$0xff] %v13292_v38  ;;  %2520 = vst [vmem:[#allocation4 + $0xe0] sm:$0xf] %v2393_v45  ;;  %v653_v31 = vsel %vm13159_vm5, %v13163_v21, %v652_v17  ;;  %v657_v43 = vor.u32 %v656_v7, %v652_v17  ;;  %v1744_v50 = vrot.slane %v1742_v18, 5  ;;  %v1748_v60 = vrot.slane %v1746_v22, 4  ;;  %v12187_v49 = vld [vmem:[%s16938_s1 + $0x40] sm:$0xff]  }
  0xc2   : > { %v1166_v62 = vld [vmem:[%s12713_s27 + $0x7c] sm:$0xf]  ;;  %v1167_v4 = vld [vmem:[%s12713_s27 + $0x80] sm:$0xf]  ;;  %v5180_v21 = vsel %vm12750_vm2, %v5178_v63, %v5179_v29  ;;  %v13313_v55 = vld [vmem:[#allocation4 + $0xec] sm:$0xf] }
  0xc3   : > { %16975 = vst [vmem:[#allocation14_spill] sm:$0xff] %v13313_v55  ;;  %1102 = vst [vmem:[#allocation4 + $0x1c] sm:$0xf] %v653_v31  ;;  %v10253_v59 = vrot.slane %v1165_v30, 9  ;;  %v658_v40 = vrot.slane %v657_v43, 4  ;;  %v1749_v44 = vor.u32 %v1748_v60, %v1744_v50  ;;  %v1310_v45 = vrot.slane %v1166_v62, 5  ;;  %4016 = vmatpush2.bf16.msra.mxu1 %v12187_v49 }
  0xc4   : > { %2521 = vst [vmem:[#allocation4 + $0xec] sm:$0xf] %v2396_v0  ;;  %v10373_v3 = vld [vmem:[%s12713_s27 + $0x90] sm:$0xe]  ;;  %v10374_v53 = vld [vmem:[%s12713_s27 + $0x94] sm:$0xf]  ;;  %v5186_v30 = vsel %vm12750_vm2, %v5184_v14, %v5185_v54  ;;  %v1745_v31 = vsel %vm13159_vm5, %v13202_v26, %v1744_v50  ;;  %5925 = vmatprep.subr.bf16.mxu1 %v16943_v8 }
  0xc5   : > { %v12150_v47 = vld [vmem:[#allocation4 + $0xc8] ss:$12 sps:$4 sm:$0xff]   ;;  %v13320_v10 = vrot.slane %v1752_v34, 5  ;;  %v1313_v29 = vrot.slane %v1167_v4, 5  ;;  %v663_v63 = vsel %vm13159_vm5, %v658_v40, %v662_v33  ;;  %v10260_v15 = vld [vmem:[%s12713_s27 + $0x20] sm:$0xf]  ;;  %v1311_v17 = vsel %vm12750_vm2, %v10253_v59, %v1310_v45 }
  0xc6   : > { %5308 = vst [vmem:[#allocation4 + $0xc8] sm:$0xf] %v5177_v48  ;;  %5309 = vst [vmem:[#allocation4 + $0xd4] sm:$0xf] %v5180_v21  ;;  %v1312_v7 = vrot.slane %v1310_v45, 4  ;;  %v10403_v18 = vrot.slane %v10373_v3, 9  ;;  %11836 = vmatprep.mubr.bf16.mxu1 %v12150_v47  ;;  %v5183_v34 = vsel %vm12750_vm2, %v13278_v2, %v5182_v42 }
  0xc7   : > { %v10375_v20 = vld [vmem:[%s12713_s27 + $0x98] sm:$0xf]  ;;  %1103 = vst [vmem:[#allocation4 + $0x28] sm:$0xf] %v663_v63  ;;  %v1750_v56 = vrot.slane %v1749_v44, 4  ;;  %v2399_v22 = vrot.slane %v10374_v53, 5 }
  0xc8   : > { %1433 = vst [vmem:[#allocation4 + $0xf8] sm:$0xf] %v1311_v17  ;;  %v13330_v0 = vld [vmem:[%s12713_s27 + $0xac] sm:$0xf]  ;;  %v13333_v33 = vld [vmem:[%s12713_s27 + $0xb0] sm:$0xf]  ;;  %v1314_v43 = vsel %vm12750_vm2, %v1312_v7, %v1313_v29 }
  0xc9   : > { %v13348_v60 = vld [vmem:[%s12713_s27 + $0xa8] sm:$0xe]  ;;  %v1168_v62 = vld [vmem:[%s12713_s27 + $0x84] sm:$0xf]  ;;  %v1169_v4 = vld [vmem:[%s12713_s27 + $0x88] sm:$0x1]  ;;  %v1755_v49 = vsel %vm13159_vm5, %v1750_v56, %v13320_v10  ;;  %v2400_v45 = vsel %vm12750_vm2, %v10403_v18, %v2399_v22 }
  0xca   : > { %1434 = vst [vmem:[#allocation4 + $0x104] sm:$0xf] %v1314_v43  ;;  %v2401_v12 = vrot.slane %v2399_v22, 4  ;;  %v2402_v48 = vrot.slane %v10375_v20, 5  ;;  %v5189_v42 = vrot.slane %v13330_v0, 5  ;;  %v1315_v2 = vrot.slane %v1313_v29, 4 }
  0xcb   : > { %v13353_v14 = vld [vmem:[#allocation4 + $0x18] sm:$0xff]  ;;  %v5192_v26 = vrot.slane %v13333_v33, 5  ;;  %v1316_v54 = vrot.slane %v1168_v62, 5  ;;  %v1319_v50 = vrot.slane %v1169_v4, 5  ;;  %v12152_v59 = vld [vmem:[#allocation4 + $0xe0] ss:$12 sps:$4 sm:$0xff]  }
  0xcc   : > { %v10376_v21 = vld [vmem:[%s12713_s27 + $0x9c] sm:$0xf]  ;;  %1624 = vst [vmem:[#allocation4 + $0x18] sm:$0xf] %v10260_v15  ;;  %2194 = vst [vmem:[#allocation4 + $0x1c] sm:$0xf] %v1745_v31  ;;  %11837 = vmatmul.mubr.bf16.gmra.mxu1 %v12152_v59  ;;  %v2403_v20 = vsel %vm12750_vm2, %v2401_v12, %v2402_v48 }
  0xcd   : > { %v10377_v40 = vld [vmem:[%s12713_s27 + $0xa0] sm:$0x1]  ;;  %5310 = vst [vmem:[#allocation4 + $0xe0] sm:$0xf] %v5183_v34  ;;  %5311 = vst [vmem:[#allocation4 + $0xec] sm:$0xf] %v5186_v30  ;;  %v1317_v3 = vsel %vm12750_vm2, %v1315_v2, %v1316_v54 }
  0xce   : > { %v10261_v44 = vld [vmem:[%s12713_s27 + $0x24] sm:$0xf]  ;;  %v1318_v53 = vrot.slane %v1316_v54, 4  ;;  %v13368_v47 = vld [vmem:[%s12713_s27 + $0xb4] sm:$0xf]  ;;  %v10769_v29 = vrot.slane %v13348_v60, 9 }
  0xcf   : > { %v5191_v63 = vrot.slane %v5189_v42, 4  ;;  %1435 = vst [vmem:[#allocation4 + $0x110] sm:$0xf] %v1317_v3  ;;  %v2404_v10 = vrot.slane %v2402_v48, 4  ;;  %v2405_v15 = vrot.slane %v10376_v21, 5  ;;  %v13373_v17 = vld [vmem:[#allocation4 + $0x24] sm:$0xff] }
  0xd0   : > { %v13375_v7 = vld [vmem:[#allocation4 + $0xf8] sm:$0xf]  ;;  %v1320_v18 = vsel %vm12750_vm2, %v1318_v53, %v1319_v50  ;;  %v2408_v56 = vrot.slane %v10377_v40, 5  ;;  %1625 = vst [vmem:[#allocation4 + $0x24] sm:$0xf] %v10261_v44  ;;  %v13386_v34 = vrot.slane %v5192_v26, 4 }
  0xd1   : > { %16976 = vst [vmem:[#allocation15_spill] sm:$0xff] %v13375_v7  ;;  %v13382_v22 = vld [vmem:[%s12713_s27 + $0xb8] sm:$0x1]  ;;  %2195 = vst [vmem:[#allocation4 + $0x28] sm:$0xf] %v1755_v49  ;;  %v16945_v30 = vrot.slane %v13368_v47, 5  ;;  %v2406_v12 = vsel %vm12750_vm2, %v2404_v10, %v2405_v15 }
  0xd2   : > { %2522 = vst [vmem:[#allocation4 + $0xf8] sm:$0xf] %v2400_v45  ;;  %1436 = vst [vmem:[#allocation4 + $0x11c] sm:$0xf] %v1320_v18  ;;  %v491_v31 = vld [vmem:[%s12713_s27 + $0x18] sm:$0xf] }
  0xd3   : > { %v492_v43 = vld [vmem:[%s12713_s27 + $0x1c] sm:$0xf]  ;;  %v13391_v60 = vld [vmem:[#allocation4 + $0x104] sm:$0xf]  ;;  %531 = vst [vmem:[#allocation4 + $0x30] sm:$0xf] %v491_v31 }
  0xd4   : > { %16977 = vst [vmem:[#allocation16_spill] sm:$0xff] %v13391_v60  ;;  %532 = vst [vmem:[#allocation4 + $0x3c] sm:$0xf] %v492_v43  ;;  %v572_v62 = vld [vmem:[%s12713_s27 + $0x18] sm:$0xf]  ;;  %v2407_v48 = vrot.slane %v2405_v15, 4 }
  0xd5   : > { %v573_v4 = vld [vmem:[%s12713_s27 + $0x1c] sm:$0xf]  ;;  %2523 = vst [vmem:[#allocation4 + $0x104] sm:$0xf] %v2403_v20  ;;  %v574_v2 = vld [vmem:[%s12713_s27 + $0x20] sm:$0xf] }
  0xd6   : > { %v665_v54 = vshrl.u32 %v572_v62, 16  ;;  %v668_v50 = vshll.u32 %v572_v62, 16  ;;  %v674_v21 = vshll.u32 %v573_v4, 16  ;;  %v678_v59 = vshrl.u32 %v573_v4, 16  ;;  %v12192_v49 = vld [vmem:[%s16938_s1 + $0xb0] sm:$0xff]  }
  0xd7   : > { %v684_v40 = vshll.u32 %v574_v2, 16  ;;  %v688_v44 = vshrl.u32 %v574_v2, 16  ;;  %v5197_v45 = vrot.slane %v16945_v30, 4  ;;  %v5198_v3 = vrot.slane %v13382_v22, 5  ;;  %v10303_v15 = vld [vmem:[%s12713_s27 + $0x30] sm:$0xf]  ;;  %11862 = vmatprep.subr.bf16.mxu0 %v12192_v49 }
  0xd8   : > { %v667_v53 = vrot.slane %v665_v54, 4  ;;  %v670_v10 = vrot.slane %v668_v50, 5  ;;  %v13405_v20 = vld [vmem:[#allocation4 + $0x110] sm:$0xf]  ;;  %v676_v18 = vrot.slane %v674_v21, 5  ;;  %v680_v31 = vrot.slane %v678_v59, 4  ;;  %11863 = vmatpush3.bf16.msra.mxu0 %v12192_v49 }
  0xd9   : > { %16978 = vst [vmem:[#allocation17_spill] sm:$0xff] %v13405_v20  ;;  %v13407_v43 = vrot.slane %v684_v40, 5  ;;  %v1757_v62 = vshrl.u32 %v10303_v15, 16  ;;  %v2409_v4 = vsel %vm12750_vm2, %v2407_v48, %v2408_v56  ;;  %2524 = vst [vmem:[#allocation4 + $0x110] sm:$0xf] %v2406_v12  ;;  %v1760_v22 = vshll.u32 %v10303_v15, 16 }
  0xda   : > { %v671_v2 = vor.u32 %v670_v10, %v667_v53  ;;  %v10304_v35 = vld [vmem:[%s12713_s27 + $0x34] sm:$0xf]  ;;  %v13413_v8 = vld [vmem:[%s12713_s27 + $0x38] sm:$0xf]  ;;  %v690_v54 = vrot.slane %v688_v44, 4  ;;  %v5190_v21 = vsel %vm12750_vm2, %v10769_v29, %v5189_v42  ;;  %v5193_v56 = vsel %vm12750_vm2, %v5191_v63, %v5192_v26 }
  0xdb   : > { %v12154_v50 = vld [vmem:[#allocation4 + $0x1c] ss:$12 sps:$4 sm:$0xff]   ;;  %v12156_v30 = vld [vmem:[#allocation4 + $0x18] ss:$12 sps:$4 sm:$0xff]   ;;  %v681_v12 = vor.u32 %v680_v31, %v676_v18  ;;  %v1759_v48 = vrot.slane %v1757_v62, 4  ;;  %v1762_v53 = vrot.slane %v1760_v22, 5 }
  0xdc   : > { %v13423_v59 = vld [vmem:[#allocation4 + $0x11c] sm:$0xf]  ;;  %v672_v40 = vrot.slane %v671_v2, 4  ;;  %3175 = vmatprep.mubr.bf16.mxu0 %v12154_v50  ;;  %v12157_v44 = vld [vmem:[#allocation4 + $0xf8] ss:$12 sps:$4 sm:$0xff]   ;;  %v1766_v49 = vshll.u32 %v10304_v35, 16 }
  0xdd   : > { %16979 = vst [vmem:[#allocation18_spill] sm:$0xff] %v13423_v59  ;;  %2525 = vst [vmem:[#allocation4 + $0x11c] sm:$0xf] %v2409_v4  ;;  %v682_v0 = vrot.slane %v681_v12, 4  ;;  %3176 = vmatmul.mubr.bf16.gmra.mxu0 %v12156_v30  ;;  %v1763_v42 = vor.u32 %v1762_v53, %v1759_v48  ;;  %v1770_v26 = vshrl.u32 %v10304_v35, 16  ;;  %v1776_v29 = vshll.u32 %v13413_v8, 16  ;;  %11840 = vmatprep.mubr.bf16.mxu1 %v12157_v44 }
  0xde   : > { %5312 = vst [vmem:[#allocation4 + $0xf8] sm:$0xf] %v5190_v21  ;;  %5313 = vst [vmem:[#allocation4 + $0x104] sm:$0xf] %v5193_v56  ;;  %v677_v33 = vsel %vm13159_vm5, %v672_v40, %v676_v18  ;;  %v1768_v10 = vrot.slane %v1766_v49, 5  ;;  %v691_v4 = vor.u32 %v690_v54, %v13407_v43  ;;  %v16980_v2 = vrot.slane %v13368_v47, 5 }
  0xdf   : > { %v687_v63 = vsel %vm13159_vm5, %v682_v0, %v13407_v43  ;;  %1104 = vst [vmem:[#allocation4 + $0x34] sm:$0xf] %v677_v33  ;;  %v1170_v30 = vld [vmem:[%s12713_s27 + $0x90] sm:$0xe]  ;;  %v1171_v15 = vld [vmem:[%s12713_s27 + $0x94] sm:$0xf]  ;;  %v5199_v12 = vsel %vm12750_vm2, %v5197_v45, %v5198_v3 }
  0xe0   : > { %1105 = vst [vmem:[#allocation4 + $0x40] sm:$0xf] %v687_v63  ;;  %v1764_v31 = vrot.slane %v1763_v42, 4  ;;  %v1772_v18 = vrot.slane %v1770_v26, 4  ;;  %v1172_v35 = vld [vmem:[%s12713_s27 + $0x98] sm:$0xf]  ;;  %v5196_v22 = vsel %vm12750_vm2, %v13386_v34, %v16980_v2 }
  0xe1   : > { %v10254_v62 = vrot.slane %v1170_v30, 9  ;;  %v1323_v50 = vrot.slane %v1171_v15, 5  ;;  %v1326_v21 = vrot.slane %v1172_v35, 5  ;;  %v10378_v56 = vld [vmem:[%s12713_s27 + $0xa8] sm:$0xe]  ;;  %v13444_v53 = vrot.slane %v1776_v29, 5 }
  0xe2   : > { %v10262_v48 = vld [vmem:[%s12713_s27 + $0x30] sm:$0xf]  ;;  %v1773_v40 = vor.u32 %v1772_v18, %v1768_v10  ;;  %v10379_v43 = vld [vmem:[%s12713_s27 + $0xac] sm:$0xf]  ;;  %v10263_v47 = vld [vmem:[%s12713_s27 + $0x34] sm:$0xf]  ;;  %v1769_v45 = vsel %vm13159_vm5, %v1764_v31, %v1768_v10 }
  0xe3   : > { %v10380_v54 = vld [vmem:[%s12713_s27 + $0xb0] sm:$0xf]  ;;  %v1324_v34 = vsel %vm12750_vm2, %v10254_v62, %v1323_v50  ;;  %v1325_v0 = vrot.slane %v1323_v50, 4  ;;  %v10404_v49 = vrot.slane %v10378_v56, 9  ;;  %v2412_v33 = vrot.slane %v10379_v43, 5 }
  0xe4   : > { %v13453_v42 = vld [vmem:[%s12713_s27 + $0xc0] sm:$0xe]  ;;  %v12158_v26 = vld [vmem:[#allocation4 + $0x110] ss:$12 sps:$4 sm:$0xff]   ;;  %v1774_v3 = vrot.slane %v1773_v40, 4  ;;  %v13457_v29 = vrot.slane %v691_v4, 4 }
  0xe5   : > { %1437 = vst [vmem:[#allocation4 + $0x128] sm:$0xf] %v1324_v34  ;;  %5314 = vst [vmem:[#allocation4 + $0x110] sm:$0xf] %v5196_v22  ;;  %v1327_v63 = vsel %vm12750_vm2, %v1325_v0, %v1326_v21  ;;  %v2415_v30 = vrot.slane %v10380_v54, 5  ;;  %v1328_v35 = vrot.slane %v1326_v21, 4  ;;  %11841 = vmatmul.mubr.bf16.gmra.mxu1 %v12158_v26 }
  0xe6   : > { %5315 = vst [vmem:[#allocation4 + $0x11c] sm:$0xf] %v5199_v12  ;;  %v13462_v15 = vld [vmem:[%s12713_s27 + $0xc4] sm:$0xf]  ;;  %v13465_v10 = vld [vmem:[#allocation4 + $0x30] sm:$0xff]  ;;  %v1779_v31 = vsel %vm13159_vm5, %v1774_v3, %v13444_v53  ;;  %v2414_v62 = vrot.slane %v2412_v33, 4  ;;  %v2413_v12 = vsel %vm12750_vm2, %v10404_v49, %v2412_v33 }
  0xe7   : > { %1438 = vst [vmem:[#allocation4 + $0x134] sm:$0xf] %v1327_v63  ;;  %v13471_v4 = vld [vmem:[%s12713_s27 + $0xc8] sm:$0xf]  ;;  %v1173_v2 = vld [vmem:[%s12713_s27 + $0x9c] sm:$0xf] }
  0xe8   : > { %v13474_v22 = vld [vmem:[#allocation4 + $0x3c] sm:$0xff]  ;;  %1626 = vst [vmem:[#allocation4 + $0x30] sm:$0xf] %v10262_v48  ;;  %2196 = vst [vmem:[#allocation4 + $0x34] sm:$0xf] %v1769_v45  ;;  %v1329_v21 = vrot.slane %v1173_v2, 5  ;;  %v2416_v3 = vsel %vm12750_vm2, %v2414_v62, %v2415_v30 }
  0xe9   : > { %v1174_v50 = vld [vmem:[%s12713_s27 + $0xa0] sm:$0x1]  ;;  %v10381_v56 = vld [vmem:[%s12713_s27 + $0xb4] sm:$0xf]  ;;  %1627 = vst [vmem:[#allocation4 + $0x3c] sm:$0xf] %v10263_v47 }
  0xea   : > { %2197 = vst [vmem:[#allocation4 + $0x40] sm:$0xf] %v1779_v31  ;;  %v5202_v40 = vrot.slane %v13462_v15, 5  ;;  %v1332_v43 = vrot.slane %v1174_v50, 5  ;;  %v10382_v54 = vld [vmem:[%s12713_s27 + $0xb8] sm:$0x1]  ;;  %v1330_v0 = vsel %vm12750_vm2, %v1328_v35, %v1329_v21 }
  0xeb   : > { %v2418_v34 = vrot.slane %v10381_v56, 5  ;;  %v5205_v48 = vrot.slane %v13471_v4, 5  ;;  %v1331_v26 = vrot.slane %v1329_v21, 4  ;;  %v2417_v47 = vrot.slane %v2415_v30, 4  ;;  %v13486_v45 = vld [vmem:[%s12713_s27 + $0xcc] sm:$0xf] }
  0xec   : > { %1439 = vst [vmem:[#allocation4 + $0x140] sm:$0xf] %v1330_v0  ;;  %v13489_v49 = vld [vmem:[%s12713_s27 + $0xd0] sm:$0x1]  ;;  %v13491_v33 = vld [vmem:[#allocation4 + $0x128] sm:$0xf] }
  0xed   : > { %16981 = vst [vmem:[#allocation19_spill] sm:$0xff] %v13491_v33  ;;  %v1333_v63 = vsel %vm12750_vm2, %v1331_v26, %v1332_v43  ;;  %v2420_v15 = vrot.slane %v2418_v34, 4  ;;  %v2421_v31 = vrot.slane %v10382_v54, 5  ;;  %v493_v35 = vld [vmem:[%s12713_s27 + $0x20] sm:$0xf]  ;;  %v5204_v56 = vrot.slane %v5202_v40, 4 }
  0xee   : > { %2526 = vst [vmem:[#allocation4 + $0x128] sm:$0xf] %v2413_v12  ;;  %1440 = vst [vmem:[#allocation4 + $0x14c] sm:$0xf] %v1333_v63  ;;  %v494_v4 = vld [vmem:[%s12713_s27 + $0x24] sm:$0xf] }
  0xef   : > { %533 = vst [vmem:[#allocation4 + $0x48] sm:$0xf] %v493_v35  ;;  %v575_v2 = vld [vmem:[%s12713_s27 + $0x24] sm:$0xf]  ;;  %v576_v50 = vld [vmem:[%s12713_s27 + $0x28] sm:$0x1]  ;;  %v2419_v35 = vsel %vm12750_vm2, %v2417_v47, %v2418_v34 }
  0xf0   : > { %v13501_v21 = vld [vmem:[#allocation4 + $0x134] sm:$0xf]  ;;  %534 = vst [vmem:[#allocation4 + $0x54] sm:$0xf] %v494_v4  ;;  %v694_v0 = vshll.u32 %v575_v2, 16  ;;  %v698_v30 = vshrl.u32 %v575_v2, 16  ;;  %v2422_v4 = vsel %vm12750_vm2, %v2420_v15, %v2421_v31 }
  0xf1   : > { %16982 = vst [vmem:[#allocation20_spill] sm:$0xff] %v13501_v21  ;;  %2527 = vst [vmem:[#allocation4 + $0x134] sm:$0xf] %v2416_v3  ;;  %v13503_v62 = vrot.slane %v5205_v48, 4  ;;  %v704_v54 = vshll.u32 %v576_v50, 16  ;;  %v16984_v12 = vshrl.u32 %v13413_v8, 16 }
  0xf2   : > { %v12160_v26 = vld [vmem:[#allocation4 + $0x34] ss:$12 sps:$4 sm:$0xff]   ;;  %v12163_v63 = vld [vmem:[#allocation4 + $0x30] ss:$12 sps:$4 sm:$0xff]   ;;  %v696_v18 = vrot.slane %v694_v0, 5  ;;  %v700_v44 = vrot.slane %v698_v30, 4 }
  0xf3   : > { %v706_v33 = vrot.slane %v704_v54, 5  ;;  %v10306_v3 = vld [vmem:[%s12713_s27 + $0x3c] sm:$0xf]  ;;  %v10307_v2 = vld [vmem:[%s12713_s27 + $0x40] sm:$0x1]  ;;  %3183 = vmatprep.mubr.bf16.mxu0 %v12160_v26  ;;  %v1782_v34 = vrot.slane %v16984_v12, 4  ;;  %v5206_v12 = vsel %vm12750_vm2, %v5204_v56, %v5205_v48 }
  0xf4   : > { %v13513_v43 = vld [vmem:[#allocation4 + $0x140] sm:$0xf]  ;;  %v697_v50 = vsel %vm13159_vm5, %v13457_v29, %v696_v18  ;;  %v1786_v47 = vshll.u32 %v10306_v3, 16  ;;  %v1790_v0 = vshrl.u32 %v10306_v3, 16  ;;  %v12202_v15 = vld [vmem:[%s16938_s1 + $0xa8] sm:$0xff]   ;;  %3184 = vmatmul.mubr.bf16.gmra.mxu0 %v12163_v63  ;;  %v16985_v31 = vrot.slane %v13453_v42, 9 }
  0xf5   : > { %16983 = vst [vmem:[#allocation21_spill] sm:$0xff] %v13513_v43  ;;  %2528 = vst [vmem:[#allocation4 + $0x140] sm:$0xf] %v2419_v35  ;;  %v701_v54 = vor.u32 %v700_v44, %v696_v18  ;;  %v1796_v29 = vshll.u32 %v10307_v2, 16  ;;  %v1175_v26 = vld [vmem:[%s12713_s27 + $0xa8] sm:$0xe]  ;;  %v1783_v43 = vor.u32 %v1782_v34, %v13444_v53  ;;  %11864 = vmatprep.subr.bf16.mxu0 %v12202_v15 }
  0xf6   : > { %v5203_v30 = vsel %vm12750_vm2, %v16985_v31, %v5202_v40  ;;  %1106 = vst [vmem:[#allocation4 + $0x4c] sm:$0xf] %v697_v50  ;;  %v1176_v8 = vld [vmem:[%s12713_s27 + $0xac] sm:$0xf]  ;;  %v1788_v63 = vrot.slane %v1786_v47, 5  ;;  %v1792_v21 = vrot.slane %v1790_v0, 4  ;;  %11865 = vmatpush3.bf16.msra.mxu0 %v12202_v15 }
  0xf7   : > { %v13531_v3 = vld [vmem:[#allocation4 + $0x14c] sm:$0xf]  ;;  %v16987_v42 = vrot.slane %v13486_v45, 5  ;;  %v702_v44 = vrot.slane %v701_v54, 4  ;;  %v1177_v18 = vld [vmem:[%s12713_s27 + $0xb0] sm:$0xf] }
  0xf8   : > { %16986 = vst [vmem:[#allocation22_spill] sm:$0xff] %v13531_v3  ;;  %2529 = vst [vmem:[#allocation4 + $0x14c] sm:$0xf] %v2422_v4  ;;  %v10255_v35 = vrot.slane %v1175_v26, 9  ;;  %v1336_v2 = vrot.slane %v1176_v8, 5  ;;  %v1784_v56 = vrot.slane %v1783_v43, 4  ;;  %v1793_v50 = vor.u32 %v1792_v21, %v1788_v63 }
  0xf9   : > { %v5210_v40 = vrot.slane %v16987_v42, 4  ;;  %v12164_v48 = vld [vmem:[#allocation4 + $0x128] ss:$12 sps:$4 sm:$0xff]   ;;  %v1339_v53 = vrot.slane %v1177_v18, 5  ;;  %v707_v4 = vsel %vm13159_vm5, %v702_v44, %v706_v33  ;;  %v10383_v0 = vld [vmem:[%s12713_s27 + $0xc0] sm:$0xe] }
  0xfa   : > { %5316 = vst [vmem:[#allocation4 + $0x128] sm:$0xf] %v5203_v30  ;;  %5317 = vst [vmem:[#allocation4 + $0x134] sm:$0xf] %v5206_v12  ;;  %v1337_v34 = vsel %vm12750_vm2, %v10255_v35, %v1336_v2  ;;  %v1338_v47 = vrot.slane %v1336_v2, 4  ;;  %11844 = vmatprep.mubr.bf16.mxu1 %v12164_v48  ;;  %v1789_v21 = vsel %vm13159_vm5, %v1784_v56, %v1788_v63  ;;  %v1798_v43 = vrot.slane %v1796_v29, 5 }
  0xfb   : > { %v10384_v31 = vld [vmem:[%s12713_s27 + $0xc4] sm:$0xf]  ;;  %1107 = vst [vmem:[#allocation4 + $0x58] sm:$0xf] %v707_v4  ;;  %v10264_v15 = vld [vmem:[%s12713_s27 + $0x38] sm:$0xf] }
  0xfc   : > { %1441 = vst [vmem:[#allocation4 + $0x158] sm:$0xf] %v1337_v34  ;;  %v10385_v30 = vld [vmem:[%s12713_s27 + $0xc8] sm:$0xf]  ;;  %v2425_v54 = vrot.slane %v10384_v31, 5  ;;  %v1794_v33 = vrot.slane %v1793_v50, 4  ;;  %v1340_v26 = vsel %vm12750_vm2, %v1338_v47, %v1339_v53 }
  0xfd   : > { %v10405_v8 = vrot.slane %v10383_v0, 9  ;;  %v13550_v12 = vld [vmem:[%s12713_s27 + $0xd8] sm:$0xe]  ;;  %v13553_v42 = vld [vmem:[%s12713_s27 + $0xdc] sm:$0xf]  ;;  %v16988_v44 = vrot.slane %v13486_v45, 5 }
  0xfe   : > { %v16989_v63 = vrot.slane %v13489_v49, 5  ;;  %v13564_v35 = vld [vmem:[#allocation4 + $0x48] sm:$0xff]  ;;  %1442 = vst [vmem:[#allocation4 + $0x164] sm:$0xf] %v1340_v26  ;;  %v2428_v2 = vrot.slane %v10385_v30, 5  ;;  %v2427_v45 = vrot.slane %v2425_v54, 4  ;;  %v1799_v47 = vsel %vm13159_vm5, %v1794_v33, %v1798_v43 }
  0xff   : > { %v5209_v29 = vsel %vm12750_vm2, %v13503_v62, %v16988_v44  ;;  %v13567_v48 = vld [vmem:[%s12713_s27 + $0xe0] sm:$0xf]  ;;  %1628 = vst [vmem:[#allocation4 + $0x48] sm:$0xf] %v10264_v15  ;;  %2198 = vst [vmem:[#allocation4 + $0x4c] sm:$0xf] %v1789_v21  ;;  %v2426_v0 = vsel %vm12750_vm2, %v10405_v8, %v2425_v54 }
 0x100   : > { %v5212_v18 = vsel %vm12750_vm2, %v5210_v40, %v16989_v63  ;;  %v5215_v56 = vrot.slane %v13553_v42, 5  ;;  %v5218_v62 = vrot.slane %v13567_v48, 5  ;;  %v1178_v49 = vld [vmem:[%s12713_s27 + $0xb4] sm:$0xf]  ;;  %v1341_v50 = vrot.slane %v1339_v53, 4 }
 0x101   : > { %v12165_v4 = vld [vmem:[#allocation4 + $0x140] ss:$12 sps:$4 sm:$0xff]   ;;  %v1179_v40 = vld [vmem:[%s12713_s27 + $0xb8] sm:$0x1]  ;;  %v10265_v34 = vld [vmem:[%s12713_s27 + $0x3c] sm:$0xf]  ;;  %v2429_v43 = vsel %vm12750_vm2, %v2427_v45, %v2428_v2 }
 0x102   : > { %5318 = vst [vmem:[#allocation4 + $0x140] sm:$0xf] %v5209_v29  ;;  %5319 = vst [vmem:[#allocation4 + $0x14c] sm:$0xf] %v5212_v18  ;;  %v1342_v31 = vrot.slane %v1178_v49, 5  ;;  %v1345_v15 = vrot.slane %v1179_v40, 5  ;;  %11845 = vmatmul.mubr.bf16.gmra.mxu1 %v12165_v4 }
 0x103   : > { %v10386_v21 = vld [vmem:[%s12713_s27 + $0xcc] sm:$0xf]  ;;  %v10771_v30 = vrot.slane %v13550_v12, 9  ;;  %v10387_v26 = vld [vmem:[%s12713_s27 + $0xd0] sm:$0x1]  ;;  %v2430_v53 = vrot.slane %v2428_v2, 4 }
 0x104   : > { %v2431_v42 = vrot.slane %v10386_v21, 5  ;;  %v13581_v44 = vld [vmem:[#allocation4 + $0x54] sm:$0xff]  ;;  %v1343_v54 = vsel %vm12750_vm2, %v1341_v50, %v1342_v31  ;;  %v1344_v33 = vrot.slane %v1342_v31, 4  ;;  %v13590_v8 = vld [vmem:[%s12713_s27 + $0xe4] sm:$0xf]  ;;  %v5217_v12 = vrot.slane %v5215_v56, 4 }
 0x105   : > { %v13583_v29 = vld [vmem:[#allocation4 + $0x158] sm:$0xf]  ;;  %1629 = vst [vmem:[#allocation4 + $0x54] sm:$0xf] %v10265_v34  ;;  %2199 = vst [vmem:[#allocation4 + $0x58] sm:$0xf] %v1799_v47 }
 0x106   : > { %16990 = vst [vmem:[#allocation23_spill] sm:$0xff] %v13583_v29  ;;  %2530 = vst [vmem:[#allocation4 + $0x158] sm:$0xf] %v2426_v0  ;;  %v2433_v63 = vrot.slane %v2431_v42, 4  ;;  %v2434_v18 = vrot.slane %v10387_v26, 5  ;;  %v13592_v48 = vrot.slane %v5218_v62, 4  ;;  %v1346_v45 = vsel %vm12750_vm2, %v1344_v33, %v1345_v15 }
 0x107   : > { %1443 = vst [vmem:[#allocation4 + $0x170] sm:$0xf] %v1343_v54  ;;  %v13594_v2 = vld [vmem:[#allocation4 + $0x164] sm:$0xf]  ;;  %v10753_v49 = vld [vmem:[%s12713_s27 + $0xe8] sm:$0x1]  ;;  %v2432_v26 = vsel %vm12750_vm2, %v2430_v53, %v2431_v42 }
 0x108   : > { %16991 = vst [vmem:[#allocation24_spill] sm:$0xff] %v13594_v2  ;;  %2531 = vst [vmem:[#allocation4 + $0x164] sm:$0xf] %v2429_v43  ;;  %v5221_v50 = vrot.slane %v13590_v8, 5  ;;  %v495_v4 = vld [vmem:[%s12713_s27 + $0x30] sm:$0xf]  ;;  %v2435_v53 = vsel %vm12750_vm2, %v2433_v63, %v2434_v18 }
 0x109   : > { %1444 = vst [vmem:[#allocation4 + $0x17c] sm:$0xf] %v1346_v45  ;;  %v496_v40 = vld [vmem:[%s12713_s27 + $0x34] sm:$0xf]  ;;  %v577_v34 = vld [vmem:[%s12713_s27 + $0x30] sm:$0xf] }
 0x10a   : > { %535 = vst [vmem:[#allocation4 + $0x60] sm:$0xf] %v495_v4  ;;  %536 = vst [vmem:[#allocation4 + $0x6c] sm:$0xf] %v496_v40  ;;  %v578_v47 = vld [vmem:[%s12713_s27 + $0x34] sm:$0xf]  ;;  %v5216_v40 = vsel %vm12750_vm2, %v10771_v30, %v5215_v56 }
 0x10b   : > { %v13605_v0 = vld [vmem:[%s12713_s27 + $0x38] sm:$0xf]  ;;  %v709_v31 = vshrl.u32 %v577_v34, 16  ;;  %v712_v21 = vshll.u32 %v577_v34, 16  ;;  %v718_v15 = vshll.u32 %v578_v47, 16  ;;  %v722_v54 = vshrl.u32 %v578_v47, 16 }
 0x10c   : > { %v728_v43 = vshll.u32 %v13605_v0, 16  ;;  %v5223_v33 = vrot.slane %v5221_v50, 4  ;;  %v5224_v8 = vrot.slane %v10753_v49, 5  ;;  %v10308_v2 = vld [vmem:[%s12713_s27 + $0x48] sm:$0xf]  ;;  %v5219_v34 = vsel %vm12750_vm2, %v5217_v12, %v5218_v62 }
 0x10d   : > { %v711_v45 = vrot.slane %v709_v31, 4  ;;  %v714_v29 = vrot.slane %v712_v21, 5  ;;  %v12167_v3 = vld [vmem:[#allocation4 + $0x4c] ss:$12 sps:$4 sm:$0xff]   ;;  %v12169_v4 = vld [vmem:[#allocation4 + $0x48] ss:$12 sps:$4 sm:$0xff]  }
 0x10e   : > { %v720_v42 = vrot.slane %v718_v15, 5  ;;  %v13617_v47 = vld [vmem:[#allocation4 + $0x170] sm:$0xf]  ;;  %v724_v31 = vrot.slane %v722_v54, 4  ;;  %v13619_v21 = vrot.slane %v728_v43, 5  ;;  %3191 = vmatprep.mubr.bf16.mxu0 %v12167_v3  ;;  %v1801_v63 = vshrl.u32 %v10308_v2, 16 }
 0x10f   : > { %16992 = vst [vmem:[#allocation25_spill] sm:$0xff] %v13617_v47  ;;  %v715_v49 = vor.u32 %v714_v29, %v711_v45  ;;  %v12170_v20 = vld [vmem:[#allocation4 + $0x158] ss:$12 sps:$4 sm:$0xff]   ;;  %2532 = vst [vmem:[#allocation4 + $0x170] sm:$0xf] %v2432_v26  ;;  %3192 = vmatmul.mubr.bf16.gmra.mxu0 %v12169_v4  ;;  %v732_v29 = vshrl.u32 %v13605_v0, 16 }
 0x110   : > { %v13621_v59 = vld [vmem:[#allocation4 + $0x17c] sm:$0xf]  ;;  %5320 = vst [vmem:[#allocation4 + $0x158] sm:$0xf] %v5216_v40  ;;  %5321 = vst [vmem:[#allocation4 + $0x164] sm:$0xf] %v5219_v34  ;;  %v725_v62 = vor.u32 %v724_v31, %v720_v42  ;;  %11848 = vmatprep.mubr.bf16.mxu1 %v12170_v20  ;;  %v5225_v34 = vsel %vm12750_vm2, %v5223_v33, %v5224_v8 }
 0x111   : > { %16993 = vst [vmem:[#allocation26_spill] sm:$0xff] %v13621_v59  ;;  %2533 = vst [vmem:[#allocation4 + $0x17c] sm:$0xf] %v2435_v53  ;;  %v716_v56 = vrot.slane %v715_v49, 4  ;;  %v10309_v30 = vld [vmem:[%s12713_s27 + $0x4c] sm:$0xf] }
 0x112   : > { %v13625_v12 = vld [vmem:[%s12713_s27 + $0x50] sm:$0xf]  ;;  %v1804_v3 = vshll.u32 %v10308_v2, 16  ;;  %v1810_v18 = vshll.u32 %v10309_v30, 16  ;;  %v1814_v15 = vshrl.u32 %v10309_v30, 16  ;;  %v726_v54 = vrot.slane %v725_v62, 4 }
 0x113   : > { %v721_v26 = vsel %vm13159_vm5, %v716_v56, %v720_v42  ;;  %v1803_v43 = vrot.slane %v1801_v63, 4  ;;  %v1820_v45 = vshll.u32 %v13625_v12, 16  ;;  %v1180_v0 = vld [vmem:[%s12713_s27 + $0xc0] sm:$0xe]  ;;  %v5222_v2 = vsel %vm12750_vm2, %v13592_v48, %v5221_v50  ;;  %v1181_v42 = vld [vmem:[%s12713_s27 + $0xc4] sm:$0xf] }
 0x114   : > { %1108 = vst [vmem:[#allocation4 + $0x64] sm:$0xf] %v721_v26  ;;  %v1806_v4 = vrot.slane %v1804_v3, 5  ;;  %v1812_v40 = vrot.slane %v1810_v18, 5  ;;  %v1816_v20 = vrot.slane %v1814_v15, 4  ;;  %v731_v53 = vsel %vm13159_vm5, %v726_v54, %v13619_v21 }
 0x115   : > { %v1182_v49 = vld [vmem:[%s12713_s27 + $0xc8] sm:$0xf]  ;;  %v10256_v31 = vrot.slane %v1180_v0, 9  ;;  %1109 = vst [vmem:[#allocation4 + $0x70] sm:$0xf] %v731_v53  ;;  %v1349_v30 = vrot.slane %v1181_v42, 5 }
 0x116   : > { %v1807_v56 = vor.u32 %v1806_v4, %v1803_v43  ;;  %v1817_v62 = vor.u32 %v1816_v20, %v1812_v40  ;;  %v1352_v63 = vrot.slane %v1182_v49, 5  ;;  %v10388_v3 = vld [vmem:[%s12713_s27 + $0xd8] sm:$0xe]  ;;  %v10389_v18 = vld [vmem:[%s12713_s27 + $0xdc] sm:$0xf]  ;;  %v13645_v48 = vrot.slane %v1820_v45, 5 }
 0x117   : > { %v10266_v15 = vld [vmem:[%s12713_s27 + $0x48] sm:$0xf]  ;;  %v10390_v50 = vld [vmem:[%s12713_s27 + $0xe0] sm:$0xf]  ;;  %v13648_v33 = vrot.slane %v732_v29, 4  ;;  %v1350_v43 = vsel %vm12750_vm2, %v10256_v31, %v1349_v30  ;;  %v1351_v20 = vrot.slane %v1349_v30, 4 }
 0x118   : > { %v12171_v8 = vld [vmem:[#allocation4 + $0x170] ss:$12 sps:$4 sm:$0xff]   ;;  %v1808_v26 = vrot.slane %v1807_v56, 4  ;;  %v1818_v54 = vrot.slane %v1817_v62, 4  ;;  %v10267_v4 = vld [vmem:[%s12713_s27 + $0x4c] sm:$0xf] }
 0x119   : > { %5322 = vst [vmem:[#allocation4 + $0x170] sm:$0xf] %v5222_v2  ;;  %5323 = vst [vmem:[#allocation4 + $0x17c] sm:$0xf] %v5225_v34  ;;  %v10406_v45 = vrot.slane %v10388_v3, 9  ;;  %v2438_v0 = vrot.slane %v10389_v18, 5  ;;  %11849 = vmatmul.mubr.bf16.gmra.mxu1 %v12171_v8  ;;  %v1353_v62 = vsel %vm12750_vm2, %v1351_v20, %v1352_v63 }
 0x11a   : > { %1445 = vst [vmem:[#allocation4 + $0x188] sm:$0xf] %v1350_v43  ;;  %v12209_v29 = vld [vmem:[%s16938_s1 + $0xa0] sm:$0xff]   ;;  %v1813_v53 = vsel %vm13159_vm5, %v1808_v26, %v1812_v40  ;;  %v1824_v42 = vshrl.u32 %v13625_v12, 16  ;;  %v13660_v2 = vld [vmem:[%s12713_s27 + $0xf0] sm:$0xe]  ;;  %v1823_v56 = vsel %vm13159_vm5, %v1818_v54, %v13645_v48  ;;  %v735_v54 = vor.u32 %v13648_v33, %v13619_v21 }
 0x11b   : > { %v13663_v34 = vld [vmem:[%s12713_s27 + $0xf4] sm:$0xf]  ;;  %v1354_v49 = vrot.slane %v1352_v63, 4  ;;  %v13665_v31 = vld [vmem:[#allocation4 + $0x60] sm:$0xff]  ;;  %v2441_v30 = vrot.slane %v10390_v50, 5  ;;  %11866 = vmatprep.subr.bf16.mxu0 %v12209_v29  ;;  %v2439_v63 = vsel %vm12750_vm2, %v10406_v45, %v2438_v0  ;;  %v2440_v50 = vrot.slane %v2438_v0, 4 }
 0x11c   : > { %v13673_v40 = vld [vmem:[%s12713_s27 + $0xf8] sm:$0xf]  ;;  %v1183_v3 = vld [vmem:[%s12713_s27 + $0xcc] sm:$0xf]  ;;  %1630 = vst [vmem:[#allocation4 + $0x60] sm:$0xf] %v10266_v15  ;;  %11867 = vmatpush3.bf16.msra.mxu0 %v12209_v29 }
 0x11d   : > { %2200 = vst [vmem:[#allocation4 + $0x64] sm:$0xf] %v1813_v53  ;;  %1446 = vst [vmem:[#allocation4 + $0x194] sm:$0xf] %v1353_v62  ;;  %v16946_v12 = vrot.slane %v13663_v34, 5  ;;  %v1355_v8 = vrot.slane %v1183_v3, 5 }
 0x11e   : > { %v1184_v18 = vld [vmem:[%s12713_s27 + $0xd0] sm:$0x1]  ;;  %v10391_v26 = vld [vmem:[%s12713_s27 + $0xe4] sm:$0xf]  ;;  %v10772_v15 = vrot.slane %v13660_v2, 9  ;;  %v5231_v53 = vrot.slane %v13673_v40, 5  ;;  %v2442_v40 = vsel %vm12750_vm2, %v2440_v50, %v2441_v30 }
 0x11f   : > { %v13681_v43 = vld [vmem:[#allocation4 + $0x6c] sm:$0xff]  ;;  %v1358_v20 = vrot.slane %v1184_v18, 5  ;;  %v1356_v21 = vsel %vm12750_vm2, %v1354_v49, %v1355_v8  ;;  %v1357_v33 = vrot.slane %v1355_v8, 4  ;;  %v2444_v29 = vrot.slane %v10391_v26, 5  ;;  %v10392_v45 = vld [vmem:[%s12713_s27 + $0xe8] sm:$0x1] }
 0x120   : > { %1631 = vst [vmem:[#allocation4 + $0x6c] sm:$0xf] %v10267_v4  ;;  %2201 = vst [vmem:[#allocation4 + $0x70] sm:$0xf] %v1823_v56  ;;  %v5230_v0 = vrot.slane %v16946_v12, 4  ;;  %v2443_v2 = vrot.slane %v2441_v30, 4 }
 0x121   : > { %1447 = vst [vmem:[#allocation4 + $0x1a0] sm:$0xf] %v1356_v21  ;;  %v13690_v62 = vld [vmem:[#allocation4 + $0x188] sm:$0xf]  ;;  %v1359_v4 = vsel %vm12750_vm2, %v1357_v33, %v1358_v20  ;;  %v497_v56 = vld [vmem:[%s12713_s27 + $0x38] sm:$0xf] }
 0x122   : > { %16994 = vst [vmem:[#allocation27_spill] sm:$0xff] %v13690_v62  ;;  %2534 = vst [vmem:[#allocation4 + $0x188] sm:$0xf] %v2439_v63  ;;  %v498_v49 = vld [vmem:[%s12713_s27 + $0x3c] sm:$0xf]  ;;  %v2446_v8 = vrot.slane %v2444_v29, 4  ;;  %v2445_v63 = vsel %vm12750_vm2, %v2443_v2, %v2444_v29 }
 0x123   : > { %1448 = vst [vmem:[#allocation4 + $0x1ac] sm:$0xf] %v1359_v4  ;;  %537 = vst [vmem:[#allocation4 + $0x78] sm:$0xf] %v497_v56  ;;  %v580_v3 = vld [vmem:[%s12713_s27 + $0x3c] sm:$0xf] }
 0x124   : > { %v581_v18 = vld [vmem:[%s12713_s27 + $0x40] sm:$0x1]  ;;  %v2447_v26 = vrot.slane %v10392_v45, 5  ;;  %v13703_v21 = vld [vmem:[%s12713_s27 + $0xfc] sm:$0xf]  ;;  %v736_v12 = vrot.slane %v735_v54, 4 }
 0x125   : > { %538 = vst [vmem:[#allocation4 + $0x84] sm:$0xf] %v498_v49  ;;  %v738_v20 = vshll.u32 %v580_v3, 16  ;;  %v13705_v33 = vld [vmem:[#allocation4 + $0x194] sm:$0xf]  ;;  %v742_v62 = vshrl.u32 %v580_v3, 16 }
 0x126   : > { %16995 = vst [vmem:[#allocation28_spill] sm:$0xff] %v13705_v33  ;;  %v748_v47 = vshll.u32 %v581_v18, 16  ;;  %v1826_v30 = vrot.slane %v1824_v42, 4  ;;  %2535 = vst [vmem:[#allocation4 + $0x194] sm:$0xf] %v2442_v40  ;;  %v5233_v4 = vrot.slane %v5231_v53, 4  ;;  %v2448_v3 = vsel %vm12750_vm2, %v2446_v8, %v2447_v26 }
 0x127   : > { %v10758_v50 = vld [vmem:[%s12713_s27 + $0x100] sm:$0x1]  ;;  %v740_v56 = vrot.slane %v738_v20, 5  ;;  %v10311_v59 = vld [vmem:[%s12713_s27 + $0x54] sm:$0xf]  ;;  %v744_v49 = vrot.slane %v742_v62, 4  ;;  %v5232_v26 = vsel %vm12750_vm2, %v5230_v0, %v5231_v53 }
 0x128   : > { %v12174_v45 = vld [vmem:[#allocation4 + $0x64] ss:$12 sps:$4 sm:$0xff]   ;;  %v12177_v7 = vld [vmem:[#allocation4 + $0x60] ss:$12 sps:$4 sm:$0xff]   ;;  %v1827_v54 = vor.u32 %v1826_v30, %v13645_v48  ;;  %v5234_v42 = vrot.slane %v13703_v21, 5  ;;  %v1830_v40 = vshll.u32 %v10311_v59, 16 }
 0x129   : > { %v13712_v60 = vld [vmem:[#allocation4 + $0x1a0] sm:$0xf]  ;;  %v741_v29 = vsel %vm13159_vm5, %v736_v12, %v740_v56  ;;  %v10312_v2 = vld [vmem:[%s12713_s27 + $0x58] sm:$0x1]  ;;  %3199 = vmatprep.mubr.bf16.mxu0 %v12174_v45  ;;  %v745_v18 = vor.u32 %v744_v49, %v740_v56  ;;  %v750_v20 = vrot.slane %v748_v47, 5  ;;  %v1834_v48 = vshrl.u32 %v10311_v59, 16 }
 0x12a   : > { %16996 = vst [vmem:[#allocation29_spill] sm:$0xff] %v13712_v60  ;;  %2536 = vst [vmem:[#allocation4 + $0x1a0] sm:$0xf] %v2445_v63  ;;  %v1828_v62 = vrot.slane %v1827_v54, 4  ;;  %v1185_v30 = vld [vmem:[%s12713_s27 + $0xd8] sm:$0xe]  ;;  %3200 = vmatmul.mubr.bf16.gmra.mxu0 %v12177_v7 }
 0x12b   : > { %1110 = vst [vmem:[#allocation4 + $0x7c] sm:$0xf] %v741_v29  ;;  %v16997_v8 = vrot.slane %v13663_v34, 5  ;;  %v13727_v21 = vld [vmem:[#allocation4 + $0x1ac] sm:$0xf]  ;;  %v1832_v47 = vrot.slane %v1830_v40, 5 }
 0x12c   : > { %16998 = vst [vmem:[#allocation30_spill] sm:$0xff] %v13727_v21  ;;  %v10257_v63 = vrot.slane %v1185_v30, 9  ;;  %2537 = vst [vmem:[#allocation4 + $0x1ac] sm:$0xf] %v2448_v3  ;;  %v5237_v56 = vrot.slane %v10758_v50, 5  ;;  %v746_v45 = vrot.slane %v745_v18, 4 }
 0x12d   : > { %v5229_v12 = vsel %vm12750_vm2, %v10772_v15, %v16997_v8  ;;  %v1836_v59 = vrot.slane %v1834_v48, 4  ;;  %v1840_v49 = vshll.u32 %v10312_v2, 16  ;;  %v1186_v54 = vld [vmem:[%s12713_s27 + $0xdc] sm:$0xf]  ;;  %v5236_v7 = vrot.slane %v5234_v42, 4 }
 0x12e   : > { %v10268_v34 = vld [vmem:[%s12713_s27 + $0x50] sm:$0xf]  ;;  %v1187_v29 = vld [vmem:[%s12713_s27 + $0xe0] sm:$0xf]  ;;  %v1362_v60 = vrot.slane %v1186_v54, 5  ;;  %v751_v53 = vsel %vm13159_vm5, %v746_v45, %v750_v20  ;;  %v1833_v50 = vsel %vm13159_vm5, %v1828_v62, %v1832_v47 }
 0x12f   : > { %v10393_v15 = vld [vmem:[%s12713_s27 + $0xf0] sm:$0xe]  ;;  %v12178_v8 = vld [vmem:[#allocation4 + $0x188] ss:$12 sps:$4 sm:$0xff]   ;;  %v1837_v0 = vor.u32 %v1836_v59, %v1832_v47  ;;  %v1365_v40 = vrot.slane %v1187_v29, 5  ;;  %v1842_v20 = vrot.slane %v1840_v49, 5  ;;  %v5238_v62 = vsel %vm12750_vm2, %v5236_v7, %v5237_v56 }
 0x130   : > { %5324 = vst [vmem:[#allocation4 + $0x188] sm:$0xf] %v5229_v12  ;;  %5325 = vst [vmem:[#allocation4 + $0x194] sm:$0xf] %v5232_v26  ;;  %v1363_v3 = vsel %vm12750_vm2, %v10257_v63, %v1362_v60  ;;  %v1364_v2 = vrot.slane %v1362_v60, 4  ;;  %11852 = vmatprep.mubr.bf16.mxu1 %v12178_v8  ;;  %v5235_v26 = vsel %vm12750_vm2, %v5233_v4, %v5234_v42  ;;  %v10407_v63 = vrot.slane %v10393_v15, 9 }
 0x131   : > { %1111 = vst [vmem:[#allocation4 + $0x88] sm:$0xf] %v751_v53  ;;  %v10394_v18 = vld [vmem:[%s12713_s27 + $0xf4] sm:$0xf]  ;;  %v10395_v48 = vld [vmem:[%s12713_s27 + $0xf8] sm:$0xf] }
 0x132   : > { %v1838_v30 = vrot.slane %v1837_v0, 4  ;;  %1449 = vst [vmem:[#allocation4 + $0x1b8] sm:$0xf] %v1363_v3  ;;  %v2451_v45 = vrot.slane %v10394_v18, 5  ;;  %v13742_v12 = vld [vmem:[%s12713_s27 + $0x108] sm:$0xe]  ;;  %v1366_v60 = vsel %vm12750_vm2, %v1364_v2, %v1365_v40 }
 0x133   : > { %v13748_v47 = vld [vmem:[#allocation4 + $0x78] sm:$0xff]  ;;  %v13753_v59 = vld [vmem:[%s12713_s27 + $0x10c] sm:$0xf]  ;;  %v10269_v49 = vld [vmem:[%s12713_s27 + $0x54] sm:$0xf]  ;;  %v2454_v54 = vrot.slane %v10395_v48, 5 }
 0x134   : > { %1632 = vst [vmem:[#allocation4 + $0x78] sm:$0xf] %v10268_v34  ;;  %2202 = vst [vmem:[#allocation4 + $0x7c] sm:$0xf] %v1833_v50  ;;  %v13757_v4 = vld [vmem:[%s12713_s27 + $0x110] sm:$0xf]  ;;  %v1843_v15 = vsel %vm13159_vm5, %v1838_v30, %v1842_v20  ;;  %v2452_v53 = vsel %vm12750_vm2, %v10407_v63, %v2451_v45 }
 0x135   : > { %1450 = vst [vmem:[#allocation4 + $0x1c4] sm:$0xf] %v1366_v60  ;;  %v1367_v42 = vrot.slane %v1365_v40, 4  ;;  %v12179_v56 = vld [vmem:[#allocation4 + $0x1a0] ss:$12 sps:$4 sm:$0xff]   ;;  %v2453_v7 = vrot.slane %v2451_v45, 4 }
 0x136   : > { %v5241_v29 = vrot.slane %v13753_v59, 5  ;;  %5326 = vst [vmem:[#allocation4 + $0x1a0] sm:$0xf] %v5235_v26  ;;  %5327 = vst [vmem:[#allocation4 + $0x1ac] sm:$0xf] %v5238_v62  ;;  %v5244_v34 = vrot.slane %v13757_v4, 5  ;;  %11853 = vmatmul.mubr.bf16.gmra.mxu1 %v12179_v56 }
 0x137   : > { %v1188_v8 = vld [vmem:[%s12713_s27 + $0xe4] sm:$0xf]  ;;  %v10773_v0 = vrot.slane %v13742_v12, 9  ;;  %v1189_v40 = vld [vmem:[%s12713_s27 + $0xe8] sm:$0x1]  ;;  %v2456_v26 = vrot.slane %v2454_v54, 4  ;;  %v2455_v45 = vsel %vm12750_vm2, %v2453_v7, %v2454_v54 }
 0x138   : > { %v1368_v50 = vrot.slane %v1188_v8, 5  ;;  %v10396_v3 = vld [vmem:[%s12713_s27 + $0xfc] sm:$0xf]  ;;  %v13769_v2 = vld [vmem:[#allocation4 + $0x84] sm:$0xff]  ;;  %v1371_v18 = vrot.slane %v1189_v40, 5  ;;  %v5243_v12 = vrot.slane %v5241_v29, 4 }
 0x139   : > { %v10397_v48 = vld [vmem:[%s12713_s27 + $0x100] sm:$0x1]  ;;  %v2457_v30 = vrot.slane %v10396_v3, 5  ;;  %1633 = vst [vmem:[#allocation4 + $0x84] sm:$0xf] %v10269_v49  ;;  %v13784_v4 = vrot.slane %v5244_v34, 4 }
 0x13a   : > { %2203 = vst [vmem:[#allocation4 + $0x88] sm:$0xf] %v1843_v15  ;;  %v13772_v20 = vld [vmem:[#allocation4 + $0x1b8] sm:$0xf]  ;;  %v1369_v62 = vsel %vm12750_vm2, %v1367_v42, %v1368_v50  ;;  %v1370_v60 = vrot.slane %v1368_v50, 4  ;;  %v2460_v59 = vrot.slane %v10397_v48, 5 }
 0x13b   : > { %16999 = vst [vmem:[#allocation31_spill] sm:$0xff] %v13772_v20  ;;  %v13779_v63 = vld [vmem:[%s12713_s27 + $0x114] sm:$0xf]  ;;  %2538 = vst [vmem:[#allocation4 + $0x1b8] sm:$0xf] %v2452_v53  ;;  %v2459_v7 = vrot.slane %v2457_v30, 4  ;;  %v2458_v40 = vsel %vm12750_vm2, %v2456_v26, %v2457_v30 }
 0x13c   : > { %1451 = vst [vmem:[#allocation4 + $0x1d0] sm:$0xf] %v1369_v62  ;;  %v13782_v49 = vld [vmem:[%s12713_s27 + $0x118] sm:$0x1]  ;;  %v13786_v54 = vld [vmem:[#allocation4 + $0x1c4] sm:$0xf]  ;;  %v1372_v56 = vsel %vm12750_vm2, %v1370_v60, %v1371_v18 }
 0x13d   : > { %17000 = vst [vmem:[#allocation32_spill] sm:$0xff] %v13786_v54  ;;  %v16947_v42 = vrot.slane %v13779_v63, 5  ;;  %2539 = vst [vmem:[#allocation4 + $0x1c4] sm:$0xf] %v2455_v45  ;;  %v499_v15 = vld [vmem:[%s12713_s27 + $0x48] sm:$0xf] }
 0x13e   : > { %1452 = vst [vmem:[#allocation4 + $0x1dc] sm:$0xf] %v1372_v56  ;;  %v500_v8 = vld [vmem:[%s12713_s27 + $0x4c] sm:$0xf]  ;;  %v12218_v53 = vld [vmem:[%s16938_s1 + $0x98] sm:$0xff]   ;;  %v5250_v18 = vrot.slane %v13782_v49, 5  ;;  %v5242_v49 = vsel %vm12750_vm2, %v10773_v0, %v5241_v29 }
 0x13f   : > { %539 = vst [vmem:[#allocation4 + $0x90] sm:$0xf] %v499_v15  ;;  %540 = vst [vmem:[#allocation4 + $0x9c] sm:$0xf] %v500_v8  ;;  %v582_v50 = vld [vmem:[%s12713_s27 + $0x48] sm:$0xf]  ;;  %11868 = vmatprep.subr.bf16.mxu0 %v12218_v53 }
 0x140   : > { %v583_v3 = vld [vmem:[%s12713_s27 + $0x4c] sm:$0xf]  ;;  %v13801_v48 = vld [vmem:[%s12713_s27 + $0x50] sm:$0xf]  ;;  %v753_v45 = vshrl.u32 %v582_v50, 16  ;;  %v756_v62 = vshll.u32 %v582_v50, 16  ;;  %11869 = vmatpush3.bf16.msra.mxu0 %v12218_v53  ;;  %v5245_v50 = vsel %vm12750_vm2, %v5243_v12, %v5244_v34 }
 0x141   : > { %v762_v60 = vshll.u32 %v583_v3, 16  ;;  %v5249_v56 = vrot.slane %v16947_v42, 4  ;;  %v766_v20 = vshrl.u32 %v583_v3, 16  ;;  %v772_v54 = vshll.u32 %v13801_v48, 16  ;;  %v12181_v30 = vld [vmem:[#allocation4 + $0x7c] ss:$12 sps:$4 sm:$0xff]  }
 0x142   : > { %v776_v26 = vshrl.u32 %v13801_v48, 16  ;;  %v12183_v15 = vld [vmem:[#allocation4 + $0x78] ss:$12 sps:$4 sm:$0xff]   ;;  %v755_v8 = vrot.slane %v753_v45, 4  ;;  %v2461_v3 = vsel %vm12750_vm2, %v2459_v7, %v2460_v59  ;;  %v758_v42 = vrot.slane %v756_v62, 5  ;;  %3207 = vmatprep.mubr.bf16.mxu0 %v12181_v30 }
 0x143   : > { %v13812_v21 = vld [vmem:[#allocation4 + $0x1d0] sm:$0xf]  ;;  %v764_v33 = vrot.slane %v762_v60, 5  ;;  %v768_v53 = vrot.slane %v766_v20, 4  ;;  %v774_v48 = vrot.slane %v772_v54, 5  ;;  %3208 = vmatmul.mubr.bf16.gmra.mxu0 %v12183_v15 }
 0x144   : > { %17001 = vst [vmem:[#allocation33_spill] sm:$0xff] %v13812_v21  ;;  %2540 = vst [vmem:[#allocation4 + $0x1d0] sm:$0xf] %v2458_v40  ;;  %v10313_v38 = vld [vmem:[%s12713_s27 + $0x60] sm:$0xf]  ;;  %v759_v45 = vor.u32 %v758_v42, %v755_v8 }
 0x145   : > { %v10314_v55 = vld [vmem:[%s12713_s27 + $0x64] sm:$0xf]  ;;  %v13818_v0 = vld [vmem:[#allocation4 + $0x1dc] sm:$0xf]  ;;  %v769_v34 = vor.u32 %v768_v53, %v764_v33  ;;  %v10315_v12 = vld [vmem:[%s12713_s27 + $0x68] sm:$0xf] }
 0x146   : > { %v12184_v29 = vld [vmem:[#allocation4 + $0x1b8] ss:$12 sps:$4 sm:$0xff]   ;;  %17002 = vst [vmem:[#allocation34_spill] sm:$0xff] %v13818_v0  ;;  %2541 = vst [vmem:[#allocation4 + $0x1dc] sm:$0xf] %v2461_v3  ;;  %v1845_v59 = vshrl.u32 %v10313_v38, 16 }
 0x147   : > { %5328 = vst [vmem:[#allocation4 + $0x1b8] sm:$0xf] %v5242_v49  ;;  %5329 = vst [vmem:[#allocation4 + $0x1c4] sm:$0xf] %v5245_v50  ;;  %v1848_v7 = vshll.u32 %v10313_v38, 16  ;;  %v1854_v62 = vshll.u32 %v10314_v55, 16  ;;  %11856 = vmatprep.mubr.bf16.mxu1 %v12184_v29  ;;  %v10541_v29 = vcombine.high %v13198_v23, %v13200_v24 }
 0x148   : > { %v760_v60 = vrot.slane %v759_v45, 4  ;;  %v1858_v20 = vshrl.u32 %v10314_v55, 16  ;;  %v1864_v54 = vshll.u32 %v10315_v12, 16  ;;  %v1868_v40 = vshrl.u32 %v10315_v12, 16  ;;  %v501_v45 = vld [vmem:[%s12713_s27 + $0x50] sm:$0xf] }
 0x149   : > { %v770_v30 = vrot.slane %v769_v34, 4  ;;  %v1847_v15 = vrot.slane %v1845_v59, 4  ;;  %v1850_v21 = vrot.slane %v1848_v7, 5  ;;  %v1856_v42 = vrot.slane %v1854_v62, 5  ;;  %v585_v34 = vld [vmem:[%s12713_s27 + $0x54] sm:$0xf] }
 0x14a   : > { %v765_v49 = vsel %vm13159_vm5, %v760_v60, %v764_v33  ;;  %v1860_v8 = vrot.slane %v1858_v20, 4  ;;  %v1866_v50 = vrot.slane %v1864_v54, 5  ;;  %v17003_v38 = vrot.slane %v13779_v63, 5  ;;  %v502_v33 = vld [vmem:[%s12713_s27 + $0x54] sm:$0xf] }
 0x14b   : > { %v775_v3 = vsel %vm13159_vm5, %v770_v30, %v774_v48  ;;  %1112 = vst [vmem:[#allocation4 + $0x94] sm:$0xf] %v765_v49  ;;  %v1851_v53 = vor.u32 %v1850_v21, %v1847_v15  ;;  %v5251_v12 = vsel %vm12750_vm2, %v5249_v56, %v5250_v18  ;;  %541 = vst [vmem:[#allocation4 + $0xa8] sm:$0xf] %v501_v45  ;;  %v778_v59 = vrot.slane %v776_v26, 4 }
 0x14c   : > { %v5248_v55 = vsel %vm12750_vm2, %v13784_v4, %v17003_v38  ;;  %1113 = vst [vmem:[#allocation4 + $0xa0] sm:$0xf] %v775_v3  ;;  %v1861_v63 = vor.u32 %v1860_v8, %v1856_v42  ;;  %542 = vst [vmem:[#allocation4 + $0xb4] sm:$0xf] %v502_v33  ;;  %v586_v4 = vld [vmem:[%s12713_s27 + $0x58] sm:$0x1] }
 0x14d   : > { %v782_v7 = vshll.u32 %v585_v34, 16  ;;  %v1852_v21 = vrot.slane %v1851_v53, 4  ;;  %v786_v62 = vshrl.u32 %v585_v34, 16  ;;  %v792_v60 = vshll.u32 %v586_v4, 16  ;;  %v12186_v54 = vld [vmem:[#allocation4 + $0x1d0] ss:$12 sps:$4 sm:$0xff]  }
 0x14e   : > { %v1870_v20 = vrot.slane %v1868_v40, 4  ;;  %v10270_v30 = vld [vmem:[%s12713_s27 + $0x60] sm:$0xf]  ;;  %v1862_v15 = vrot.slane %v1861_v63, 4  ;;  %v779_v49 = vor.u32 %v778_v59, %v774_v48  ;;  %5330 = vst [vmem:[#allocation4 + $0x1d0] sm:$0xf] %v5248_v55  ;;  %11857 = vmatmul.mubr.bf16.gmra.mxu1 %v12186_v54  ;;  %v10544_v54 = vcombine.high %v13353_v14, %v13373_v17 }
 0x14f   : > { %v784_v38 = vrot.slane %v782_v7, 5  ;;  %5331 = vst [vmem:[#allocation4 + $0x1dc] sm:$0xf] %v5251_v12  ;;  %v10271_v18 = vld [vmem:[%s12713_s27 + $0x64] sm:$0xf]  ;;  %v788_v56 = vrot.slane %v786_v62, 4  ;;  %v1857_v26 = vsel %vm13159_vm5, %v1852_v21, %v1856_v42  ;;  %4017 = vmatprep.mubr.bf16.mxu1 %v10541_v29 }
 0x150   : > { %v10316_v8 = vld [vmem:[%s12713_s27 + $0x6c] sm:$0xf]  ;;  %v1871_v3 = vor.u32 %v1870_v20, %v1866_v50  ;;  %v780_v53 = vrot.slane %v779_v49, 4  ;;  %v10317_v45 = vld [vmem:[%s12713_s27 + $0x70] sm:$0x1]  ;;  %v1867_v34 = vsel %vm13159_vm5, %v1862_v15, %v1866_v50  ;;  %v794_v55 = vrot.slane %v792_v60, 5 }
 0x151   : > { %v1874_v33 = vshll.u32 %v10316_v8, 16  ;;  %v1878_v40 = vshrl.u32 %v10316_v8, 16  ;;  %v789_v48 = vor.u32 %v788_v56, %v784_v38  ;;  %v1884_v42 = vshll.u32 %v10317_v45, 16  ;;  %v503_v7 = vld [vmem:[%s12713_s27 + $0x60] sm:$0xf] }
 0x152   : > { %v13846_v12 = vld [vmem:[#allocation4 + $0x90] sm:$0xff]  ;;  %v785_v63 = vsel %vm13159_vm5, %v780_v53, %v784_v38  ;;  %v1872_v29 = vrot.slane %v1871_v3, 4  ;;  %v504_v62 = vld [vmem:[%s12713_s27 + $0x64] sm:$0xf]  ;;  %543 = vst [vmem:[#allocation4 + $0xc0] sm:$0xf] %v503_v7  ;;  %v10540_v60 = vcombine.low %v13198_v23, %v13200_v24 }
 0x153   : > { %v13850_v4 = vrot.slane %v1874_v33, 5  ;;  %v1880_v59 = vrot.slane %v1878_v40, 4  ;;  %v13853_v21 = vld [vmem:[#allocation4 + $0x9c] sm:$0xff]  ;;  %1634 = vst [vmem:[#allocation4 + $0x90] sm:$0xf] %v10270_v30  ;;  %v790_v50 = vrot.slane %v789_v48, 4 }
 0x154   : > { %2204 = vst [vmem:[#allocation4 + $0x94] sm:$0xf] %v1857_v26  ;;  %1114 = vst [vmem:[#allocation4 + $0xac] sm:$0xf] %v785_v63  ;;  %v587_v15 = vld [vmem:[%s12713_s27 + $0x60] sm:$0xf]  ;;  %v10559_v57 = vcombine.high %v13846_v12, %v13853_v21 }
 0x155   : > { %1635 = vst [vmem:[#allocation4 + $0x9c] sm:$0xf] %v10271_v18  ;;  %2205 = vst [vmem:[#allocation4 + $0xa0] sm:$0xf] %v1867_v34  ;;  %v1881_v20 = vor.u32 %v1880_v59, %v13850_v4  ;;  %v588_v30 = vld [vmem:[%s12713_s27 + $0x64] sm:$0xf]  ;;  %v795_v18 = vsel %vm13159_vm5, %v790_v50, %v794_v55  ;;  %v1877_v63 = vsel %vm13159_vm5, %v1872_v29, %v13850_v4 }
 0x156   : > { %544 = vst [vmem:[#allocation4 + $0xcc] sm:$0xf] %v504_v62  ;;  %v589_v49 = vld [vmem:[%s12713_s27 + $0x68] sm:$0xf]  ;;  %v12191_v38 = vld [vmem:[%s16938_s1 + $0x1b8] sm:$0xff]   ;;  %v797_v56 = vshrl.u32 %v587_v15, 16  ;;  %4018 = vmatmul.mubr.bf16.vlgmr.msra.gmra.mxu1 %v10540_v60 }
 0x157   : > { %v800_v8 = vshll.u32 %v587_v15, 16  ;;  %v806_v23 = vshll.u32 %v588_v30, 16  ;;  %1115 = vst [vmem:[#allocation4 + $0xb8] sm:$0xf] %v795_v18  ;;  %v10272_v24 = vld [vmem:[%s12713_s27 + $0x68] sm:$0xf]  ;;  %5926 = vmatpush1.bf16.msra.mxu1 %v12191_v38  ;;  %4025 = vmatprep.mubr.bf16.mxu1 %v10544_v54 }
 0x158   : > { %v1882_v3 = vrot.slane %v1881_v20, 4  ;;  %v1886_v26 = vrot.slane %v1884_v42, 5  ;;  %v810_v53 = vshrl.u32 %v588_v30, 16  ;;  %v816_v45 = vshll.u32 %v589_v49, 16  ;;  %v10318_v48 = vld [vmem:[%s12713_s27 + $0x78] sm:$0xf] }
 0x159   : > { %v799_v33 = vrot.slane %v797_v56, 4  ;;  %v802_v40 = vrot.slane %v800_v8, 5  ;;  %v808_v34 = vrot.slane %v806_v23, 5  ;;  %v12225_v55 = vld [vmem:[%s16938_s1 + $0x90] sm:$0xff]   ;;  %v820_v7 = vshrl.u32 %v589_v49, 16 }
 0x15a   : > { %v812_v59 = vrot.slane %v810_v53, 4  ;;  %v10319_v50 = vld [vmem:[%s12713_s27 + $0x7c] sm:$0xf]  ;;  %v13879_v62 = vld [vmem:[%s12713_s27 + $0x80] sm:$0xf]  ;;  %v12196_v20 = vld [vmem:[%s16938_s1 + $0x1b0] sm:$0xff]   ;;  %11870 = vmatprep.subr.bf16.mxu0 %v12225_v55  ;;  %v1887_v53 = vsel %vm13159_vm5, %v1882_v3, %v1886_v26 }
 0x15b   : > { %v10273_v42 = vld [vmem:[%s12713_s27 + $0x6c] sm:$0xf]  ;;  %v803_v15 = vor.u32 %v802_v40, %v799_v33  ;;  %v1889_v30 = vshrl.u32 %v10318_v48, 16  ;;  %v1892_v18 = vshll.u32 %v10318_v48, 16  ;;  %v1898_v60 = vshll.u32 %v10319_v50, 16  ;;  %11871 = vmatpush3.bf16.msra.mxu0 %v12225_v55 }
 0x15c   : > { %v13885_v56 = vld [vmem:[#allocation4 + $0xa8] sm:$0xff]  ;;  %v17004_v8 = vmov 0   ;;  %v813_v4 = vor.u32 %v812_v59, %v808_v34  ;;  %v13888_v29 = vrot.slane %v816_v45, 5  ;;  %v1902_v49 = vshrl.u32 %v10319_v50, 16  ;;  %v12188_v54 = vld [vmem:[#allocation4 + $0x94] ss:$12 sps:$4 sm:$0xff]  }
 0x15d   : > { %5927 = vmatprep.subr.bf16.mxu1 %v17004_v8  ;;  %v1908_v38 = vshll.u32 %v13879_v62, 16  ;;  %v12190_v23 = vld [vmem:[#allocation4 + $0x90] ss:$12 sps:$4 sm:$0xff]   ;;  %1636 = vst [vmem:[#allocation4 + $0xa8] sm:$0xf] %v10272_v24  ;;  %v10543_v33 = vcombine.low %v13353_v14, %v13373_v17  ;;  %v804_v40 = vrot.slane %v803_v15, 4  ;;  %v10547_v45 = vcombine.high %v13465_v10, %v13474_v22  ;;  %3215 = vmatprep.mubr.bf16.mxu0 %v12188_v54 }
 0x15e   : > { %2206 = vst [vmem:[#allocation4 + $0xac] sm:$0xf] %v1877_v63  ;;  %v814_v48 = vrot.slane %v813_v4, 4  ;;  %v1891_v59 = vrot.slane %v1889_v30, 4  ;;  %v1894_v50 = vrot.slane %v1892_v18, 5  ;;  %v13897_v19 = vrot.slane %v1898_v60, 5  ;;  %5928 = vmatpush1.bf16.msra.mxu1 %v12196_v20  ;;  %3216 = vmatmul.mubr.bf16.gmra.mxu0 %v12190_v23 }
 0x15f   : > { %v12199_v24 = vld [vmem:[%s16938_s1 + $0x1a8] sm:$0xff]   ;;  %v13902_v3 = vld [vmem:[#allocation4 + $0xb4] sm:$0xff]  ;;  %v809_v14 = vsel %vm13159_vm5, %v804_v40, %v808_v34  ;;  %v1904_v17 = vrot.slane %v1902_v49, 4  ;;  %v1912_v26 = vshrl.u32 %v13879_v62, 16  ;;  %v10684_v55 = vld [vmem:[%s12713_s27 + $0x90] sm:$0xf]  ;;  %5929 = vmatprep.subr.bf16.mxu1 %v17004_v8  ;;  %4026 = vmatmul.mubr.bf16.gmra.mxu1 %v10543_v33  ;;  %v10546_v33 = vcombine.low %v13465_v10, %v13474_v22 }
 0x160   : > { %v822_v63 = vrot.slane %v820_v7, 4  ;;  %1637 = vst [vmem:[#allocation4 + $0xb4] sm:$0xf] %v10273_v42  ;;  %2207 = vst [vmem:[#allocation4 + $0xb8] sm:$0xf] %v1887_v53  ;;  %v819_v15 = vsel %vm13159_vm5, %v814_v48, %v13888_v29  ;;  %v1895_v30 = vor.u32 %v1894_v50, %v1891_v59  ;;  %v4679_v20 = vshrl.u32 %v10684_v55, 16  ;;  %4033 = vmatprep.mubr.bf16.mxu1 %v10547_v45 }
 0x161   : > { %1116 = vst [vmem:[#allocation4 + $0xc4] sm:$0xf] %v809_v14  ;;  %v10685_v18 = vld [vmem:[%s12713_s27 + $0x94] sm:$0xf]  ;;  %v13913_v60 = vld [vmem:[%s12713_s27 + $0x98] sm:$0xf]  ;;  %v1905_v34 = vor.u32 %v1904_v17, %v13897_v19 }
 0x162   : > { %v4682_v4 = vshll.u32 %v10684_v55, 16  ;;  %1117 = vst [vmem:[#allocation4 + $0xd0] sm:$0xf] %v819_v15  ;;  %v4688_v7 = vshll.u32 %v10685_v18, 16  ;;  %v4692_v62 = vshrl.u32 %v10685_v18, 16  ;;  %v12205_v42 = vld [vmem:[%s16938_s1 + $0x1a0] sm:$0xff]   ;;  %5930 = vmatpush1.bf16.msra.mxu1 %v12199_v24  ;;  %v823_v15 = vor.u32 %v822_v63, %v13888_v29 }
 0x163   : > { %v1896_v49 = vrot.slane %v1895_v30, 4  ;;  %v1910_v54 = vrot.slane %v1908_v38, 5  ;;  %v4681_v23 = vrot.slane %v4679_v20, 4  ;;  %v1906_v40 = vrot.slane %v1905_v34, 4  ;;  %v505_v14 = vld [vmem:[%s12713_s27 + $0x68] sm:$0xf]  ;;  %5931 = vmatprep.subr.bf16.mxu1 %v17004_v8 }
 0x164   : > { %v4684_v53 = vrot.slane %v4682_v4, 5  ;;  %v13920_v48 = vrot.slane %v4688_v7, 5  ;;  %v4694_v59 = vrot.slane %v4692_v62, 4  ;;  %v4698_v50 = vshll.u32 %v13913_v60, 16  ;;  %v506_v55 = vld [vmem:[%s12713_s27 + $0x6c] sm:$0xf] }
 0x165   : > { %545 = vst [vmem:[#allocation4 + $0xd8] sm:$0xf] %v505_v14  ;;  %v590_v38 = vld [vmem:[%s12713_s27 + $0x6c] sm:$0xf]  ;;  %v1914_v30 = vrot.slane %v1912_v26, 4  ;;  %v4702_v45 = vshrl.u32 %v13913_v60, 16  ;;  %v1901_v29 = vsel %vm13159_vm5, %v1896_v49, %v13897_v19  ;;  %v1911_v26 = vsel %vm13159_vm5, %v1906_v40, %v1910_v54 }
 0x166   : > { %v4685_v17 = vor.u32 %v4684_v53, %v4681_v23  ;;  %v4695_v18 = vor.u32 %v4694_v59, %v13920_v48  ;;  %546 = vst [vmem:[#allocation4 + $0xe4] sm:$0xf] %v506_v55  ;;  %v591_v24 = vld [vmem:[%s12713_s27 + $0x70] sm:$0x1]  ;;  %v826_v20 = vshll.u32 %v590_v38, 16  ;;  %v830_v4 = vshrl.u32 %v590_v38, 16  ;;  %5932 = vmatpush1.bf16.msra.mxu1 %v12205_v42 }
 0x167   : > { %v12208_v10 = vld [vmem:[%s16938_s1 + $0x198] sm:$0xff]   ;;  %v824_v63 = vrot.slane %v823_v15, 4  ;;  %v836_v7 = vshll.u32 %v591_v24, 16  ;;  %v12195_v62 = vld [vmem:[#allocation4 + $0xa8] ss:$12 sps:$4 sm:$0xff]   ;;  %v13943_v23 = vrot.slane %v4698_v50, 5  ;;  %v1915_v53 = vor.u32 %v1914_v30, %v1910_v54  ;;  %5933 = vmatprep.subr.bf16.mxu1 %v17004_v8  ;;  %4034 = vmatmul.mubr.bf16.gmra.mxu1 %v10546_v33 }
 0x168   : > { %v10274_v22 = vld [vmem:[%s12713_s27 + $0x78] sm:$0xf]  ;;  %v10275_v34 = vld [vmem:[%s12713_s27 + $0x7c] sm:$0xf]  ;;  %v10550_v59 = vcombine.high %v13564_v35, %v13581_v44  ;;  %v13947_v14 = vld [vmem:[#allocation4 + $0xc0] sm:$0xff]  ;;  %v13951_v19 = vrot.slane %v4685_v17, 4 }
 0x169   : > { %v12193_v60 = vld [vmem:[#allocation4 + $0xac] ss:$12 sps:$4 sm:$0xff]   ;;  %v13953_v49 = vrot.slane %v4695_v18, 4  ;;  %v828_v40 = vrot.slane %v826_v20, 5  ;;  %v832_v38 = vrot.slane %v830_v4, 4  ;;  %v838_v42 = vrot.slane %v836_v7, 5 }
 0x16a   : > { %v13949_v55 = vld [vmem:[#allocation4 + $0xcc] sm:$0xff]  ;;  %3223 = vmatprep.mubr.bf16.mxu0 %v12193_v60  ;;  %1638 = vst [vmem:[#allocation4 + $0xc0] sm:$0xf] %v10274_v22  ;;  %2208 = vst [vmem:[#allocation4 + $0xc4] sm:$0xf] %v1901_v29  ;;  %v4704_v15 = vrot.slane %v4702_v45, 4  ;;  %4041 = vmatprep.mubr.bf16.mxu1 %v10550_v59  ;;  %v10549_v29 = vcombine.low %v13564_v35, %v13581_v44 }
 0x16b   : > { %1639 = vst [vmem:[#allocation4 + $0xcc] sm:$0xf] %v10275_v34  ;;  %2209 = vst [vmem:[#allocation4 + $0xd0] sm:$0xf] %v1911_v26  ;;  %v10321_v54 = vld [vmem:[%s12713_s27 + $0x84] sm:$0xf]  ;;  %3224 = vmatmul.mubr.bf16.gmra.mxu0 %v12195_v62  ;;  %v829_v17 = vsel %vm13159_vm5, %v824_v63, %v828_v40  ;;  %v833_v30 = vor.u32 %v832_v38, %v828_v40  ;;  %5934 = vmatpush1.bf16.msra.mxu1 %v12208_v10 }
 0x16c   : > { %v10322_v50 = vld [vmem:[%s12713_s27 + $0x88] sm:$0x1]  ;;  %v1918_v18 = vshll.u32 %v10321_v54, 16  ;;  %v1922_v24 = vshrl.u32 %v10321_v54, 16  ;;  %v12212_v20 = vld [vmem:[%s16938_s1 + $0x190] sm:$0xff]   ;;  %v13963_v4 = vrot.slane %v1915_v53, 4  ;;  %v4705_v33 = vor.u32 %v4704_v15, %v13943_v23  ;;  %5935 = vmatprep.subr.bf16.mxu1 %v17004_v8 }
 0x16d   : > { %1118 = vst [vmem:[#allocation4 + $0xdc] sm:$0xf] %v829_v17  ;;  %v1928_v22 = vshll.u32 %v10322_v50, 16  ;;  %v10687_v34 = vld [vmem:[%s12713_s27 + $0x9c] sm:$0xf]  ;;  %v834_v63 = vrot.slane %v833_v30, 4  ;;  %v4691_v40 = vsel %vm13159_vm5, %v13951_v19, %v13920_v48  ;;  %v4701_v35 = vsel %vm13159_vm5, %v13953_v49, %v13943_v23 }
 0x16e   : > { %v13967_v45 = vld [vmem:[%s12713_s27 + $0xa0] sm:$0x1]  ;;  %v10640_v26 = vld [vmem:[%s12713_s27 + $0x90] sm:$0xf]  ;;  %v1920_v7 = vrot.slane %v1918_v18, 5  ;;  %v1924_v60 = vrot.slane %v1922_v24, 4  ;;  %v10553_v18 = vcombine.high %v13665_v31, %v13681_v43 }
 0x16f   : > { %v4708_v62 = vshll.u32 %v10687_v34, 16  ;;  %v10641_v53 = vld [vmem:[%s12713_s27 + $0x94] sm:$0xf]  ;;  %v13983_v44 = vrot.slane %v1928_v22, 5  ;;  %v4712_v10 = vshrl.u32 %v10687_v34, 16  ;;  %v839_v59 = vsel %vm13159_vm5, %v834_v63, %v838_v42  ;;  %v12215_v23 = vld [vmem:[%s16938_s1 + $0x188] sm:$0xff]   ;;  %5936 = vmatpush1.bf16.msra.mxu1 %v12212_v20 }
 0x170   : > { %v10276_v38 = vld [vmem:[%s12713_s27 + $0x80] sm:$0xf]  ;;  %v1925_v54 = vor.u32 %v1924_v60, %v1920_v7  ;;  %v13988_v50 = vrot.slane %v4705_v33, 4  ;;  %v507_v48 = vld [vmem:[%s12713_s27 + $0x78] sm:$0xf]  ;;  %v4718_v17 = vshll.u32 %v13967_v45, 16  ;;  %v1921_v63 = vsel %vm13159_vm5, %v13963_v4, %v1920_v7  ;;  %5937 = vmatprep.subr.bf16.mxu1 %v17004_v8  ;;  %4042 = vmatmul.mubr.bf16.gmra.mxu1 %v10549_v29 }
 0x171   : > { %v13990_v15 = vrot.slane %v4708_v62, 5  ;;  %v508_v19 = vld [vmem:[%s12713_s27 + $0x7c] sm:$0xf]  ;;  %1119 = vst [vmem:[#allocation4 + $0xe8] sm:$0xf] %v839_v59  ;;  %v4714_v49 = vrot.slane %v4712_v10, 4  ;;  %4049 = vmatprep.mubr.bf16.mxu1 %v10553_v18 }
 0x172   : > { %547 = vst [vmem:[#allocation4 + $0xf0] sm:$0xf] %v507_v48  ;;  %548 = vst [vmem:[#allocation4 + $0xfc] sm:$0xf] %v508_v19  ;;  %v592_v30 = vld [vmem:[%s12713_s27 + $0x78] sm:$0xf] }
 0x173   : > { %v593_v42 = vld [vmem:[%s12713_s27 + $0x7c] sm:$0xf]  ;;  %v2574_v22 = vld [vmem:[#allocation4 + $0xc0] sm:$0xff]  ;;  %v2576_v34 = vld [vmem:[#allocation4 + $0xcc] sm:$0xff]  ;;  %v1926_v45 = vrot.slane %v1925_v54, 4  ;;  %v841_v60 = vshrl.u32 %v592_v30, 16  ;;  %v4715_v10 = vor.u32 %v4714_v49, %v13990_v15  ;;  %5938 = vmatpush1.bf16.msra.mxu1 %v12215_v23 }
 0x174   : > { %v12197_v33 = vld [vmem:[#allocation4 + $0xc4] ss:$12 sps:$4 sm:$0xff]   ;;  %4428 = vst [vmem:[#allocation4 + $0xc0] sm:$0xf] %v10640_v26  ;;  %4429 = vst [vmem:[#allocation4 + $0xcc] sm:$0xf] %v10641_v53  ;;  %v10480_v20 = vcombine.low %v2574_v22, %v2576_v34  ;;  %5939 = vmatprep.subr.bf16.mxu1 %v17004_v8 }
 0x175   : > { %4998 = vst [vmem:[#allocation4 + $0xc4] sm:$0xf] %v4691_v40  ;;  %4999 = vst [vmem:[#allocation4 + $0xd0] sm:$0xf] %v4701_v35  ;;  %v14012_v59 = vld [vmem:[%s12713_s27 + $0x80] sm:$0xf]  ;;  %3231 = vmatprep.mubr.bf16.mxu0 %v12197_v33  ;;  %v1931_v22 = vsel %vm13159_vm5, %v1926_v45, %v13983_v44 }
 0x176   : > { %v844_v48 = vshll.u32 %v592_v30, 16  ;;  %v850_v19 = vshll.u32 %v593_v42, 16  ;;  %v14014_v4 = vld [vmem:[#allocation4 + $0xd8] sm:$0xff]  ;;  %v10277_v7 = vld [vmem:[%s12713_s27 + $0x84] sm:$0xf]  ;;  %v843_v54 = vrot.slane %v841_v60, 4  ;;  %3232 = vmatmul.mubr.bf16.gmra.mxu0 %v10480_v20 }
 0x177   : > { %v854_v62 = vshrl.u32 %v593_v42, 16  ;;  %v860_v26 = vshll.u32 %v14012_v59, 16  ;;  %v12221_v40 = vld [vmem:[%s16938_s1 + $0x180] sm:$0xff]   ;;  %1640 = vst [vmem:[#allocation4 + $0xd8] sm:$0xf] %v10276_v38  ;;  %v14023_v35 = vrot.slane %v4715_v10, 4 }
 0x178   : > { %2210 = vst [vmem:[#allocation4 + $0xdc] sm:$0xf] %v1921_v63  ;;  %v14025_v49 = vrot.slane %v4718_v17, 5  ;;  %v846_v29 = vrot.slane %v844_v48, 5  ;;  %v852_v30 = vrot.slane %v850_v19, 5  ;;  %v14043_v44 = vld [vmem:[#allocation4 + $0xe4] sm:$0xff]  ;;  %5940 = vmatpush1.bf16.msra.mxu1 %v12221_v40 }
 0x179   : > { %v10323_v42 = vld [vmem:[%s12713_s27 + $0x90] sm:$0xf]  ;;  %v856_v38 = vrot.slane %v854_v62, 4  ;;  %v10324_v63 = vld [vmem:[%s12713_s27 + $0x94] sm:$0xf]  ;;  %v14040_v20 = vrot.slane %v860_v26, 5  ;;  %5941 = vmatprep.subr.bf16.mxu1 %v17004_v8 }
 0x17a   : > { %v14038_v17 = vld [vmem:[%s12713_s27 + $0x98] sm:$0xf]  ;;  %v847_v60 = vor.u32 %v846_v29, %v843_v54  ;;  %v1933_v18 = vshrl.u32 %v10323_v42, 16  ;;  %v1936_v10 = vshll.u32 %v10323_v42, 16  ;;  %v1942_v48 = vshll.u32 %v10324_v63, 16 }
 0x17b   : > { %v857_v45 = vor.u32 %v856_v38, %v852_v30  ;;  %v1946_v62 = vshrl.u32 %v10324_v63, 16  ;;  %v1952_v19 = vshll.u32 %v14038_v17, 16  ;;  %v10689_v53 = vld [vmem:[%s12713_s27 + $0xa8] sm:$0xf]  ;;  %v12224_v23 = vld [vmem:[%s16938_s1 + $0x1f8] sm:$0xff]  }
 0x17c   : > { %1641 = vst [vmem:[#allocation4 + $0xe4] sm:$0xf] %v10277_v7  ;;  %2211 = vst [vmem:[#allocation4 + $0xe8] sm:$0xf] %v1931_v22  ;;  %v848_v54 = vrot.slane %v847_v60, 4  ;;  %v1935_v26 = vrot.slane %v1933_v18, 4  ;;  %5942 = vmatpush2.bf16.msra.mxu1 %v12224_v23 }
 0x17d   : > { %v1938_v29 = vrot.slane %v1936_v10, 5  ;;  %v10690_v38 = vld [vmem:[%s12713_s27 + $0xac] sm:$0xf]  ;;  %v858_v34 = vrot.slane %v857_v45, 4  ;;  %v14052_v33 = vrot.slane %v1942_v48, 5  ;;  %v1948_v63 = vrot.slane %v1946_v62, 4  ;;  %5943 = vmatprep.subr.bf16.mxu1 %v17004_v8 }
 0x17e   : > { %v14054_v24 = vrot.slane %v1952_v19, 5  ;;  %v14057_v0 = vld [vmem:[%s12713_s27 + $0xb0] sm:$0xf]  ;;  %v853_v7 = vsel %vm13159_vm5, %v848_v54, %v852_v30  ;;  %v4723_v60 = vshrl.u32 %v10689_v53, 16  ;;  %v4726_v18 = vshll.u32 %v10689_v53, 16 }
 0x17f   : > { %v1939_v22 = vor.u32 %v1938_v29, %v1935_v26  ;;  %v10642_v10 = vld [vmem:[%s12713_s27 + $0x98] sm:$0xf]  ;;  %v10643_v45 = vld [vmem:[%s12713_s27 + $0x9c] sm:$0xf]  ;;  %v863_v48 = vsel %vm13159_vm5, %v858_v34, %v14040_v20  ;;  %1120 = vst [vmem:[#allocation4 + $0xf4] sm:$0xf] %v853_v7  ;;  %v1949_v62 = vor.u32 %v1948_v63, %v14052_v33  ;;  %v17005_v30 = vcombine.low %v13665_v31, %v13681_v43 }
 0x180   : > { %v4732_v19 = vshll.u32 %v10690_v38, 16  ;;  %v4736_v40 = vshrl.u32 %v10690_v38, 16  ;;  %v509_v54 = vld [vmem:[%s12713_s27 + $0x80] sm:$0xf]  ;;  %v12228_v53 = vld [vmem:[%s16938_s1 + $0x1f0] sm:$0xff]   ;;  %v4725_v29 = vrot.slane %v4723_v60, 4  ;;  %v17006_v31 = vcombine.high %v13748_v47, %v13769_v2 }
 0x181   : > { %4050 = vmatmul.mubr.bf16.gmra.mxu1 %v17005_v30  ;;  %1121 = vst [vmem:[#allocation4 + $0x100] sm:$0xf] %v863_v48  ;;  %v1940_v26 = vrot.slane %v1939_v22, 4  ;;  %v4728_v34 = vrot.slane %v4726_v18, 5  ;;  %v4742_v63 = vshll.u32 %v14057_v0, 16  ;;  %v2578_v43 = vld [vmem:[#allocation4 + $0xd8] sm:$0xff]  ;;  %v4721_v38 = vsel %vm13159_vm5, %v14023_v35, %v14025_v49 }
 0x182   : > { %v510_v7 = vld [vmem:[%s12713_s27 + $0x84] sm:$0xf]  ;;  %549 = vst [vmem:[#allocation4 + $0x108] sm:$0xf] %v509_v54  ;;  %4057 = vmatprep.mubr.bf16.mxu1 %v17006_v31  ;;  %v1950_v48 = vrot.slane %v1949_v62, 4  ;;  %v14084_v30 = vrot.slane %v4732_v19, 5  ;;  %5944 = vmatpush2.bf16.msra.mxu1 %v12228_v53 }
 0x183   : > { %v4738_v22 = vrot.slane %v4736_v40, 4  ;;  %550 = vst [vmem:[#allocation4 + $0x114] sm:$0xf] %v510_v7  ;;  %v595_v60 = vld [vmem:[%s12713_s27 + $0x84] sm:$0xf]  ;;  %v4729_v42 = vor.u32 %v4728_v34, %v4725_v29  ;;  %v4746_v54 = vshrl.u32 %v14057_v0, 16  ;;  %v1945_v23 = vsel %vm13159_vm5, %v1940_v26, %v14052_v33  ;;  %5945 = vmatprep.subr.bf16.mxu1 %v17004_v8 }
 0x184   : > { %v10278_v18 = vld [vmem:[%s12713_s27 + $0x90] sm:$0xf]  ;;  %v596_v39 = vld [vmem:[%s12713_s27 + $0x88] sm:$0x1]  ;;  %v17007_v31 = vshrl.u32 %v14012_v59, 16  ;;  %v870_v0 = vshll.u32 %v595_v60, 16  ;;  %v17008_v40 = vsel %vm13159_vm5, %v13988_v50, %v13990_v15 }
 0x185   : > { %v2580_v35 = vld [vmem:[#allocation4 + $0xe4] sm:$0xff]  ;;  %v4739_v62 = vor.u32 %v4738_v22, %v14084_v30  ;;  %v874_v19 = vshrl.u32 %v595_v60, 16  ;;  %4430 = vst [vmem:[#allocation4 + $0xd8] sm:$0xf] %v10642_v10  ;;  %v10279_v33 = vld [vmem:[%s12713_s27 + $0x94] sm:$0xf]  ;;  %v1955_v10 = vsel %vm13159_vm5, %v1950_v48, %v14054_v24 }
 0x186   : > { %v866_v61 = vrot.slane %v17007_v31, 4  ;;  %v12200_v49 = vld [vmem:[#allocation4 + $0xdc] ss:$12 sps:$4 sm:$0xff]   ;;  %4431 = vst [vmem:[#allocation4 + $0xe4] sm:$0xf] %v10643_v45  ;;  %v10483_v29 = vcombine.low %v2578_v43, %v2580_v35  ;;  %v14108_v26 = vrot.slane %v4742_v63, 5 }
 0x187   : > { %v12234_v59 = vld [vmem:[%s16938_s1 + $0x88] sm:$0xff]   ;;  %5000 = vst [vmem:[#allocation4 + $0xdc] sm:$0xf] %v17008_v40  ;;  %5001 = vst [vmem:[#allocation4 + $0xe8] sm:$0xf] %v4721_v38  ;;  %v880_v7 = vshll.u32 %v596_v39, 16  ;;  %3239 = vmatprep.mubr.bf16.mxu0 %v12200_v49 }
 0x188   : > { %v867_v34 = vor.u32 %v866_v61, %v14040_v20  ;;  %v10326_v22 = vld [vmem:[%s12713_s27 + $0x9c] sm:$0xf]  ;;  %v872_v45 = vrot.slane %v870_v0, 5  ;;  %v876_v60 = vrot.slane %v874_v19, 4  ;;  %v10327_v31 = vld [vmem:[%s12713_s27 + $0xa0] sm:$0x1]  ;;  %3240 = vmatmul.mubr.bf16.gmra.mxu0 %v10483_v29  ;;  %11872 = vmatprep.subr.bf16.mxu0 %v12234_v59 }
 0x189   : > { %v17009_v50 = vshrl.u32 %v14038_v17, 16  ;;  %v12231_v63 = vld [vmem:[%s16938_s1 + $0x1e8] sm:$0xff]   ;;  %v14121_v39 = vld [vmem:[#allocation4 + $0xf0] sm:$0xff]  ;;  %v14123_v61 = vrot.slane %v4729_v42, 4  ;;  %v14125_v20 = vrot.slane %v4739_v62, 4  ;;  %v1962_v38 = vshll.u32 %v10326_v22, 16  ;;  %11873 = vmatpush3.bf16.msra.mxu0 %v12234_v59 }
 0x18a   : > { %v868_v43 = vrot.slane %v867_v34, 4  ;;  %v14128_v17 = vld [vmem:[#allocation4 + $0xfc] sm:$0xff]  ;;  %1642 = vst [vmem:[#allocation4 + $0xf0] sm:$0xf] %v10278_v18  ;;  %2212 = vst [vmem:[#allocation4 + $0xf4] sm:$0xf] %v1945_v23  ;;  %v877_v53 = vor.u32 %v876_v60, %v872_v45  ;;  %v17010_v42 = vcombine.low %v13748_v47, %v13769_v2  ;;  %5946 = vmatpush2.bf16.msra.mxu1 %v12231_v63 }
 0x18b   : > { %v1958_v15 = vrot.slane %v17009_v50, 4  ;;  %v882_v48 = vrot.slane %v880_v7, 5  ;;  %v1966_v49 = vshrl.u32 %v10326_v22, 16  ;;  %v10692_v0 = vld [vmem:[%s12713_s27 + $0xb4] sm:$0xf]  ;;  %v14137_v19 = vrot.slane %v1962_v38, 5  ;;  %5947 = vmatprep.subr.bf16.mxu1 %v17004_v8  ;;  %v14152_v22 = vpop.f32.mrf.mxu1 }
 0x18c   : > { %4058 = vmatmul.mubr.bf16.gmra.mxu1 %v17010_v42  ;;  %1643 = vst [vmem:[#allocation4 + $0xfc] sm:$0xf] %v10279_v33  ;;  %2213 = vst [vmem:[#allocation4 + $0x100] sm:$0xf] %v1955_v10  ;;  %v873_v62 = vsel %vm13159_vm5, %v868_v43, %v872_v45  ;;  %v1972_v18 = vshll.u32 %v10327_v31, 16  ;;  %v4748_v40 = vrot.slane %v4746_v54, 4 }
 0x18d   : > { %v1959_v35 = vor.u32 %v1958_v15, %v14054_v24  ;;  %v10693_v23 = vld [vmem:[%s12713_s27 + $0xb8] sm:$0x1]  ;;  %4065 = vmatprep.mubr.bf16.mxu1 %v10559_v57  ;;  %v12235_v24 = vld [vmem:[%s16938_s1 + $0x80] sm:$0xff]   ;;  %v878_v47 = vrot.slane %v877_v53, 4  ;;  %1122 = vst [vmem:[#allocation4 + $0x10c] sm:$0xf] %v873_v62  ;;  %v10558_v15 = vcombine.low %v13846_v12, %v13853_v21  ;;  %v4735_v12 = vsel %vm13159_vm5, %v14123_v61, %v14084_v30 }
 0x18e   : > { %v1968_v29 = vrot.slane %v1966_v49, 4  ;;  %v4752_v33 = vshll.u32 %v10692_v0, 16  ;;  %v14145_v34 = vrot.slane %v1972_v18, 5  ;;  %v4749_v54 = vor.u32 %v4748_v40, %v14108_v26  ;;  %11874 = vmatprep.subr.bf16.mxu0 %v12235_v24  ;;  %v12236_v7 = vld [vmem:[%s16938_s1 + $0x1e0] sm:$0xff]   ;;  %v10644_v10 = vld [vmem:[%s12713_s27 + $0xa8] sm:$0xf]  ;;  %v14173_v49 = vpop.f32.mrf.mxu1 }
 0x18f   : > { %v14143_v2 = vrot.slane %v1959_v35, 4  ;;  %v4756_v57 = vshrl.u32 %v10692_v0, 16  ;;  %v4762_v59 = vshll.u32 %v10693_v23, 16  ;;  %v10645_v45 = vld [vmem:[%s12713_s27 + $0xac] sm:$0xf]  ;;  %v883_v60 = vsel %vm13159_vm5, %v878_v47, %v882_v48  ;;  %11875 = vmatpush3.bf16.msra.mxu0 %v12235_v24  ;;  %5948 = vmatpush2.bf16.msra.mxu1 %v12236_v7 }
 0x190   : > { %v1969_v31 = vor.u32 %v1968_v29, %v14137_v19  ;;  %v14159_v50 = vrot.slane %v4752_v33, 5  ;;  %1123 = vst [vmem:[#allocation4 + $0x118] sm:$0xf] %v883_v60  ;;  %v10280_v63 = vld [vmem:[%s12713_s27 + $0x98] sm:$0xf]  ;;  %v14164_v43 = vrot.slane %v4749_v54, 4  ;;  %v10562_v35 = vcombine.high %v13885_v56, %v13902_v3  ;;  %5949 = vmatprep.subr.bf16.mxu1 %v17004_v8 }
 0x191   : > { %v14166_v38 = vrot.slane %v4756_v57, 4  ;;  %v14168_v53 = vrot.slane %v4762_v59, 5  ;;  %v511_v48 = vld [vmem:[%s12713_s27 + $0x90] sm:$0xf]  ;;  %v4745_v21 = vsel %vm13159_vm5, %v14125_v20, %v14108_v26  ;;  %v512_v42 = vld [vmem:[%s12713_s27 + $0x94] sm:$0xf]  ;;  %v1965_v23 = vsel %vm13159_vm5, %v14143_v2, %v14137_v19  ;;  %v11823_v26 = vpop.f32.mrf.mxu1 }
 0x192   : > { %v1970_v0 = vrot.slane %v1969_v31, 4  ;;  %551 = vst [vmem:[#allocation4 + $0x120] sm:$0xf] %v511_v48  ;;  %v597_v62 = vld [vmem:[%s12713_s27 + $0x90] sm:$0xf]  ;;  %v10561_v61 = vcombine.low %v13885_v56, %v13902_v3 }
 0x193   : > { %v2582_v18 = vld [vmem:[#allocation4 + $0xf0] sm:$0xff]  ;;  %552 = vst [vmem:[#allocation4 + $0x12c] sm:$0xf] %v512_v42  ;;  %v14191_v24 = vld [vmem:[%s12713_s27 + $0x98] sm:$0xf]  ;;  %v885_v30 = vshrl.u32 %v597_v62, 16  ;;  %v4759_v29 = vor.u32 %v14166_v38, %v14159_v50  ;;  %v14204_v31 = vpop.f32.mrf.mxu1 }
 0x194   : > { %v598_v40 = vld [vmem:[%s12713_s27 + $0x94] sm:$0xf]  ;;  %v2584_v20 = vld [vmem:[#allocation4 + $0xfc] sm:$0xff]  ;;  %v888_v33 = vshll.u32 %v597_v62, 16  ;;  %4066 = vmatmul.mubr.bf16.gmra.mxu1 %v10558_v15  ;;  %4432 = vst [vmem:[#allocation4 + $0xf0] sm:$0xf] %v10644_v10  ;;  %v1975_v59 = vsel %vm13159_vm5, %v1970_v0, %v14145_v34 }
 0x195   : > { %v12203_v47 = vld [vmem:[#allocation4 + $0xf4] ss:$12 sps:$4 sm:$0xff]   ;;  %v894_v54 = vshll.u32 %v598_v40, 16  ;;  %v898_v19 = vshrl.u32 %v598_v40, 16  ;;  %4433 = vst [vmem:[#allocation4 + $0xfc] sm:$0xf] %v10645_v45  ;;  %v10486_v2 = vcombine.low %v2582_v18, %v2584_v20  ;;  %4073 = vmatprep.mubr.bf16.mxu1 %v10562_v35  ;;  %v14220_v42 = vpop.f32.mrf.mxu1 }
 0x196   : > { %5002 = vst [vmem:[#allocation4 + $0xf4] sm:$0xf] %v4735_v12  ;;  %5003 = vst [vmem:[#allocation4 + $0x100] sm:$0xf] %v4745_v21  ;;  %v14198_v57 = vld [vmem:[#allocation4 + $0x108] sm:$0xff]  ;;  %v887_v7 = vrot.slane %v885_v30, 4  ;;  %3247 = vmatprep.mubr.bf16.mxu0 %v12203_v47 }
 0x197   : > { %v904_v60 = vshll.u32 %v14191_v24, 16  ;;  %v10281_v10 = vld [vmem:[%s12713_s27 + $0x9c] sm:$0xf]  ;;  %1644 = vst [vmem:[#allocation4 + $0x108] sm:$0xf] %v10280_v63  ;;  %v890_v45 = vrot.slane %v888_v33, 5  ;;  %3248 = vmatmul.mubr.bf16.gmra.mxu0 %v10486_v2  ;;  %v10565_v63 = vcombine.high %v13947_v14, %v13949_v55 }
 0x198   : > { %2214 = vst [vmem:[#allocation4 + $0x10c] sm:$0xf] %v1965_v23  ;;  %v896_v15 = vrot.slane %v894_v54, 5  ;;  %v900_v38 = vrot.slane %v898_v19, 4  ;;  %v908_v48 = vshrl.u32 %v14191_v24, 16  ;;  %17011 = vst [vmem:[#allocation35_spill] sm:$0xff] %v14220_v42  ;;  %v14231_v19 = vpop.f32.mrf.mxu1 }
 0x199   : > { %v14212_v12 = vrot.slane %v904_v60, 5  ;;  %v10328_v35 = vld [vmem:[%s12713_s27 + $0xa8] sm:$0xf]  ;;  %v10329_v21 = vld [vmem:[%s12713_s27 + $0xac] sm:$0xf]  ;;  %v12237_v62 = vld [vmem:[%s16938_s1 + $0x1d8] sm:$0xff]   ;;  %v891_v23 = vor.u32 %v890_v45, %v887_v7 }
 0x19a   : > { %v14225_v18 = vld [vmem:[#allocation4 + $0x114] sm:$0xff]  ;;  %v901_v40 = vor.u32 %v900_v38, %v896_v15  ;;  %v14228_v24 = vld [vmem:[%s12713_s27 + $0xb0] sm:$0xf]  ;;  %v1977_v30 = vshrl.u32 %v10328_v35, 16  ;;  %v1980_v26 = vshll.u32 %v10328_v35, 16  ;;  %v4760_v20 = vrot.slane %v4759_v29, 4  ;;  %5950 = vmatpush2.bf16.msra.mxu1 %v12237_v62 }
 0x19b   : > { %1645 = vst [vmem:[#allocation4 + $0x114] sm:$0xf] %v10281_v10  ;;  %2215 = vst [vmem:[#allocation4 + $0x118] sm:$0xf] %v1975_v59  ;;  %v1986_v47 = vshll.u32 %v10329_v21, 16  ;;  %v1990_v33 = vshrl.u32 %v10329_v21, 16  ;;  %5951 = vmatprep.subr.bf16.mxu1 %v17004_v8  ;;  %v11827_v21 = vpop.f32.mrf.mxu1 }
 0x19c   : > { %v1996_v54 = vshll.u32 %v14228_v24, 16  ;;  %v892_v2 = vrot.slane %v891_v23, 4  ;;  %v902_v7 = vrot.slane %v901_v40, 4  ;;  %v1979_v60 = vrot.slane %v1977_v30, 4  ;;  %v10694_v38 = vld [vmem:[%s12713_s27 + $0xc0] sm:$0xf]  ;;  %4074 = vmatmul.mubr.bf16.gmra.mxu1 %v10561_v61 }
 0x19d   : > { %v1982_v45 = vrot.slane %v1980_v26, 5  ;;  %v14234_v10 = vrot.slane %v1986_v47, 5  ;;  %v1992_v29 = vrot.slane %v1990_v33, 4  ;;  %v910_v35 = vrot.slane %v908_v48, 4  ;;  %v10646_v0 = vld [vmem:[%s12713_s27 + $0xb0] sm:$0xf]  ;;  %4081 = vmatprep.mubr.bf16.mxu1 %v10565_v63 }
 0x19e   : > { %v14236_v59 = vrot.slane %v1996_v54, 5  ;;  %v10647_v62 = vld [vmem:[%s12713_s27 + $0xb4] sm:$0xf]  ;;  %v897_v23 = vsel %vm13159_vm5, %v892_v2, %v896_v15  ;;  %v907_v40 = vsel %vm13159_vm5, %v902_v7, %v14212_v12  ;;  %v10695_v26 = vld [vmem:[%s12713_s27 + $0xc4] sm:$0xf]  ;;  %v4767_v47 = vshrl.u32 %v10694_v38, 16  ;;  %v14254_v2 = vpop.f32.mrf.mxu1 }
 0x19f   : > { %v1983_v30 = vor.u32 %v1982_v45, %v1979_v60  ;;  %v14248_v34 = vld [vmem:[%s12713_s27 + $0xc8] sm:$0xf]  ;;  %1124 = vst [vmem:[#allocation4 + $0x124] sm:$0xf] %v897_v23  ;;  %1125 = vst [vmem:[#allocation4 + $0x130] sm:$0xf] %v907_v40  ;;  %v1993_v48 = vor.u32 %v1992_v29, %v14234_v10  ;;  %v4765_v60 = vsel %vm13159_vm5, %v4760_v20, %v14168_v53 }
 0x1a0   : > { %v4770_v33 = vshll.u32 %v10694_v38, 16  ;;  %v4776_v15 = vshll.u32 %v10695_v26, 16  ;;  %v4780_v54 = vshrl.u32 %v10695_v26, 16  ;;  %v2586_v7 = vld [vmem:[#allocation4 + $0x108] sm:$0xff]  ;;  %v4769_v56 = vrot.slane %v4767_v47, 4  ;;  %v14263_v63 = vpop.f32.mrf.mxu1 }
 0x1a1   : > { %v1984_v45 = vrot.slane %v1983_v30, 4  ;;  %v4786_v3 = vshll.u32 %v14248_v34, 16  ;;  %v1994_v61 = vrot.slane %v1993_v48, 4  ;;  %v513_v38 = vld [vmem:[%s12713_s27 + $0x98] sm:$0xf]  ;;  %17012 = vst [vmem:[#allocation36_spill] sm:$0xff] %v14263_v63  ;;  %v911_v30 = vor.u32 %v910_v35, %v14212_v12 }
 0x1a2   : > { %v4772_v21 = vrot.slane %v4770_v33, 5  ;;  %v14260_v23 = vrot.slane %v4776_v15, 5  ;;  %v4782_v29 = vrot.slane %v4780_v54, 4  ;;  %v2588_v40 = vld [vmem:[#allocation4 + $0x114] sm:$0xff]  ;;  %v2000_v53 = vshrl.u32 %v14228_v24, 16  ;;  %v14285_v15 = vpop.f32.mrf.mxu1 }
 0x1a3   : > { %v12206_v26 = vld [vmem:[#allocation4 + $0x10c] ss:$12 sps:$4 sm:$0xff]   ;;  %v1989_v42 = vsel %vm13159_vm5, %v1984_v45, %v14234_v10  ;;  %v514_v20 = vld [vmem:[%s12713_s27 + $0x9c] sm:$0xf]  ;;  %553 = vst [vmem:[#allocation4 + $0x138] sm:$0xf] %v513_v38  ;;  %v10568_v47 = vcombine.high %v14014_v4, %v14043_v44  ;;  %v17013_v48 = vsel %vm13159_vm5, %v14164_v43, %v14159_v50  ;;  %v10489_v10 = vcombine.low %v2586_v7, %v2588_v40 }
 0x1a4   : > { %4434 = vst [vmem:[#allocation4 + $0x108] sm:$0xf] %v10646_v0  ;;  %4435 = vst [vmem:[#allocation4 + $0x114] sm:$0xf] %v10647_v62  ;;  %v10282_v24 = vld [vmem:[%s12713_s27 + $0xa8] sm:$0xf]  ;;  %v1999_v33 = vsel %vm13159_vm5, %v1994_v61, %v14236_v59  ;;  %v4773_v12 = vor.u32 %v4772_v21, %v4769_v56  ;;  %v4783_v35 = vor.u32 %v4782_v29, %v14260_v23  ;;  %3255 = vmatprep.mubr.bf16.mxu0 %v12206_v26  ;;  %v11831_v40 = vpop.f32.mrf.mxu1 }
 0x1a5   : > { %5004 = vst [vmem:[#allocation4 + $0x10c] sm:$0xf] %v17013_v48  ;;  %5005 = vst [vmem:[#allocation4 + $0x118] sm:$0xf] %v4765_v60  ;;  %v600_v0 = vld [vmem:[%s12713_s27 + $0x9c] sm:$0xf]  ;;  %3256 = vmatmul.mubr.bf16.gmra.mxu0 %v10489_v10  ;;  %v17020_v63 = vcombine.high %v14121_v39, %v14128_v17 }
 0x1a6   : > { %554 = vst [vmem:[#allocation4 + $0x144] sm:$0xf] %v514_v20  ;;  %v601_v62 = vld [vmem:[%s12713_s27 + $0xa0] sm:$0x1]  ;;  %17014 = vst [vmem:[#allocation37_spill] sm:$0xff] %v14285_v15  ;;  %v912_v43 = vrot.slane %v911_v30, 4 }
 0x1a7   : > { %v10283_v50 = vld [vmem:[%s12713_s27 + $0xac] sm:$0xf]  ;;  %v914_v54 = vshll.u32 %v600_v0, 16  ;;  %v918_v7 = vshrl.u32 %v600_v0, 16  ;;  %v924_v60 = vshll.u32 %v601_v62, 16  ;;  %v14288_v45 = vrot.slane %v4786_v3, 5 }
 0x1a8   : > { %v4790_v61 = vshrl.u32 %v14248_v34, 16  ;;  %v10331_v56 = vld [vmem:[%s12713_s27 + $0xb4] sm:$0xf]  ;;  %v10332_v21 = vld [vmem:[%s12713_s27 + $0xb8] sm:$0x1]  ;;  %v14297_v26 = vld [vmem:[#allocation4 + $0x120] sm:$0xff]  ;;  %v17015_v34 = vcombine.low %v13947_v14, %v13949_v55 }
 0x1a9   : > { %v14299_v20 = vld [vmem:[#allocation4 + $0x12c] sm:$0xff]  ;;  %v14301_v30 = vrot.slane %v4773_v12, 4  ;;  %v916_v48 = vrot.slane %v914_v54, 5  ;;  %v920_v3 = vrot.slane %v918_v7, 4  ;;  %v2002_v10 = vrot.slane %v2000_v53, 4  ;;  %v14308_v12 = vpop.f32.mrf.mxu1 }
 0x1aa   : > { %4082 = vmatmul.mubr.bf16.gmra.mxu1 %v17015_v34  ;;  %1646 = vst [vmem:[#allocation4 + $0x120] sm:$0xf] %v10282_v24  ;;  %1647 = vst [vmem:[#allocation4 + $0x12c] sm:$0xf] %v10283_v50  ;;  %v14306_v0 = vrot.slane %v4783_v35, 4  ;;  %v926_v62 = vrot.slane %v924_v60, 5 }
 0x1ab   : > { %2216 = vst [vmem:[#allocation4 + $0x124] sm:$0xf] %v1989_v42  ;;  %2217 = vst [vmem:[#allocation4 + $0x130] sm:$0xf] %v1999_v33  ;;  %v2006_v40 = vshll.u32 %v10331_v56, 16  ;;  %v2010_v38 = vshrl.u32 %v10331_v56, 16  ;;  %4089 = vmatprep.mubr.bf16.mxu1 %v10568_v47  ;;  %v917_v14 = vsel %vm13159_vm5, %v912_v43, %v916_v48  ;;  %v921_v55 = vor.u32 %v920_v3, %v916_v48  ;;  %v14322_v43 = vpop.f32.mrf.mxu1 }
 0x1ac   : > { %17016 = vst [vmem:[#allocation38_spill] sm:$0xff] %v14308_v12  ;;  %v2003_v53 = vor.u32 %v2002_v10, %v14236_v59  ;;  %v2016_v24 = vshll.u32 %v10332_v21, 16  ;;  %v10697_v50 = vld [vmem:[%s12713_s27 + $0xcc] sm:$0xf]  ;;  %v14315_v42 = vld [vmem:[%s12713_s27 + $0xd0] sm:$0x1]  ;;  %v14330_v10 = vpop.f32.mrf.mxu0 }
 0x1ad   : > { %v12238_v33 = vld [vmem:[%s16938_s1 + $0x1d0] sm:$0xff]   ;;  %1126 = vst [vmem:[#allocation4 + $0x13c] sm:$0xf] %v917_v14  ;;  %v14320_v35 = vrot.slane %v2006_v40, 5  ;;  %v2012_v47 = vrot.slane %v2010_v38, 4  ;;  %v4792_v54 = vrot.slane %v4790_v61, 4 }
 0x1ae   : > { %v4796_v7 = vshll.u32 %v10697_v50, 16  ;;  %17017 = vst [vmem:[#allocation39_spill] sm:$0xff] %v14322_v43  ;;  %v10648_v60 = vld [vmem:[%s12713_s27 + $0xc0] sm:$0xf]  ;;  %v10649_v59 = vld [vmem:[%s12713_s27 + $0xc4] sm:$0xf]  ;;  %5952 = vmatpush2.bf16.msra.mxu1 %v12238_v33  ;;  %v3171_v43 = vpop.f32.mrf.mxu0 }
 0x1af   : > { %v922_v56 = vrot.slane %v921_v55, 4  ;;  %v14326_v21 = vrot.slane %v2003_v53, 4  ;;  %v4800_v48 = vshrl.u32 %v10697_v50, 16  ;;  %v2013_v61 = vor.u32 %v2012_v47, %v14320_v35  ;;  %v515_v14 = vld [vmem:[%s12713_s27 + $0xa8] sm:$0xf]  ;;  %v14340_v53 = vpop.f32.mrf.mxu1  ;;  %5953 = vmatprep.subr.bf16.mxu1 %v17004_v8 }
 0x1b0   : > { %v14333_v38 = vrot.slane %v2016_v24, 5  ;;  %v4793_v34 = vor.u32 %v4792_v54, %v14288_v45  ;;  %v14336_v40 = vrot.slane %v4796_v7, 5  ;;  %v516_v55 = vld [vmem:[%s12713_s27 + $0xac] sm:$0xf]  ;;  %17018 = vst [vmem:[#allocation40_spill] sm:$0xff] %v14340_v53  ;;  %v4779_v50 = vsel %vm13159_vm5, %v14301_v30, %v14260_v23 }
 0x1b1   : > { %v4789_v24 = vsel %vm13159_vm5, %v14306_v0, %v14288_v45  ;;  %v927_v33 = vsel %vm13159_vm5, %v922_v56, %v926_v62  ;;  %v10284_v47 = vld [vmem:[%s12713_s27 + $0xb0] sm:$0xf]  ;;  %v4802_v54 = vrot.slane %v4800_v48, 4  ;;  %555 = vst [vmem:[#allocation4 + $0x150] sm:$0xf] %v515_v14  ;;  %v12239_v29 = vld [vmem:[%s16938_s1 + $0x1c8] sm:$0xff]   ;;  %v11835_v56 = vpop.f32.mrf.mxu1  ;;  %v2009_v53 = vsel %vm13159_vm5, %v14326_v21, %v14320_v35 }
 0x1b2   : > { %556 = vst [vmem:[#allocation4 + $0x15c] sm:$0xf] %v516_v55  ;;  %v602_v7 = vld [vmem:[%s12713_s27 + $0xa8] sm:$0xf]  ;;  %v603_v3 = vld [vmem:[%s12713_s27 + $0xac] sm:$0xf]  ;;  %v10574_v35 = vcombine.high %v14198_v57, %v14225_v18  ;;  %5954 = vmatpush2.bf16.msra.mxu1 %v12239_v29 }
 0x1b3   : > { %1127 = vst [vmem:[#allocation4 + $0x148] sm:$0xf] %v927_v33  ;;  %v14359_v23 = vrot.slane %v2013_v61, 4  ;;  %v14361_v30 = vrot.slane %v4793_v34, 4  ;;  %v4806_v45 = vshll.u32 %v14315_v42, 16  ;;  %v929_v62 = vshrl.u32 %v602_v7, 16  ;;  %5955 = vmatprep.subr.bf16.mxu1 %v17004_v8 }
 0x1b4   : > { %v14365_v0 = vld [vmem:[%s12713_s27 + $0xb0] sm:$0xf]  ;;  %v2590_v48 = vld [vmem:[#allocation4 + $0x120] sm:$0xff]  ;;  %v4803_v43 = vor.u32 %v4802_v54, %v14336_v40  ;;  %v932_v61 = vshll.u32 %v602_v7, 16  ;;  %v938_v33 = vshll.u32 %v603_v3, 16  ;;  %v17019_v34 = vcombine.low %v14014_v4, %v14043_v44  ;;  %v14382_v4 = vpop.f32.mrf.mxu1  ;;  %v12240_v44 = vld [vmem:[%s16938_s1 + $0x238] sm:$0xff]  }
 0x1b5   : > { %v2592_v14 = vld [vmem:[#allocation4 + $0x12c] sm:$0xff]  ;;  %4436 = vst [vmem:[#allocation4 + $0x120] sm:$0xf] %v10648_v60  ;;  %v931_v56 = vrot.slane %v929_v62, 4  ;;  %17021 = vst [vmem:[#allocation41_spill] sm:$0xff] %v14382_v4  ;;  %v14387_v60 = vld [vmem:[#allocation4 + $0x138] sm:$0xff]  ;;  %v2019_v29 = vsel %vm13159_vm5, %v14359_v23, %v14333_v38  ;;  %11916 = vmatprep.subr.bf16.mxu0 %v12240_v44 }
 0x1b6   : > { %v12210_v55 = vld [vmem:[#allocation4 + $0x124] ss:$12 sps:$4 sm:$0xff]   ;;  %4090 = vmatmul.mubr.bf16.gmra.mxu1 %v17019_v34  ;;  %4437 = vst [vmem:[#allocation4 + $0x12c] sm:$0xf] %v10649_v59  ;;  %v10492_v42 = vcombine.low %v2590_v48, %v2592_v14  ;;  %v10285_v59 = vld [vmem:[%s12713_s27 + $0xb4] sm:$0xf]  ;;  %v14406_v14 = vpop.f32.mrf.mxu1 }
 0x1b7   : > { %5006 = vst [vmem:[#allocation4 + $0x124] sm:$0xf] %v4779_v50  ;;  %5007 = vst [vmem:[#allocation4 + $0x130] sm:$0xf] %v4789_v24  ;;  %4097 = vmatprep.mubr.bf16.mxu1 %v17020_v63  ;;  %3263 = vmatprep.mubr.bf16.mxu0 %v12210_v55  ;;  %v934_v63 = vrot.slane %v932_v61, 5  ;;  %v940_v50 = vrot.slane %v938_v33, 5 }
 0x1b8   : > { %v942_v24 = vshrl.u32 %v603_v3, 16  ;;  %3264 = vmatmul.mubr.bf16.gmra.mxu0 %v10492_v42  ;;  %1648 = vst [vmem:[#allocation4 + $0x138] sm:$0xf] %v10284_v47  ;;  %2218 = vst [vmem:[#allocation4 + $0x13c] sm:$0xf] %v2009_v53  ;;  %v14401_v3 = vrot.slane %v4806_v45, 5  ;;  %v14408_v47 = vpop.f32.mrf.mxu0  ;;  %v14417_v54 = vpop.f32.mrf.mxu1 }
 0x1b9   : > { %v948_v62 = vshll.u32 %v14365_v0, 16  ;;  %v10333_v48 = vld [vmem:[%s12713_s27 + $0xc0] sm:$0xf]  ;;  %v10334_v8 = vld [vmem:[%s12713_s27 + $0xc4] sm:$0xf]  ;;  %17022 = vst [vmem:[#allocation42_spill] sm:$0xff] %v14406_v14  ;;  %v935_v38 = vor.u32 %v934_v63, %v931_v56 }
 0x1ba   : > { %v14410_v55 = vrot.slane %v4803_v43, 4  ;;  %v944_v53 = vrot.slane %v942_v24, 4  ;;  %v14413_v23 = vld [vmem:[%s12713_s27 + $0xc8] sm:$0xf]  ;;  %v2021_v61 = vshrl.u32 %v10333_v48, 16  ;;  %v2024_v45 = vshll.u32 %v10333_v48, 16  ;;  %v3174_v44 = vpop.f32.mrf.mxu0 }
 0x1bb   : > { %v14415_v33 = vrot.slane %v948_v62, 5  ;;  %v2030_v34 = vshll.u32 %v10334_v8, 16  ;;  %v2034_v42 = vshrl.u32 %v10334_v8, 16  ;;  %17023 = vst [vmem:[#allocation43_spill] sm:$0xff] %v14417_v54  ;;  %v14419_v21 = vld [vmem:[#allocation4 + $0x144] sm:$0xff]  ;;  %v936_v7 = vrot.slane %v935_v38, 4  ;;  %v11839_v54 = vpop.f32.mrf.mxu1 }
 0x1bc   : > { %v945_v43 = vor.u32 %v944_v53, %v940_v50  ;;  %v2023_v14 = vrot.slane %v2021_v61, 4  ;;  %v2040_v56 = vshll.u32 %v14413_v23, 16  ;;  %v10699_v63 = vld [vmem:[%s12713_s27 + $0xd8] sm:$0xf]  ;;  %1649 = vst [vmem:[#allocation4 + $0x144] sm:$0xf] %v10285_v59 }
 0x1bd   : > { %2219 = vst [vmem:[#allocation4 + $0x148] sm:$0xf] %v2019_v29  ;;  %v952_v24 = vshrl.u32 %v14365_v0, 16  ;;  %v2026_v62 = vrot.slane %v2024_v45, 5  ;;  %v14424_v48 = vrot.slane %v2030_v34, 5  ;;  %v2036_v8 = vrot.slane %v2034_v42, 4 }
 0x1be   : > { %v10700_v44 = vld [vmem:[%s12713_s27 + $0xdc] sm:$0xf]  ;;  %v941_v38 = vsel %vm13159_vm5, %v936_v7, %v940_v50  ;;  %v946_v53 = vrot.slane %v945_v43, 4  ;;  %v14429_v61 = vrot.slane %v2040_v56, 5  ;;  %v14432_v4 = vld [vmem:[%s12713_s27 + $0xe0] sm:$0xf]  ;;  %v17024_v0 = vcombine.low %v14121_v39, %v14128_v17 }
 0x1bf   : > { %v4811_v59 = vshrl.u32 %v10699_v63, 16  ;;  %1128 = vst [vmem:[#allocation4 + $0x154] sm:$0xf] %v941_v38  ;;  %v2027_v29 = vor.u32 %v2026_v62, %v2023_v14  ;;  %v2037_v45 = vor.u32 %v2036_v8, %v14424_v48  ;;  %v4814_v54 = vshll.u32 %v10699_v63, 16  ;;  %v10650_v50 = vld [vmem:[%s12713_s27 + $0xc8] sm:$0xf] }
 0x1c0   : > { %4098 = vmatmul.mubr.bf16.gmra.mxu1 %v17024_v0  ;;  %v4820_v34 = vshll.u32 %v10700_v44, 16  ;;  %v10651_v7 = vld [vmem:[%s12713_s27 + $0xcc] sm:$0xf]  ;;  %v951_v42 = vsel %vm13159_vm5, %v946_v53, %v14415_v33  ;;  %v4824_v56 = vshrl.u32 %v10700_v44, 16  ;;  %v4830_v39 = vshll.u32 %v14432_v4, 16  ;;  %v2594_v38 = vld [vmem:[#allocation4 + $0x138] sm:$0xff] }
 0x1c1   : > { %4105 = vmatprep.mubr.bf16.mxu1 %v10574_v35  ;;  %v4813_v43 = vrot.slane %v4811_v59, 4  ;;  %v517_v17 = vld [vmem:[%s12713_s27 + $0xb0] sm:$0xf]  ;;  %1129 = vst [vmem:[#allocation4 + $0x160] sm:$0xf] %v951_v42  ;;  %v2028_v14 = vrot.slane %v2027_v29, 4  ;;  %v4809_v53 = vsel %vm13159_vm5, %v14410_v55, %v14401_v3 }
 0x1c2   : > { %v2038_v62 = vrot.slane %v2037_v45, 4  ;;  %v4816_v63 = vrot.slane %v4814_v54, 5  ;;  %v14445_v8 = vrot.slane %v4820_v34, 5  ;;  %v518_v35 = vld [vmem:[%s12713_s27 + $0xb4] sm:$0xf]  ;;  %v2044_v59 = vshrl.u32 %v14413_v23, 16 }
 0x1c3   : > { %557 = vst [vmem:[#allocation4 + $0x168] sm:$0xf] %v517_v17  ;;  %v10286_v44 = vld [vmem:[%s12713_s27 + $0xc0] sm:$0xf]  ;;  %v4826_v0 = vrot.slane %v4824_v56, 4  ;;  %v954_v29 = vrot.slane %v952_v24, 4  ;;  %v2033_v45 = vsel %vm13159_vm5, %v2028_v14, %v14424_v48  ;;  %v14466_v48 = vpop.f32.mrf.mxu0 }
 0x1c4   : > { %558 = vst [vmem:[#allocation4 + $0x174] sm:$0xf] %v518_v35  ;;  %v605_v42 = vld [vmem:[%s12713_s27 + $0xb4] sm:$0xf]  ;;  %v4817_v54 = vor.u32 %v4816_v63, %v4813_v43  ;;  %v14458_v34 = vrot.slane %v4830_v39, 5  ;;  %v12241_v3 = vld [vmem:[%s16938_s1 + $0x1c0] sm:$0xff]   ;;  %v17025_v43 = vsel %vm13159_vm5, %v14361_v30, %v14336_v40  ;;  %v2043_v63 = vsel %vm13159_vm5, %v2038_v62, %v14429_v61 }
 0x1c5   : > { %v606_v17 = vld [vmem:[%s12713_s27 + $0xb8] sm:$0x1]  ;;  %v958_v12 = vshll.u32 %v605_v42, 16  ;;  %v2596_v55 = vld [vmem:[#allocation4 + $0x144] sm:$0xff]  ;;  %v4827_v56 = vor.u32 %v4826_v0, %v14445_v8  ;;  %v955_v24 = vor.u32 %v954_v29, %v14415_v33  ;;  %v962_v35 = vshrl.u32 %v605_v42, 16  ;;  %5956 = vmatpush2.bf16.msra.mxu1 %v12241_v3  ;;  %v3179_v62 = vpop.f32.mrf.mxu0 }
 0x1c6   : > { %v12213_v23 = vld [vmem:[#allocation4 + $0x13c] ss:$12 sps:$4 sm:$0xff]   ;;  %v968_v15 = vshll.u32 %v606_v17, 16  ;;  %4438 = vst [vmem:[#allocation4 + $0x138] sm:$0xf] %v10650_v50  ;;  %v10495_v39 = vcombine.low %v2594_v38, %v2596_v55  ;;  %v4834_v33 = vshrl.u32 %v14432_v4, 16  ;;  %v10576_v3 = vcombine.low %v14297_v26, %v14299_v20 }
 0x1c7   : > { %4439 = vst [vmem:[#allocation4 + $0x144] sm:$0xf] %v10651_v7  ;;  %5008 = vst [vmem:[#allocation4 + $0x13c] sm:$0xf] %v17025_v43  ;;  %v10287_v14 = vld [vmem:[%s12713_s27 + $0xc4] sm:$0xf]  ;;  %3271 = vmatprep.mubr.bf16.mxu0 %v12213_v23  ;;  %v3180_v23 = vpop.f32.mrf.mxu0  ;;  %v10580_v43 = vcombine.high %v14387_v60, %v14419_v21 }
 0x1c8   : > { %5009 = vst [vmem:[#allocation4 + $0x148] sm:$0xf] %v4809_v53  ;;  %v960_v0 = vrot.slane %v958_v12, 5  ;;  %v10336_v42 = vld [vmem:[%s12713_s27 + $0xcc] sm:$0xf]  ;;  %v14479_v50 = vld [vmem:[#allocation4 + $0x150] sm:$0xff]  ;;  %v17026_v53 = vcombine.low %v14198_v57, %v14225_v18  ;;  %3272 = vmatmul.mubr.bf16.gmra.mxu0 %v10495_v39 }
 0x1c9   : > { %v14481_v7 = vrot.slane %v4817_v54, 4  ;;  %v14483_v40 = vrot.slane %v4827_v56, 4  ;;  %v956_v30 = vrot.slane %v955_v24, 4  ;;  %v964_v38 = vrot.slane %v962_v35, 4  ;;  %1650 = vst [vmem:[#allocation4 + $0x150] sm:$0xf] %v10286_v44 }
 0x1ca   : > { %4106 = vmatmul.mubr.bf16.gmra.mxu1 %v17026_v53  ;;  %2220 = vst [vmem:[#allocation4 + $0x154] sm:$0xf] %v2033_v45  ;;  %v10337_v12 = vld [vmem:[%s12713_s27 + $0xd0] sm:$0x1]  ;;  %v2046_v4 = vrot.slane %v2044_v59, 4  ;;  %v2050_v29 = vshll.u32 %v10336_v42, 16  ;;  %v17027_v54 = vcombine.high %v14297_v26, %v14299_v20  ;;  %v14498_v59 = vpop.f32.mrf.mxu1 }
 0x1cb   : > { %v2054_v17 = vshrl.u32 %v10336_v42, 16  ;;  %v14494_v55 = vld [vmem:[#allocation4 + $0x15c] sm:$0xff]  ;;  %v961_v57 = vsel %vm13159_vm5, %v956_v30, %v960_v0  ;;  %v965_v18 = vor.u32 %v964_v38, %v960_v0  ;;  %v970_v44 = vrot.slane %v968_v15, 5  ;;  %17028 = vst [vmem:[#allocation44_spill] sm:$0xff] %v14498_v59  ;;  %v10702_v20 = vld [vmem:[%s12713_s27 + $0xe4] sm:$0xf] }
 0x1cc   : > { %4113 = vmatprep.mubr.bf16.mxu1 %v17027_v54  ;;  %v2060_v45 = vshll.u32 %v10337_v12, 16  ;;  %1651 = vst [vmem:[#allocation4 + $0x15c] sm:$0xf] %v10287_v14  ;;  %2221 = vst [vmem:[#allocation4 + $0x160] sm:$0xf] %v2043_v63  ;;  %v2047_v56 = vor.u32 %v2046_v4, %v14429_v61  ;;  %v2052_v24 = vrot.slane %v2050_v29, 5  ;;  %v3182_v63 = vpop.f32.mrf.mxu0  ;;  %v14516_v54 = vpop.f32.mrf.mxu1 }
 0x1cd   : > { %1130 = vst [vmem:[#allocation4 + $0x16c] sm:$0xf] %v961_v57  ;;  %v2056_v26 = vrot.slane %v2054_v17, 4  ;;  %v10703_v35 = vld [vmem:[%s12713_s27 + $0xe8] sm:$0x1]  ;;  %v966_v15 = vrot.slane %v965_v18, 4  ;;  %v4823_v57 = vsel %vm13159_vm5, %v14481_v7, %v14445_v8  ;;  %v4833_v18 = vsel %vm13159_vm5, %v14483_v40, %v14458_v34 }
 0x1ce   : > { %v14505_v39 = vrot.slane %v2060_v45, 5  ;;  %v4836_v0 = vrot.slane %v4834_v33, 4  ;;  %v4840_v14 = vshll.u32 %v10702_v20, 16  ;;  %v2048_v42 = vrot.slane %v2047_v56, 4  ;;  %v10652_v53 = vld [vmem:[%s12713_s27 + $0xd8] sm:$0xf]  ;;  %v14537_v40 = vpop.f32.mrf.mxu1 }
 0x1cf   : > { %v2057_v30 = vor.u32 %v2056_v26, %v2052_v24  ;;  %v4844_v38 = vshrl.u32 %v10702_v20, 16  ;;  %v4850_v61 = vshll.u32 %v10703_v35, 16  ;;  %v10653_v62 = vld [vmem:[%s12713_s27 + $0xdc] sm:$0xf]  ;;  %v971_v12 = vsel %vm13159_vm5, %v966_v15, %v970_v44  ;;  %v519_v17 = vld [vmem:[%s12713_s27 + $0xc0] sm:$0xf] }
 0x1d0   : > { %v4837_v4 = vor.u32 %v4836_v0, %v14458_v34  ;;  %v14512_v29 = vrot.slane %v4840_v14, 5  ;;  %v520_v33 = vld [vmem:[%s12713_s27 + $0xc4] sm:$0xf]  ;;  %17029 = vst [vmem:[#allocation45_spill] sm:$0xff] %v14516_v54  ;;  %1131 = vst [vmem:[#allocation4 + $0x178] sm:$0xf] %v971_v12  ;;  %v2053_v20 = vsel %vm13159_vm5, %v2048_v42, %v2052_v24  ;;  %v10579_v7 = vcombine.low %v14387_v60, %v14419_v21  ;;  %v11843_v12 = vpop.f32.mrf.mxu1 }
 0x1d1   : > { %v2058_v44 = vrot.slane %v2057_v30, 4  ;;  %v4846_v45 = vrot.slane %v4844_v38, 4  ;;  %559 = vst [vmem:[#allocation4 + $0x180] sm:$0xf] %v519_v17  ;;  %560 = vst [vmem:[#allocation4 + $0x18c] sm:$0xf] %v520_v33  ;;  %v10583_v34 = vcombine.high %v14479_v50, %v14494_v55 }
 0x1d2   : > { %v607_v23 = vld [vmem:[%s12713_s27 + $0xc0] sm:$0xf]  ;;  %v2598_v56 = vld [vmem:[#allocation4 + $0x150] sm:$0xff]  ;;  %v10288_v26 = vld [vmem:[%s12713_s27 + $0xc8] sm:$0xf]  ;;  %v14530_v35 = vrot.slane %v4837_v4, 4  ;;  %4114 = vmatmul.mubr.bf16.gmra.mxu1 %v10576_v3 }
 0x1d3   : > { %v608_v8 = vld [vmem:[%s12713_s27 + $0xc4] sm:$0xf]  ;;  %17030 = vst [vmem:[#allocation46_spill] sm:$0xff] %v14537_v40  ;;  %v4847_v15 = vor.u32 %v4846_v45, %v14512_v29  ;;  %v14540_v0 = vrot.slane %v4850_v61, 5  ;;  %v14543_v14 = vld [vmem:[%s12713_s27 + $0xc8] sm:$0xf]  ;;  %4121 = vmatprep.mubr.bf16.mxu1 %v10580_v43  ;;  %v2063_v21 = vsel %vm13159_vm5, %v2058_v44, %v14505_v39 }
 0x1d4   : > { %v973_v63 = vshrl.u32 %v607_v23, 16  ;;  %v976_v24 = vshll.u32 %v607_v23, 16  ;;  %v2600_v42 = vld [vmem:[#allocation4 + $0x15c] sm:$0xff]  ;;  %v14545_v30 = vld [vmem:[#allocation4 + $0x168] sm:$0xff]  ;;  %v982_v60 = vshll.u32 %v608_v8, 16  ;;  %v986_v38 = vshrl.u32 %v608_v8, 16 }
 0x1d5   : > { %v12216_v3 = vld [vmem:[#allocation4 + $0x154] ss:$12 sps:$4 sm:$0xff]   ;;  %4440 = vst [vmem:[#allocation4 + $0x150] sm:$0xf] %v10652_v53  ;;  %4441 = vst [vmem:[#allocation4 + $0x15c] sm:$0xf] %v10653_v62  ;;  %v10498_v43 = vcombine.low %v2598_v56, %v2600_v42 }
 0x1d6   : > { %5010 = vst [vmem:[#allocation4 + $0x154] sm:$0xf] %v4823_v57  ;;  %5011 = vst [vmem:[#allocation4 + $0x160] sm:$0xf] %v4833_v18  ;;  %v10289_v4 = vld [vmem:[%s12713_s27 + $0xcc] sm:$0xf]  ;;  %3279 = vmatprep.mubr.bf16.mxu0 %v12216_v3 }
 0x1d7   : > { %1652 = vst [vmem:[#allocation4 + $0x168] sm:$0xf] %v10288_v26  ;;  %2222 = vst [vmem:[#allocation4 + $0x16c] sm:$0xf] %v2053_v20  ;;  %v975_v17 = vrot.slane %v973_v63, 4  ;;  %v978_v33 = vrot.slane %v976_v24, 5  ;;  %3280 = vmatmul.mubr.bf16.gmra.mxu0 %v10498_v43 }
 0x1d8   : > { %v10338_v44 = vld [vmem:[%s12713_s27 + $0xd8] sm:$0xf]  ;;  %v14558_v45 = vrot.slane %v4847_v15, 4  ;;  %v984_v53 = vrot.slane %v982_v60, 5  ;;  %v988_v62 = vrot.slane %v986_v38, 4  ;;  %v992_v57 = vshll.u32 %v14543_v14, 16 }
 0x1d9   : > { %v10339_v18 = vld [vmem:[%s12713_s27 + $0xdc] sm:$0xf]  ;;  %v979_v23 = vor.u32 %v978_v33, %v975_v17  ;;  %v996_v56 = vshrl.u32 %v14543_v14, 16  ;;  %v14564_v26 = vld [vmem:[%s12713_s27 + $0xe0] sm:$0xf]  ;;  %v2065_v20 = vshrl.u32 %v10338_v44, 16 }
 0x1da   : > { %v2068_v8 = vshll.u32 %v10338_v44, 16  ;;  %v14566_v63 = vld [vmem:[#allocation4 + $0x174] sm:$0xff]  ;;  %v989_v24 = vor.u32 %v988_v62, %v984_v53  ;;  %v14568_v15 = vrot.slane %v992_v57, 5  ;;  %v2074_v42 = vshll.u32 %v10339_v18, 16  ;;  %v10704_v43 = vld [vmem:[%s12713_s27 + $0xf0] sm:$0xf]  ;;  %4122 = vmatmul.mubr.bf16.gmra.mxu1 %v10579_v7 }
 0x1db   : > { %v2078_v3 = vshrl.u32 %v10339_v18, 16  ;;  %1653 = vst [vmem:[#allocation4 + $0x174] sm:$0xf] %v10289_v4  ;;  %2223 = vst [vmem:[#allocation4 + $0x178] sm:$0xf] %v2063_v21  ;;  %v980_v60 = vrot.slane %v979_v23, 4  ;;  %4129 = vmatprep.mubr.bf16.mxu1 %v10583_v34  ;;  %v4853_v34 = vsel %vm13159_vm5, %v14558_v45, %v14540_v0  ;;  %v10586_v0 = vcombine.high %v14545_v30, %v14566_v63 }
 0x1dc   : > { %v2067_v38 = vrot.slane %v2065_v20, 4  ;;  %v2070_v12 = vrot.slane %v2068_v8, 5  ;;  %v2084_v14 = vshll.u32 %v14564_v26, 16  ;;  %v990_v17 = vrot.slane %v989_v24, 4  ;;  %v10705_v57 = vld [vmem:[%s12713_s27 + $0xf4] sm:$0xf] }
 0x1dd   : > { %v14572_v33 = vrot.slane %v2074_v42, 5  ;;  %v2080_v44 = vrot.slane %v2078_v3, 4  ;;  %v985_v4 = vsel %vm13159_vm5, %v980_v60, %v984_v53  ;;  %v14581_v23 = vld [vmem:[%s12713_s27 + $0xf8] sm:$0xf]  ;;  %v4855_v20 = vshrl.u32 %v10704_v43, 16  ;;  %v14589_v53 = vpop.f32.mrf.mxu0 }
 0x1de   : > { %v2071_v21 = vor.u32 %v2070_v12, %v2067_v38  ;;  %v14578_v18 = vrot.slane %v2084_v14, 5  ;;  %v10654_v8 = vld [vmem:[%s12713_s27 + $0xe0] sm:$0xf]  ;;  %v10655_v61 = vld [vmem:[%s12713_s27 + $0xe4] sm:$0xf]  ;;  %v995_v24 = vsel %vm13159_vm5, %v990_v17, %v14568_v15  ;;  %v4858_v7 = vshll.u32 %v10704_v43, 16 }
 0x1df   : > { %1132 = vst [vmem:[#allocation4 + $0x184] sm:$0xf] %v985_v4  ;;  %v2081_v42 = vor.u32 %v2080_v44, %v14572_v33  ;;  %v4864_v3 = vshll.u32 %v10705_v57, 16  ;;  %v2602_v60 = vld [vmem:[#allocation4 + $0x168] sm:$0xff]  ;;  %1133 = vst [vmem:[#allocation4 + $0x190] sm:$0xf] %v995_v24  ;;  %v3187_v62 = vpop.f32.mrf.mxu0 }
 0x1e0   : > { %v2072_v38 = vrot.slane %v2071_v21, 4  ;;  %v4857_v12 = vrot.slane %v4855_v20, 4  ;;  %v4868_v14 = vshrl.u32 %v10705_v57, 16  ;;  %v4860_v4 = vrot.slane %v4858_v7, 5  ;;  %v521_v40 = vld [vmem:[%s12713_s27 + $0xc8] sm:$0xf] }
 0x1e1   : > { %v2082_v17 = vrot.slane %v2081_v42, 4  ;;  %v14595_v44 = vrot.slane %v4864_v3, 5  ;;  %v4874_v43 = vshll.u32 %v14581_v23, 16  ;;  %v4878_v54 = vshrl.u32 %v14581_v23, 16  ;;  %v522_v59 = vld [vmem:[%s12713_s27 + $0xcc] sm:$0xf]  ;;  %v14607_v23 = vpop.f32.mrf.mxu0 }
 0x1e2   : > { %v4870_v39 = vrot.slane %v4868_v14, 4  ;;  %v2604_v45 = vld [vmem:[#allocation4 + $0x174] sm:$0xff]  ;;  %v2077_v21 = vsel %vm13159_vm5, %v2072_v38, %v14572_v33  ;;  %v4861_v20 = vor.u32 %v4860_v4, %v4857_v12  ;;  %561 = vst [vmem:[#allocation4 + $0x198] sm:$0xf] %v521_v40  ;;  %562 = vst [vmem:[#allocation4 + $0x1a4] sm:$0xf] %v522_v59  ;;  %v17031_v42 = vsel %vm13159_vm5, %v14530_v35, %v14512_v29 }
 0x1e3   : > { %v12219_v57 = vld [vmem:[#allocation4 + $0x16c] ss:$12 sps:$4 sm:$0xff]   ;;  %v998_v24 = vrot.slane %v996_v56, 4  ;;  %4442 = vst [vmem:[#allocation4 + $0x168] sm:$0xf] %v10654_v8  ;;  %v10501_v7 = vcombine.low %v2602_v60, %v2604_v45  ;;  %v17032_v60 = vcombine.low %v14479_v50, %v14494_v55  ;;  %v14630_v14 = vrot.slane %v4874_v43, 5 }
 0x1e4   : > { %v610_v62 = vld [vmem:[%s12713_s27 + $0xcc] sm:$0xf]  ;;  %4443 = vst [vmem:[#allocation4 + $0x174] sm:$0xf] %v10655_v61  ;;  %5012 = vst [vmem:[#allocation4 + $0x16c] sm:$0xf] %v17031_v42  ;;  %v4871_v40 = vor.u32 %v4870_v39, %v14595_v44  ;;  %3287 = vmatprep.mubr.bf16.mxu0 %v12219_v57  ;;  %v2087_v61 = vsel %vm13159_vm5, %v2082_v17, %v14578_v18  ;;  %v3190_v39 = vpop.f32.mrf.mxu0  ;;  %v14635_v17 = vpop.f32.mrf.mxu1 }
 0x1e5   : > { %5013 = vst [vmem:[#allocation4 + $0x178] sm:$0xf] %v4853_v34  ;;  %v10290_v33 = vld [vmem:[%s12713_s27 + $0xd8] sm:$0xf]  ;;  %v611_v3 = vld [vmem:[%s12713_s27 + $0xd0] sm:$0x1]  ;;  %v999_v29 = vor.u32 %v998_v24, %v14568_v15  ;;  %4130 = vmatmul.mubr.bf16.gmra.mxu1 %v17032_v60  ;;  %3288 = vmatmul.mubr.bf16.gmra.mxu0 %v10501_v7  ;;  %v10585_v15 = vcombine.low %v14545_v30, %v14566_v63 }
 0x1e6   : > { %v1002_v59 = vshll.u32 %v610_v62, 16  ;;  %v1006_v56 = vshrl.u32 %v610_v62, 16  ;;  %v10291_v38 = vld [vmem:[%s12713_s27 + $0xdc] sm:$0xf]  ;;  %v14621_v8 = vrot.slane %v4861_v20, 4  ;;  %v1012_v35 = vshll.u32 %v611_v3, 16  ;;  %4137 = vmatprep.mubr.bf16.mxu1 %v10586_v0 }
 0x1e7   : > { %v10341_v34 = vld [vmem:[%s12713_s27 + $0xe4] sm:$0xf]  ;;  %v10342_v57 = vld [vmem:[%s12713_s27 + $0xe8] sm:$0x1]  ;;  %17033 = vst [vmem:[#allocation47_spill] sm:$0xff] %v14635_v17  ;;  %v14637_v20 = vld [vmem:[#allocation4 + $0x18c] sm:$0xff] }
 0x1e8   : > { %v14628_v12 = vld [vmem:[#allocation4 + $0x180] sm:$0xff]  ;;  %v1004_v4 = vrot.slane %v1002_v59, 5  ;;  %v1008_v45 = vrot.slane %v1006_v56, 4  ;;  %v4867_v50 = vsel %vm13159_vm5, %v14621_v8, %v14595_v44  ;;  %v4872_v55 = vrot.slane %v4871_v40, 4  ;;  %1655 = vst [vmem:[#allocation4 + $0x18c] sm:$0xf] %v10291_v38 }
 0x1e9   : > { %1654 = vst [vmem:[#allocation4 + $0x180] sm:$0xf] %v10290_v33  ;;  %2224 = vst [vmem:[#allocation4 + $0x184] sm:$0xf] %v2077_v21  ;;  %v1000_v43 = vrot.slane %v999_v29, 4  ;;  %v17034_v0 = vshrl.u32 %v14564_v26, 16 }
 0x1ea   : > { %2225 = vst [vmem:[#allocation4 + $0x190] sm:$0xf] %v2087_v61  ;;  %v1009_v30 = vor.u32 %v1008_v45, %v1004_v4  ;;  %v1014_v63 = vrot.slane %v1012_v35, 5  ;;  %v2094_v24 = vshll.u32 %v10341_v34, 16  ;;  %v2098_v42 = vshrl.u32 %v10341_v34, 16  ;;  %v14650_v61 = vpop.f32.mrf.mxu1 }
 0x1eb   : > { %v2090_v62 = vrot.slane %v17034_v0, 4  ;;  %v10707_v7 = vld [vmem:[%s12713_s27 + $0xfc] sm:$0xf]  ;;  %v1005_v21 = vsel %vm13159_vm5, %v1000_v43, %v1004_v4  ;;  %v2104_v44 = vshll.u32 %v10342_v57, 16  ;;  %v10708_v40 = vld [vmem:[%s12713_s27 + $0x100] sm:$0x1] }
 0x1ec   : > { %v4880_v3 = vrot.slane %v4878_v54, 4  ;;  %v1010_v26 = vrot.slane %v1009_v30, 4  ;;  %1134 = vst [vmem:[#allocation4 + $0x19c] sm:$0xf] %v1005_v21  ;;  %v2096_v59 = vrot.slane %v2094_v24, 5  ;;  %v2100_v56 = vrot.slane %v2098_v42, 4 }
 0x1ed   : > { %v2091_v33 = vor.u32 %v2090_v62, %v14578_v18  ;;  %v4884_v38 = vshll.u32 %v10707_v7, 16  ;;  %17035 = vst [vmem:[#allocation48_spill] sm:$0xff] %v14650_v61  ;;  %v10656_v8 = vld [vmem:[%s12713_s27 + $0xf0] sm:$0xf]  ;;  %v10657_v29 = vld [vmem:[%s12713_s27 + $0xf4] sm:$0xf]  ;;  %v4877_v18 = vsel %vm13159_vm5, %v4872_v55, %v14630_v14  ;;  %v14665_v62 = vpop.f32.mrf.mxu1  ;;  %4138 = vmatmul.mubr.bf16.gmra.mxu1 %v10585_v15 }
 0x1ee   : > { %v4881_v34 = vor.u32 %v4880_v3, %v14630_v14  ;;  %v4888_v54 = vshrl.u32 %v10707_v7, 16  ;;  %v523_v60 = vld [vmem:[%s12713_s27 + $0xd8] sm:$0xf]  ;;  %v1015_v39 = vsel %vm13159_vm5, %v1010_v26, %v1014_v63  ;;  %v2101_v4 = vor.u32 %v2100_v56, %v2096_v59  ;;  %v524_v43 = vld [vmem:[%s12713_s27 + $0xdc] sm:$0xf]  ;;  %17036 = vst [vmem:[#allocation49_spill] sm:$0xff] %v14665_v62 }
 0x1ef   : > { %v2092_v35 = vrot.slane %v2091_v33, 4  ;;  %v14661_v45 = vrot.slane %v4884_v38, 5  ;;  %v4894_v57 = vshll.u32 %v10708_v40, 16  ;;  %563 = vst [vmem:[#allocation4 + $0x1b0] sm:$0xf] %v523_v60  ;;  %v2106_v30 = vrot.slane %v2104_v44, 5  ;;  %v11847_v26 = vpop.f32.mrf.mxu1 }
 0x1f0   : > { %v612_v0 = vld [vmem:[%s12713_s27 + $0xd8] sm:$0xf]  ;;  %1135 = vst [vmem:[#allocation4 + $0x1a8] sm:$0xf] %v1015_v39  ;;  %v10292_v55 = vld [vmem:[%s12713_s27 + $0xe0] sm:$0xf]  ;;  %v10589_v63 = vcombine.high %v14628_v12, %v14637_v20 }
 0x1f1   : > { %v14668_v14 = vrot.slane %v4881_v34, 4  ;;  %v4890_v24 = vrot.slane %v4888_v54, 4  ;;  %564 = vst [vmem:[#allocation4 + $0x1bc] sm:$0xf] %v524_v43  ;;  %v613_v42 = vld [vmem:[%s12713_s27 + $0xdc] sm:$0xf]  ;;  %v2097_v44 = vsel %vm13159_vm5, %v2092_v35, %v2096_v59 }
 0x1f2   : > { %v2606_v7 = vld [vmem:[#allocation4 + $0x180] sm:$0xff]  ;;  %v2102_v21 = vrot.slane %v2101_v4, 4  ;;  %v1017_v40 = vshrl.u32 %v612_v0, 16  ;;  %v1020_v3 = vshll.u32 %v612_v0, 16  ;;  %v2608_v56 = vld [vmem:[#allocation4 + $0x18c] sm:$0xff]  ;;  %v1026_v54 = vshll.u32 %v613_v42, 16  ;;  %4145 = vmatprep.mubr.bf16.mxu1 %v10589_v63 }
 0x1f3   : > { %v14674_v33 = vld [vmem:[%s12713_s27 + $0xe0] sm:$0xf]  ;;  %v12222_v38 = vld [vmem:[#allocation4 + $0x184] ss:$12 sps:$4 sm:$0xff]   ;;  %v4891_v34 = vor.u32 %v4890_v24, %v14661_v45  ;;  %v1030_v15 = vshrl.u32 %v613_v42, 16  ;;  %v10504_v60 = vcombine.low %v2606_v7, %v2608_v56  ;;  %v14680_v4 = vrot.slane %v4894_v57, 5 }
 0x1f4   : > { %4444 = vst [vmem:[#allocation4 + $0x180] sm:$0xf] %v10656_v8  ;;  %4445 = vst [vmem:[#allocation4 + $0x18c] sm:$0xf] %v10657_v29  ;;  %v10293_v39 = vld [vmem:[%s12713_s27 + $0xe4] sm:$0xf]  ;;  %3295 = vmatprep.mubr.bf16.mxu0 %v12222_v38  ;;  %v10588_v63 = vcombine.low %v14628_v12, %v14637_v20 }
 0x1f5   : > { %5014 = vst [vmem:[#allocation4 + $0x184] sm:$0xf] %v4867_v50  ;;  %5015 = vst [vmem:[#allocation4 + $0x190] sm:$0xf] %v4877_v18  ;;  %v1019_v43 = vrot.slane %v1017_v40, 4  ;;  %v1022_v0 = vrot.slane %v1020_v3, 5  ;;  %3296 = vmatmul.mubr.bf16.gmra.mxu0 %v10504_v60  ;;  %v2107_v50 = vsel %vm13159_vm5, %v2102_v21, %v2106_v30 }
 0x1f6   : > { %v14682_v26 = vld [vmem:[#allocation4 + $0x198] sm:$0xff]  ;;  %v14684_v59 = vrot.slane %v4891_v34, 4  ;;  %v1028_v35 = vrot.slane %v1026_v54, 5  ;;  %v1032_v24 = vrot.slane %v1030_v15, 4  ;;  %v1036_v8 = vshll.u32 %v14674_v33, 16  ;;  %4146 = vmatmul.mubr.bf16.gmra.mxu1 %v10588_v63 }
 0x1f7   : > { %1656 = vst [vmem:[#allocation4 + $0x198] sm:$0xf] %v10292_v55  ;;  %2226 = vst [vmem:[#allocation4 + $0x19c] sm:$0xf] %v2097_v44  ;;  %v1023_v18 = vor.u32 %v1022_v0, %v1019_v43  ;;  %v10343_v57 = vld [vmem:[%s12713_s27 + $0xf0] sm:$0xf] }
 0x1f8   : > { %v10344_v42 = vld [vmem:[%s12713_s27 + $0xf4] sm:$0xf]  ;;  %v1033_v7 = vor.u32 %v1032_v24, %v1028_v35  ;;  %v14697_v40 = vrot.slane %v1036_v8, 5  ;;  %v1040_v55 = vshrl.u32 %v14674_v33, 16  ;;  %v14701_v3 = vld [vmem:[%s12713_s27 + $0xf8] sm:$0xf]  ;;  %v4897_v12 = vsel %vm13159_vm5, %v14684_v59, %v14680_v4  ;;  %v14715_v24 = vpop.f32.mrf.mxu0 }
 0x1f9   : > { %v2109_v30 = vshrl.u32 %v10343_v57, 16  ;;  %v14703_v21 = vld [vmem:[#allocation4 + $0x1a4] sm:$0xff]  ;;  %v1024_v56 = vrot.slane %v1023_v18, 4  ;;  %v2112_v38 = vshll.u32 %v10343_v57, 16  ;;  %v2118_v44 = vshll.u32 %v10344_v42, 16 }
 0x1fa   : > { %v2122_v34 = vshrl.u32 %v10344_v42, 16  ;;  %1657 = vst [vmem:[#allocation4 + $0x1a4] sm:$0xf] %v10293_v39  ;;  %2227 = vst [vmem:[#allocation4 + $0x1a8] sm:$0xf] %v2107_v50  ;;  %v1034_v20 = vrot.slane %v1033_v7, 4 }
 0x1fb   : > { %v2111_v33 = vrot.slane %v2109_v30, 4  ;;  %v2128_v54 = vshll.u32 %v14701_v3, 16  ;;  %v1029_v15 = vsel %vm13159_vm5, %v1024_v56, %v1028_v35  ;;  %v2114_v60 = vrot.slane %v2112_v38, 5  ;;  %v10709_v0 = vld [vmem:[%s12713_s27 + $0x108] sm:$0xf]  ;;  %v3195_v38 = vpop.f32.mrf.mxu0 }
 0x1fc   : > { %v14712_v39 = vrot.slane %v2118_v44, 5  ;;  %v2124_v43 = vrot.slane %v2122_v34, 4  ;;  %v1039_v4 = vsel %vm13159_vm5, %v1034_v20, %v14697_v40  ;;  %1136 = vst [vmem:[#allocation4 + $0x1b4] sm:$0xf] %v1029_v15  ;;  %v10710_v8 = vld [vmem:[%s12713_s27 + $0x10c] sm:$0xf]  ;;  %v10592_v35 = vcombine.high %v14682_v26, %v14703_v21 }
 0x1fd   : > { %v14720_v59 = vrot.slane %v2128_v54, 5  ;;  %v14724_v50 = vld [vmem:[%s12713_s27 + $0x110] sm:$0xf]  ;;  %v4899_v18 = vshrl.u32 %v10709_v0, 16  ;;  %v10658_v57 = vld [vmem:[%s12713_s27 + $0xf8] sm:$0xf]  ;;  %v2115_v63 = vor.u32 %v2114_v60, %v2111_v33 }
 0x1fe   : > { %v10659_v42 = vld [vmem:[%s12713_s27 + $0xfc] sm:$0xf]  ;;  %1137 = vst [vmem:[#allocation4 + $0x1c0] sm:$0xf] %v1039_v4  ;;  %v2125_v7 = vor.u32 %v2124_v43, %v14712_v39  ;;  %v4902_v30 = vshll.u32 %v10709_v0, 16  ;;  %v4908_v56 = vshll.u32 %v10710_v8, 16  ;;  %4153 = vmatprep.mubr.bf16.mxu1 %v10592_v35  ;;  %v3196_v0 = vpop.f32.mrf.mxu0 }
 0x1ff   : > { %v2610_v44 = vld [vmem:[#allocation4 + $0x198] sm:$0xff]  ;;  %v2132_v34 = vshrl.u32 %v14701_v3, 16  ;;  %v4901_v20 = vrot.slane %v4899_v18, 4  ;;  %v4912_v54 = vshrl.u32 %v10710_v8, 16  ;;  %v4918_v15 = vshll.u32 %v14724_v50, 16  ;;  %v14742_v18 = vpop.f32.mrf.mxu1 }
 0x200   : > { %v10294_v29 = vld [vmem:[%s12713_s27 + $0xf0] sm:$0xf]  ;;  %v2116_v61 = vrot.slane %v2115_v63, 4  ;;  %v2126_v4 = vrot.slane %v2125_v7, 4  ;;  %v4904_v33 = vrot.slane %v4902_v30, 5  ;;  %v14734_v60 = vrot.slane %v4908_v56, 5 }
 0x201   : > { %v525_v43 = vld [vmem:[%s12713_s27 + $0xe0] sm:$0xf]  ;;  %v4914_v38 = vrot.slane %v4912_v54, 4  ;;  %v4922_v62 = vshrl.u32 %v14724_v50, 16  ;;  %v526_v17 = vld [vmem:[%s12713_s27 + $0xe4] sm:$0xf]  ;;  %v10591_v8 = vcombine.low %v14682_v26, %v14703_v21  ;;  %v17037_v26 = vsel %vm13159_vm5, %v14668_v14, %v14661_v45 }
 0x202   : > { %565 = vst [vmem:[#allocation4 + $0x1c8] sm:$0xf] %v525_v43  ;;  %v615_v3 = vld [vmem:[%s12713_s27 + $0xe4] sm:$0xf]  ;;  %v12226_v63 = vld [vmem:[#allocation4 + $0x19c] ss:$12 sps:$4 sm:$0xff]   ;;  %v2121_v7 = vsel %vm13159_vm5, %v2116_v61, %v14712_v39  ;;  %v2131_v30 = vsel %vm13159_vm5, %v2126_v4, %v14720_v59  ;;  %v4905_v50 = vor.u32 %v4904_v33, %v4901_v20  ;;  %v3198_v43 = vpop.f32.mrf.mxu0 }
 0x203   : > { %v2612_v35 = vld [vmem:[#allocation4 + $0x1a4] sm:$0xff]  ;;  %566 = vst [vmem:[#allocation4 + $0x1d4] sm:$0xf] %v526_v17  ;;  %v1042_v54 = vrot.slane %v1040_v55, 4  ;;  %4446 = vst [vmem:[#allocation4 + $0x198] sm:$0xf] %v10658_v57  ;;  %v4915_v39 = vor.u32 %v4914_v38, %v14734_v60  ;;  %4154 = vmatmul.mubr.bf16.gmra.mxu1 %v10591_v8  ;;  %3303 = vmatprep.mubr.bf16.mxu0 %v12226_v63 }
 0x204   : > { %v616_v56 = vld [vmem:[%s12713_s27 + $0xe8] sm:$0x1]  ;;  %4447 = vst [vmem:[#allocation4 + $0x1a4] sm:$0xf] %v10659_v42  ;;  %5016 = vst [vmem:[#allocation4 + $0x19c] sm:$0xf] %v17037_v26  ;;  %v10507_v61 = vcombine.low %v2610_v44, %v2612_v35 }
 0x205   : > { %5017 = vst [vmem:[#allocation4 + $0x1a8] sm:$0xf] %v4897_v12  ;;  %v10295_v21 = vld [vmem:[%s12713_s27 + $0xf4] sm:$0xf]  ;;  %v1046_v4 = vshll.u32 %v615_v3, 16  ;;  %v1050_v20 = vshrl.u32 %v615_v3, 16  ;;  %v1043_v57 = vor.u32 %v1042_v54, %v14697_v40  ;;  %v14765_v3 = vpop.f32.mrf.mxu1 }
 0x206   : > { %v14758_v17 = vld [vmem:[#allocation4 + $0x1b0] sm:$0xff]  ;;  %v14760_v55 = vrot.slane %v4918_v15, 5  ;;  %v1056_v42 = vshll.u32 %v616_v56, 16  ;;  %v10346_v33 = vld [vmem:[%s12713_s27 + $0xfc] sm:$0xf]  ;;  %v2134_v45 = vrot.slane %v2132_v34, 4  ;;  %3304 = vmatmul.mubr.bf16.gmra.mxu0 %v10507_v61 }
 0x207   : > { %v1527_v14 = vld [vmem:[#allocation4 + $0x1bc] sm:$0xff]  ;;  %1658 = vst [vmem:[#allocation4 + $0x1b0] sm:$0xf] %v10294_v29  ;;  %2228 = vst [vmem:[#allocation4 + $0x1b4] sm:$0xf] %v2121_v7  ;;  %v4906_v12 = vrot.slane %v4905_v50, 4  ;;  %v14770_v50 = vpop.f32.mrf.mxu1 }
 0x208   : > { %v1048_v44 = vrot.slane %v1046_v4, 5  ;;  %v1052_v0 = vrot.slane %v1050_v20, 4  ;;  %v10347_v38 = vld [vmem:[%s12713_s27 + $0x100] sm:$0x1]  ;;  %1659 = vst [vmem:[#allocation4 + $0x1bc] sm:$0xf] %v10295_v21  ;;  %v2135_v34 = vor.u32 %v2134_v45, %v14720_v59 }
 0x209   : > { %2229 = vst [vmem:[#allocation4 + $0x1c0] sm:$0xf] %v2131_v30  ;;  %v4916_v40 = vrot.slane %v4915_v39, 4  ;;  %v1044_v15 = vrot.slane %v1043_v57, 4  ;;  %v1058_v8 = vrot.slane %v1056_v42, 5  ;;  %v2138_v29 = vshll.u32 %v10346_v33, 16  ;;  %v11851_v20 = vpop.f32.mrf.mxu1 }
 0x20a   : > { %v1053_v35 = vor.u32 %v1052_v0, %v1048_v44  ;;  %v2142_v63 = vshrl.u32 %v10346_v33, 16  ;;  %v10712_v7 = vld [vmem:[%s12713_s27 + $0x114] sm:$0xf]  ;;  %v10713_v56 = vld [vmem:[%s12713_s27 + $0x118] sm:$0x1]  ;;  %v2148_v43 = vshll.u32 %v10347_v38, 16  ;;  %v4911_v57 = vsel %vm13159_vm5, %v4906_v12, %v14734_v60 }
 0x20b   : > { %v1049_v54 = vsel %vm13159_vm5, %v1044_v15, %v1048_v44  ;;  %v4924_v26 = vrot.slane %v4922_v62, 4  ;;  %v10660_v61 = vld [vmem:[%s12713_s27 + $0x108] sm:$0xf]  ;;  %v10661_v21 = vld [vmem:[%s12713_s27 + $0x10c] sm:$0xf]  ;;  %v2140_v39 = vrot.slane %v2138_v29, 5  ;;  %v4921_v62 = vsel %vm13159_vm5, %v4916_v40, %v14760_v55 }
 0x20c   : > { %v1054_v30 = vrot.slane %v1053_v35, 4  ;;  %1138 = vst [vmem:[#allocation4 + $0x1cc] sm:$0xf] %v1049_v54  ;;  %v2144_v4 = vrot.slane %v2142_v63, 4  ;;  %v4928_v59 = vshll.u32 %v10712_v7, 16  ;;  %v2136_v42 = vrot.slane %v2135_v34, 4 }
 0x20d   : > { %v2150_v33 = vrot.slane %v2148_v43, 5  ;;  %v4932_v45 = vshrl.u32 %v10712_v7, 16  ;;  %v10296_v35 = vld [vmem:[%s12713_s27 + $0xf8] sm:$0xf]  ;;  %v4925_v29 = vor.u32 %v4924_v26, %v14760_v55  ;;  %v4938_v60 = vshll.u32 %v10713_v56, 16 }
 0x20e   : > { %v1059_v44 = vsel %vm13159_vm5, %v1054_v30, %v1058_v8  ;;  %v2145_v0 = vor.u32 %v2144_v4, %v2140_v39  ;;  %v14784_v38 = vrot.slane %v4928_v59, 5  ;;  %v2614_v15 = vld [vmem:[#allocation4 + $0x1b0] sm:$0xff]  ;;  %v10595_v12 = vcombine.high %v14758_v17, %v1527_v14  ;;  %v10297_v56 = vld [vmem:[%s12713_s27 + $0xfc] sm:$0xf]  ;;  %v10626_v4 = vld [vmem:[%s12713_s27 + $0x38] sm:$0xf] }
 0x20f   : > { %1139 = vst [vmem:[#allocation4 + $0x1d8] sm:$0xf] %v1059_v44  ;;  %v4934_v63 = vrot.slane %v4932_v45, 4  ;;  %v10594_v40 = vcombine.low %v14758_v17, %v1527_v14  ;;  %4448 = vst [vmem:[#allocation4 + $0x1b0] sm:$0xf] %v10660_v61  ;;  %v2141_v43 = vsel %vm13159_vm5, %v2136_v42, %v2140_v39  ;;  %v14794_v30 = vrot.slane %v4925_v29, 4 }
 0x210   : > { %v2616_v34 = vld [vmem:[#allocation4 + $0x1bc] sm:$0xff]  ;;  %v2146_v54 = vrot.slane %v2145_v0, 4  ;;  %4161 = vmatprep.mubr.bf16.mxu1 %v10595_v12  ;;  %v4940_v61 = vrot.slane %v4938_v60, 5  ;;  %v17038_v59 = vor.u32 %v13204_v32, %v13193_v51  ;;  %4414 = vst [vmem:[#allocation4 + $0x18] sm:$0xf] %v10626_v4 }
 0x211   : > { %v12229_v7 = vld [vmem:[#allocation4 + $0x1b4] ss:$12 sps:$4 sm:$0xff]   ;;  %4449 = vst [vmem:[#allocation4 + $0x1bc] sm:$0xf] %v10661_v21  ;;  %v10510_v8 = vcombine.low %v2614_v15, %v2616_v34  ;;  %v4935_v55 = vor.u32 %v4934_v63, %v14784_v38  ;;  %4162 = vmatmul.mubr.bf16.gmra.mxu1 %v10594_v40  ;;  %v12243_v21 = vld [vmem:[#allocation4 + $0x4] ss:$12 sps:$4 sm:$0xff]  }
 0x212   : > { %5018 = vst [vmem:[#allocation4 + $0x1b4] sm:$0xf] %v4911_v57  ;;  %5019 = vst [vmem:[#allocation4 + $0x1c0] sm:$0xf] %v4921_v62  ;;  %3311 = vmatprep.mubr.bf16.mxu0 %v12229_v7  ;;  %v2151_v17 = vsel %vm13159_vm5, %v2146_v54, %v2150_v33  ;;  %v4530_v20 = vrot.slane %v17038_v59, 4  ;;  %v14802_v57 = vpop.f32.mrf.mxu0 }
 0x213   : > { %3312 = vmatmul.mubr.bf16.gmra.mxu0 %v10510_v8  ;;  %v1529_v26 = vld [vmem:[#allocation4 + $0x1c8] sm:$0xff]  ;;  %v4936_v14 = vrot.slane %v4935_v55, 4  ;;  %v10627_v45 = vld [vmem:[%s12713_s27 + $0x3c] sm:$0xf]  ;;  %v10668_v44 = vld [vmem:[%s12713_s27 + $0x40] sm:$0x1] }
 0x214   : > { %1660 = vst [vmem:[#allocation4 + $0x1c8] sm:$0xf] %v10296_v35  ;;  %2230 = vst [vmem:[#allocation4 + $0x1cc] sm:$0xf] %v2141_v43  ;;  %v10667_v62 = vld [vmem:[%s12713_s27 + $0x3c] sm:$0xf]  ;;  %v3203_v32 = vpop.f32.mrf.mxu0  ;;  %v4931_v43 = vsel %vm13159_vm5, %v14794_v30, %v14784_v38 }
 0x215   : > { %4415 = vst [vmem:[#allocation4 + $0x24] sm:$0xf] %v10627_v45  ;;  %v4532_v0 = vshll.u32 %v10667_v62, 16  ;;  %v4536_v15 = vshrl.u32 %v10667_v62, 16  ;;  %v4542_v51 = vshll.u32 %v10668_v44, 16  ;;  %v4941_v55 = vsel %vm13159_vm5, %v4936_v14, %v4940_v61 }
 0x216   : > { %v1531_v39 = vld [vmem:[#allocation4 + $0x1d4] sm:$0xff]  ;;  %v10628_v35 = vld [vmem:[%s12713_s27 + $0x48] sm:$0xf]  ;;  %v10629_v29 = vld [vmem:[%s12713_s27 + $0x4c] sm:$0xf]  ;;  %v14812_v40 = vpop.f32.mrf.mxu0 }
 0x217   : > { %1661 = vst [vmem:[#allocation4 + $0x1d4] sm:$0xf] %v10297_v56  ;;  %2231 = vst [vmem:[#allocation4 + $0x1d8] sm:$0xf] %v2151_v17  ;;  %v10598_v42 = vcombine.high %v1529_v26, %v1531_v39  ;;  %v10597_v33 = vcombine.low %v1529_v26, %v1531_v39  ;;  %v10662_v63 = vld [vmem:[%s12713_s27 + $0x110] sm:$0xf] }
 0x218   : > { %v10663_v60 = vld [vmem:[%s12713_s27 + $0x114] sm:$0xf]  ;;  %v4534_v12 = vrot.slane %v4532_v0, 5  ;;  %v4538_v34 = vrot.slane %v4536_v15, 4  ;;  %v4544_v7 = vrot.slane %v4542_v51, 5  ;;  %v3206_v62 = vpop.f32.mrf.mxu0  ;;  %v10542_v0 = vcombine.low %v12817_v1, %v12828_v9 }
 0x219   : > { %4169 = vmatprep.mubr.bf16.mxu1 %v10598_v42  ;;  %4416 = vst [vmem:[#allocation4 + $0x30] sm:$0xf] %v10628_v35  ;;  %4417 = vst [vmem:[#allocation4 + $0x3c] sm:$0xf] %v10629_v29  ;;  %v10669_v54 = vld [vmem:[%s12713_s27 + $0x48] sm:$0xf]  ;;  %v14824_v42 = vpop.f32.mrf.mxu1  ;;  %v10545_v62 = vcombine.low %v12846_v28, %v12872_v37  ;;  %v10548_v28 = vcombine.low %v12904_v58, %v12924_v6 }
 0x21a   : > { %4170 = vmatmul.mubr.bf16.gmra.mxu1 %v10597_v33  ;;  %v10670_v56 = vld [vmem:[%s12713_s27 + $0x4c] sm:$0xf]  ;;  %v10671_v26 = vld [vmem:[%s12713_s27 + $0x50] sm:$0xf]  ;;  %v4547_v17 = vshrl.u32 %v10669_v54, 16  ;;  %v4535_v4 = vsel %vm13159_vm5, %v4530_v20, %v4534_v12  ;;  %v4539_v59 = vor.u32 %v4538_v34, %v4534_v12  ;;  %v4550_v33 = vshll.u32 %v10669_v54, 16 }
 0x21b   : > { %v2618_v8 = vld [vmem:[#allocation4 + $0x1c8] sm:$0xff]  ;;  %5957 = vmatprep.mubr.bf16.mxu1 %v12243_v21  ;;  %v4556_v45 = vshll.u32 %v10670_v56, 16  ;;  %4984 = vst [vmem:[#allocation4 + $0x1c] sm:$0xf] %v4535_v4  ;;  %v4560_v38 = vshrl.u32 %v10670_v56, 16  ;;  %v4566_v30 = vshll.u32 %v10671_v26, 16  ;;  %v14831_v1 = vpop.f32.mrf.mxu1 }
 0x21c   : > { %v12245_v39 = vld [vmem:[#allocation4] ss:$12 sps:$4 sm:$0xff]   ;;  %v4549_v44 = vrot.slane %v4547_v17, 4  ;;  %v4570_v14 = vshrl.u32 %v10671_v26, 16  ;;  %v4540_v15 = vrot.slane %v4539_v59, 4  ;;  %v4552_v20 = vrot.slane %v4550_v33, 5 }
 0x21d   : > { %v4558_v51 = vrot.slane %v4556_v45, 5  ;;  %4450 = vst [vmem:[#allocation4 + $0x1c8] sm:$0xf] %v10662_v63  ;;  %v4562_v35 = vrot.slane %v4560_v38, 4  ;;  %v4568_v29 = vrot.slane %v4566_v30, 5  ;;  %v14836_v17 = vpop.f32.mrf.mxu1 }
 0x21e   : > { %v2620_v61 = vld [vmem:[#allocation4 + $0x1d4] sm:$0xff]  ;;  %v10630_v12 = vld [vmem:[%s12713_s27 + $0x50] sm:$0xf]  ;;  %v4545_v34 = vsel %vm13159_vm5, %v4540_v15, %v4544_v7  ;;  %v4553_v54 = vor.u32 %v4552_v20, %v4549_v44  ;;  %v10633_v37 = vld [vmem:[%s12713_s27 + $0x64] sm:$0xf] }
 0x21f   : > { %v12232_v21 = vld [vmem:[#allocation4 + $0x1cc] ss:$12 sps:$4 sm:$0xff]   ;;  %4451 = vst [vmem:[#allocation4 + $0x1d4] sm:$0xf] %v10663_v60  ;;  %v10513_v32 = vcombine.low %v2618_v8, %v2620_v61  ;;  %v10631_v9 = vld [vmem:[%s12713_s27 + $0x54] sm:$0xf]  ;;  %v4563_v63 = vor.u32 %v4562_v35, %v4558_v51  ;;  %v11855_v38 = vpop.f32.mrf.mxu1 }
 0x220   : > { %5020 = vst [vmem:[#allocation4 + $0x1cc] sm:$0xf] %v4931_v43  ;;  %5021 = vst [vmem:[#allocation4 + $0x1d8] sm:$0xf] %v4941_v55  ;;  %3319 = vmatprep.mubr.bf16.mxu0 %v12232_v21  ;;  %v10672_v56 = vld [vmem:[%s12713_s27 + $0x54] sm:$0xf] }
 0x221   : > { %4418 = vst [vmem:[#allocation4 + $0x48] sm:$0xf] %v10630_v12  ;;  %v10673_v26 = vld [vmem:[%s12713_s27 + $0x58] sm:$0x1]  ;;  %3320 = vmatmul.mubr.bf16.gmra.mxu0 %v10513_v32  ;;  %4985 = vst [vmem:[#allocation4 + $0x28] sm:$0xf] %v4545_v34 }
 0x222   : > { %4419 = vst [vmem:[#allocation4 + $0x54] sm:$0xf] %v10631_v9  ;;  %v4572_v60 = vrot.slane %v4570_v14, 4  ;;  %v4576_v8 = vshll.u32 %v10672_v56, 16  ;;  %v4580_v43 = vshrl.u32 %v10672_v56, 16  ;;  %11876 = vmatprep.mubr.bf16.mxu0 %v10542_v0  ;;  %5958 = vmatmul.mubr.bf16.vlgmr.msra.gmra.mxu1 %v12245_v39  ;;  %v4554_v55 = vrot.slane %v4553_v54, 4 }
 0x223   : > { %v4586_v7 = vshll.u32 %v10673_v26, 16  ;;  %v4564_v4 = vrot.slane %v4563_v63, 4  ;;  %v12242_v39 = vld [vmem:[%s16938_s1 + $0x230] sm:$0xff]   ;;  %v10632_v0 = vld [vmem:[%s12713_s27 + $0x60] sm:$0xf]  ;;  %v12458_v63 = vld [vmem:[%s16938_s1 + $0x238] sm:$0xff]  }
 0x224   : > { %v4573_v59 = vor.u32 %v4572_v60, %v4568_v29  ;;  %v4578_v33 = vrot.slane %v4576_v8, 5  ;;  %v4582_v45 = vrot.slane %v4580_v43, 4  ;;  %v4559_v44 = vsel %vm13159_vm5, %v4554_v55, %v4558_v51  ;;  %4420 = vst [vmem:[#allocation4 + $0x60] sm:$0xf] %v10632_v0  ;;  %v10674_v15 = vld [vmem:[%s12713_s27 + $0x60] sm:$0xf] }
 0x225   : > { %v4569_v30 = vsel %vm13159_vm5, %v4564_v4, %v4568_v29  ;;  %4986 = vst [vmem:[#allocation4 + $0x34] sm:$0xf] %v4559_v44  ;;  %v4588_v21 = vrot.slane %v4586_v7, 5  ;;  %v10675_v20 = vld [vmem:[%s12713_s27 + $0x64] sm:$0xf]  ;;  %v4591_v29 = vshrl.u32 %v10674_v15, 16 }
 0x226   : > { %v4574_v14 = vrot.slane %v4573_v59, 4  ;;  %v4583_v61 = vor.u32 %v4582_v45, %v4578_v33  ;;  %4987 = vst [vmem:[#allocation4 + $0x40] sm:$0xf] %v4569_v30  ;;  %4421 = vst [vmem:[#allocation4 + $0x6c] sm:$0xf] %v10633_v37  ;;  %v4594_v12 = vshll.u32 %v10674_v15, 16  ;;  %v14864_v59 = vpop.f32.mrf.mxu0 }
 0x227   : > { %v10676_v35 = vld [vmem:[%s12713_s27 + $0x68] sm:$0xf]  ;;  %v12249_v54 = vld [vmem:[#allocation4 + $0x18] ss:$12 sps:$4 sm:$0xff]   ;;  %v4600_v9 = vshll.u32 %v10675_v20, 16  ;;  %v4593_v6 = vrot.slane %v4591_v29, 4 }
 0x228   : > { %v4579_v51 = vsel %vm13159_vm5, %v4574_v14, %v4578_v33  ;;  %v4584_v32 = vrot.slane %v4583_v61, 4  ;;  %v12247_v34 = vld [vmem:[#allocation4 + $0x1c] ss:$12 sps:$4 sm:$0xff]   ;;  %v4596_v56 = vrot.slane %v4594_v12, 5  ;;  %v4604_v26 = vshrl.u32 %v10675_v20, 16  ;;  %v12250_v45 = vld [vmem:[%s16938_s1 + $0x220] sm:$0xff]  }
 0x229   : > { %4988 = vst [vmem:[#allocation4 + $0x4c] sm:$0xf] %v4579_v51  ;;  %11877 = vmatmul.mubr.bf16.vlgmr.msra.gmra.mxu0 %v10545_v62  ;;  %v4602_v60 = vrot.slane %v4600_v9, 5  ;;  %v4610_v8 = vshll.u32 %v10676_v35, 16  ;;  %v12246_v43 = vld [vmem:[%s16938_s1 + $0x228] sm:$0xff]   ;;  %5965 = vmatprep.mubr.bf16.mxu1 %v12247_v34  ;;  %v4614_v4 = vshrl.u32 %v10676_v35, 16  ;;  %v10551_v33 = vcombine.low %v12945_v25, %v12969_v41  ;;  %v14881_v34 = vpop.f32.mrf.mxu1 }
 0x22a   : > { %v4589_v58 = vsel %vm13159_vm5, %v4584_v32, %v4588_v21  ;;  %11880 = vmatprep.mubr.bf16.mxu0 %v10548_v28  ;;  %11917 = vmatpush3.bf16.msra.mxu0 %v12458_v63  ;;  %v4597_v55 = vor.u32 %v4596_v56, %v4593_v6  ;;  %v4606_v7 = vrot.slane %v4604_v26, 4  ;;  %v10554_v14 = vcombine.low %v13012_v5, %v13031_v16  ;;  %v12254_v61 = vld [vmem:[#allocation4 + $0x30] ss:$12 sps:$4 sm:$0xff]   ;;  %v3211_v21 = vpop.f32.mrf.mxu0  ;;  %v10634_v0 = vld [vmem:[%s12713_s27 + $0x68] sm:$0xf] }
 0x22b   : > { %4989 = vst [vmem:[#allocation4 + $0x58] sm:$0xf] %v4589_v58  ;;  %11918 = vmatprep.subr.bf16.mxu0 %v12242_v39  ;;  %5966 = vmatmul.mubr.bf16.gmra.mxu1 %v12249_v54  ;;  %v4612_v30 = vrot.slane %v4610_v8, 5  ;;  %v10635_v28 = vld [vmem:[%s12713_s27 + $0x6c] sm:$0xf]  ;;  %v4616_v20 = vrot.slane %v4614_v4, 4  ;;  %v10557_v26 = vcombine.low %v13051_v36, %v13069_v46 }
 0x22c   : > { %v4598_v44 = vrot.slane %v4597_v55, 4  ;;  %v4607_v38 = vor.u32 %v4606_v7, %v4602_v60  ;;  %v10677_v37 = vld [vmem:[%s12713_s27 + $0x6c] sm:$0xf]  ;;  %4422 = vst [vmem:[#allocation4 + $0x78] sm:$0xf] %v10634_v0  ;;  %v3212_v32 = vpop.f32.mrf.mxu0  ;;  %v12253_v58 = vld [vmem:[%s16938_s1 + $0x218] sm:$0xff]   ;;  %v10560_v55 = vcombine.low %v13110_v13, %v13119_v27 }
 0x22d   : > { %v12251_v62 = vld [vmem:[#allocation4 + $0x34] ss:$12 sps:$4 sm:$0xff]   ;;  %4423 = vst [vmem:[#allocation4 + $0x84] sm:$0xf] %v10635_v28  ;;  %v10678_v15 = vld [vmem:[%s12713_s27 + $0x70] sm:$0x1]  ;;  %v4617_v29 = vor.u32 %v4616_v20, %v4612_v30 }
 0x22e   : > { %11919 = vmatpush3.bf16.msra.mxu0 %v12242_v39  ;;  %5973 = vmatprep.mubr.bf16.mxu1 %v12251_v62  ;;  %v4603_v25 = vsel %vm13159_vm5, %v4598_v44, %v4602_v60  ;;  %v4608_v41 = vrot.slane %v4607_v38, 4  ;;  %v4620_v51 = vshll.u32 %v10677_v37, 16  ;;  %v4624_v5 = vshrl.u32 %v10677_v37, 16  ;;  %v3214_v54 = vpop.f32.mrf.mxu0  ;;  %v10636_v60 = vld [vmem:[%s12713_s27 + $0x78] sm:$0xf]  ;;  %v12255_v7 = vld [vmem:[%s16938_s1 + $0x210] sm:$0xff]   ;;  %v14900_v44 = vpop.f32.mrf.mxu1 }
 0x22f   : > { %11920 = vmatprep.subr.bf16.mxu0 %v12246_v43  ;;  %4990 = vst [vmem:[#allocation4 + $0x64] sm:$0xf] %v4603_v25  ;;  %v4630_v16 = vshll.u32 %v10678_v15, 16  ;;  %v4618_v6 = vrot.slane %v4617_v29, 4  ;;  %v10637_v8 = vld [vmem:[%s12713_s27 + $0x7c] sm:$0xf] }
 0x230   : > { %v4613_v35 = vsel %vm13159_vm5, %v4608_v41, %v4612_v30  ;;  %v4622_v12 = vrot.slane %v4620_v51, 5  ;;  %v4626_v9 = vrot.slane %v4624_v5, 4  ;;  %4424 = vst [vmem:[#allocation4 + $0x90] sm:$0xf] %v10636_v60  ;;  %4425 = vst [vmem:[#allocation4 + $0x9c] sm:$0xf] %v10637_v8  ;;  %v14902_v28 = vpop.f32.mrf.mxu1 }
 0x231   : > { %11881 = vmatmul.mubr.bf16.gmra.mxu0 %v10551_v33  ;;  %4991 = vst [vmem:[#allocation4 + $0x70] sm:$0xf] %v4613_v35  ;;  %v4632_v56 = vrot.slane %v4630_v16, 5  ;;  %v10680_v33 = vld [vmem:[%s12713_s27 + $0x7c] sm:$0xf]  ;;  %v12258_v16 = vld [vmem:[%s16938_s1 + $0x208] sm:$0xff]  }
 0x232   : > { %v12256_v39 = vld [vmem:[#allocation4 + $0x4c] ss:$12 sps:$4 sm:$0xff]   ;;  %11884 = vmatprep.mubr.bf16.mxu0 %v10554_v14  ;;  %11921 = vmatpush3.bf16.msra.mxu0 %v12246_v43  ;;  %v4627_v63 = vor.u32 %v4626_v9, %v4622_v12  ;;  %v4623_v4 = vsel %vm13159_vm5, %v4618_v6, %v4622_v12  ;;  %v10681_v36 = vld [vmem:[%s12713_s27 + $0x80] sm:$0xf]  ;;  %v4644_v13 = vshll.u32 %v10680_v33, 16  ;;  %v4648_v27 = vshrl.u32 %v10680_v33, 16  ;;  %v11859_v32 = vpop.f32.mrf.mxu1 }
 0x233   : > { %11922 = vmatprep.subr.bf16.mxu0 %v12250_v45  ;;  %5974 = vmatmul.mubr.bf16.gmra.mxu1 %v12254_v61  ;;  %v10679_v43 = vld [vmem:[%s12713_s27 + $0x78] sm:$0xf]  ;;  %4992 = vst [vmem:[#allocation4 + $0x7c] sm:$0xf] %v4623_v4  ;;  %v4654_v30 = vshll.u32 %v10681_v36, 16  ;;  %v4658_v21 = vshrl.u32 %v10681_v36, 16  ;;  %v3363_v6 = vadd.f32 %v14173_v49, %v14330_v10 }
 0x234   : > { %5981 = vmatprep.mubr.bf16.mxu1 %v12256_v39  ;;  %v4635_v46 = vshrl.u32 %v10679_v43, 16  ;;  %v4638_v62 = vshll.u32 %v10679_v43, 16  ;;  %v4628_v38 = vrot.slane %v4627_v63, 4  ;;  %v12259_v0 = vld [vmem:[#allocation4 + $0x48] ss:$12 sps:$4 sm:$0xff]   ;;  %v4646_v25 = vrot.slane %v4644_v13, 5 }
 0x235   : > { %v4656_v20 = vrot.slane %v4654_v30, 5  ;;  %v4660_v51 = vrot.slane %v4658_v21, 4  ;;  %v10638_v35 = vld [vmem:[%s12713_s27 + $0x80] sm:$0xf]  ;;  %v10639_v29 = vld [vmem:[%s12713_s27 + $0x84] sm:$0xf] }
 0x236   : > { %11923 = vmatpush3.bf16.msra.mxu0 %v12250_v45  ;;  %v4637_v14 = vrot.slane %v4635_v46, 4  ;;  %v4640_v61 = vrot.slane %v4638_v62, 5  ;;  %v4633_v37 = vsel %vm13159_vm5, %v4628_v38, %v4632_v56  ;;  %v4650_v45 = vrot.slane %v4648_v27, 4  ;;  %v17039_v54 = vld [vmem:[#allocation10_spill] sm:$0xff]  ;;  %4426 = vst [vmem:[#allocation4 + $0xa8] sm:$0xf] %v10638_v35 }
 0x237   : > { %11924 = vmatprep.subr.bf16.mxu0 %v12253_v58  ;;  %4993 = vst [vmem:[#allocation4 + $0x88] sm:$0xf] %v4633_v37  ;;  %v4661_v12 = vor.u32 %v4660_v51, %v4656_v20  ;;  %v10563_v9 = vcombine.low %v17039_v54, %v13149_v11  ;;  %4427 = vst [vmem:[#allocation4 + $0xb4] sm:$0xf] %v10639_v29  ;;  %v10683_v63 = vld [vmem:[%s12713_s27 + $0x88] sm:$0x1]  ;;  %v3371_v51 = vadd.f32 %v14152_v22, %v14466_v48 }
 0x238   : > { %v12262_v41 = vld [vmem:[#allocation4 + $0x64] ss:$12 sps:$4 sm:$0xff]   ;;  %v4641_v15 = vor.u32 %v4640_v61, %v4637_v14  ;;  %v4651_v5 = vor.u32 %v4650_v45, %v4646_v25  ;;  %v17040_v4 = vld [vmem:[#allocation12_spill] sm:$0xff]  ;;  %v4674_v46 = vshll.u32 %v10683_v63, 16  ;;  %v12265_v27 = vld [vmem:[#allocation4 + $0x60] ss:$12 sps:$4 sm:$0xff]  }
 0x239   : > { %11885 = vmatmul.mubr.bf16.gmra.mxu0 %v10557_v26  ;;  %v10682_v26 = vld [vmem:[%s12713_s27 + $0x84] sm:$0xf]  ;;  %v4662_v8 = vrot.slane %v4661_v12, 4  ;;  %v17041_v11 = vld [vmem:[#allocation11_spill] sm:$0xff]  ;;  %v17046_v63 = vld [vmem:[#allocation18_spill] sm:$0xff] }
 0x23a   : > { %11888 = vmatprep.mubr.bf16.mxu0 %v10560_v55  ;;  %11925 = vmatpush3.bf16.msra.mxu0 %v12253_v58  ;;  %v4642_v39 = vrot.slane %v4641_v15, 4  ;;  %v14915_v58 = vpop.f32.mrf.mxu1  ;;  %v4652_v56 = vrot.slane %v4651_v5, 4  ;;  %v4664_v43 = vshll.u32 %v10682_v26, 16  ;;  %v4668_v55 = vshrl.u32 %v10682_v26, 16  ;;  %v12260_v49 = vld [vmem:[%s16938_s1 + $0x200] sm:$0xff]   ;;  %v17044_v5 = vld [vmem:[#allocation16_spill] sm:$0xff] }
 0x23b   : > { %11926 = vmatprep.subr.bf16.mxu0 %v12255_v7  ;;  %5982 = vmatmul.mubr.bf16.gmra.mxu1 %v12259_v0  ;;  %v10566_v33 = vcombine.low %v17041_v11, %v17040_v4  ;;  %v4676_v0 = vrot.slane %v4674_v46, 5  ;;  %v17049_v4 = vld [vmem:[#allocation19_spill] sm:$0xff] }
 0x23c   : > { %5989 = vmatprep.mubr.bf16.mxu1 %v12262_v41  ;;  %v4647_v60 = vsel %vm13159_vm5, %v4642_v39, %v4646_v25  ;;  %v4019_v10 = vpop.f32.mrf.mxu1  ;;  %v4657_v36 = vsel %vm13159_vm5, %v4652_v56, %v4656_v20  ;;  %v4666_v38 = vrot.slane %v4664_v43, 5  ;;  %v4670_v13 = vrot.slane %v4668_v55, 4  ;;  %v14936_v41 = vpop.f32.mrf.mxu0  ;;  %v17042_v20 = vld [vmem:[#allocation14_spill] sm:$0xff]  ;;  %v17048_v55 = vld [vmem:[#allocation20_spill] sm:$0xff] }
 0x23d   : > { %4994 = vst [vmem:[#allocation4 + $0x94] sm:$0xf] %v4647_v60  ;;  %v14928_v62 = vadd.f32 %v4019_v10, %v3363_v6  ;;  %4995 = vst [vmem:[#allocation4 + $0xa0] sm:$0xf] %v4657_v36  ;;  %v17047_v60 = vld [vmem:[#allocation17_spill] sm:$0xff]  ;;  %v3379_v43 = vadd.f32 %v14231_v19, %v14589_v53  ;;  %v10578_v11 = vcombine.low %v17049_v4, %v17048_v55 }
 0x23e   : > { %11927 = vmatpush3.bf16.msra.mxu0 %v12255_v7  ;;  %v4021_v30 = vpop.f32.mrf.mxu1  ;;  %v3366_v7 = vadd.f32 %v14204_v31, %v14408_v47  ;;  %v12267_v14 = vld [vmem:[#allocation4 + $0x7c] ss:$12 sps:$4 sm:$0xff]   ;;  %v4667_v61 = vsel %vm13159_vm5, %v4662_v8, %v4666_v38  ;;  %v4671_v21 = vor.u32 %v4670_v13, %v4666_v38  ;;  %v17043_v31 = vld [vmem:[#allocation13_spill] sm:$0xff]  ;;  %v3219_v35 = vpop.f32.mrf.mxu0  ;;  %v10575_v8 = vcombine.low %v17047_v60, %v17046_v63  ;;  %v17059_v63 = vld [vmem:[#allocation27_spill] sm:$0xff] }
 0x23f   : > { %11928 = vmatprep.subr.bf16.mxu0 %v12258_v16  ;;  %4996 = vst [vmem:[#allocation4 + $0xac] sm:$0xf] %v4667_v61  ;;  %v10569_v47 = vcombine.low %v17043_v31, %v17042_v20  ;;  %v12275_v46 = vld [vmem:[#allocation4 + $0x90] ss:$12 sps:$4 sm:$0xff]   ;;  %v3382_v13 = vadd.f32 %v14254_v2, %v14607_v23  ;;  %v17050_v61 = vld [vmem:[#allocation22_spill] sm:$0xff] }
 0x240   : > { %v4022_v37 = vpop.f32.mrf.mxu1  ;;  %v4672_v45 = vrot.slane %v4671_v21, 4  ;;  %v14948_v54 = vpop.f32.mrf.mxu0  ;;  %v17051_v21 = vld [vmem:[#allocation21_spill] sm:$0xff]  ;;  %v17054_v20 = vld [vmem:[#allocation23_spill] sm:$0xff] }
 0x241   : > { %11889 = vmatmul.mubr.bf16.gmra.mxu0 %v10563_v9  ;;  %v14934_v25 = vadd.f32 %v4022_v37, %v3366_v7  ;;  %v12270_v9 = vld [vmem:[#allocation4 + $0x78] ss:$12 sps:$4 sm:$0xff]   ;;  %v17052_v37 = vld [vmem:[#allocation35_spill] sm:$0xff] }
 0x242   : > { %11892 = vmatprep.mubr.bf16.mxu0 %v10566_v33  ;;  %11929 = vmatpush3.bf16.msra.mxu0 %v12258_v16  ;;  %v4024_v15 = vpop.f32.mrf.mxu1  ;;  %v4677_v32 = vsel %vm13159_vm5, %v4672_v45, %v4676_v0  ;;  %v17045_v16 = vld [vmem:[#allocation15_spill] sm:$0xff]  ;;  %v3222_v22 = vpop.f32.mrf.mxu0  ;;  %v10581_v0 = vcombine.low %v17051_v21, %v17050_v61  ;;  %v3387_v45 = vadd.f32 %v17052_v37, %v14715_v24  ;;  %v17064_v61 = vld [vmem:[#allocation32_spill] sm:$0xff] }
 0x243   : > { %11930 = vmatprep.subr.bf16.mxu0 %v12260_v49  ;;  %5990 = vmatmul.mubr.bf16.gmra.mxu1 %v12265_v27  ;;  %v10572_v39 = vcombine.low %v17045_v16, %v17044_v5  ;;  %4997 = vst [vmem:[#allocation4 + $0xb8] sm:$0xf] %v4677_v32  ;;  %v17053_v15 = vld [vmem:[#allocation24_spill] sm:$0xff]  ;;  %v12280_v23 = vld [vmem:[#allocation4 + $0xa8] ss:$12 sps:$4 sm:$0xff]  }
 0x244   : > { %5997 = vmatprep.mubr.bf16.mxu1 %v12267_v14  ;;  %v4027_v29 = vpop.f32.mrf.mxu1  ;;  %v12272_v56 = vld [vmem:[#allocation4 + $0x94] ss:$12 sps:$4 sm:$0xff]   ;;  %v14956_v33 = vpop.f32.mrf.mxu0  ;;  %v10584_v31 = vcombine.low %v17054_v20, %v17053_v15  ;;  %v12284_v32 = vld [vmem:[#allocation4 + $0xc4] ss:$12 sps:$4 sm:$0xff]  }
 0x245   : > { %v14946_v12 = vadd.f32 %v4027_v29, %v3371_v51  ;;  %v17055_v29 = vld [vmem:[#allocation26_spill] sm:$0xff]  ;;  %v17065_v21 = vld [vmem:[#allocation31_spill] sm:$0xff] }
 0x246   : > { %11931 = vmatpush3.bf16.msra.mxu0 %v12260_v49  ;;  %v4029_v6 = vpop.f32.mrf.mxu1  ;;  %v3227_v36 = vpop.f32.mrf.mxu0 }
 0x248   : > { %v4030_v48 = vpop.f32.mrf.mxu1  ;;  %v3228_v30 = vpop.f32.mrf.mxu0 }
 0x249   : > { %11893 = vmatmul.mubr.bf16.gmra.mxu0 %v10569_v47 }
 0x24a   : > { %11896 = vmatprep.mubr.bf16.mxu0 %v10572_v39  ;;  %v4032_v26 = vpop.f32.mrf.mxu1  ;;  %v12277_v27 = vld [vmem:[#allocation4 + $0xac] ss:$12 sps:$4 sm:$0xff]   ;;  %v3230_v7 = vpop.f32.mrf.mxu0 }
 0x24b   : > { %5998 = vmatmul.mubr.bf16.gmra.mxu1 %v12270_v9  ;;  %v17056_v9 = vld [vmem:[#allocation25_spill] sm:$0xff]  ;;  %v17058_v26 = vld [vmem:[#allocation28_spill] sm:$0xff] }
 0x24c   : > { %6005 = vmatprep.mubr.bf16.mxu1 %v12272_v56  ;;  %v4035_v49 = vpop.f32.mrf.mxu1  ;;  %v14970_v47 = vpop.f32.mrf.mxu0  ;;  %v10587_v6 = vcombine.low %v17056_v9, %v17055_v29  ;;  %v17057_v56 = vld [vmem:[#allocation37_spill] sm:$0xff]  ;;  %v10590_v60 = vcombine.low %v17059_v63, %v17058_v26  ;;  %v17068_v29 = vld [vmem:[#allocation40_spill] sm:$0xff] }
 0x24d   : > { %v14958_v10 = vadd.f32 %v4035_v49, %v3379_v43  ;;  %v3395_v22 = vadd.f32 %v17057_v56, %v14802_v57  ;;  %v12282_v43 = vld [vmem:[#allocation4 + $0xc0] ss:$12 sps:$4 sm:$0xff]   ;;  %v3411_v9 = vadd.f32 %v17068_v29, %v14936_v41  ;;  %v12291_v56 = vld [vmem:[#allocation4 + $0xf0] ss:$12 sps:$4 sm:$0xff]  }
 0x24e   : > { %v4037_v38 = vpop.f32.mrf.mxu1  ;;  %v3235_v16 = vpop.f32.mrf.mxu0  ;;  %v17060_v49 = vld [vmem:[#allocation38_spill] sm:$0xff]  ;;  %v17069_v63 = vld [vmem:[#allocation41_spill] sm:$0xff] }
 0x24f   : > { %v3398_v36 = vadd.f32 %v17060_v49, %v14812_v40  ;;  %v17066_v16 = vld [vmem:[#allocation34_spill] sm:$0xff] }
 0x250   : > { %v4038_v19 = vpop.f32.mrf.mxu1  ;;  %v14974_v35 = vpop.f32.mrf.mxu0  ;;  %v12296_v26 = vld [vmem:[#allocation4 + $0x10c] ss:$12 sps:$4 sm:$0xff]  }
 0x251   : > { %11897 = vmatmul.mubr.bf16.gmra.mxu0 %v10575_v8  ;;  %v14962_v53 = vadd.f32 %v4038_v19, %v3382_v13  ;;  %v17061_v13 = vld [vmem:[#allocation30_spill] sm:$0xff]  ;;  %v17063_v19 = vld [vmem:[#allocation36_spill] sm:$0xff] }
 0x252   : > { %11900 = vmatprep.mubr.bf16.mxu0 %v10578_v11  ;;  %v4040_v14 = vpop.f32.mrf.mxu1  ;;  %v3238_v48 = vpop.f32.mrf.mxu0  ;;  %v12288_v11 = vld [vmem:[#allocation4 + $0xdc] ss:$12 sps:$4 sm:$0xff]   ;;  %v3403_v7 = vadd.f32 %v17063_v19, %v14864_v59 }
 0x253   : > { %6006 = vmatmul.mubr.bf16.gmra.mxu1 %v12275_v46 }
 0x254   : > { %6013 = vmatprep.mubr.bf16.mxu1 %v12277_v27  ;;  %v4043_v2 = vpop.f32.mrf.mxu1  ;;  %v17062_v27 = vld [vmem:[#allocation29_spill] sm:$0xff]  ;;  %v14992_v14 = vpop.f32.mrf.mxu0 }
 0x255   : > { %v14972_v51 = vadd.f32 %v4043_v2, %v3387_v45  ;;  %v10593_v30 = vcombine.low %v17062_v27, %v17061_v13  ;;  %v12286_v45 = vld [vmem:[#allocation4 + $0xd8] ss:$12 sps:$4 sm:$0xff]   ;;  %v12294_v27 = vld [vmem:[#allocation4 + $0x108] ss:$12 sps:$4 sm:$0xff]  }
 0x256   : > { %v4045_v5 = vpop.f32.mrf.mxu1  ;;  %v3243_v40 = vpop.f32.mrf.mxu0 }
 0x257   : > { %v12261_v5 = vld [vmem:[#allocation4 + $0x8] ss:$12 sps:$4 sm:$0xff]  }
 0x258   : > { %v4046_v39 = vpop.f32.mrf.mxu1  ;;  %v3244_v2 = vpop.f32.mrf.mxu0 }
 0x259   : > { %11901 = vmatmul.mubr.bf16.gmra.mxu0 %v10581_v0  ;;  %v10596_v0 = vcombine.low %v17065_v21, %v17064_v61  ;;  %v17067_v39 = vld [vmem:[#allocation33_spill] sm:$0xff] }
 0x25a   : > { %11904 = vmatprep.mubr.bf16.mxu0 %v10584_v31  ;;  %v4048_v24 = vpop.f32.mrf.mxu1  ;;  %v12293_v31 = vld [vmem:[#allocation4 + $0xf4] ss:$12 sps:$4 sm:$0xff]  }
 0x25b   : > { %6014 = vmatmul.mubr.bf16.gmra.mxu1 %v12280_v23  ;;  %v10599_v24 = vcombine.low %v17067_v39, %v17066_v16  ;;  %v17072_v16 = vld [vmem:[#allocation44_spill] sm:$0xff] }
 0x25c   : > { %6021 = vmatprep.mubr.bf16.mxu1 %v12284_v32  ;;  %v4051_v8 = vpop.f32.mrf.mxu1  ;;  %v3246_v32 = vpop.f32.mrf.mxu0  ;;  %v3430_v39 = vadd.f32 %v17072_v16, %v14974_v35  ;;  %v17076_v16 = vld [vmem:[#allocation45_spill] sm:$0xff] }
 0x25d   : > { %v14982_v55 = vadd.f32 %v4051_v8, %v3395_v22 }
 0x25e   : > { %v4053_v4 = vpop.f32.mrf.mxu1  ;;  %v3249_v8 = vpop.f32.mrf.mxu0 }
 0x25f   : > { %v12264_v4 = vld [vmem:[#allocation4 + $0x20] ss:$12 sps:$4 sm:$0xff]  }
 0x260   : > { %v4054_v46 = vpop.f32.mrf.mxu1 }
 0x261   : > { %11905 = vmatmul.mubr.bf16.gmra.mxu0 %v10587_v6  ;;  %v14986_v38 = vadd.f32 %v4054_v46, %v3398_v36  ;;  %v12266_v36 = vld [vmem:[#allocation4 + $0x38] ss:$12 sps:$4 sm:$0xff]   ;;  %v17070_v46 = vld [vmem:[#allocation39_spill] sm:$0xff] }
 0x262   : > { %11908 = vmatprep.mubr.bf16.mxu0 %v10590_v60  ;;  %v4056_v57 = vpop.f32.mrf.mxu1  ;;  %v3414_v60 = vadd.f32 %v17069_v63, %v14948_v54 }
 0x263   : > { %6022 = vmatmul.mubr.bf16.gmra.mxu1 %v12282_v43  ;;  %v3419_v57 = vadd.f32 %v17070_v46, %v14956_v33 }
 0x264   : > { %6029 = vmatprep.mubr.bf16.mxu1 %v12288_v11  ;;  %v4059_v37 = vpop.f32.mrf.mxu1  ;;  %v3251_v11 = vpop.f32.mrf.mxu0 }
 0x265   : > { %v14996_v15 = vadd.f32 %v4059_v37, %v3403_v7  ;;  %v12301_v7 = vld [vmem:[#allocation4 + $0x124] ss:$12 sps:$4 sm:$0xff]   ;;  %v12271_v37 = vld [vmem:[#allocation4 + $0x68] ss:$12 sps:$4 sm:$0xff]  }
 0x266   : > { %v4061_v20 = vpop.f32.mrf.mxu1  ;;  %v15010_v13 = vpop.f32.mrf.mxu0 }
 0x268   : > { %v4062_v23 = vpop.f32.mrf.mxu1  ;;  %v3254_v19 = vpop.f32.mrf.mxu0 }
 0x269   : > { %11909 = vmatmul.mubr.bf16.gmra.mxu0 %v10593_v30 }
 0x26a   : > { %11912 = vmatprep.mubr.bf16.mxu0 %v10596_v0  ;;  %v4064_v59 = vpop.f32.mrf.mxu1  ;;  %v12269_v0 = vld [vmem:[#allocation4 + $0x50] ss:$12 sps:$4 sm:$0xff]   ;;  %v3257_v20 = vpop.f32.mrf.mxu0 }
 0x26b   : > { %6030 = vmatmul.mubr.bf16.gmra.mxu1 %v12286_v45  ;;  %v17071_v45 = vld [vmem:[#allocation43_spill] sm:$0xff] }
 0x26c   : > { %6037 = vmatprep.mubr.bf16.mxu1 %v12293_v31  ;;  %v4067_v6 = vpop.f32.mrf.mxu1  ;;  %v3427_v33 = vadd.f32 %v17071_v45, %v14970_v47  ;;  %v12299_v31 = vld [vmem:[#allocation4 + $0x120] ss:$12 sps:$4 sm:$0xff]   ;;  %v3259_v23 = vpop.f32.mrf.mxu0  ;;  %v12276_v47 = vld [vmem:[#allocation4 + $0x98] ss:$12 sps:$4 sm:$0xff]  }
 0x26d   : > { %v15002_v22 = vadd.f32 %v4067_v6, %v3411_v9  ;;  %v12274_v9 = vld [vmem:[#allocation4 + $0x80] ss:$12 sps:$4 sm:$0xff]  }
 0x26e   : > { %v4069_v48 = vpop.f32.mrf.mxu1 }
 0x270   : > { %v4070_v43 = vpop.f32.mrf.mxu1 }
 0x271   : > { %11913 = vmatmul.mubr.bf16.gmra.mxu0 %v10599_v24  ;;  %v15006_v49 = vadd.f32 %v4070_v43, %v3414_v60  ;;  %v3260_v24 = vpop.f32.mrf.mxu0 }
 0x272   : > { %11932 = vmatprep.mubr.bf16.mxu0 %v12261_v5  ;;  %v4072_v41 = vpop.f32.mrf.mxu1  ;;  %v12304_v5 = vld [vmem:[#allocation4 + $0x13c] ss:$12 sps:$4 sm:$0xff]   ;;  %v12289_v24 = vld [vmem:[#allocation4 + $0xf8] ss:$12 sps:$4 sm:$0xff]  }
 0x273   : > { %6038 = vmatmul.mubr.bf16.gmra.mxu1 %v12291_v56  ;;  %v3262_v6 = vpop.f32.mrf.mxu0 }
 0x274   : > { %6045 = vmatprep.mubr.bf16.mxu1 %v12296_v26  ;;  %v4075_v30 = vpop.f32.mrf.mxu1  ;;  %v17073_v26 = vld [vmem:[#allocation42_spill] sm:$0xff] }
 0x275   : > { %v15012_v54 = vadd.f32 %v4075_v30, %v3419_v57  ;;  %v3435_v63 = vadd.f32 %v17073_v26, %v14992_v14  ;;  %v12279_v30 = vld [vmem:[#allocation4 + $0xb0] ss:$12 sps:$4 sm:$0xff]   ;;  %v17074_v14 = vld [vmem:[#allocation46_spill] sm:$0xff] }
 0x276   : > { %v4077_v61 = vpop.f32.mrf.mxu1  ;;  %v3443_v19 = vadd.f32 %v17074_v14, %v3249_v8  ;;  %v12317_v26 = vld [vmem:[#allocation4 + $0x184] ss:$12 sps:$4 sm:$0xff]  }
 0x277   : > { %v12281_v61 = vld [vmem:[#allocation4 + $0xc8] ss:$12 sps:$4 sm:$0xff]  }
 0x278   : > { %v4078_v21 = vpop.f32.mrf.mxu1  ;;  %v3265_v35 = vpop.f32.mrf.mxu0 }
 0x279   : > { %11933 = vmatmul.mubr.bf16.vlgmr.msra.gmra.mxu0 %v12264_v4  ;;  %v12302_v4 = vld [vmem:[#allocation4 + $0x138] ss:$12 sps:$4 sm:$0xff]  }
 0x27a   : > { %11936 = vmatprep.mubr.bf16.mxu0 %v12266_v36  ;;  %v4080_v40 = vpop.f32.mrf.mxu1  ;;  %v12309_v36 = vld [vmem:[#allocation4 + $0x154] ss:$12 sps:$4 sm:$0xff]   ;;  %v3267_v46 = vpop.f32.mrf.mxu0 }
 0x27b   : > { %6046 = vmatmul.mubr.bf16.gmra.mxu1 %v12294_v27  ;;  %v12329_v27 = vld [vmem:[%s16940_s3 + $0x178] sm:$0xff]   ;;  %v12297_v46 = vld [vmem:[#allocation4 + $0x128] ss:$12 sps:$4 sm:$0xff]  }
 0x27c   : > { %6053 = vmatprep.mubr.bf16.mxu1 %v12301_v7  ;;  %v4083_v2 = vpop.f32.mrf.mxu1  ;;  %v3268_v7 = vpop.f32.mrf.mxu0  ;;  %11972 = vmatprep.subr.bf16.mxu1 %v12329_v27  ;;  %v12307_v40 = vld [vmem:[#allocation4 + $0x150] ss:$12 sps:$4 sm:$0xff]  }
 0x27d   : > { %v15016_v32 = vadd.f32 %v4083_v2, %v3427_v33  ;;  %11973 = vmatpush3.bf16.msra.mxu1 %v12329_v27  ;;  %v17075_v33 = vld [vmem:[#allocation47_spill] sm:$0xff]  ;;  %v12312_v2 = vld [vmem:[#allocation4 + $0x16c] ss:$12 sps:$4 sm:$0xff]  }
 0x27e   : > { %v4085_v59 = vpop.f32.mrf.mxu1 }
 0x27f   : > { %v12285_v59 = vld [vmem:[#allocation4 + $0xe0] ss:$12 sps:$4 sm:$0xff]  }
 0x280   : > { %v4086_v29 = vpop.f32.mrf.mxu1 }
 0x281   : > { %11937 = vmatmul.mubr.bf16.gmra.mxu0 %v12269_v0  ;;  %v15020_v56 = vadd.f32 %v4086_v29, %v3430_v39  ;;  %v3270_v0 = vpop.f32.mrf.mxu0  ;;  %v3451_v39 = vadd.f32 %v17076_v16, %v3257_v20 }
 0x282   : > { %11940 = vmatprep.mubr.bf16.mxu0 %v12271_v37  ;;  %v4088_v48 = vpop.f32.mrf.mxu1 }
 0x283   : > { %6054 = vmatmul.mubr.bf16.gmra.mxu1 %v12299_v31  ;;  %v3446_v31 = vadd.f32 %v17075_v33, %v15010_v13  ;;  %v17078_v33 = vld [vmem:[#allocation48_spill] sm:$0xff] }
 0x284   : > { %6061 = vmatprep.mubr.bf16.mxu1 %v12304_v5  ;;  %v4091_v60 = vpop.f32.mrf.mxu1 }
 0x285   : > { %v15024_v43 = vadd.f32 %v4091_v60, %v3435_v63 }
 0x286   : > { %v4093_v11 = vpop.f32.mrf.mxu1 }
 0x287   : > { %v12290_v11 = vld [vmem:[#allocation4 + $0x110] ss:$12 sps:$4 sm:$0xff]  }
 0x288   : > { %v4094_v41 = vpop.f32.mrf.mxu1 }
 0x289   : > { %11941 = vmatmul.mubr.bf16.gmra.mxu0 %v12274_v9  ;;  %v3273_v9 = vpop.f32.mrf.mxu0 }
 0x28a   : > { %11944 = vmatprep.mubr.bf16.mxu0 %v12276_v47  ;;  %v4096_v57 = vpop.f32.mrf.mxu1  ;;  %v12310_v47 = vld [vmem:[#allocation4 + $0x168] ss:$12 sps:$4 sm:$0xff]  }
 0x28b   : > { %6062 = vmatmul.mubr.bf16.gmra.mxu1 %v12302_v4  ;;  %v3275_v13 = vpop.f32.mrf.mxu0 }
 0x28c   : > { %6069 = vmatprep.mubr.bf16.mxu1 %v12309_v36  ;;  %v4099_v21 = vpop.f32.mrf.mxu1  ;;  %v17077_v36 = vld [vmem:[#allocation49_spill] sm:$0xff] }
 0x28d   : > { %v15030_v37 = vadd.f32 %v4099_v21, %v3443_v19  ;;  %v3276_v60 = vpop.f32.mrf.mxu0  ;;  %v3459_v41 = vadd.f32 %v17077_v36, %v3265_v35  ;;  %v12330_v19 = vld [vmem:[%s16940_s3 + $0x170] sm:$0xff]   ;;  %v12320_v21 = vld [vmem:[#allocation4 + $0x19c] ss:$12 sps:$4 sm:$0xff]  }
 0x28e   : > { %v4101_v45 = vpop.f32.mrf.mxu1  ;;  %11974 = vmatprep.subr.bf16.mxu1 %v12330_v19 }
 0x28f   : > { %v3278_v20 = vpop.f32.mrf.mxu0  ;;  %11975 = vmatpush3.bf16.msra.mxu1 %v12330_v19  ;;  %v12331_v19 = vld [vmem:[%s16940_s3 + $0x168] sm:$0xff]  }
 0x290   : > { %v4102_v23 = vpop.f32.mrf.mxu1  ;;  %11976 = vmatprep.subr.bf16.mxu1 %v12331_v19 }
 0x291   : > { %11945 = vmatmul.mubr.bf16.gmra.mxu0 %v12279_v30  ;;  %v15034_v5 = vadd.f32 %v4102_v23, %v3446_v31  ;;  %v12315_v30 = vld [vmem:[#allocation4 + $0x180] ss:$12 sps:$4 sm:$0xff]   ;;  %v3467_v31 = vadd.f32 %v17078_v33, %v3273_v9  ;;  %v12306_v9 = vld [vmem:[#allocation4 + $0x170] ss:$12 sps:$4 sm:$0xff]   ;;  %v12326_v33 = vld [vmem:[#allocation4 + $0x1c8] ss:$12 sps:$4 sm:$0xff]  }
 0x292   : > { %11948 = vmatprep.mubr.bf16.mxu0 %v12281_v61  ;;  %v4104_v8 = vpop.f32.mrf.mxu1  ;;  %v3462_v61 = vadd.f32 %v14742_v18, %v3268_v7  ;;  %v12318_v18 = vld [vmem:[#allocation4 + $0x198] ss:$12 sps:$4 sm:$0xff]  }
 0x293   : > { %6070 = vmatmul.mubr.bf16.gmra.mxu1 %v12307_v40  ;;  %v12305_v8 = vld [vmem:[#allocation4 + $0x158] ss:$12 sps:$4 sm:$0xff]  }
 0x294   : > { %6077 = vmatprep.mubr.bf16.mxu1 %v12312_v2  ;;  %v4107_v29 = vpop.f32.mrf.mxu1  ;;  %v12298_v2 = vld [vmem:[#allocation4 + $0x140] ss:$12 sps:$4 sm:$0xff]   ;;  %11977 = vmatpush3.bf16.msra.mxu1 %v12331_v19 }
 0x295   : > { %v15037_v6 = vadd.f32 %v4107_v29, %v3451_v39  ;;  %v12325_v29 = vld [vmem:[#allocation4 + $0x1b4] ss:$12 sps:$4 sm:$0xff]  }
 0x296   : > { %v4109_v48 = vpop.f32.mrf.mxu1 }
 0x297   : > { %v3281_v35 = vpop.f32.mrf.mxu0 }
 0x298   : > { %v4110_v63 = vpop.f32.mrf.mxu1  ;;  %v3475_v13 = vadd.f32 %v14770_v50, %v3281_v35 }
 0x299   : > { %11949 = vmatmul.mubr.bf16.gmra.mxu0 %v12285_v59  ;;  %v3283_v23 = vpop.f32.mrf.mxu0 }
 0x29a   : > { %11952 = vmatprep.mubr.bf16.mxu0 %v12289_v24  ;;  %v4112_v4 = vpop.f32.mrf.mxu1 }
 0x29b   : > { %6078 = vmatmul.mubr.bf16.gmra.mxu1 %v12310_v47  ;;  %v3284_v16 = vpop.f32.mrf.mxu0 }
 0x29c   : > { %6085 = vmatprep.mubr.bf16.mxu1 %v12317_v26  ;;  %v4115_v57 = vpop.f32.mrf.mxu1  ;;  %v12313_v26 = vld [vmem:[#allocation4 + $0x188] ss:$12 sps:$4 sm:$0xff]  }
 0x29d   : > { %v15040_v27 = vadd.f32 %v4115_v57, %v3459_v41  ;;  %v3286_v24 = vpop.f32.mrf.mxu0  ;;  %v3478_v41 = vadd.f32 %v14824_v42, %v3284_v16  ;;  %v12321_v42 = vld [vmem:[#allocation4 + $0x1b8] ss:$12 sps:$4 sm:$0xff]   ;;  %v12322_v16 = vld [vmem:[#allocation4 + $0x1d0] ss:$12 sps:$4 sm:$0xff]  }
 0x29e   : > { %v4117_v14 = vpop.f32.mrf.mxu1 }
 0x2a0   : > { %v4118_v0 = vpop.f32.mrf.mxu1 }
 0x2a1   : > { %11953 = vmatmul.mubr.bf16.gmra.mxu0 %v12290_v11  ;;  %v15046_v40 = vadd.f32 %v4118_v0, %v3462_v61  ;;  %v12323_v11 = vld [vmem:[#allocation4 + $0x1b0] ss:$12 sps:$4 sm:$0xff]   ;;  %v12314_v0 = vld [vmem:[#allocation4 + $0x1a0] ss:$12 sps:$4 sm:$0xff]  }
 0x2a2   : > { %11956 = vmatprep.mubr.bf16.mxu0 %v12297_v46  ;;  %v4120_v45 = vpop.f32.mrf.mxu1  ;;  %v12328_v46 = vld [vmem:[#allocation4 + $0x1cc] ss:$12 sps:$4 sm:$0xff]  }
 0x2a3   : > { %6086 = vmatmul.mubr.bf16.gmra.mxu1 %v12315_v30 }
 0x2a4   : > { %6093 = vmatprep.mubr.bf16.mxu1 %v12320_v21  ;;  %v4123_v59 = vpop.f32.mrf.mxu1 }
 0x2a5   : > { %v15049_v39 = vadd.f32 %v4123_v59, %v3467_v31  ;;  %v3289_v60 = vpop.f32.mrf.mxu0 }
 0x2a6   : > { %v4125_v7 = vpop.f32.mrf.mxu1  ;;  %v3483_v61 = vadd.f32 %v14765_v3, %v3289_v60 }
 0x2a7   : > { %v3291_v20 = vpop.f32.mrf.mxu0 }
 0x2a8   : > { %v4126_v47 = vpop.f32.mrf.mxu1 }
 0x2a9   : > { %11957 = vmatmul.mubr.bf16.gmra.mxu0 %v12298_v2  ;;  %v3292_v30 = vpop.f32.mrf.mxu0 }
 0x2aa   : > { %11960 = vmatprep.mubr.bf16.mxu0 %v12305_v8  ;;  %v4128_v48 = vpop.f32.mrf.mxu1 }
 0x2ab   : > { %6094 = vmatmul.mubr.bf16.gmra.mxu1 %v12318_v18  ;;  %v3294_v21 = vpop.f32.mrf.mxu0 }
 0x2ac   : > { %6101 = vmatprep.mubr.bf16.mxu1 %v12325_v29  ;;  %v4131_v63 = vpop.f32.mrf.mxu1 }
 0x2ad   : > { %v15052_v4 = vadd.f32 %v4131_v63, %v3475_v13 }
 0x2ae   : > { %v4133_v36 = vpop.f32.mrf.mxu1 }
 0x2b0   : > { %v4134_v57 = vpop.f32.mrf.mxu1 }
 0x2b1   : > { %11961 = vmatmul.mubr.bf16.gmra.mxu0 %v12306_v9  ;;  %v15055_v14 = vadd.f32 %v4134_v57, %v3478_v41 }
 0x2b2   : > { %11964 = vmatprep.mubr.bf16.mxu0 %v12313_v26  ;;  %v4136_v50 = vpop.f32.mrf.mxu1 }
 0x2b3   : > { %6102 = vmatmul.mubr.bf16.gmra.mxu1 %v12323_v11  ;;  %v12333_v50 = vld [vmem:[%s16940_s3 + $0xf8] sm:$0xff]  }
 0x2b4   : > { %6109 = vmatprep.mubr.bf16.mxu1 %v12328_v46  ;;  %v4139_v35 = vpop.f32.mrf.mxu1 }
 0x2b5   : > { %v15061_v45 = vadd.f32 %v4139_v35, %v3483_v61  ;;  %v3297_v23 = vpop.f32.mrf.mxu0 }
 0x2b6   : > { %v4141_v31 = vpop.f32.mrf.mxu1  ;;  %v3491_v59 = vadd.f32 %v14836_v17, %v3297_v23  ;;  %v12334_v23 = vld [vmem:[%s16940_s3 + $0x130] sm:$0xff]  }
 0x2b7   : > { %v3299_v3 = vpop.f32.mrf.mxu0 }
 0x2b8   : > { %v4142_v2 = vpop.f32.mrf.mxu1 }
 0x2b9   : > { %11965 = vmatmul.mubr.bf16.gmra.mxu0 %v12314_v0  ;;  %v3300_v7 = vpop.f32.mrf.mxu0 }
 0x2ba   : > { %11968 = vmatprep.mubr.bf16.mxu0 %v12321_v42  ;;  %v4144_v8 = vpop.f32.mrf.mxu1  ;;  %v3494_v47 = vadd.f32 %v14881_v34, %v3300_v7  ;;  %v12332_v34 = vld [vmem:[%s16940_s3 + $0x138] sm:$0xff]  }
 0x2bb   : > { %6110 = vmatmul.mubr.bf16.gmra.mxu1 %v12326_v33  ;;  %v3302_v48 = vpop.f32.mrf.mxu0  ;;  %11564 = vmatprep.subr.bf16.mxu0 %v12332_v34 }
 0x2bc   : > { %v4147_v18 = vpop.f32.mrf.mxu1  ;;  %11565 = vmatpush3.bf16.msra.mxu0 %v12333_v50 }
 0x2bd   : > { %v15064_v24 = vadd.f32 %v4147_v18, %v3491_v59  ;;  %11566 = vmatprep.subr.bf16.mxu0 %v12334_v23 }
 0x2be   : > { %v4149_v29 = vpop.f32.mrf.mxu1 }
 0x2c0   : > { %v4150_v13 = vpop.f32.mrf.mxu1 }
 0x2c1   : > { %11969 = vmatmul.mubr.bf16.gmra.mxu0 %v12322_v16  ;;  %v15067_v9 = vadd.f32 %v4150_v13, %v3494_v47  ;;  %v12335_v13 = vld [vmem:[%s16940_s3 + $0x160] sm:$0xff]  }
 0x2c2   : > { %v4152_v26 = vpop.f32.mrf.mxu1  ;;  %11978 = vmatprep.subr.bf16.mxu1 %v12335_v13 }
 0x2c3   : > { %17079 = vst [vmem:[#allocation10_spill] sm:$0xff] %v15067_v9  ;;  %11979 = vmatpush3.bf16.msra.mxu1 %v12335_v13  ;;  %v16950_v9 = vmov 0.0  }
 0x2c4   : > { %v4155_v63 = vpop.f32.mrf.mxu1 }
 0x2c6   : > { %v3305_v60 = vpop.f32.mrf.mxu0  ;;  %v4157_v11 = vpop.f32.mrf.mxu1 }
 0x2c7   : > { %v3499_v17 = vadd.f32 %v14831_v1, %v3305_v60 }
 0x2c8   : > { %v3307_v36 = vpop.f32.mrf.mxu0  ;;  %v4158_v41 = vpop.f32.mrf.mxu1 }
 0x2c9   : > { %v15070_v20 = vadd.f32 %v4155_v63, %v3499_v17 }
 0x2ca   : > { %v3308_v46 = vpop.f32.mrf.mxu0  ;;  %v4160_v57 = vpop.f32.mrf.mxu1 }
 0x2cc   : > { %v3310_v30 = vpop.f32.mrf.mxu0 }
 0x2d1   : > { %v4163_v19 = vpop.f32.mrf.mxu1 }
 0x2d3   : > { %v3313_v61 = vpop.f32.mrf.mxu0  ;;  %v4165_v21 = vpop.f32.mrf.mxu1 }
 0x2d4   : > { %v3507_v1 = vadd.f32 %v14902_v28, %v3313_v61  ;;  %v12336_v28 = vld [vmem:[%s16940_s3 + $0xf0] sm:$0xff]  }
 0x2d5   : > { %v3315_v0 = vpop.f32.mrf.mxu0  ;;  %v4166_v35 = vpop.f32.mrf.mxu1  ;;  %11567 = vmatpush3.bf16.msra.mxu0 %v12336_v28 }
 0x2d6   : > { %v15079_v42 = vadd.f32 %v4163_v19, %v3507_v1  ;;  %v12337_v19 = vld [vmem:[%s16940_s3 + $0x128] sm:$0xff]  }
 0x2d7   : > { %v3316_v33 = vpop.f32.mrf.mxu0  ;;  %v4168_v2 = vpop.f32.mrf.mxu1  ;;  %v12338_v1 = vld [vmem:[%s16940_s3 + $0xe8] sm:$0xff]   ;;  %11568 = vmatprep.subr.bf16.mxu0 %v12337_v19 }
 0x2d8   : > { %v3510_v31 = vadd.f32 %v14915_v58, %v3316_v33 }
 0x2d9   : > { %v3318_v8 = vpop.f32.mrf.mxu0  ;;  %11569 = vmatpush3.bf16.msra.mxu0 %v12338_v1 }
 0x2da   : > { %v15085_v59 = vadd.f32 %v4166_v35, %v3510_v31  ;;  %v4171_v3 = vpop.f32.mrf.mxu1 }
 0x2dc   : > { %17080 = vst [vmem:[#allocation12_spill] sm:$0xff] %v15085_v59  ;;  %v4173_v16 = vpop.f32.mrf.mxu1 }
 0x2de   : > { %v4174_v18 = vpop.f32.mrf.mxu1 }
 0x2e0   : > { %v4176_v7 = vpop.f32.mrf.mxu1 }
 0x2e1   : > { %v3321_v29 = vpop.f32.mrf.mxu0 }
 0x2e2   : > { %v3515_v58 = vadd.f32 %v14900_v44, %v3321_v29  ;;  %v15091_v47 = vpop.f32.mrf.mxu1 }
 0x2e3   : > { %v3323_v48 = vpop.f32.mrf.mxu0 }
 0x2e4   : > { %v15096_v26 = vadd.f32 %v4171_v3, %v3515_v58  ;;  %v5961_v63 = vpop.f32.mrf.mxu1 }
 0x2e5   : > { %v3324_v60 = vpop.f32.mrf.mxu0 }
 0x2e6   : > { %v15098_v11 = vpop.f32.mrf.mxu1 }
 0x2e7   : > { %v3326_v17 = vpop.f32.mrf.mxu0 }
 0x2e8   : > { %v5964_v36 = vpop.f32.mrf.mxu1  ;;  %v12341_v17 = vld [vmem:[%s16940_s3 + $0x158] sm:$0xff]  }
 0x2e9   : > { %v11878_v41 = vpop.f32.mrf.mxu0  ;;  %v12342_v36 = vld [vmem:[%s16940_s3 + $0x118] sm:$0xff]   ;;  %11980 = vmatprep.subr.bf16.mxu1 %v12341_v17 }
 0x2ea   : > { %v15101_v44 = vadd.f32 %v11878_v41, %v14946_v12  ;;  %11981 = vmatpush3.bf16.msra.mxu1 %v12341_v17  ;;  %v12349_v17 = vld [vmem:[%s16940_s3 + $0x148] sm:$0xff]  }
 0x2eb   : > { %v4212_v46 = vpop.f32.mrf.mxu0  ;;  %v15106_v34 = vpop.f32.mrf.mxu1 }
 0x2ec   : > { %v15104_v57 = vadd.f32 %v4212_v46, %v14928_v62  ;;  %v12343_v46 = vld [vmem:[%s16940_s3 + $0xd8] sm:$0xff]  }
 0x2ed   : > { %v11879_v30 = vpop.f32.mrf.mxu0  ;;  %v5969_v50 = vpop.f32.mrf.mxu1 }
 0x2ef   : > { %v15111_v61 = vpop.f32.mrf.mxu0  ;;  %v5970_v12 = vpop.f32.mrf.mxu1 }
 0x2f1   : > { %v11882_v21 = vpop.f32.mrf.mxu0  ;;  %v5972_v0 = vpop.f32.mrf.mxu1 }
 0x2f2   : > { %v15117_v62 = vadd.f32 %v11882_v21, %v14972_v51  ;;  %v12339_v51 = vld [vmem:[%s16940_s3 + $0x120] sm:$0xff]   ;;  %v12345_v21 = vld [vmem:[%s16940_s3 + $0xd0] sm:$0xff]  }
 0x2f3   : > { %v4228_v35 = vpop.f32.mrf.mxu0  ;;  %v15122_v31 = vpop.f32.mrf.mxu1  ;;  %11570 = vmatprep.subr.bf16.mxu0 %v12339_v51  ;;  %v12348_v51 = vld [vmem:[%s16940_s3 + $0xc8] sm:$0xff]  }
 0x2f4   : > { %v15120_v33 = vadd.f32 %v4228_v35, %v14958_v10  ;;  %v12340_v10 = vld [vmem:[%s16940_s3 + $0xe0] sm:$0xff]  }
 0x2f5   : > { %v11883_v2 = vpop.f32.mrf.mxu0  ;;  %v5977_v23 = vpop.f32.mrf.mxu1  ;;  %11571 = vmatpush3.bf16.msra.mxu0 %v12340_v10 }
 0x2f6   : > { %11572 = vmatprep.subr.bf16.mxu0 %v12342_v36  ;;  %v12347_v23 = vld [vmem:[%s16940_s3 + $0x108] sm:$0xff]  }
 0x2f7   : > { %v15124_v8 = vpop.f32.mrf.mxu0  ;;  %v15126_v3 = vpop.f32.mrf.mxu1 }
 0x2f9   : > { %v11886_v28 = vpop.f32.mrf.mxu0  ;;  %v5980_v18 = vpop.f32.mrf.mxu1  ;;  %11573 = vmatpush3.bf16.msra.mxu0 %v12343_v46 }
 0x2fa   : > { %v15129_v16 = vadd.f32 %v11886_v28, %v14996_v15 }
 0x2fb   : > { %v4244_v7 = vpop.f32.mrf.mxu0  ;;  %v15140_v58 = vpop.f32.mrf.mxu1 }
 0x2fc   : > { %v15138_v29 = vadd.f32 %v4244_v7, %v14982_v55 }
 0x2fd   : > { %v11887_v48 = vpop.f32.mrf.mxu0  ;;  %v5985_v15 = vpop.f32.mrf.mxu1 }
 0x2ff   : > { %v15142_v13 = vpop.f32.mrf.mxu0  ;;  %v5986_v63 = vpop.f32.mrf.mxu1 }
 0x301   : > { %v11890_v60 = vpop.f32.mrf.mxu0  ;;  %v5988_v41 = vpop.f32.mrf.mxu1 }
 0x302   : > { %v15151_v55 = vadd.f32 %v11890_v60, %v15012_v54  ;;  %v12344_v54 = vld [vmem:[%s16940_s3 + $0x110] sm:$0xff]  }
 0x303   : > { %v4260_v30 = vpop.f32.mrf.mxu0  ;;  %v15159_v19 = vpop.f32.mrf.mxu1  ;;  %11574 = vmatprep.subr.bf16.mxu0 %v12344_v54 }
 0x304   : > { %v15157_v50 = vadd.f32 %v4260_v30, %v15002_v22  ;;  %11575 = vmatpush3.bf16.msra.mxu0 %v12345_v21  ;;  %v12346_v22 = vld [vmem:[%s16940_s3 + $0x150] sm:$0xff]  }
 0x305   : > { %v11891_v1 = vpop.f32.mrf.mxu0  ;;  %v5993_v12 = vpop.f32.mrf.mxu1  ;;  %11982 = vmatprep.subr.bf16.mxu1 %v12346_v22  ;;  %11576 = vmatprep.subr.bf16.mxu0 %v12347_v23 }
 0x306   : > { %11983 = vmatpush3.bf16.msra.mxu1 %v12346_v22 }
 0x307   : > { %v15167_v0 = vpop.f32.mrf.mxu0  ;;  %v15169_v35 = vpop.f32.mrf.mxu1  ;;  %11984 = vmatprep.subr.bf16.mxu1 %v12349_v17 }
 0x308   : > { %11577 = vmatpush3.bf16.msra.mxu0 %v12348_v51 }
 0x309   : > { %v11894_v2 = vpop.f32.mrf.mxu0  ;;  %v5996_v18 = vpop.f32.mrf.mxu1 }
 0x30a   : > { %v15178_v28 = vadd.f32 %v11894_v2, %v15024_v43  ;;  %11985 = vmatpush3.bf16.msra.mxu1 %v12349_v17 }
 0x30b   : > { %v4276_v7 = vpop.f32.mrf.mxu0  ;;  %v15186_v48 = vpop.f32.mrf.mxu1 }
 0x30c   : > { %v15184_v10 = vadd.f32 %v4276_v7, %v15016_v32 }
 0x30d   : > { %v11895_v15 = vpop.f32.mrf.mxu0  ;;  %v6001_v63 = vpop.f32.mrf.mxu1 }
 0x30f   : > { %v15188_v60 = vpop.f32.mrf.mxu0  ;;  %v6002_v43 = vpop.f32.mrf.mxu1 }
 0x311   : > { %v11898_v36 = vpop.f32.mrf.mxu0  ;;  %v6004_v46 = vpop.f32.mrf.mxu1 }
 0x312   : > { %v15194_v41 = vadd.f32 %v11898_v36, %v15037_v6  ;;  %v12351_v36 = vld [vmem:[%s16940_s3 + $0x100] sm:$0xff]  }
 0x313   : > { %v4292_v32 = vpop.f32.mrf.mxu0  ;;  %v15199_v1 = vpop.f32.mrf.mxu1  ;;  %11578 = vmatprep.subr.bf16.mxu0 %v12351_v36 }
 0x314   : > { %v15197_v30 = vadd.f32 %v4292_v32, %v15030_v37 }
 0x315   : > { %v11899_v54 = vpop.f32.mrf.mxu0  ;;  %v6009_v12 = vpop.f32.mrf.mxu1 }
 0x317   : > { %v15201_v21 = vpop.f32.mrf.mxu0  ;;  %v15203_v22 = vpop.f32.mrf.mxu1 }
 0x319   : > { %v11902_v2 = vpop.f32.mrf.mxu0  ;;  %v6012_v6 = vpop.f32.mrf.mxu1 }
 0x31a   : > { %v15206_v23 = vadd.f32 %v11902_v2, %v15049_v39  ;;  %v12352_v39 = vld [vmem:[%s16940_s3 + $0xc0] sm:$0xff]  }
 0x31b   : > { %v4308_v18 = vpop.f32.mrf.mxu0  ;;  %v15211_v7 = vpop.f32.mrf.mxu1  ;;  %11579 = vmatpush3.bf16.msra.mxu0 %v12352_v39 }
 0x31c   : > { %17081 = vst [vmem:[#allocation11_spill] sm:$0xff] %v15206_v23  ;;  %v15209_v51 = vadd.f32 %v4308_v18, %v15040_v27 }
 0x31d   : > { %v11903_v37 = vpop.f32.mrf.mxu0  ;;  %v6017_v15 = vpop.f32.mrf.mxu1 }
 0x31e   : > { %v12356_v37 = vld [vmem:[%s16940_s3 + $0x140] sm:$0xff]  }
 0x31f   : > { %v15213_v63 = vpop.f32.mrf.mxu0  ;;  %v6018_v43 = vpop.f32.mrf.mxu1  ;;  %11986 = vmatprep.subr.bf16.mxu1 %v12356_v37 }
 0x320   : > { %11987 = vmatpush3.bf16.msra.mxu1 %v12356_v37 }
 0x321   : > { %v11906_v17 = vpop.f32.mrf.mxu0  ;;  %v6020_v27 = vpop.f32.mrf.mxu1 }
 0x322   : > { %v15222_v46 = vadd.f32 %v11906_v17, %v15061_v45 }
 0x323   : > { %v4324_v32 = vpop.f32.mrf.mxu0  ;;  %v15227_v12 = vpop.f32.mrf.mxu1 }
 0x324   : > { %17082 = vst [vmem:[#allocation14_spill] sm:$0xff] %v15222_v46  ;;  %v15225_v54 = vadd.f32 %v4324_v32, %v15052_v4 }
 0x325   : > { %v11907_v2 = vpop.f32.mrf.mxu0  ;;  %v6025_v6 = vpop.f32.mrf.mxu1 }
 0x326   : > { %17083 = vst [vmem:[#allocation13_spill] sm:$0xff] %v15225_v54  ;;  %v6438_v6 = vlaneseq }
 0x327   : > { %v15229_v18 = vpop.f32.mrf.mxu0  ;;  %v15234_v15 = vpop.f32.mrf.mxu1 }
 0x329   : > { %v11910_v45 = vpop.f32.mrf.mxu0  ;;  %v6028_v4 = vpop.f32.mrf.mxu1 }
 0x32a   : > { %v15237_v43 = vadd.f32 %v11910_v45, %v15070_v20  ;;  %v15250_v20 = vstv %s12570_s25 }
 0x32b   : > { %v4340_v17 = vpop.f32.mrf.mxu0  ;;  %v15242_v39 = vpop.f32.mrf.mxu1  ;;  %17088 = vst [vmem:[#allocation20_spill] sm:$0xff] %v15250_v20  ;;  %vm6462_vm12 = vcmp.ge.s32.totalorder %v15250_v20, 0  ;;  %vm6472_vm13 = vcmp.lt.s32.totalorder %v15250_v20, 16 }
 0x32c   : > { %17084 = vst [vmem:[#allocation16_spill] sm:$0xff] %v15237_v43  ;;  %v15240_v36 = vadd.f32 %v4340_v17, %v15064_v24  ;;  %v15255_v24 = vshrl.u32 %v6438_v6, 7  ;;  %vm15304_vm15 = vmand %vm6462_vm12, %vm6472_vm13 }
 0x32d   : > { %v11911_v27 = vpop.f32.mrf.mxu0  ;;  %v6033_v32 = vpop.f32.mrf.mxu1 }
 0x32e   : > { %17085 = vst [vmem:[#allocation15_spill] sm:$0xff] %v15240_v36  ;;  %v10907_v32 = vadd.s32 4294967295, %v15250_v20  ;;  %vm6491_vm11 = vcmp.ge.s32.totalorder %v15255_v24, 1 }
 0x32f   : > { %v15244_v2 = vpop.f32.mrf.mxu0  ;;  %v6034_v59 = vpop.f32.mrf.mxu1  ;;  %vm6499_vm4 = vmand %vm15304_vm15, %vm6491_vm11 }
 0x330   : > { %17086 = vst [vmem:[#allocation18_spill] sm:$0xff] %v15244_v2  ;;  %vm6461_vm6 = vcmp.ge.s32.totalorder %v10907_v32, 0  ;;  %vm6471_vm7 = vcmp.lt.s32.totalorder %v10907_v32, 16 }
 0x331   : > { %v11914_v46 = vpop.f32.mrf.mxu0  ;;  %v6036_v45 = vpop.f32.mrf.mxu1  ;;  %vm15274_vm8 = vmand %vm6461_vm6, %vm6471_vm7 }
 0x332   : > { %v15247_v54 = vadd.f32 %v11914_v46, %v15096_v26  ;;  %v15263_v26 = vadd.s32 16, %v15255_v24  ;;  %vm6495_vm14 = vmand %vm15274_vm8, %vm6491_vm11 }
 0x333   : > { %v4356_v37 = vpop.f32.mrf.mxu0  ;;  %v15257_v17 = vpop.f32.mrf.mxu1 }
 0x334   : > { %17087 = vst [vmem:[#allocation17_spill] sm:$0xff] %v15247_v54  ;;  %v15253_v4 = vadd.f32 %v4356_v37, %v15079_v42  ;;  %v15271_v37 = vld [vmem:[%s16939_s2] ss:$0 sm:$0xff]  ;;  %vm6537_vm9 = vcmp.le.s32.totalorder %v15263_v26, 16 }
 0x335   : > { %v11915_v27 = vpop.f32.mrf.mxu0  ;;  %v6041_v43 = vpop.f32.mrf.mxu1  ;;  %vm6541_vm10 = vmand %vm15274_vm8, %vm6537_vm9 }
 0x336   : > { %17089 = vst [vmem:[#allocation19_spill] sm:$0xff] %v15253_v4  ;;  %vm6545_vm0 = vmand %vm15304_vm15, %vm6537_vm9 }
 0x337   : > { %v15260_v59 = vpop.f32.mrf.mxu0  ;;  %v15265_v46 = vpop.f32.mrf.mxu1 }
 0x338   : > { %17090 = vst [vmem:[#allocation22_spill] sm:$0xff] %v15260_v59 }
 0x339   : > { %v11934_v45 = vpop.f32.mrf.mxu0  ;;  %v6044_v6 = vpop.f32.mrf.mxu1 }
 0x33a   : > { %v6161_v42 = vadd.f32 %v11934_v45, %v15106_v34 }
 0x33b   : > { %v6152_v27 = vpop.f32.mrf.mxu0  ;;  %v15280_v32 = vpop.f32.mrf.mxu1 }
 0x33c   : > { %v6313_v43 = vadd.f32 %v6161_v42, %v15101_v44  ;;  %v6153_v4 = vadd.f32 %v6152_v27, %v15091_v47  ;;  %v4216_v42 = vadd.f32 %v15111_v61, %v14934_v25 }
 0x33d   : > { %v11935_v34 = vpop.f32.mrf.mxu0  ;;  %v6049_v59 = vpop.f32.mrf.mxu1 }
 0x33e   : > { %v6360_v45 = vadd.f32 %v15271_v37, %v6313_v43  ;;  %v6311_v6 = vadd.f32 %v6153_v4, %v15104_v57  ;;  %v6444_v57 = vadd.s32 2, %v15250_v20 }
 0x33f   : > { %v6155_v44 = vpop.f32.mrf.mxu0  ;;  %v6050_v43 = vpop.f32.mrf.mxu1 }
 0x340   : > { %v6400_v47 = vmax.f32 %v6360_v45, 0.0  ;;  %v6358_v27 = vadd.f32 %v15271_v37, %v6311_v6  ;;  %v6156_v34 = vadd.f32 %v6155_v44, %v15098_v11  ;;  %v6449_v44 = vadd.s32 7, %v15250_v20 }
 0x341   : > { %v11938_v36 = vpop.f32.mrf.mxu0  ;;  %v6052_v2 = vpop.f32.mrf.mxu1 }
 0x342   : > { %v6661_v4 = vsel %vm6541_vm10, %v6400_v47, 0.0  ;;  %v6312_v59 = vadd.f32 %v6156_v34, %v4216_v42  ;;  %v6177_v23 = vadd.f32 %v11938_v36, %v15140_v58  ;;  %v6398_v61 = vmax.f32 %v6358_v27, 0.0 }
 0x343   : > { %v11331_v25 = vpack.c.bf16 %v16950_v9, %v6661_v4  ;;  %v6168_v11 = vpop.f32.mrf.mxu0  ;;  %v15309_v36 = vpop.f32.mrf.mxu1  ;;  %v10908_v42 = vadd.s32 4294967295, %v6444_v57 }
 0x344   : > { %v6359_v45 = vadd.f32 %v15271_v37, %v6312_v59  ;;  %v6317_v6 = vadd.f32 %v6177_v23, %v15117_v62  ;;  %v6169_v58 = vadd.f32 %v6168_v11, %v15122_v31  ;;  %v4232_v62 = vadd.f32 %v15124_v8, %v14962_v53 }
 0x345   : > { %11454 = vst [vmem:[#allocation5 + $0x8] sm:$0xff] %v11331_v25   ;;  %v11939_v2 = vpop.f32.mrf.mxu0  ;;  %v6057_v43 = vpop.f32.mrf.mxu1  ;;  %v6659_v23 = vsel %vm6495_vm14, %v6398_v61, 0.0  ;;  %vm6463_vm1 = vcmp.ge.s32.totalorder %v10908_v42, 0  ;;  %vm6473_vm3 = vcmp.lt.s32.totalorder %v10908_v42, 16 }
 0x346   : > { %v6399_v47 = vmax.f32 %v6359_v45, 0.0  ;;  %v6364_v27 = vadd.f32 %v15271_v37, %v6317_v6  ;;  %v6315_v34 = vadd.f32 %v6169_v58, %v15120_v33  ;;  %v6445_v6 = vadd.s32 3, %v15250_v20  ;;  %vm15345_vm6 = vmand %vm6463_vm1, %vm6473_vm3 }
 0x347   : > { %v6171_v31 = vpop.f32.mrf.mxu0  ;;  %v15323_v33 = vpop.f32.mrf.mxu1  ;;  %vm15370_vm7 = vmand %vm15345_vm6, %vm6537_vm9 }
 0x348   : > { %v6660_v4 = vsel %vm15274_vm8, %v6399_v47, 0.0  ;;  %v6404_v57 = vmax.f32 %v6364_v27, 0.0  ;;  %v6362_v59 = vadd.f32 %v15271_v37, %v6315_v34  ;;  %v6172_v25 = vadd.f32 %v6171_v31, %v15126_v3  ;;  %vm15400_vm8 = vmand %vm15345_vm6, %vm6491_vm11 }
 0x349   : > { %v11327_v11 = vpack.c.bf16 %v6660_v4, %v6659_v23  ;;  %v11942_v45 = vpop.f32.mrf.mxu0  ;;  %v6060_v58 = vpop.f32.mrf.mxu1  ;;  %v6446_v47 = vadd.s32 4, %v15250_v20  ;;  %v6447_v3 = vadd.s32 5, %v15250_v20  ;;  %v6448_v27 = vadd.s32 6, %v15250_v20 }
 0x34a   : > { %v6665_v53 = vsel %vm6545_vm0, %v6404_v57, 0.0  ;;  %v6316_v8 = vadd.f32 %v6172_v25, %v4232_v62  ;;  %v6193_v61 = vadd.f32 %v11942_v45, %v15186_v48  ;;  %v6402_v43 = vmax.f32 %v6362_v59, 0.0 }
 0x34b   : > { %11328 = vst [vmem:[#allocation5] sm:$0xff] %v11327_v11   ;;  %v11340_v54 = vpack.c.bf16 %v16950_v9, %v6665_v53  ;;  %v6184_v2 = vpop.f32.mrf.mxu0  ;;  %v15334_v31 = vpop.f32.mrf.mxu1  ;;  %v15350_v45 = vadd.s32 4294967295, %v6445_v6  ;;  %v15354_v58 = vadd.s32 4294967295, %v6446_v47 }
 0x34c   : > { %v6933_v34 = vld [vmem:[#allocation5 + $0x8] sm:$0x1]  ;;  %v6363_v23 = vadd.f32 %v15271_v37, %v6316_v8  ;;  %v6321_v62 = vadd.f32 %v6193_v61, %v15129_v16  ;;  %v6185_v48 = vadd.f32 %v6184_v2, %v15159_v19  ;;  %v4248_v8 = vadd.f32 %v15142_v13, %v14986_v38 }
 0x34d   : > { %v6975_v4 = vshll.u32 %v6933_v34, 16  ;;  %11456 = vst [vmem:[#allocation5 + $0x18] sm:$0xff] %v11340_v54   ;;  %v11943_v57 = vpop.f32.mrf.mxu0  ;;  %v15340_v25 = vld [vmem:[#allocation5 + $0x8] sm:$0x1]  ;;  %v6065_v53 = vpop.f32.mrf.mxu1  ;;  %v15356_v54 = vadd.s32 4294967295, %v6447_v3  ;;  %v15358_v2 = vadd.s32 4294967295, %v6448_v27  ;;  %v15381_v3 = vadd.f32 %v15188_v60, %v15020_v56 }
 0x34e   : > { %v6403_v11 = vmax.f32 %v6363_v23, 0.0  ;;  %v6368_v59 = vadd.f32 %v15271_v37, %v6321_v62  ;;  %v6319_v19 = vadd.f32 %v6185_v48, %v15138_v29  ;;  %v6663_v42 = vsel %vm6499_vm4, %v6402_v43, 0.0 }
 0x34f   : > { %v6187_v61 = vpop.f32.mrf.mxu0  ;;  %17097 = vst [vmem:[#allocation21_spill] sm:$0xff] %v15356_v54  ;;  %17098 = vst [vmem:[#allocation35_spill] sm:$0xff] %v15358_v2  ;;  %v6066_v6 = vpop.f32.mrf.mxu1  ;;  %v15363_v62 = vrot.slane %v6975_v4, 5  ;;  %v7232_v48 = vrot.slane %v15340_v25, 5  ;;  %v15385_v27 = vadd.f32 %v15201_v21, %v15034_v5  ;;  %vm6464_vm10 = vcmp.ge.s32.totalorder %v15350_v45, 0 }
 0x350   : > { %v6664_v34 = vsel %vm15304_vm15, %v6403_v11, 0.0  ;;  %v6408_v23 = vmax.f32 %v6368_v59, 0.0  ;;  %v6188_v29 = vadd.f32 %v6187_v61, %v15169_v35  ;;  %v15377_v35 = vadd.f32 %v15167_v0, %v15006_v49 }
 0x351   : > { %v11336_v38 = vpack.c.bf16 %v6664_v34, %v6663_v42  ;;  %v11946_v47 = vpop.f32.mrf.mxu0  ;;  %v6366_v25 = vadd.f32 %v15271_v37, %v6319_v19  ;;  %v6068_v11 = vpop.f32.mrf.mxu1  ;;  %vm6474_vm12 = vcmp.lt.s32.totalorder %v15350_v45, 16  ;;  %vm6465_vm13 = vcmp.ge.s32.totalorder %v15354_v58, 0 }
 0x352   : > { %v6899_v43 = vld [vmem:[#allocation5] sm:$0xf]  ;;  %v6900_v4 = vld [vmem:[#allocation5 + $0x4] sm:$0xf]  ;;  %v6320_v49 = vadd.f32 %v6188_v29, %v4248_v8  ;;  %v6209_v56 = vadd.f32 %v11946_v47, %v15211_v7  ;;  %v6669_v6 = vsel %vm15370_vm7, %v6408_v23, 0.0  ;;  %vm6475_vm14 = vcmp.lt.s32.totalorder %v15354_v58, 16  ;;  %vm15472_vm15 = vmand %vm6464_vm10, %vm6474_vm12 }
 0x353   : > { %v6931_v57 = vld [vmem:[#allocation5] sm:$0xf]  ;;  %v6932_v59 = vld [vmem:[#allocation5 + $0x4] sm:$0xf]  ;;  %6915 = vst [vmem:[#allocation4] sm:$0xf] %v6899_v43  ;;  %v6200_v0 = vpop.f32.mrf.mxu0  ;;  %v15391_v19 = vpop.f32.mrf.mxu1  ;;  %vm15502_vm0 = vmand %vm15472_vm15, %vm6537_vm9 }
 0x354   : > { %v6956_v53 = vshrl.u32 %v6931_v57, 16  ;;  %v6959_v61 = vshll.u32 %v6931_v57, 16  ;;  %v7179_v42 = vld [vmem:[#allocation5] sm:$0xe]  ;;  %6916 = vst [vmem:[#allocation4 + $0xc] sm:$0xf] %v6900_v4  ;;  %vm15534_vm1 = vmand %vm15472_vm15, %vm6491_vm11 }
 0x355   : > { %11455 = vst [vmem:[#allocation5 + $0x10] sm:$0xff] %v11336_v38   ;;  %v6965_v60 = vshll.u32 %v6932_v59, 16  ;;  %v6969_v5 = vshrl.u32 %v6932_v59, 16  ;;  %v7180_v21 = vld [vmem:[#allocation5 + $0x4] sm:$0xf]  ;;  %v10956_v34 = vrot.slane %v7179_v42, 9  ;;  %v11947_v38 = vpop.f32.mrf.mxu0  ;;  %v6073_v13 = vpop.f32.mrf.mxu1  ;;  %vm15568_vm3 = vmand %vm6465_vm13, %vm6475_vm14 }
 0x356   : > { %17101 = vst [vmem:[#allocation24_spill] sm:$0xff] %v15391_v19  ;;  %v6958_v11 = vrot.slane %v6956_v53, 4  ;;  %v6961_v9 = vrot.slane %v6959_v61, 5  ;;  %v7229_v57 = vrot.slane %v7180_v21, 5  ;;  %v6936_v20 = vld [vmem:[#allocation5 + $0x18] sm:$0x1]  ;;  %vm15589_vm4 = vmand %vm15568_vm3, %vm6491_vm11 }
 0x357   : > { %v17102_v43 = vmov 0.0   ;;  %v6967_v8 = vrot.slane %v6965_v60, 5  ;;  %v6971_v29 = vrot.slane %v6969_v5, 4  ;;  %v6999_v7 = vshll.u32 %v6936_v20, 16  ;;  %v15394_v47 = vld [vmem:[#allocation5 + $0x18] sm:$0x1]  ;;  %v6203_v20 = vpop.f32.mrf.mxu0 }
 0x358   : > { %v11349_v4 = vpack.c.bf16 %v17102_v43, %v6669_v6  ;;  %v6406_v59 = vmax.f32 %v6366_v25, 0.0  ;;  %v6962_v53 = vor.u32 %v6961_v9, %v6958_v11  ;;  %v7230_v42 = vsel %vm12750_vm2, %v10956_v34, %v7229_v57  ;;  %v7430_v60 = vld [vmem:[#allocation5 + $0x18] sm:$0x1]  ;;  %v15415_v9 = vpop.f32.mrf.mxu1 }
 0x359   : > { %v7231_v21 = vrot.slane %v7229_v57, 4  ;;  %v15406_v5 = vld [vmem:[#allocation5 + $0x18] sm:$0x1]  ;;  %v15408_v25 = vadd.s32 4294967295, %v6449_v44  ;;  %v6972_v6 = vor.u32 %v6971_v29, %v6967_v8  ;;  %7299 = vst [vmem:[#allocation4 + $0x8] sm:$0xf] %v7230_v42  ;;  %v15427_v42 = vadd.f32 %v15271_v37, %v6320_v49 }
 0x35a   : > { %11458 = vst [vmem:[#allocation5 + $0x28] sm:$0xff] %v11349_v4   ;;  %v15410_v38 = vrot.slane %v6999_v7, 5  ;;  %v7239_v19 = vrot.slane %v15394_v47, 5  ;;  %v7472_v2 = vshll.u32 %v7430_v60, 16  ;;  %17107 = vst [vmem:[#allocation26_spill] sm:$0xff] %v15415_v9  ;;  %v6963_v34 = vrot.slane %v6962_v53, 4  ;;  %v11950_v4 = vpop.f32.mrf.mxu0  ;;  %v6076_v60 = vpop.f32.mrf.mxu1 }
 0x35b   : > { %17106 = vst [vmem:[#allocation23_spill] sm:$0xff] %v15408_v25  ;;  %v7233_v11 = vsel %vm12750_vm2, %v7231_v21, %v7232_v48  ;;  %v15422_v57 = vsel %vm15400_vm8, %v6406_v59, 0.0  ;;  %v6973_v29 = vrot.slane %v6972_v6, 4  ;;  %v6325_v53 = vadd.f32 %v6209_v56, %v15151_v55 }
 0x35c   : > { %7300 = vst [vmem:[#allocation4 + $0x14] sm:$0xf] %v7233_v11  ;;  %v15424_v7 = vrot.slane %v7472_v2, 5  ;;  %v6901_v47 = vld [vmem:[#allocation5 + $0x10] sm:$0xf]  ;;  %v15432_v48 = vadd.f32 %v15213_v63, %v15046_v40  ;;  %v6968_v59 = vsel %vm13159_vm5, %v6963_v34, %v6967_v8  ;;  %v15437_v2 = vadd.f32 %v6200_v0, %v15199_v1  ;;  %v15442_v55 = vpop.f32.mrf.mxu0  ;;  %v15447_v11 = vpop.f32.mrf.mxu1 }
 0x35d   : > { %v6902_v13 = vld [vmem:[#allocation5 + $0x14] sm:$0xf]  ;;  %v6934_v23 = vld [vmem:[#allocation5 + $0x10] sm:$0xf]  ;;  %6917 = vst [vmem:[#allocation4 + $0x18] sm:$0xf] %v6901_v47  ;;  %v15440_v49 = vadd.f32 %v6203_v20, %v15203_v22  ;;  %v6978_v40 = vsel %vm13159_vm5, %v6973_v29, %v15363_v62  ;;  %v15450_v22 = vadd.f32 %v11950_v4, %v15242_v39 }
 0x35e   : > { %17108 = vst [vmem:[#allocation25_spill] sm:$0xff] %v15432_v48  ;;  %v6935_v21 = vld [vmem:[#allocation5 + $0x14] sm:$0xf]  ;;  %v7182_v6 = vld [vmem:[#allocation5 + $0x10] sm:$0xe]  ;;  %v6980_v63 = vshrl.u32 %v6934_v23, 16  ;;  %v6081_v29 = vpop.f32.mrf.mxu1 }
 0x35f   : > { %6918 = vst [vmem:[#allocation4 + $0x24] sm:$0xf] %v6902_v13  ;;  %7163 = vst [vmem:[#allocation4 + $0x4] sm:$0xf] %v6968_v59  ;;  %v6983_v56 = vshll.u32 %v6934_v23, 16  ;;  %v6989_v8 = vshll.u32 %v6935_v21, 16  ;;  %v11951_v13 = vpop.f32.mrf.mxu0  ;;  %v6324_v16 = vadd.f32 %v15440_v49, %v15377_v35  ;;  %v6217_v35 = vadd.f32 %v15442_v55, %v15227_v12 }
 0x360   : > { %v7183_v34 = vld [vmem:[#allocation5 + $0x14] sm:$0xf]  ;;  %17109 = vst [vmem:[#allocation37_spill] sm:$0xff] %v15447_v11  ;;  %7164 = vst [vmem:[#allocation4 + $0x10] sm:$0xf] %v6978_v40  ;;  %v6993_v47 = vshrl.u32 %v6935_v21, 16  ;;  %v15456_v21 = vadd.f32 %v15271_v37, %v6325_v53  ;;  %v6329_v12 = vadd.f32 %v15450_v22, %v15178_v28 }
 0x361   : > { %v10957_v1 = vrot.slane %v7182_v6, 9  ;;  %v7236_v0 = vrot.slane %v7183_v34, 5  ;;  %v6982_v20 = vrot.slane %v6980_v63, 4  ;;  %v6985_v60 = vrot.slane %v6983_v56, 5  ;;  %v7428_v11 = vld [vmem:[#allocation5 + $0x10] sm:$0xf]  ;;  %v15458_v6 = vpop.f32.mrf.mxu0  ;;  %v6082_v34 = vpop.f32.mrf.mxu1 }
 0x362   : > { %v6991_v44 = vrot.slane %v6989_v8, 5  ;;  %v6995_v59 = vrot.slane %v6993_v47, 4  ;;  %v7429_v40 = vld [vmem:[#allocation5 + $0x14] sm:$0xf]  ;;  %v7453_v4 = vshrl.u32 %v7428_v11, 16  ;;  %v7456_v63 = vshll.u32 %v7428_v11, 16 }
 0x363   : > { %v7237_v23 = vsel %vm12750_vm2, %v10957_v1, %v7236_v0  ;;  %v7238_v25 = vrot.slane %v7236_v0, 4  ;;  %v6986_v39 = vor.u32 %v6985_v60, %v6982_v20  ;;  %v7462_v56 = vshll.u32 %v7429_v40, 16  ;;  %v7676_v8 = vld [vmem:[#allocation5 + $0x10] sm:$0xe]  ;;  %v7677_v0 = vld [vmem:[#allocation5 + $0x14] sm:$0xf]  ;;  %v15462_v9 = vpop.f32.mrf.mxu0  ;;  %v6084_v11 = vpop.f32.mrf.mxu1 }
 0x364   : > { %7301 = vst [vmem:[#allocation4 + $0x20] sm:$0xf] %v7237_v23  ;;  %v6996_v13 = vor.u32 %v6995_v59, %v6991_v44  ;;  %v7466_v1 = vshrl.u32 %v7429_v40, 16  ;;  %v10964_v29 = vrot.slane %v7676_v8, 9  ;;  %v6939_v62 = vld [vmem:[#allocation5 + $0x28] sm:$0x1]  ;;  %v15573_v22 = vadd.f32 %v15271_v37, %v6329_v12 }
 0x365   : > { %v7240_v47 = vsel %vm12750_vm2, %v7238_v25, %v7239_v19  ;;  %v6987_v53 = vrot.slane %v6986_v39, 4  ;;  %v7455_v54 = vrot.slane %v7453_v4, 4  ;;  %v7458_v20 = vrot.slane %v7456_v63, 5  ;;  %v15464_v23 = vld [vmem:[#allocation5 + $0x28] sm:$0x1]  ;;  %v6232_v4 = vpop.f32.mrf.mxu0 }
 0x366   : > { %7302 = vst [vmem:[#allocation4 + $0x2c] sm:$0xf] %v7240_v47  ;;  %v7464_v60 = vrot.slane %v7462_v56, 5  ;;  %v6997_v59 = vrot.slane %v6996_v13, 4  ;;  %v7468_v19 = vrot.slane %v7466_v1, 4  ;;  %v7726_v25 = vrot.slane %v7677_v0, 5  ;;  %v15480_v1 = vpop.f32.mrf.mxu1 }
 0x367   : > { %v7023_v40 = vshll.u32 %v6939_v62, 16  ;;  %v7433_v8 = vld [vmem:[#allocation5 + $0x28] sm:$0x1]  ;;  %v6992_v63 = vsel %vm13159_vm5, %v6987_v53, %v6991_v44  ;;  %v7396_v56 = vld [vmem:[#allocation5 + $0x10] sm:$0xf]  ;;  %v7459_v34 = vor.u32 %v7458_v20, %v7455_v54  ;;  %v6323_v62 = vadd.f32 %v15437_v2, %v15157_v50  ;;  %17112 = vst [vmem:[#allocation28_spill] sm:$0xff] %v15480_v1  ;;  %v11955_v53 = vpop.f32.mrf.mxu0 }
 0x368   : > { %v7496_v47 = vshll.u32 %v7433_v8, 16  ;;  %v8860_v13 = vld [vmem:[#allocation5 + $0x28] sm:$0x1]  ;;  %v7002_v45 = vsel %vm13159_vm5, %v6997_v59, %v15410_v38  ;;  %v7397_v0 = vld [vmem:[#allocation5 + $0x14] sm:$0xf]  ;;  %v7469_v11 = vor.u32 %v7468_v19, %v7464_v60  ;;  %v7727_v48 = vsel %vm12750_vm2, %v10964_v29, %v7726_v25  ;;  %v15490_v20 = vld [vmem:[#allocation4] sm:$0xff]  ;;  %v6089_v59 = vpop.f32.mrf.mxu1 }
 0x369   : > { %7165 = vst [vmem:[#allocation4 + $0x1c] sm:$0xf] %v6992_v63  ;;  %v7246_v44 = vrot.slane %v15464_v23, 5  ;;  %v15488_v54 = vld [vmem:[#allocation4 + $0x8] sm:$0xf]  ;;  %17114 = vst [vmem:[#allocation38_spill] sm:$0xff] %v15490_v20  ;;  %v6233_v55 = vadd.f32 %v6232_v4, %v15257_v17  ;;  %v6241_v58 = vadd.f32 %v15462_v9, %v15280_v32 }
 0x36a   : > { %17113 = vst [vmem:[#allocation27_spill] sm:$0xff] %v15488_v54  ;;  %v7460_v50 = vrot.slane %v7459_v34, 4  ;;  %v7728_v2 = vrot.slane %v7726_v25, 4  ;;  %7166 = vst [vmem:[#allocation4 + $0x28] sm:$0xf] %v7002_v45  ;;  %v15492_v8 = vrot.slane %v7023_v40, 5 }
 0x36b   : > { %v15494_v1 = vrot.slane %v7496_v47, 5  ;;  %v15496_v38 = vld [vmem:[#allocation5 + $0x28] sm:$0x1]  ;;  %7796 = vst [vmem:[#allocation4 + $0x8] sm:$0xf] %v7727_v48  ;;  %v7470_v19 = vrot.slane %v7469_v11, 4  ;;  %v6235_v47 = vpop.f32.mrf.mxu0 }
 0x36c   : > { %7412 = vst [vmem:[#allocation4] sm:$0xf] %v7396_v56  ;;  %v8902_v25 = vshll.u32 %v8860_v13, 16  ;;  %v17117_v40 = vmax.f32 %v15427_v42, 0.0  ;;  %v6412_v34 = vmax.f32 %v15456_v21, 0.0  ;;  %v15511_v45 = vld [vmem:[#allocation4 + $0xc] sm:$0xff]  ;;  %v7465_v48 = vsel %vm13159_vm5, %v7460_v50, %v7464_v60  ;;  %v15522_v42 = vpop.f32.mrf.mxu1 }
 0x36d   : > { %17118 = vst [vmem:[#allocation30_spill] sm:$0xff] %v15511_v45  ;;  %v12366_v53 = vld [vmem:[%s16940_s3 + $0x78] sm:$0xff]   ;;  %v6370_v13 = vadd.f32 %v15271_v37, %v6323_v62  ;;  %7413 = vst [vmem:[#allocation4 + $0xc] sm:$0xf] %v7397_v0  ;;  %v7475_v21 = vsel %vm13159_vm5, %v7470_v19, %v15424_v7  ;;  %v7736_v11 = vrot.slane %v15496_v38, 5  ;;  %v11958_v7 = vpop.f32.mrf.mxu0  ;;  %v6371_v0 = vadd.f32 %v15271_v37, %v6324_v16 }
 0x36e   : > { %v6668_v63 = vsel %vm15345_vm6, %v17117_v40, 0.0  ;;  %17119 = vst [vmem:[#allocation29_spill] sm:$0xff] %v15522_v42  ;;  %v6673_v59 = vsel %vm15502_vm0, %v6412_v34, 0.0  ;;  %v15540_v49 = vld [vmem:[#allocation4 + $0x14] sm:$0xf]  ;;  %11644 = vmatprep.subr.bf16.mxu0 %v12366_v53  ;;  %v6220_v50 = vadd.f32 %v15458_v6, %v15234_v15  ;;  %v6092_v29 = vpop.f32.mrf.mxu1  ;;  %v6327_v19 = vadd.f32 %v6217_v35, %v15184_v10  ;;  %vm15706_vm6 = vmand %vm15568_vm3, %vm6537_vm9 }
 0x36f   : > { %v11345_v56 = vpack.c.bf16 %v6668_v63, %v15422_v57  ;;  %17122 = vst [vmem:[#allocation36_spill] sm:$0xff] %v15540_v49  ;;  %7660 = vst [vmem:[#allocation4 + $0x4] sm:$0xf] %v7465_v48  ;;  %v11358_v60 = vpack.c.bf16 %v17102_v43, %v6673_v59  ;;  %v6410_v62 = vmax.f32 %v6370_v13, 0.0  ;;  %v17123_v40 = vrot.slane %v15406_v5, 5  ;;  %v6248_v34 = vpop.f32.mrf.mxu0 }
 0x370   : > { %7661 = vst [vmem:[#allocation4 + $0x10] sm:$0xf] %v7475_v21  ;;  %v15554_v53 = vrot.slane %v8902_v25, 5  ;;  %v6411_v6 = vmax.f32 %v6371_v0, 0.0  ;;  %v6328_v10 = vadd.f32 %v6220_v50, %v15381_v3  ;;  %v15559_v48 = vld [vmem:[#allocation5 + $0x28] sm:$0x1]  ;;  %v15561_v28 = vpop.f32.mrf.mxu1  ;;  %v6374_v17 = vadd.f32 %v15271_v37, %v6327_v19 }
 0x371   : > { %11457 = vst [vmem:[#allocation5 + $0x20] sm:$0xff] %v11345_v56   ;;  %v7730_v63 = vsel %vm12750_vm2, %v7728_v2, %v17123_v40  ;;  %11460 = vst [vmem:[#allocation5 + $0x38] sm:$0xff] %v11358_v60   ;;  %v6671_v15 = vsel %vm15534_vm1, %v6410_v62, 0.0  ;;  %v6331_v3 = vadd.f32 %v6233_v55, %v15197_v30  ;;  %v6236_v4 = vadd.f32 %v6235_v47, %v15265_v46  ;;  %v11959_v2 = vpop.f32.mrf.mxu0  ;;  %v15597_v9 = vld [vmem:[#allocation4 + $0x18] sm:$0xff]  ;;  %v17130_v0 = vld [vmem:[#allocation10_spill] sm:$0xff] }
 0x372   : > { %7797 = vst [vmem:[#allocation4 + $0x14] sm:$0xf] %v7730_v63  ;;  %17124 = vst [vmem:[#allocation32_spill] sm:$0xff] %v15561_v28  ;;  %v6672_v25 = vsel %vm15472_vm15, %v6411_v6, 0.0  ;;  %v6375_v56 = vadd.f32 %v15271_v37, %v6328_v10  ;;  %v6249_v13 = vadd.f32 %v6248_v34, %v15309_v36  ;;  %v6097_v16 = vpop.f32.mrf.mxu1  ;;  %v6414_v59 = vmax.f32 %v6374_v17, 0.0  ;;  %v17131_v50 = vld [vmem:[#allocation18_spill] sm:$0xff] }
 0x373   : > { %v11354_v21 = vpack.c.bf16 %v6672_v25, %v6671_v15  ;;  %v6251_v35 = vpop.f32.mrf.mxu0  ;;  %v6332_v32 = vadd.f32 %v6236_v4, %v15385_v27  ;;  %v15595_v36 = vadd.f32 %v6241_v58, %v15194_v41  ;;  %17129 = vst [vmem:[#allocation31_spill] sm:$0xff] %v15597_v9  ;;  %v15604_v62 = vadd.f32 %v15229_v18, %v15055_v14  ;;  %v15613_v55 = vld [vmem:[#allocation4 + $0x24] sm:$0xff] }
 0x374   : > { %v6415_v39 = vmax.f32 %v6375_v56, 0.0  ;;  %v15600_v47 = vadd.f32 %v6249_v13, %v15209_v51  ;;  %v6098_v60 = vpop.f32.mrf.mxu1  ;;  %v15608_v29 = vadd.f32 %v17131_v50, %v17130_v0  ;;  %v15611_v41 = vadd.f32 %v15271_v37, %v6331_v3  ;;  %17133 = vst [vmem:[#allocation33_spill] sm:$0xff] %v15613_v55  ;;  %v12353_v42 = vld [vmem:[#allocation4] ss:$12 sps:$4 sm:$0xff]  }
 0x375   : > { %11459 = vst [vmem:[#allocation5 + $0x30] sm:$0xff] %v11354_v21   ;;  %v15615_v51 = vpop.f32.mrf.mxu0  ;;  %v15620_v15 = vadd.f32 %v6251_v35, %v15323_v33  ;;  %v15623_v6 = vadd.f32 %v11958_v7, %v15334_v31  ;;  %v6675_v25 = vsel %vm15589_vm4, %v6414_v59, 0.0  ;;  %v15632_v50 = vadd.f32 %v15271_v37, %v6332_v32 }
 0x376   : > { %17132 = vst [vmem:[#allocation34_spill] sm:$0xff] %v15608_v29  ;;  %v6100_v10 = vpop.f32.mrf.mxu1  ;;  %v6676_v33 = vsel %vm15568_vm3, %v6415_v39, 0.0  ;;  %v17222_v61 = vld [vmem:[#allocation36_spill] sm:$0xff] }
 0x377   : > { %v15627_v56 = vpop.f32.mrf.mxu0  ;;  %v11363_v0 = vpack.c.bf16 %v6676_v33, %v6675_v25 }
 0x378   : > { %v6903_v19 = vld [vmem:[#allocation5 + $0x20] sm:$0xf]  ;;  %v6904_v12 = vld [vmem:[#allocation5 + $0x24] sm:$0xf]  ;;  %v15671_v40 = vld [vmem:[#allocation5 + $0x38] sm:$0x1] }
 0x379   : > { %v6937_v27 = vld [vmem:[#allocation5 + $0x20] sm:$0xf]  ;;  %6919 = vst [vmem:[#allocation4 + $0x30] sm:$0xf] %v6903_v19  ;;  %6920 = vst [vmem:[#allocation4 + $0x3c] sm:$0xf] %v6904_v12  ;;  %v11963_v46 = vpop.f32.mrf.mxu0 }
 0x37a   : > { %v6938_v14 = vld [vmem:[#allocation5 + $0x24] sm:$0xf]  ;;  %v7004_v18 = vshrl.u32 %v6937_v27, 16  ;;  %v7007_v63 = vshll.u32 %v6937_v27, 16  ;;  %v7185_v34 = vld [vmem:[#allocation5 + $0x20] sm:$0xe] }
 0x37b   : > { %v7013_v17 = vshll.u32 %v6938_v14, 16  ;;  %v7017_v3 = vshrl.u32 %v6938_v14, 16  ;;  %v7186_v4 = vld [vmem:[#allocation5 + $0x24] sm:$0xf]  ;;  %v10958_v2 = vrot.slane %v7185_v34, 9  ;;  %11461 = vst [vmem:[#allocation5 + $0x40] sm:$0xff] %v11363_v0   ;;  %v15636_v32 = vpop.f32.mrf.mxu0 }
 0x37c   : > { %v7006_v58 = vrot.slane %v7004_v18, 4  ;;  %v7009_v13 = vrot.slane %v7007_v63, 5  ;;  %v7243_v16 = vrot.slane %v7186_v4, 5  ;;  %v7398_v21 = vld [vmem:[#allocation5 + $0x20] sm:$0xf] }
 0x37d   : > { %v7015_v35 = vrot.slane %v7013_v17, 5  ;;  %v7019_v31 = vrot.slane %v7017_v3, 4  ;;  %v7399_v7 = vld [vmem:[#allocation5 + $0x24] sm:$0xf]  ;;  %v7431_v60 = vld [vmem:[#allocation5 + $0x20] sm:$0xf]  ;;  %v15651_v0 = vpop.f32.mrf.mxu0 }
 0x37e   : > { %7414 = vst [vmem:[#allocation4 + $0x18] sm:$0xf] %v7398_v21  ;;  %v7010_v59 = vor.u32 %v7009_v13, %v7006_v58  ;;  %v7244_v19 = vsel %vm12750_vm2, %v10958_v2, %v7243_v16  ;;  %v7245_v12 = vrot.slane %v7243_v16, 4  ;;  %v7432_v27 = vld [vmem:[#allocation5 + $0x24] sm:$0xf]  ;;  %v7477_v14 = vshrl.u32 %v7431_v60, 16  ;;  %v15644_v16 = vpop.f32.mrf.mxu1 }
 0x37f   : > { %v7679_v18 = vld [vmem:[#allocation5 + $0x20] sm:$0xe]  ;;  %7415 = vst [vmem:[#allocation4 + $0x24] sm:$0xf] %v7399_v7  ;;  %v7020_v39 = vor.u32 %v7019_v31, %v7015_v35  ;;  %v7480_v63 = vshll.u32 %v7431_v60, 16  ;;  %v7486_v34 = vshll.u32 %v7432_v27, 16 }
 0x380   : > { %v7490_v10 = vshrl.u32 %v7432_v27, 16  ;;  %v7680_v17 = vld [vmem:[#allocation5 + $0x24] sm:$0xf]  ;;  %7303 = vst [vmem:[#allocation4 + $0x38] sm:$0xf] %v7244_v19  ;;  %v7011_v3 = vrot.slane %v7010_v59, 4  ;;  %v7247_v4 = vsel %vm12750_vm2, %v7245_v12, %v7246_v44 }
 0x381   : > { %v7479_v2 = vrot.slane %v7477_v14, 4  ;;  %v10965_v25 = vrot.slane %v7679_v18, 9  ;;  %v8858_v58 = vld [vmem:[#allocation5 + $0x20] sm:$0xf]  ;;  %17135 = vst [vmem:[#allocation41_spill] sm:$0xff] %v15644_v16  ;;  %v15649_v21 = vld [vmem:[%s16940_s3 + $0xb8] sm:$0xff]   ;;  %v6105_v14 = vpop.f32.mrf.mxu1 }
 0x382   : > { %v15642_v13 = vld [vmem:[#allocation4 + $0x20] sm:$0xf]  ;;  %v7021_v33 = vrot.slane %v7020_v39, 4  ;;  %v7482_v31 = vrot.slane %v7480_v63, 5  ;;  %v7488_v7 = vrot.slane %v7486_v34, 5  ;;  %v7492_v60 = vrot.slane %v7490_v10, 4  ;;  %12004 = vmatprep.subr.bf16.mxu1 %v15649_v21 }
 0x383   : > { %17134 = vst [vmem:[#allocation40_spill] sm:$0xff] %v15642_v13  ;;  %v8859_v23 = vld [vmem:[#allocation5 + $0x24] sm:$0xf]  ;;  %7304 = vst [vmem:[#allocation4 + $0x44] sm:$0xf] %v7247_v4  ;;  %v7016_v44 = vsel %vm13159_vm5, %v7011_v3, %v7015_v35  ;;  %v7733_v46 = vrot.slane %v7680_v17, 5  ;;  %v15663_v17 = vpop.f32.mrf.mxu0 }
 0x384   : > { %17136 = vst [vmem:[#allocation39_spill] sm:$0xff] %v15651_v0  ;;  %v8883_v59 = vshrl.u32 %v8858_v58, 16  ;;  %v8886_v19 = vshll.u32 %v8858_v58, 16  ;;  %v6942_v12 = vld [vmem:[#allocation5 + $0x38] sm:$0x1]  ;;  %v7026_v18 = vsel %vm13159_vm5, %v7021_v33, %v15492_v8  ;;  %v7483_v39 = vor.u32 %v7482_v31, %v7479_v2  ;;  %17138 = vst [vmem:[#allocation44_spill] sm:$0xff] %v15663_v17  ;;  %v15673_v8 = vpop.f32.mrf.mxu1 }
 0x385   : > { %v15655_v27 = vld [vmem:[#allocation4 + $0x2c] sm:$0xf]  ;;  %v7493_v63 = vor.u32 %v7492_v60, %v7488_v7  ;;  %v8892_v34 = vshll.u32 %v8859_v23, 16  ;;  %7167 = vst [vmem:[#allocation4 + $0x34] sm:$0xf] %v7016_v44  ;;  %v7734_v3 = vsel %vm12750_vm2, %v10965_v25, %v7733_v46  ;;  %v7735_v4 = vrot.slane %v7733_v46, 4  ;;  %v11967_v30 = vpop.f32.mrf.mxu0 }
 0x386   : > { %17137 = vst [vmem:[#allocation43_spill] sm:$0xff] %v15655_v27  ;;  %v15661_v10 = vld [vmem:[#allocation5 + $0x38] sm:$0x1]  ;;  %v15667_v58 = vrot.slane %v8883_v59, 4  ;;  %v15669_v14 = vrot.slane %v8886_v19, 5  ;;  %17139 = vst [vmem:[#allocation42_spill] sm:$0xff] %v15673_v8 }
 0x387   : > { %v7436_v35 = vld [vmem:[#allocation5 + $0x38] sm:$0x1]  ;;  %7168 = vst [vmem:[#allocation4 + $0x40] sm:$0xf] %v7026_v18  ;;  %v7484_v2 = vrot.slane %v7483_v39, 4  ;;  %v7494_v33 = vrot.slane %v7493_v63, 4  ;;  %v7737_v25 = vsel %vm12750_vm2, %v7735_v4, %v7736_v11  ;;  %v6108_v39 = vpop.f32.mrf.mxu1 }
 0x388   : > { %v15675_v31 = vrot.slane %v8892_v34, 5  ;;  %v8896_v60 = vshrl.u32 %v8859_v23, 16  ;;  %v15677_v44 = vld [vmem:[#allocation5 + $0x38] sm:$0x1]  ;;  %7798 = vst [vmem:[#allocation4 + $0x20] sm:$0xf] %v7734_v3  ;;  %v15714_v39 = vadd.f32 %v15271_v37, %v15595_v36 }
 0x389   : > { %v7047_v46 = vshll.u32 %v6942_v12, 16  ;;  %v7520_v19 = vshll.u32 %v7436_v35, 16  ;;  %v15684_v18 = vld [vmem:[#allocation5 + $0x38] sm:$0x1]  ;;  %v7489_v63 = vsel %vm13159_vm5, %v7484_v2, %v7488_v7  ;;  %v7499_v23 = vsel %vm13159_vm5, %v7494_v33, %v15494_v1  ;;  %v6905_v34 = vld [vmem:[#allocation5 + $0x30] sm:$0xf]  ;;  %v15694_v12 = vpop.f32.mrf.mxu0  ;;  %v15710_v33 = vpop.f32.mrf.mxu1 }
 0x38a   : > { %v15691_v30 = vrot.slane %v8896_v60, 4  ;;  %v6906_v11 = vld [vmem:[#allocation5 + $0x34] sm:$0xf]  ;;  %7799 = vst [vmem:[#allocation4 + $0x2c] sm:$0xf] %v7737_v25  ;;  %17140 = vst [vmem:[#allocation46_spill] sm:$0xff] %v15694_v12 }
 0x38b   : > { %v15696_v35 = vrot.slane %v7047_v46, 5  ;;  %v15698_v3 = vrot.slane %v7520_v19, 5  ;;  %6921 = vst [vmem:[#allocation4 + $0x48] sm:$0xf] %v6905_v34  ;;  %6922 = vst [vmem:[#allocation4 + $0x54] sm:$0xf] %v6906_v11  ;;  %v15718_v34 = vadd.f32 %v15271_v37, %v15600_v47  ;;  %v15720_v5 = vpop.f32.mrf.mxu0  ;;  %v6113_v4 = vpop.f32.mrf.mxu1 }
 0x38c   : > { %v6940_v1 = vld [vmem:[#allocation5 + $0x30] sm:$0xf]  ;;  %7662 = vst [vmem:[#allocation4 + $0x1c] sm:$0xf] %v7489_v63  ;;  %7663 = vst [vmem:[#allocation4 + $0x28] sm:$0xf] %v7499_v23 }
 0x38d   : > { %17143 = vst [vmem:[#allocation47_spill] sm:$0xff] %v15710_v33  ;;  %v6941_v60 = vld [vmem:[#allocation5 + $0x34] sm:$0xf]  ;;  %v7028_v25 = vshrl.u32 %v6940_v1, 16  ;;  %v7031_v46 = vshll.u32 %v6940_v1, 16  ;;  %17144 = vst [vmem:[#allocation45_spill] sm:$0xff] %v15720_v5  ;;  %v15728_v37 = vpop.f32.mrf.mxu0  ;;  %v6114_v4 = vpop.f32.mrf.mxu1 }
 0x38e   : > { %v7188_v19 = vld [vmem:[#allocation5 + $0x30] sm:$0xe]  ;;  %v7037_v11 = vshll.u32 %v6941_v60, 16  ;;  %v7041_v7 = vshrl.u32 %v6941_v60, 16  ;;  %v7189_v63 = vld [vmem:[#allocation5 + $0x34] sm:$0xf] }
 0x38f   : > { %v10959_v23 = vrot.slane %v7188_v19, 9  ;;  %v7030_v1 = vrot.slane %v7028_v25, 4  ;;  %v7033_v59 = vrot.slane %v7031_v46, 5  ;;  %v7250_v57 = vrot.slane %v7189_v63, 5  ;;  %17146 = vst [vmem:[#allocation49_spill] sm:$0xff] %v15728_v37  ;;  %v17147_v27 = vld [vmem:[#allocation25_spill] sm:$0xff]  ;;  %v11971_v20 = vpop.f32.mrf.mxu0 }
 0x390   : > { %v17145_v36 = vmax.f32 %v15573_v22, 0.0  ;;  %v7039_v47 = vrot.slane %v7037_v11, 5  ;;  %v7043_v55 = vrot.slane %v7041_v7, 4  ;;  %v7400_v13 = vld [vmem:[#allocation5 + $0x30] sm:$0xf]  ;;  %v15733_v38 = vadd.f32 %v15620_v15, %v17147_v27  ;;  %v6116_v15 = vpop.f32.mrf.mxu1 }
 0x391   : > { %v7434_v60 = vld [vmem:[#allocation5 + $0x30] sm:$0xf]  ;;  %v7034_v25 = vor.u32 %v7033_v59, %v7030_v1  ;;  %v7251_v22 = vsel %vm12750_vm2, %v10959_v23, %v7250_v57  ;;  %v7252_v46 = vrot.slane %v7250_v57, 4  ;;  %v7435_v2 = vld [vmem:[#allocation5 + $0x34] sm:$0xf]  ;;  %v17149_v59 = vrot.slane %v15661_v10, 5 }
 0x392   : > { %v6677_v9 = vsel %vm15706_vm6, %v17145_v36, 0.0  ;;  %v7501_v63 = vshrl.u32 %v7434_v60, 16  ;;  %v7682_v36 = vld [vmem:[#allocation5 + $0x30] sm:$0xe]  ;;  %v7044_v11 = vor.u32 %v7043_v55, %v7039_v47  ;;  %v7504_v7 = vshll.u32 %v7434_v60, 16 }
 0x393   : > { %v11367_v19 = vpack.c.bf16 %v17102_v43, %v6677_v9  ;;  %v7510_v45 = vshll.u32 %v7435_v2, 16  ;;  %v7514_v49 = vshrl.u32 %v7435_v2, 16  ;;  %v7683_v54 = vld [vmem:[#allocation5 + $0x34] sm:$0xf]  ;;  %7305 = vst [vmem:[#allocation4 + $0x50] sm:$0xf] %v7251_v22  ;;  %v7254_v57 = vsel %vm12750_vm2, %v7252_v46, %v17149_v59 }
 0x394   : > { %v15737_v9 = vld [vmem:[#allocation4 + $0x30] sm:$0xff]  ;;  %v7035_v27 = vrot.slane %v7034_v25, 4  ;;  %v7503_v23 = vrot.slane %v7501_v63, 4  ;;  %v10966_v1 = vrot.slane %v7682_v36, 9  ;;  %v7045_v20 = vrot.slane %v7044_v11, 4 }
 0x395   : > { %11462 = vst [vmem:[#allocation5 + $0x48] sm:$0xff] %v11367_v19   ;;  %17148 = vst [vmem:[#allocation48_spill] sm:$0xff] %v15737_v9  ;;  %v8861_v4 = vld [vmem:[#allocation5 + $0x30] sm:$0xf]  ;;  %v7401_v55 = vld [vmem:[#allocation5 + $0x34] sm:$0xf] }
 0x396   : > { %7416 = vst [vmem:[#allocation4 + $0x30] sm:$0xf] %v7400_v13  ;;  %v7506_v60 = vrot.slane %v7504_v7, 5  ;;  %v7512_v2 = vrot.slane %v7510_v45, 5  ;;  %v7516_v5 = vrot.slane %v7514_v49, 4  ;;  %v7040_v19 = vsel %vm13159_vm5, %v7035_v27, %v7039_v47  ;;  %v15748_v49 = vld [vmem:[#allocation4 + $0x3c] sm:$0xff] }
 0x397   : > { %v8862_v22 = vld [vmem:[#allocation5 + $0x34] sm:$0xf]  ;;  %7306 = vst [vmem:[#allocation4 + $0x5c] sm:$0xf] %v7254_v57  ;;  %v7740_v25 = vrot.slane %v7683_v54, 5  ;;  %v8907_v15 = vshrl.u32 %v8861_v4, 16  ;;  %v7050_v46 = vsel %vm13159_vm5, %v7045_v20, %v15696_v35 }
 0x398   : > { %v8910_v10 = vshll.u32 %v8861_v4, 16  ;;  %v9109_v9 = vld [vmem:[#allocation5 + $0x30] sm:$0xe]  ;;  %v7507_v63 = vor.u32 %v7506_v60, %v7503_v23  ;;  %v7517_v13 = vor.u32 %v7516_v5, %v7512_v2  ;;  %v8916_v36 = vshll.u32 %v8862_v22, 16  ;;  %v9110_v11 = vld [vmem:[#allocation5 + $0x34] sm:$0xf] }
 0x399   : > { %7169 = vst [vmem:[#allocation4 + $0x4c] sm:$0xf] %v7040_v19  ;;  %v6907_v45 = vld [vmem:[#allocation5 + $0x40] sm:$0xf]  ;;  %17150 = vst [vmem:[#allocation9_spill] sm:$0xff] %v15748_v49  ;;  %v17151_v7 = vshll.u32 %v15677_v44, 16  ;;  %v15756_v54 = vsel %vm12750_vm2, %v10966_v1, %v7740_v25 }
 0x39a   : > { %v7742_v47 = vrot.slane %v7740_v25, 4  ;;  %7170 = vst [vmem:[#allocation4 + $0x58] sm:$0xf] %v7050_v46  ;;  %v6908_v27 = vld [vmem:[#allocation5 + $0x44] sm:$0xf]  ;;  %v7508_v5 = vrot.slane %v7507_v63, 4 }
 0x39b   : > { %v15752_v59 = vrot.slane %v17151_v7, 5  ;;  %6923 = vst [vmem:[#allocation4 + $0x60] sm:$0xf] %v6907_v45  ;;  %7417 = vst [vmem:[#allocation4 + $0x3c] sm:$0xf] %v7401_v55  ;;  %v7518_v57 = vrot.slane %v7517_v13, 4 }
 0x39c   : > { %v15760_v23 = vrot.slane %v8907_v15, 4  ;;  %v15762_v4 = vrot.slane %v8910_v10, 5  ;;  %6924 = vst [vmem:[#allocation4 + $0x6c] sm:$0xf] %v6908_v27  ;;  %v6943_v44 = vld [vmem:[#allocation5 + $0x40] sm:$0xf]  ;;  %v7513_v55 = vsel %vm13159_vm5, %v7508_v5, %v7512_v2 }
 0x39d   : > { %v17152_v20 = vld [vmem:[#allocation21_spill] sm:$0xff]  ;;  %v8920_v1 = vshrl.u32 %v8862_v22, 16  ;;  %v11117_v60 = vrot.slane %v9109_v9, 9  ;;  %v9163_v19 = vrot.slane %v9110_v11, 5  ;;  %v7052_v46 = vshrl.u32 %v6943_v44, 16 }
 0x39e   : > { %vm6466_vm7 = vcmp.ge.s32.totalorder %v17152_v20, 0  ;;  %vm6476_vm8 = vcmp.lt.s32.totalorder %v17152_v20, 16  ;;  %v6944_v25 = vld [vmem:[#allocation5 + $0x44] sm:$0xf]  ;;  %v7523_v15 = vsel %vm13159_vm5, %v7518_v57, %v15698_v3  ;;  %v15771_v10 = vrot.slane %v8916_v36, 5 }
 0x39f   : > { %v7055_v63 = vshll.u32 %v6943_v44, 16  ;;  %v7191_v13 = vld [vmem:[#allocation5 + $0x40] sm:$0xe]  ;;  %v7192_v45 = vld [vmem:[#allocation5 + $0x44] sm:$0xf]  ;;  %v17153_v7 = vrot.slane %v15671_v40, 5  ;;  %v15783_v57 = vsel %vm12750_vm2, %v11117_v60, %v9163_v19  ;;  %vm15814_vm13 = vmand %vm6466_vm7, %vm6476_vm8 }
 0x3a0   : > { %v9165_v22 = vrot.slane %v9163_v19, 4  ;;  %v7054_v11 = vrot.slane %v7052_v46, 4  ;;  %v7061_v27 = vshll.u32 %v6944_v25, 16  ;;  %7664 = vst [vmem:[#allocation4 + $0x34] sm:$0xf] %v7513_v55  ;;  %v7065_v5 = vshrl.u32 %v6944_v25, 16  ;;  %vm15834_vm14 = vmand %vm15814_vm13, %vm6491_vm11 }
 0x3a1   : > { %v15777_v9 = vsel %vm12750_vm2, %v7742_v47, %v17153_v7  ;;  %7665 = vst [vmem:[#allocation4 + $0x40] sm:$0xf] %v7523_v15  ;;  %v7057_v2 = vrot.slane %v7055_v63, 5  ;;  %v10960_v35 = vrot.slane %v7191_v13, 9  ;;  %v7257_v3 = vrot.slane %v7192_v45, 5  ;;  %v15801_v33 = vld [vmem:[#allocation4 + $0x48] sm:$0xff]  ;;  %vm15871_vm15 = vmand %vm15814_vm13, %vm6537_vm9 }
 0x3a2   : > { %v15779_v36 = vrot.slane %v8920_v1, 4  ;;  %v17154_v40 = vrot.slane %v15684_v18, 5  ;;  %v7063_v44 = vrot.slane %v7061_v27, 5  ;;  %v7437_v46 = vld [vmem:[#allocation5 + $0x40] sm:$0xf]  ;;  %v7067_v63 = vrot.slane %v7065_v5, 4 }
 0x3a3   : > { %v7438_v55 = vld [vmem:[#allocation5 + $0x44] sm:$0xf]  ;;  %v7058_v15 = vor.u32 %v7057_v2, %v7054_v11  ;;  %v7258_v25 = vsel %vm12750_vm2, %v10960_v35, %v7257_v3  ;;  %v7402_v1 = vld [vmem:[#allocation5 + $0x40] sm:$0xf]  ;;  %v7525_v18 = vshrl.u32 %v7437_v46, 16  ;;  %v7528_v19 = vshll.u32 %v7437_v46, 16 }
 0x3a4   : > { %v15789_v47 = vsel %vm12750_vm2, %v9165_v22, %v17154_v40  ;;  %v15793_v13 = vld [vmem:[#allocation5 + $0x40] sm:$0xe]  ;;  %v15795_v45 = vld [vmem:[#allocation5 + $0x44] sm:$0xf]  ;;  %v7534_v7 = vshll.u32 %v7438_v55, 16  ;;  %v7538_v22 = vshrl.u32 %v7438_v55, 16  ;;  %v7068_v49 = vor.u32 %v7067_v63, %v7063_v44 }
 0x3a5   : > { %v8864_v40 = vld [vmem:[#allocation5 + $0x40] sm:$0xf]  ;;  %7307 = vst [vmem:[#allocation4 + $0x68] sm:$0xf] %v7258_v25  ;;  %v7059_v27 = vrot.slane %v7058_v15, 4  ;;  %v7259_v11 = vrot.slane %v7257_v3, 4 }
 0x3a6   : > { %v8865_v5 = vld [vmem:[#allocation5 + $0x44] sm:$0xf]  ;;  %v17155_v35 = vld [vmem:[#allocation35_spill] sm:$0xff]  ;;  %17156 = vst [vmem:[#allocation10_spill] sm:$0xff] %v15801_v33  ;;  %v7527_v8 = vrot.slane %v7525_v18, 4  ;;  %v7530_v60 = vrot.slane %v7528_v19, 5 }
 0x3a7   : > { %vm6467_vm10 = vcmp.ge.s32.totalorder %v17155_v35, 0  ;;  %vm6477_vm12 = vcmp.lt.s32.totalorder %v17155_v35, 16  ;;  %v7536_v37 = vrot.slane %v7534_v7, 5  ;;  %v7540_v46 = vrot.slane %v7538_v22, 4  ;;  %v6945_v16 = vld [vmem:[#allocation5 + $0x48] sm:$0x1] }
 0x3a8   : > { %7418 = vst [vmem:[#allocation4 + $0x48] sm:$0xf] %v7402_v1  ;;  %v7064_v55 = vsel %vm13159_vm5, %v7059_v27, %v7063_v44  ;;  %v7069_v15 = vrot.slane %v7068_v49, 4  ;;  %v7193_v63 = vld [vmem:[#allocation5 + $0x48] sm:$0x1]  ;;  %v7531_v0 = vor.u32 %v7530_v60, %v7527_v8  ;;  %v8931_v33 = vshrl.u32 %v8864_v40, 16  ;;  %vm15893_vm0 = vmand %vm6467_vm10, %vm6477_vm12 }
 0x3a9   : > { %v7439_v25 = vld [vmem:[#allocation5 + $0x48] sm:$0x1]  ;;  %v7541_v28 = vor.u32 %v7540_v46, %v7536_v37  ;;  %v8934_v18 = vshll.u32 %v8864_v40, 16  ;;  %7171 = vst [vmem:[#allocation4 + $0x64] sm:$0xf] %v7064_v55  ;;  %v8940_v44 = vshll.u32 %v8865_v5, 16  ;;  %vm15950_vm1 = vmand %vm15893_vm0, %vm6491_vm11 }
 0x3aa   : > { %v15808_v19 = vld [vmem:[#allocation5 + $0x48] sm:$0x1]  ;;  %v8944_v1 = vshrl.u32 %v8865_v5, 16  ;;  %v7071_v22 = vshll.u32 %v6945_v16, 16  ;;  %v7260_v27 = vrot.slane %v7193_v63, 5  ;;  %v7532_v8 = vrot.slane %v7531_v0, 4  ;;  %vm16030_vm3 = vmand %vm15893_vm0, %vm6537_vm9 }
 0x3ab   : > { %v8866_v7 = vld [vmem:[#allocation5 + $0x48] sm:$0x1]  ;;  %v7542_v60 = vrot.slane %v7541_v28, 4  ;;  %v17159_v40 = vrot.slane %v15795_v45, 5  ;;  %v15822_v55 = vrot.slane %v8931_v33, 4  ;;  %v15824_v29 = vrot.slane %v8934_v18, 5 }
 0x3ac   : > { %v12350_v2 = vld [vmem:[#allocation4 + $0x8] ss:$12 sps:$4 sm:$0xff]   ;;  %v7403_v3 = vld [vmem:[#allocation5 + $0x44] sm:$0xf]  ;;  %v15826_v20 = vrot.slane %v8940_v44, 5  ;;  %v7073_v17 = vrot.slane %v7071_v22, 5  ;;  %v7261_v5 = vsel %vm12750_vm2, %v7259_v11, %v7260_v27  ;;  %v7537_v0 = vsel %vm13159_vm5, %v7532_v8, %v7536_v37 }
 0x3ad   : > { %v15820_v46 = vrot.slane %v17159_v40, 4  ;;  %v9106_v16 = vld [vmem:[#allocation5 + $0x20] sm:$0xe]  ;;  %v15840_v33 = vrot.slane %v8944_v1, 4  ;;  %v7544_v63 = vshll.u32 %v7439_v25, 16  ;;  %v8950_v18 = vshll.u32 %v8866_v7, 16  ;;  %11988 = vmatprep.mubr.bf16.mxu1 %v12350_v2 }
 0x3ae   : > { %7308 = vst [vmem:[#allocation4 + $0x74] sm:$0xf] %v7261_v5  ;;  %v9107_v44 = vld [vmem:[#allocation5 + $0x24] sm:$0xf]  ;;  %v12367_v11 = vld [vmem:[%s16940_s3 + $0x38] sm:$0xff]   ;;  %v7074_v22 = vsel %vm13159_vm5, %v7069_v15, %v7073_v17  ;;  %v7750_v27 = vrot.slane %v15808_v19, 5 }
 0x3af   : > { %v11116_v40 = vrot.slane %v9106_v16, 9  ;;  %v9156_v12 = vrot.slane %v9107_v44, 5  ;;  %v15848_v37 = vld [vmem:[#allocation4 + $0x54] sm:$0xff]  ;;  %7666 = vst [vmem:[#allocation4 + $0x4c] sm:$0xf] %v7537_v0  ;;  %v7546_v25 = vrot.slane %v7544_v63, 5 }
 0x3b0   : > { %v15850_v7 = vrot.slane %v8950_v18, 5  ;;  %7172 = vst [vmem:[#allocation4 + $0x70] sm:$0xf] %v7074_v22  ;;  %v17162_v2 = vmax.f32 %v15611_v41, 0.0  ;;  %v6419_v8 = vmax.f32 %v15632_v50, 0.0  ;;  %v15860_v15 = vld [vmem:[%s16940_s3 + $0x70] sm:$0xff]   ;;  %v17163_v41 = vor.u32 %v15669_v14, %v15667_v58 }
 0x3b1   : > { %v12355_v17 = vld [vmem:[#allocation4 + $0x4] ss:$12 sps:$4 sm:$0xff]   ;;  %7419 = vst [vmem:[#allocation4 + $0x54] sm:$0xf] %v7403_v3  ;;  %v9157_v5 = vsel %vm12750_vm2, %v11116_v40, %v9156_v12  ;;  %v9158_v16 = vrot.slane %v9156_v12, 4  ;;  %v8923_v3 = vor.u32 %v15779_v36, %v15771_v10  ;;  %v7547_v12 = vsel %vm13159_vm5, %v7542_v60, %v7546_v25  ;;  %v15885_v22 = vld [vmem:[#allocation4 + $0x18] sm:$0xff] }
 0x3b2   : > { %v6679_v1 = vsel %vm15834_vm14, %v17162_v2, 0.0  ;;  %v8826_v0 = vld [vmem:[#allocation5 + $0x20] sm:$0xf]  ;;  %v8827_v63 = vld [vmem:[#allocation5 + $0x24] sm:$0xf]  ;;  %v8890_v28 = vrot.slane %v17163_v41, 4  ;;  %8197 = vmatprep.mubr.bf16.mxu0 %v12355_v17  ;;  %v17166_v58 = vor.u32 %v15691_v30, %v15675_v31  ;;  %v8937_v41 = vor.u32 %v15824_v29, %v15822_v55 }
 0x3b3   : > { %9226 = vst [vmem:[#allocation4 + $0x8] sm:$0xf] %v9157_v5  ;;  %v6680_v18 = vsel %vm15814_vm13, %v6419_v8, 0.0  ;;  %8842 = vst [vmem:[#allocation4] sm:$0xf] %v8826_v0  ;;  %v6420_v44 = vmax.f32 %v15714_v39, 0.0  ;;  %8198 = vmatmul.mubr.bf16.vlgmr.msra.gmra.mxu0 %v12353_v42  ;;  %v8947_v29 = vor.u32 %v15840_v33, %v15826_v20 }
 0x3b4   : > { %8843 = vst [vmem:[#allocation4 + $0xc] sm:$0xf] %v8827_v63  ;;  %v8900_v14 = vrot.slane %v17166_v58, 4  ;;  %v15887_v40 = vld [vmem:[#allocation4 + $0x24] sm:$0xff]  ;;  %v15900_v49 = vld [vmem:[%s16940_s3 + $0x30] sm:$0xff]   ;;  %v17169_v39 = vrot.slane %v15795_v45, 5  ;;  %v11372_v8 = vpack.c.bf16 %v6680_v18, %v6679_v1  ;;  %v8895_v17 = vsel %vm13159_vm5, %v8890_v28, %v15675_v31  ;;  %11645 = vmatpush3.bf16.msra.mxu0 %v12367_v11 }
 0x3b5   : > { %v15905_v30 = vld [vmem:[%s16940_s3 + $0xb0] sm:$0xff]   ;;  %v17170_v60 = vrot.slane %v15793_v13, 9  ;;  %v17171_v25 = vrot.slane %v15559_v48, 5  ;;  %v12357_v5 = vld [vmem:[#allocation4 + $0x20] ss:$12 sps:$4 sm:$0xff]   ;;  %v6681_v45 = vsel %vm15871_vm15, %v6420_v44, 0.0  ;;  %v17172_v1 = vor.u32 %v15762_v4, %v15760_v23  ;;  %11646 = vmatprep.subr.bf16.mxu0 %v15860_v15 }
 0x3b6   : > { %v12358_v0 = vld [vmem:[#allocation4 + $0x1c] ss:$12 sps:$4 sm:$0xff]   ;;  %7667 = vst [vmem:[#allocation4 + $0x58] sm:$0xf] %v7547_v12  ;;  %v8905_v48 = vsel %vm13159_vm5, %v8900_v14, %v15554_v53  ;;  %9090 = vst [vmem:[#allocation4 + $0x4] sm:$0xf] %v8895_v17  ;;  %11989 = vmatmul.mubr.bf16.vlgmr.msra.gmra.mxu1 %v12357_v5 }
 0x3b7   : > { %v15913_v35 = vsel %vm12750_vm2, %v17170_v60, %v17169_v39  ;;  %v9160_v2 = vsel %vm12750_vm2, %v9158_v16, %v17171_v25  ;;  %v15925_v13 = vld [vmem:[%s16940_s3 + $0x68] sm:$0xff]   ;;  %9228 = vst [vmem:[#allocation4 + $0x20] sm:$0xf] %v15783_v57  ;;  %9229 = vst [vmem:[#allocation4 + $0x2c] sm:$0xf] %v15789_v47  ;;  %v8914_v16 = vrot.slane %v17172_v1, 4  ;;  %v11376_v57 = vpack.c.bf16 %v17102_v43, %v6681_v45 }
 0x3b8   : > { %9227 = vst [vmem:[#allocation4 + $0x14] sm:$0xf] %v9160_v2  ;;  %v8828_v42 = vld [vmem:[#allocation5 + $0x30] sm:$0xf]  ;;  %v8829_v31 = vld [vmem:[#allocation5 + $0x34] sm:$0xf]  ;;  %8205 = vmatprep.mubr.bf16.mxu0 %v12358_v0  ;;  %12005 = vmatpush3.bf16.msra.mxu1 %v15649_v21 }
 0x3b9   : > { %v15940_v63 = vld [vmem:[%s16939_s2] ss:$0 sm:$0xff]  ;;  %11463 = vst [vmem:[#allocation5 + $0x50] sm:$0xff] %v11372_v8   ;;  %9091 = vst [vmem:[#allocation4 + $0x10] sm:$0xf] %v8905_v48  ;;  %v8924_v47 = vrot.slane %v8923_v3, 4  ;;  %v8919_v28 = vsel %vm13159_vm5, %v8914_v16, %v15771_v10  ;;  %11647 = vmatpush3.bf16.msra.mxu0 %v15900_v49  ;;  %12006 = vmatprep.subr.bf16.mxu1 %v15905_v30 }
 0x3ba   : > { %v6383_v53 = vadd.f32 %v15940_v63, %v15733_v38  ;;  %8844 = vst [vmem:[#allocation4 + $0x18] sm:$0xf] %v8828_v42  ;;  %8845 = vst [vmem:[#allocation4 + $0x24] sm:$0xf] %v8829_v31  ;;  %v6422_v23 = vmax.f32 %v15718_v34, 0.0  ;;  %v7751_v34 = vsel %vm12750_vm2, %v15820_v46, %v7750_v27  ;;  %v17175_v55 = vld [vmem:[#allocation11_spill] sm:$0xff]  ;;  %11648 = vmatprep.subr.bf16.mxu0 %v15925_v13 }
 0x3bb   : > { %v15954_v38 = vld [vmem:[#allocation4 + $0x38] sm:$0xf]  ;;  %v15956_v11 = vld [vmem:[#allocation4 + $0x44] sm:$0xf]  ;;  %v9112_v50 = vld [vmem:[#allocation5 + $0x40] sm:$0xe]  ;;  %v6337_v19 = vadd.f32 %v15623_v6, %v17175_v55  ;;  %v8929_v10 = vsel %vm13159_vm5, %v8924_v47, %v15752_v59 }
 0x3bc   : > { %7800 = vst [vmem:[#allocation4 + $0x38] sm:$0xf] %v15756_v54  ;;  %7801 = vst [vmem:[#allocation4 + $0x44] sm:$0xf] %v15777_v9  ;;  %v9113_v3 = vld [vmem:[#allocation5 + $0x44] sm:$0xf]  ;;  %v11023_v54 = vcombine.low %v15885_v22, %v15887_v40  ;;  %12007 = vmatpush3.bf16.msra.mxu1 %v15905_v30 }
 0x3bd   : > { %v9114_v12 = vld [vmem:[#allocation5 + $0x48] sm:$0x1]  ;;  %11464 = vst [vmem:[#allocation5 + $0x58] sm:$0xff] %v11376_v57   ;;  %9092 = vst [vmem:[#allocation4 + $0x1c] sm:$0xf] %v8919_v28  ;;  %v11118_v9 = vrot.slane %v9112_v50, 9  ;;  %v6384_v44 = vadd.f32 %v15940_v63, %v6337_v19 }
 0x3be   : > { %v9170_v46 = vrot.slane %v9113_v3, 5  ;;  %v15980_v27 = vld [vmem:[#allocation4 + $0x30] sm:$0xff]  ;;  %v15982_v18 = vld [vmem:[#allocation4 + $0x3c] sm:$0xff]  ;;  %v12374_v6 = vld [vmem:[%s16940_s3 + $0x28] sm:$0xff]   ;;  %9093 = vst [vmem:[#allocation4 + $0x28] sm:$0xf] %v8929_v10  ;;  %8206 = vmatmul.mubr.bf16.gmra.mxu0 %v11023_v54 }
 0x3bf   : > { %v12361_v33 = vld [vmem:[#allocation4 + $0x34] ss:$12 sps:$4 sm:$0xff]   ;;  %v9173_v15 = vrot.slane %v9114_v12, 5  ;;  %v6423_v59 = vmax.f32 %v6383_v53, 0.0  ;;  %v8831_v14 = vld [vmem:[#allocation5 + $0x44] sm:$0xf]  ;;  %11649 = vmatpush3.bf16.msra.mxu0 %v12374_v6 }
 0x3c0   : > { %v8830_v58 = vld [vmem:[#allocation5 + $0x40] sm:$0xf]  ;;  %v17176_v22 = vld [vmem:[#allocation24_spill] sm:$0xff]  ;;  %v15999_v21 = vld [vmem:[%s16940_s3 + $0xa8] sm:$0xff]   ;;  %v6683_v60 = vsel %vm15950_vm1, %v6422_v23, 0.0  ;;  %v9172_v25 = vrot.slane %v9170_v46, 4  ;;  %v16041_v4 = vsel %vm12750_vm2, %v11118_v9, %v9170_v46  ;;  %8213 = vmatprep.mubr.bf16.mxu0 %v12361_v33 }
 0x3c1   : > { %v6265_v40 = vadd.f32 %v15627_v56, %v17176_v22  ;;  %v12378_v39 = vld [vmem:[%s16940_s3 + $0x60] sm:$0xff]   ;;  %8846 = vst [vmem:[#allocation4 + $0x30] sm:$0xf] %v8830_v58  ;;  %8847 = vst [vmem:[#allocation4 + $0x3c] sm:$0xf] %v8831_v14  ;;  %v8938_v56 = vrot.slane %v8937_v41, 4  ;;  %12008 = vmatprep.subr.bf16.mxu1 %v15999_v21 }
 0x3c2   : > { %v8948_v2 = vrot.slane %v8947_v29, 4  ;;  %v16003_v49 = vld [vmem:[#allocation4 + $0x50] sm:$0xf]  ;;  %v6684_v8 = vsel %vm15893_vm0, %v6423_v59, 0.0  ;;  %v6424_v17 = vmax.f32 %v6384_v44, 0.0  ;;  %v16011_v0 = vld [vmem:[#allocation4 + $0x48] sm:$0xff]  ;;  %v16045_v36 = vsel %vm12750_vm2, %v9172_v25, %v9173_v15  ;;  %11650 = vmatprep.subr.bf16.mxu0 %v12378_v39  ;;  %12009 = vmatpush3.bf16.msra.mxu1 %v15999_v21 }
 0x3c3   : > { %v16008_v5 = vld [vmem:[#allocation4 + $0x5c] sm:$0xf]  ;;  %7802 = vst [vmem:[#allocation4 + $0x50] sm:$0xf] %v15913_v35  ;;  %v16013_v48 = vld [vmem:[#allocation4 + $0x54] sm:$0xff]  ;;  %v17177_v45 = vld [vmem:[#allocation13_spill] sm:$0xff]  ;;  %v11381_v16 = vpack.c.bf16 %v6684_v8, %v6683_v60  ;;  %v8943_v13 = vsel %vm13159_vm5, %v8938_v56, %v15826_v20  ;;  %v11026_v35 = vcombine.low %v15980_v27, %v15982_v18 }
 0x3c4   : > { %v6339_v42 = vadd.f32 %v6265_v40, %v17177_v45  ;;  %v17178_v31 = vld [vmem:[#allocation26_spill] sm:$0xff]  ;;  %v8953_v53 = vsel %vm13159_vm5, %v8948_v2, %v15850_v7  ;;  %7803 = vst [vmem:[#allocation4 + $0x5c] sm:$0xf] %v7751_v34  ;;  %v12379_v20 = vld [vmem:[%s16940_s3 + $0x20] sm:$0xff]   ;;  %v6909_v47 = vld [vmem:[#allocation5 + $0x50] sm:$0xf] }
 0x3c5   : > { %v6268_v1 = vadd.f32 %v15636_v32, %v17178_v31  ;;  %v16034_v32 = vld [vmem:[#allocation4 + $0x60] sm:$0xff]  ;;  %v6910_v7 = vld [vmem:[#allocation5 + $0x54] sm:$0xf]  ;;  %v6946_v23 = vld [vmem:[#allocation5 + $0x50] sm:$0xf]  ;;  %11465 = vst [vmem:[#allocation5 + $0x60] sm:$0xff] %v11381_v16   ;;  %11651 = vmatpush3.bf16.msra.mxu0 %v12379_v20 }
 0x3c6   : > { %9094 = vst [vmem:[#allocation4 + $0x34] sm:$0xf] %v8943_v13  ;;  %9095 = vst [vmem:[#allocation4 + $0x40] sm:$0xf] %v8953_v53  ;;  %v17181_v34 = vld [vmem:[#allocation37_spill] sm:$0xff]  ;;  %v16052_v50 = vld [vmem:[#allocation4 + $0x6c] sm:$0xff]  ;;  %v16072_v8 = vadd.f32 %v15940_v63, %v6339_v42  ;;  %8214 = vmatmul.mubr.bf16.gmra.mxu0 %v11026_v35 }
 0x3c7   : > { %v16048_v41 = vadd.f32 %v6268_v1, %v15604_v62  ;;  %v6273_v28 = vadd.f32 %v15615_v51, %v17181_v34  ;;  %v12381_v3 = vld [vmem:[%s16940_s3 + $0x58] sm:$0xff]   ;;  %6925 = vst [vmem:[#allocation4 + $0x78] sm:$0xf] %v6909_v47  ;;  %6926 = vst [vmem:[#allocation4 + $0x84] sm:$0xf] %v6910_v7  ;;  %v7076_v29 = vshrl.u32 %v6946_v23, 16  ;;  %v11029_v62 = vcombine.low %v16011_v0, %v16013_v48 }
 0x3c8   : > { %v6947_v12 = vld [vmem:[#allocation5 + $0x54] sm:$0xf]  ;;  %v7079_v55 = vshll.u32 %v6946_v23, 16  ;;  %v7194_v19 = vld [vmem:[#allocation5 + $0x50] sm:$0xe]  ;;  %v17182_v10 = vld [vmem:[#allocation29_spill] sm:$0xff]  ;;  %11652 = vmatprep.subr.bf16.mxu0 %v12381_v3 }
 0x3c9   : > { %v17183_v54 = vld [vmem:[#allocation46_spill] sm:$0xff]  ;;  %v7085_v51 = vshll.u32 %v6947_v12, 16  ;;  %v7089_v46 = vshrl.u32 %v6947_v12, 16  ;;  %v7195_v33 = vld [vmem:[#allocation5 + $0x54] sm:$0xf]  ;;  %v10961_v15 = vrot.slane %v7194_v19, 9 }
 0x3ca   : > { %v16061_v9 = vadd.f32 %v17183_v54, %v17182_v10  ;;  %v6685_v59 = vsel %vm16030_vm3, %v6424_v17, 0.0  ;;  %v12364_v58 = vld [vmem:[#allocation4 + $0x4c] ss:$12 sps:$4 sm:$0xff]   ;;  %v7078_v14 = vrot.slane %v7076_v29, 4  ;;  %v7081_v44 = vrot.slane %v7079_v55, 5  ;;  %v12388_v45 = vld [vmem:[%s16940_s3 + $0x50] sm:$0xff]  }
 0x3cb   : > { %v7264_v22 = vrot.slane %v7195_v33, 5  ;;  %v7404_v40 = vld [vmem:[#allocation5 + $0x50] sm:$0xf]  ;;  %v11385_v60 = vpack.c.bf16 %v17102_v43, %v6685_v59  ;;  %v12382_v30 = vld [vmem:[%s16940_s3 + $0x18] sm:$0xff]   ;;  %v7087_v6 = vrot.slane %v7085_v51, 5  ;;  %v7091_v25 = vrot.slane %v7089_v46, 4  ;;  %8221 = vmatprep.mubr.bf16.mxu0 %v12364_v58 }
 0x3cc   : > { %v7405_v56 = vld [vmem:[#allocation5 + $0x54] sm:$0xf]  ;;  %v7440_v2 = vld [vmem:[#allocation5 + $0x50] sm:$0xf]  ;;  %v17184_v39 = vld [vmem:[#allocation14_spill] sm:$0xff]  ;;  %v7082_v31 = vor.u32 %v7081_v44, %v7078_v14  ;;  %11653 = vmatpush3.bf16.msra.mxu0 %v12382_v30 }
 0x3cd   : > { %v16075_v17 = vadd.f32 %v6273_v28, %v17184_v39  ;;  %7420 = vst [vmem:[#allocation4 + $0x60] sm:$0xf] %v7404_v40  ;;  %v7265_v1 = vsel %vm12750_vm2, %v10961_v15, %v7264_v22  ;;  %v16082_v16 = vrot.slane %v7264_v22, 4  ;;  %v7441_v13 = vld [vmem:[#allocation5 + $0x54] sm:$0xf]  ;;  %v7549_v53 = vshrl.u32 %v7440_v2, 16  ;;  %11654 = vmatprep.subr.bf16.mxu0 %v12388_v45 }
 0x3ce   : > { %v7688_v57 = vld [vmem:[#allocation5 + $0x50] sm:$0xe]  ;;  %11466 = vst [vmem:[#allocation5 + $0x68] sm:$0xff] %v11385_v60   ;;  %7421 = vst [vmem:[#allocation4 + $0x6c] sm:$0xf] %v7405_v56  ;;  %v7092_v42 = vor.u32 %v7091_v25, %v7087_v6  ;;  %v7552_v47 = vshll.u32 %v7440_v2, 16  ;;  %8222 = vmatmul.mubr.bf16.gmra.mxu0 %v11029_v62 }
 0x3cf   : > { %v7558_v7 = vshll.u32 %v7441_v13, 16  ;;  %v7562_v23 = vshrl.u32 %v7441_v13, 16  ;;  %v7689_v34 = vld [vmem:[#allocation5 + $0x54] sm:$0xf]  ;;  %7309 = vst [vmem:[#allocation4 + $0x80] sm:$0xf] %v7265_v1 }
 0x3d0   : > { %v12390_v28 = vld [vmem:[%s16940_s3 + $0xa0] sm:$0xff]   ;;  %v7083_v12 = vrot.slane %v7082_v31, 4  ;;  %v7551_v29 = vrot.slane %v7549_v53, 4  ;;  %v10968_v55 = vrot.slane %v7688_v57, 9  ;;  %v7754_v19 = vrot.slane %v7689_v34, 5  ;;  %v12389_v20 = vld [vmem:[%s16940_s3 + $0x10] sm:$0xff]  }
 0x3d1   : > { %v8867_v10 = vld [vmem:[#allocation5 + $0x50] sm:$0xf]  ;;  %v16091_v21 = vld [vmem:[#allocation4 + $0x68] sm:$0xf]  ;;  %v16096_v3 = vrot.slane %v7092_v42, 4  ;;  %v7554_v54 = vrot.slane %v7552_v47, 5  ;;  %12010 = vmatprep.subr.bf16.mxu1 %v12390_v28  ;;  %11655 = vmatpush3.bf16.msra.mxu0 %v12389_v20 }
 0x3d2   : > { %v7560_v51 = vrot.slane %v7558_v7, 5  ;;  %v7564_v46 = vrot.slane %v7562_v23, 4  ;;  %v8868_v33 = vld [vmem:[#allocation5 + $0x54] sm:$0xf]  ;;  %v7088_v15 = vsel %vm13159_vm5, %v7083_v12, %v7087_v6  ;;  %v7755_v27 = vsel %vm12750_vm2, %v10968_v55, %v7754_v19  ;;  %v9115_v59 = vld [vmem:[#allocation5 + $0x50] sm:$0xe]  ;;  %12011 = vmatpush3.bf16.msra.mxu1 %v12390_v28 }
 0x3d3   : > { %v7756_v18 = vrot.slane %v7754_v19, 4  ;;  %v8955_v35 = vshrl.u32 %v8867_v10, 16  ;;  %v9116_v14 = vld [vmem:[#allocation5 + $0x54] sm:$0xf]  ;;  %v7555_v44 = vor.u32 %v7554_v54, %v7551_v29  ;;  %v8958_v40 = vshll.u32 %v8867_v10, 16  ;;  %v12391_v10 = vld [vmem:[%s16940_s3 + $0x98] sm:$0xff]  }
 0x3d4   : > { %v7565_v22 = vor.u32 %v7564_v46, %v7560_v51  ;;  %v8964_v60 = vshll.u32 %v8868_v33, 16  ;;  %7173 = vst [vmem:[#allocation4 + $0x7c] sm:$0xf] %v7088_v15  ;;  %v6948_v25 = vld [vmem:[#allocation5 + $0x58] sm:$0x1]  ;;  %v8968_v6 = vshrl.u32 %v8868_v33, 16  ;;  %12012 = vmatprep.subr.bf16.mxu1 %v12391_v10 }
 0x3d5   : > { %v7196_v58 = vld [vmem:[#allocation5 + $0x58] sm:$0x1]  ;;  %7804 = vst [vmem:[#allocation4 + $0x68] sm:$0xf] %v7755_v27  ;;  %v16102_v56 = vrot.slane %v8955_v35, 4  ;;  %v11119_v2 = vrot.slane %v9115_v59, 9 }
 0x3d6   : > { %v9177_v39 = vrot.slane %v9116_v14, 5  ;;  %v7442_v31 = vld [vmem:[#allocation5 + $0x58] sm:$0x1]  ;;  %v7556_v1 = vrot.slane %v7555_v44, 4  ;;  %v7566_v13 = vrot.slane %v7565_v22, 4  ;;  %v16104_v53 = vrot.slane %v8958_v40, 5  ;;  %12013 = vmatpush3.bf16.msra.mxu1 %v12391_v10 }
 0x3d7   : > { %v16106_v30 = vrot.slane %v8964_v60, 5  ;;  %v7690_v57 = vld [vmem:[#allocation5 + $0x58] sm:$0x1]  ;;  %v16108_v42 = vrot.slane %v8968_v6, 4  ;;  %v7095_v7 = vshll.u32 %v6948_v25, 16  ;;  %v7267_v23 = vrot.slane %v7196_v58, 5 }
 0x3d8   : > { %v9179_v47 = vrot.slane %v9177_v39, 4  ;;  %v8869_v34 = vld [vmem:[#allocation5 + $0x58] sm:$0x1]  ;;  %v7561_v45 = vsel %vm13159_vm5, %v7556_v1, %v7560_v51  ;;  %v7568_v28 = vshll.u32 %v7442_v31, 16  ;;  %v7757_v12 = vrot.slane %v7690_v57, 5  ;;  %v17188_v1 = vld [vmem:[#allocation15_spill] sm:$0xff] }
 0x3d9   : > { %v8974_v29 = vshll.u32 %v8869_v34, 16  ;;  %v9117_v55 = vld [vmem:[#allocation5 + $0x58] sm:$0x1]  ;;  %v16112_v19 = vld [vmem:[#allocation4 + $0x74] sm:$0xf]  ;;  %v7097_v54 = vrot.slane %v7095_v7, 5  ;;  %v7268_v46 = vsel %vm12750_vm2, %v16082_v16, %v7267_v23  ;;  %v16131_v16 = vadd.f32 %v15940_v63, %v16048_v41 }
 0x3da   : > { %v9180_v33 = vrot.slane %v9117_v55, 5  ;;  %7668 = vst [vmem:[#allocation4 + $0x64] sm:$0xf] %v7561_v45  ;;  %v17185_v20 = vld [vmem:[#allocation28_spill] sm:$0xff]  ;;  %v7570_v27 = vrot.slane %v7568_v28, 5  ;;  %v7758_v35 = vsel %vm12750_vm2, %v7756_v18, %v7757_v12  ;;  %v16140_v22 = vsel %vm12750_vm2, %v11119_v2, %v9177_v39  ;;  %v17189_v57 = vld [vmem:[#allocation34_spill] sm:$0xff] }
 0x3db   : > { %v17186_v51 = vld [vmem:[#allocation44_spill] sm:$0xff]  ;;  %v16127_v59 = vrot.slane %v8974_v29, 5  ;;  %7310 = vst [vmem:[#allocation4 + $0x8c] sm:$0xf] %v7268_v46  ;;  %v6911_v44 = vld [vmem:[#allocation5 + $0x60] sm:$0xf]  ;;  %v7098_v0 = vsel %vm13159_vm5, %v16096_v3, %v7097_v54  ;;  %v8961_v40 = vor.u32 %v16104_v53, %v16102_v56  ;;  %v8971_v55 = vor.u32 %v16108_v42, %v16106_v30 }
 0x3dc   : > { %v6281_v15 = vadd.f32 %v17186_v51, %v17185_v20  ;;  %v12360_v14 = vld [vmem:[#allocation4 + $0x38] ss:$12 sps:$4 sm:$0xff]   ;;  %6927 = vst [vmem:[#allocation4 + $0x90] sm:$0xf] %v6911_v44  ;;  %v6949_v62 = vld [vmem:[#allocation5 + $0x60] sm:$0xf]  ;;  %v16144_v41 = vsel %vm12750_vm2, %v9179_v47, %v9180_v33  ;;  %v16165_v10 = vadd.f32 %v15940_v63, %v16075_v17 }
 0x3dd   : > { %9230 = vst [vmem:[#allocation4 + $0x38] sm:$0xf] %v16041_v4  ;;  %9231 = vst [vmem:[#allocation4 + $0x44] sm:$0xf] %v16045_v36  ;;  %v6912_v48 = vld [vmem:[#allocation5 + $0x64] sm:$0xf]  ;;  %v7571_v4 = vsel %vm13159_vm5, %v7566_v13, %v7570_v27  ;;  %11992 = vmatprep.mubr.bf16.mxu1 %v12360_v14  ;;  %v6344_v13 = vadd.f32 %v16061_v9, %v17189_v57 }
 0x3de   : > { %v6950_v18 = vld [vmem:[#allocation5 + $0x64] sm:$0xf]  ;;  %v17187_v3 = vld [vmem:[#allocation23_spill] sm:$0xff]  ;;  %7805 = vst [vmem:[#allocation4 + $0x74] sm:$0xf] %v7758_v35  ;;  %v7100_v36 = vshrl.u32 %v6949_v62, 16  ;;  %v16155_v53 = vadd.f32 %v6281_v15, %v17188_v1 }
 0x3df   : > { %vm6468_vm4 = vcmp.ge.s32.totalorder %v17187_v3, 0  ;;  %vm6478_vm6 = vcmp.lt.s32.totalorder %v17187_v3, 16  ;;  %7174 = vst [vmem:[#allocation4 + $0x88] sm:$0xf] %v7098_v0  ;;  %6928 = vst [vmem:[#allocation4 + $0x9c] sm:$0xf] %v6912_v48  ;;  %v16180_v1 = vadd.f32 %v15940_v63, %v6344_v13 }
 0x3e0   : > { %v7103_v60 = vshll.u32 %v6949_v62, 16  ;;  %v7109_v25 = vshll.u32 %v6950_v18, 16  ;;  %v7197_v58 = vld [vmem:[#allocation5 + $0x60] sm:$0xe]  ;;  %v16152_v6 = vld [vmem:[#allocation4 + $0x78] sm:$0xff]  ;;  %v7113_v2 = vshrl.u32 %v6950_v18, 16  ;;  %vm16190_vm7 = vmand %vm6468_vm4, %vm6478_vm6 }
 0x3e1   : > { %v7198_v56 = vld [vmem:[#allocation5 + $0x64] sm:$0xf]  ;;  %v10962_v39 = vrot.slane %v7197_v58, 9  ;;  %v7406_v31 = vld [vmem:[#allocation5 + $0x60] sm:$0xf]  ;;  %v7102_v47 = vrot.slane %v7100_v36, 4  ;;  %vm16217_vm8 = vmand %vm16190_vm7, %vm6491_vm11 }
 0x3e2   : > { %7669 = vst [vmem:[#allocation4 + $0x70] sm:$0xf] %v7571_v4  ;;  %v7105_v7 = vrot.slane %v7103_v60, 5  ;;  %v7111_v23 = vrot.slane %v7109_v25, 5  ;;  %v7271_v34 = vrot.slane %v7198_v56, 5  ;;  %v7115_v45 = vrot.slane %v7113_v2, 4  ;;  %vm16231_vm10 = vmand %vm16190_vm7, %vm6537_vm9 }
 0x3e3   : > { %7422 = vst [vmem:[#allocation4 + $0x78] sm:$0xf] %v7406_v31  ;;  %v7443_v28 = vld [vmem:[#allocation5 + $0x60] sm:$0xf]  ;;  %v7444_v12 = vld [vmem:[#allocation5 + $0x64] sm:$0xf] }
 0x3e4   : > { %v16159_v29 = vrot.slane %v8961_v40, 4  ;;  %v7106_v54 = vor.u32 %v7105_v7, %v7102_v47  ;;  %v7272_v9 = vsel %vm12750_vm2, %v10962_v39, %v7271_v34  ;;  %v7273_v46 = vrot.slane %v7271_v34, 4  ;;  %v16169_v20 = vld [vmem:[#allocation5 + $0x60] sm:$0xe]  ;;  %v16171_v51 = vld [vmem:[#allocation5 + $0x64] sm:$0xf] }
 0x3e5   : > { %v7573_v33 = vshrl.u32 %v7443_v28, 16  ;;  %v7116_v15 = vor.u32 %v7115_v45, %v7111_v23  ;;  %v7576_v27 = vshll.u32 %v7443_v28, 16  ;;  %v7582_v35 = vshll.u32 %v7444_v12, 16  ;;  %v8870_v44 = vld [vmem:[#allocation5 + $0x60] sm:$0xf]  ;;  %v12392_v42 = vld [vmem:[%s16940_s3 + $0x48] sm:$0xff]  }
 0x3e6   : > { %v7586_v14 = vshrl.u32 %v7444_v12, 16  ;;  %7311 = vst [vmem:[#allocation4 + $0x98] sm:$0xf] %v7272_v9  ;;  %v7107_v0 = vrot.slane %v7106_v54, 4  ;;  %v10969_v17 = vrot.slane %v16169_v20, 9  ;;  %v7761_v62 = vrot.slane %v16171_v51, 5  ;;  %11656 = vmatprep.subr.bf16.mxu0 %v12392_v42 }
 0x3e7   : > { %v7575_v48 = vrot.slane %v7573_v33, 4  ;;  %v8871_v18 = vld [vmem:[#allocation5 + $0x64] sm:$0xf]  ;;  %v7117_v40 = vrot.slane %v7116_v15, 4  ;;  %v7578_v4 = vrot.slane %v7576_v27, 5  ;;  %v7584_v36 = vrot.slane %v7582_v35, 5 }
 0x3e8   : > { %v7588_v60 = vrot.slane %v7586_v14, 4  ;;  %v6951_v25 = vld [vmem:[#allocation5 + $0x68] sm:$0x1]  ;;  %v7112_v58 = vsel %vm13159_vm5, %v7107_v0, %v7111_v23  ;;  %v16177_v2 = vrot.slane %v7761_v62, 4  ;;  %v8979_v56 = vshrl.u32 %v8870_v44, 16 }
 0x3e9   : > { %v7199_v39 = vld [vmem:[#allocation5 + $0x68] sm:$0x1]  ;;  %v7579_v57 = vor.u32 %v7578_v4, %v7575_v48  ;;  %v8982_v7 = vshll.u32 %v8870_v44, 16  ;;  %v8988_v34 = vshll.u32 %v8871_v18, 16  ;;  %7175 = vst [vmem:[#allocation4 + $0x94] sm:$0xf] %v7112_v58 }
 0x3ea   : > { %v7445_v31 = vld [vmem:[#allocation5 + $0x68] sm:$0x1]  ;;  %v7589_v47 = vor.u32 %v7588_v60, %v7584_v36  ;;  %v7407_v12 = vld [vmem:[#allocation5 + $0x64] sm:$0xf]  ;;  %v16184_v54 = vrot.slane %v8979_v56, 4  ;;  %v8992_v23 = vshrl.u32 %v8871_v18, 16 }
 0x3eb   : > { %v16182_v45 = vld [vmem:[#allocation5 + $0x68] sm:$0x1]  ;;  %v7119_v9 = vshll.u32 %v6951_v25, 16  ;;  %v7274_v33 = vrot.slane %v7199_v39, 5  ;;  %v7580_v20 = vrot.slane %v7579_v57, 4  ;;  %v16194_v15 = vrot.slane %v8982_v7, 5 }
 0x3ec   : > { %v8872_v28 = vld [vmem:[#allocation5 + $0x68] sm:$0x1]  ;;  %v7590_v51 = vrot.slane %v7589_v47, 4  ;;  %v16196_v27 = vrot.slane %v8988_v34, 5  ;;  %v8994_v35 = vrot.slane %v8992_v23, 4  ;;  %v7592_v0 = vshll.u32 %v7445_v31, 16 }
 0x3ed   : > { %v7121_v14 = vrot.slane %v7119_v9, 5  ;;  %v7275_v44 = vsel %vm12750_vm2, %v7273_v46, %v7274_v33  ;;  %v12363_v48 = vld [vmem:[#allocation4 + $0x50] ss:$12 sps:$4 sm:$0xff]   ;;  %v16200_v18 = vld [vmem:[#allocation4 + $0x60] sm:$0xff]  ;;  %v7585_v4 = vsel %vm13159_vm5, %v7580_v20, %v7584_v36  ;;  %v7764_v60 = vrot.slane %v16182_v45, 5  ;;  %v17201_v42 = vld [vmem:[#allocation42_spill] sm:$0xff] }
 0x3ee   : > { %v16202_v3 = vld [vmem:[#allocation4 + $0x6c] sm:$0xff]  ;;  %v8998_v25 = vshll.u32 %v8872_v28, 16  ;;  %7312 = vst [vmem:[#allocation4 + $0xa4] sm:$0xf] %v7275_v44  ;;  %9232 = vst [vmem:[#allocation4 + $0x50] sm:$0xf] %v16140_v22  ;;  %v8967_v46 = vsel %vm13159_vm5, %v16159_v29, %v16106_v30  ;;  %11993 = vmatmul.mubr.bf16.gmra.mxu1 %v12363_v48  ;;  %v7762_v57 = vsel %vm12750_vm2, %v10969_v17, %v7761_v62 }
 0x3ef   : > { %9233 = vst [vmem:[#allocation4 + $0x5c] sm:$0xf] %v16144_v41  ;;  %v8832_v58 = vld [vmem:[#allocation5 + $0x50] sm:$0xf]  ;;  %v8833_v56 = vld [vmem:[#allocation5 + $0x54] sm:$0xf]  ;;  %v7122_v22 = vsel %vm13159_vm5, %v7117_v40, %v7121_v14  ;;  %v8995_v23 = vor.u32 %v8994_v35, %v16196_v27 }
 0x3f0   : > { %v7594_v39 = vrot.slane %v7592_v0, 5  ;;  %8848 = vst [vmem:[#allocation4 + $0x48] sm:$0xf] %v8832_v58  ;;  %8849 = vst [vmem:[#allocation4 + $0x54] sm:$0xf] %v8833_v56  ;;  %v8972_v41 = vrot.slane %v8971_v55, 4  ;;  %v6299_v58 = vpop.f32.mrf.mxu0 }
 0x3f1   : > { %9096 = vst [vmem:[#allocation4 + $0x4c] sm:$0xf] %v8967_v46  ;;  %v6426_v29 = vmax.f32 %v16072_v8, 0.0  ;;  %v16235_v40 = vld [vmem:[#allocation4 + $0x84] sm:$0xff]  ;;  %7670 = vst [vmem:[#allocation4 + $0x7c] sm:$0xf] %v7585_v4  ;;  %v6390_v46 = vadd.f32 %v15940_v63, %v16155_v53 }
 0x3f2   : > { %v9000_v47 = vrot.slane %v8998_v25, 5  ;;  %7176 = vst [vmem:[#allocation4 + $0xa0] sm:$0xf] %v7122_v22  ;;  %v6427_v30 = vmax.f32 %v16131_v16, 0.0  ;;  %v6428_v8 = vmax.f32 %v16165_v10, 0.0  ;;  %v7595_v55 = vsel %vm13159_vm5, %v7590_v51, %v7594_v39  ;;  %v12394_v53 = vld [vmem:[%s16940_s3 + $0x90] sm:$0xff]  }
 0x3f3   : > { %7423 = vst [vmem:[#allocation4 + $0x84] sm:$0xf] %v7407_v12  ;;  %v8977_v7 = vsel %vm13159_vm5, %v8972_v41, %v16127_v59  ;;  %v6687_v17 = vsel %vm16217_vm8, %v6426_v29, 0.0  ;;  %v12368_v62 = vld [vmem:[#allocation4 + $0x68] ss:$12 sps:$4 sm:$0xff]   ;;  %v8985_v16 = vor.u32 %v16194_v15, %v16184_v54  ;;  %v11032_v59 = vcombine.low %v16200_v18, %v16202_v3  ;;  %v17196_v3 = vld [vmem:[#allocation20_spill] sm:$0xff]  ;;  %12014 = vmatprep.subr.bf16.mxu1 %v12394_v53 }
 0x3f4   : > { %v9118_v34 = vld [vmem:[#allocation5 + $0x60] sm:$0xe]  ;;  %9097 = vst [vmem:[#allocation4 + $0x58] sm:$0xf] %v8977_v7  ;;  %v6688_v10 = vsel %vm16190_vm7, %v6427_v30, 0.0  ;;  %v6689_v45 = vsel %vm16231_vm10, %v6428_v8, 0.0  ;;  %11996 = vmatprep.mubr.bf16.mxu1 %v12368_v62  ;;  %v7765_v15 = vsel %vm12750_vm2, %v16177_v2, %v7764_v60  ;;  %12015 = vmatpush3.bf16.msra.mxu1 %v12394_v53 }
 0x3f5   : > { %v9119_v28 = vld [vmem:[#allocation5 + $0x64] sm:$0xf]  ;;  %v9120_v12 = vld [vmem:[#allocation5 + $0x68] sm:$0x1]  ;;  %7671 = vst [vmem:[#allocation4 + $0x88] sm:$0xf] %v7595_v55  ;;  %v11390_v9 = vpack.c.bf16 %v6688_v10, %v6687_v17  ;;  %v11394_v33 = vpack.c.bf16 %v17102_v43, %v6689_v45  ;;  %v6300_v55 = vadd.f32 %v6299_v58, %v17201_v42 }
 0x3f6   : > { %v11120_v54 = vrot.slane %v9118_v34, 9  ;;  %v9184_v20 = vrot.slane %v9119_v28, 5  ;;  %v12369_v13 = vld [vmem:[#allocation4 + $0x64] ss:$12 sps:$4 sm:$0xff]   ;;  %v8834_v51 = vld [vmem:[#allocation5 + $0x60] sm:$0xf] }
 0x3f7   : > { %v9187_v14 = vrot.slane %v9120_v12, 5  ;;  %v8835_v44 = vld [vmem:[#allocation5 + $0x64] sm:$0xf]  ;;  %8850 = vst [vmem:[#allocation4 + $0x60] sm:$0xf] %v8834_v51  ;;  %v8986_v35 = vrot.slane %v8985_v16, 4  ;;  %8229 = vmatprep.mubr.bf16.mxu0 %v12369_v13 }
 0x3f8   : > { %v8996_v0 = vrot.slane %v8995_v23, 4  ;;  %11467 = vst [vmem:[#allocation5 + $0x70] sm:$0xff] %v11390_v9   ;;  %11468 = vst [vmem:[#allocation5 + $0x78] sm:$0xff] %v11394_v33   ;;  %v9185_v48 = vsel %vm12750_vm2, %v11120_v54, %v9184_v20  ;;  %v9186_v18 = vrot.slane %v9184_v20, 4  ;;  %v6450_v4 = vadd.s32 8, %v17196_v3  ;;  %v12393_v2 = vld [vmem:[%s16940_s3 + $0x8] sm:$0xff]   ;;  %8230 = vmatmul.mubr.bf16.gmra.mxu0 %v11032_v59 }
 0x3f9   : > { %8851 = vst [vmem:[#allocation4 + $0x6c] sm:$0xf] %v8835_v44  ;;  %v16267_v25 = vld [vmem:[#allocation4 + $0x80] sm:$0xf]  ;;  %9234 = vst [vmem:[#allocation4 + $0x68] sm:$0xf] %v9185_v48  ;;  %v8991_v60 = vsel %vm13159_vm5, %v8986_v35, %v16196_v27  ;;  %11657 = vmatpush3.bf16.msra.mxu0 %v12393_v2 }
 0x3fa   : > { %v9001_v56 = vsel %vm13159_vm5, %v8996_v0, %v9000_v47  ;;  %v6431_v36 = vmax.f32 %v16180_v1, 0.0  ;;  %v16280_v22 = vld [vmem:[#allocation4 + $0x8c] sm:$0xf]  ;;  %7806 = vst [vmem:[#allocation4 + $0x80] sm:$0xf] %v7762_v57  ;;  %v9188_v39 = vsel %vm12750_vm2, %v9186_v18, %v9187_v14  ;;  %v10914_v41 = vadd.s32 4294967295, %v6450_v4 }
 0x3fb   : > { %9098 = vst [vmem:[#allocation4 + $0x64] sm:$0xf] %v8991_v60  ;;  %9099 = vst [vmem:[#allocation4 + $0x70] sm:$0xf] %v9001_v56  ;;  %v17197_v29 = vld [vmem:[#allocation32_spill] sm:$0xff]  ;;  %v17198_v27 = vld [vmem:[#allocation39_spill] sm:$0xff]  ;;  %v11076_v56 = vcombine.low %v15954_v38, %v15956_v11 }
 0x3fc   : > { %v6289_v31 = vadd.f32 %v17198_v27, %v17197_v29  ;;  %7807 = vst [vmem:[#allocation4 + $0x8c] sm:$0xf] %v7765_v15  ;;  %v7832_v47 = vld [vmem:[#allocation4 + $0x78] sm:$0xff]  ;;  %v6451_v30 = vadd.s32 9, %v17196_v3  ;;  %9235 = vst [vmem:[#allocation4 + $0x74] sm:$0xf] %v9188_v39  ;;  %v11079_v29 = vcombine.low %v16003_v49, %v16008_v5  ;;  %v11082_v27 = vcombine.low %v16091_v21, %v16112_v19 }
 0x3fd   : > { %v17199_v1 = vld [vmem:[#allocation41_spill] sm:$0xff]  ;;  %v12396_v7 = vld [vmem:[%s16940_s3 + $0x88] sm:$0xff]   ;;  %vm6469_vm12 = vcmp.ge.s32.totalorder %v10914_v41, 0  ;;  %vm6479_vm13 = vcmp.lt.s32.totalorder %v10914_v41, 16  ;;  %v17202_v10 = vld [vmem:[#allocation12_spill] sm:$0xff]  ;;  %v6430_v12 = vmax.f32 %v6390_v46, 0.0 }
 0x3fe   : > { %v17200_v57 = vld [vmem:[#allocation49_spill] sm:$0xff]  ;;  %v12376_v34 = vld [vmem:[#allocation4 + $0x7c] ss:$12 sps:$4 sm:$0xff]   ;;  %vm16304_vm14 = vmand %vm6469_vm12, %vm6479_vm13  ;;  %v16319_v13 = vadd.s32 4294967295, %v6451_v30  ;;  %12016 = vmatprep.subr.bf16.mxu1 %v12396_v7 }
 0x3ff   : > { %v6297_v8 = vadd.f32 %v17200_v57, %v17199_v1  ;;  %v12399_v17 = vld [vmem:[%s16940_s3 + $0x40] sm:$0xff]   ;;  %v17203_v45 = vld [vmem:[#allocation22_spill] sm:$0xff]  ;;  %vm16312_vm15 = vmand %vm16304_vm14, %vm6491_vm11  ;;  %v6692_v33 = vsel %vm16304_vm14, %v6431_v36, 0.0  ;;  %8237 = vmatprep.mubr.bf16.mxu0 %v12376_v34  ;;  %12017 = vmatpush3.bf16.msra.mxu1 %v12396_v7 }
 0x400   : > { %v7834_v62 = vld [vmem:[#allocation4 + $0x84] sm:$0xff]  ;;  %v4360_v28 = vadd.f32 %v17203_v45, %v17202_v10  ;;  %v17208_v54 = vld [vmem:[#allocation16_spill] sm:$0xff]  ;;  %v16321_v51 = vld [vmem:[#allocation4 + $0x90] sm:$0xff]  ;;  %11658 = vmatprep.subr.bf16.mxu0 %v12399_v17  ;;  %v6691_v1 = vsel %vm16312_vm15, %v6430_v12, 0.0  ;;  %vm6470_vm0 = vcmp.ge.s32.totalorder %v16319_v13, 0  ;;  %vm6480_vm1 = vcmp.lt.s32.totalorder %v16319_v13, 16 }
 0x401   : > { %v12400_v16 = vld [vmem:[%s16940_s3] sm:$0xff]   ;;  %v11035_v59 = vcombine.low %v7832_v47, %v7834_v62  ;;  %v6345_v20 = vadd.f32 %v6289_v31, %v17208_v54  ;;  %v16329_v14 = vld [vmem:[%s16940_s3 + $0x238] sm:$0xff]   ;;  %v6913_v44 = vld [vmem:[#allocation5 + $0x70] sm:$0xf]  ;;  %v11399_v17 = vpack.c.bf16 %v6692_v33, %v6691_v1 }
 0x402   : > { %v12401_v15 = vld [vmem:[%s16940_s3 + $0x80] sm:$0xff]   ;;  %v6914_v35 = vld [vmem:[#allocation5 + $0x74] sm:$0xf]  ;;  %v6952_v0 = vld [vmem:[#allocation5 + $0x70] sm:$0xf]  ;;  %v6348_v3 = vadd.f32 %v6300_v55, %v4360_v28  ;;  %11659 = vmatpush3.bf16.msra.mxu0 %v12400_v16 }
 0x403   : > { %v17209_v48 = vld [vmem:[#allocation19_spill] sm:$0xff]  ;;  %v17211_v58 = vld [vmem:[#allocation45_spill] sm:$0xff]  ;;  %6929 = vst [vmem:[#allocation4 + $0xa8] sm:$0xf] %v6913_v44  ;;  %6930 = vst [vmem:[#allocation4 + $0xb4] sm:$0xf] %v6914_v35  ;;  %8238 = vmatmul.mubr.bf16.gmra.mxu0 %v11035_v59  ;;  %12018 = vmatprep.subr.bf16.mxu1 %v12401_v15  ;;  %v16349_v28 = vadd.f32 %v15940_v63, %v6345_v20 }
 0x404   : > { %v6347_v18 = vadd.f32 %v6297_v8, %v17209_v48  ;;  %v17210_v4 = vld [vmem:[#allocation47_spill] sm:$0xff]  ;;  %v16334_v60 = vld [vmem:[#allocation4 + $0x9c] sm:$0xff]  ;;  %v7124_v36 = vshrl.u32 %v6952_v0, 16  ;;  %v7127_v39 = vshll.u32 %v6952_v0, 16  ;;  %12036 = vmatprep.subr.bf16.mxu0 %v16329_v14  ;;  %11469 = vst [vmem:[#allocation5 + $0x80] sm:$0xff] %v11399_v17   ;;  %12019 = vmatpush3.bf16.msra.mxu1 %v12401_v15  ;;  %v16362_v1 = vadd.f32 %v15940_v63, %v6348_v3  ;;  %vm16405_vm3 = vmand %vm6470_vm0, %vm6480_vm1 }
 0x405   : > { %v6305_v2 = vadd.f32 %v17211_v58, %v17210_v4  ;;  %v6953_v46 = vld [vmem:[#allocation5 + $0x74] sm:$0xf]  ;;  %v7200_v41 = vld [vmem:[#allocation5 + $0x70] sm:$0xe]  ;;  %v12402_v62 = vld [vmem:[%s16940_s3 + $0x1f8] sm:$0xff]   ;;  %v11087_v24 = vcombine.high %v16321_v51, %v16334_v60 }
 0x406   : > { %v7133_v31 = vshll.u32 %v6953_v46, 16  ;;  %v7137_v47 = vshrl.u32 %v6953_v46, 16  ;;  %v7201_v30 = vld [vmem:[#allocation5 + $0x74] sm:$0xf]  ;;  %v10963_v53 = vrot.slane %v7200_v41, 9  ;;  %v7126_v57 = vrot.slane %v7124_v36, 4  ;;  %11724 = vmatprep.subr.bf16.mxu1 %v12402_v62  ;;  %vm16427_vm4 = vmand %vm16304_vm14, %vm6537_vm9 }
 0x407   : > { %v7129_v8 = vrot.slane %v7127_v39, 5  ;;  %v7278_v42 = vrot.slane %v7201_v30, 5  ;;  %v7408_v55 = vld [vmem:[#allocation5 + $0x70] sm:$0xf]  ;;  %v7409_v10 = vld [vmem:[#allocation5 + $0x74] sm:$0xf]  ;;  %v16352_v7 = vadd.f32 %v15940_v63, %v6347_v18  ;;  %vm16438_vm6 = vmand %vm16405_vm3, %vm6491_vm11 }
 0x408   : > { %v7135_v34 = vrot.slane %v7133_v31, 5  ;;  %v7139_v16 = vrot.slane %v7137_v47, 4  ;;  %v7446_v45 = vld [vmem:[#allocation5 + $0x70] sm:$0xf]  ;;  %7424 = vst [vmem:[#allocation4 + $0x90] sm:$0xf] %v7408_v55  ;;  %vm16452_vm7 = vmand %vm16405_vm3, %vm6537_vm9 }
 0x409   : > { %v7130_v12 = vor.u32 %v7129_v8, %v7126_v57  ;;  %v7279_v59 = vsel %vm12750_vm2, %v10963_v53, %v7278_v42  ;;  %v7447_v9 = vld [vmem:[#allocation5 + $0x74] sm:$0xf]  ;;  %v7597_v33 = vshrl.u32 %v7446_v45, 16  ;;  %v7694_v54 = vld [vmem:[#allocation5 + $0x70] sm:$0xe]  ;;  %v17212_v44 = vld [vmem:[#allocation17_spill] sm:$0xff] }
 0x40a   : > { %v16357_v35 = vadd.f32 %v6305_v2, %v17212_v44  ;;  %7425 = vst [vmem:[#allocation4 + $0x9c] sm:$0xf] %v7409_v10  ;;  %v7140_v0 = vor.u32 %v7139_v16, %v7135_v34  ;;  %v7600_v48 = vshll.u32 %v7446_v45, 16  ;;  %v7606_v20 = vshll.u32 %v7447_v9, 16  ;;  %v7695_v58 = vld [vmem:[#allocation5 + $0x74] sm:$0xf] }
 0x40b   : > { %v7610_v4 = vshrl.u32 %v7447_v9, 16  ;;  %7313 = vst [vmem:[#allocation4 + $0xb0] sm:$0xf] %v7279_v59  ;;  %v7131_v18 = vrot.slane %v7130_v12, 4  ;;  %v7599_v46 = vrot.slane %v7597_v33, 4  ;;  %v10970_v36 = vrot.slane %v7694_v54, 9 }
 0x40c   : > { %v7768_v39 = vrot.slane %v7695_v58, 5  ;;  %v8873_v41 = vld [vmem:[#allocation5 + $0x70] sm:$0xf]  ;;  %v16359_v31 = vld [vmem:[#allocation4 + $0x98] sm:$0xf]  ;;  %v7602_v47 = vrot.slane %v7600_v48, 5 }
 0x40d   : > { %v7608_v30 = vrot.slane %v7606_v20, 5  ;;  %v7612_v2 = vrot.slane %v7610_v4, 4  ;;  %v8874_v53 = vld [vmem:[#allocation5 + $0x74] sm:$0xf]  ;;  %v7136_v57 = vsel %vm13159_vm5, %v7131_v18, %v7135_v34  ;;  %v7280_v8 = vrot.slane %v7278_v42, 4  ;;  %v12408_v38 = vld [vmem:[%s16940_s3 + $0x1a8] sm:$0xff]  }
 0x40e   : > { %v7769_v15 = vsel %vm12750_vm2, %v10970_v36, %v7768_v39  ;;  %v9003_v55 = vshrl.u32 %v8873_v41, 16  ;;  %v9121_v17 = vld [vmem:[#allocation5 + $0x70] sm:$0xe]  ;;  %v9122_v16 = vld [vmem:[#allocation5 + $0x74] sm:$0xf]  ;;  %v7603_v62 = vor.u32 %v7602_v47, %v7599_v46  ;;  %v9006_v45 = vshll.u32 %v8873_v41, 16 }
 0x40f   : > { %v7613_v10 = vor.u32 %v7612_v2, %v7608_v30  ;;  %v9012_v12 = vshll.u32 %v8874_v53, 16  ;;  %7177 = vst [vmem:[#allocation4 + $0xac] sm:$0xf] %v7136_v57  ;;  %v6954_v63 = vld [vmem:[#allocation5 + $0x78] sm:$0x1]  ;;  %v7141_v34 = vrot.slane %v7140_v0, 4 }
 0x410   : > { %v7202_v3 = vld [vmem:[#allocation5 + $0x78] sm:$0x1]  ;;  %7808 = vst [vmem:[#allocation4 + $0x98] sm:$0xf] %v7769_v15  ;;  %v7770_v42 = vrot.slane %v7768_v39, 4  ;;  %v9016_v59 = vshrl.u32 %v8874_v53, 16 }
 0x411   : > { %v9191_v9 = vrot.slane %v9122_v16, 5  ;;  %v7448_v33 = vld [vmem:[#allocation5 + $0x78] sm:$0x1]  ;;  %v7604_v54 = vrot.slane %v7603_v62, 4  ;;  %v7614_v44 = vrot.slane %v7613_v10, 4  ;;  %v16370_v48 = vrot.slane %v9003_v55, 4 }
 0x412   : > { %v11121_v20 = vrot.slane %v9121_v17, 9  ;;  %v7696_v4 = vld [vmem:[#allocation5 + $0x78] sm:$0x1]  ;;  %v16372_v58 = vrot.slane %v9006_v45, 5  ;;  %v16374_v18 = vrot.slane %v9012_v12, 5  ;;  %v7143_v46 = vshll.u32 %v6954_v63, 16 }
 0x413   : > { %v7281_v36 = vrot.slane %v7202_v3, 5  ;;  %v8875_v41 = vld [vmem:[#allocation5 + $0x78] sm:$0x1]  ;;  %v7609_v0 = vsel %vm13159_vm5, %v7604_v54, %v7608_v30  ;;  %v16378_v39 = vrot.slane %v9016_v59, 4  ;;  %v7616_v47 = vshll.u32 %v7448_v33, 16  ;;  %v12410_v11 = vld [vmem:[%s16940_s3 + $0x1e0] sm:$0xff]  }
 0x414   : > { %v7771_v2 = vrot.slane %v7696_v4, 5  ;;  %v9123_v53 = vld [vmem:[#allocation5 + $0x78] sm:$0x1]  ;;  %v16380_v57 = vld [vmem:[#allocation4 + $0xa4] sm:$0xf]  ;;  %v9193_v15 = vrot.slane %v9191_v9, 4  ;;  %v9192_v3 = vsel %vm12750_vm2, %v11121_v20, %v9191_v9  ;;  %v9009_v9 = vor.u32 %v16372_v58, %v16370_v48 }
 0x415   : > { %v7145_v55 = vrot.slane %v7143_v46, 5  ;;  %v7282_v17 = vsel %vm12750_vm2, %v7280_v8, %v7281_v36  ;;  %v9194_v16 = vrot.slane %v9123_v53, 5  ;;  %v7410_v62 = vld [vmem:[#allocation5 + $0x80] sm:$0xf]  ;;  %7672 = vst [vmem:[#allocation4 + $0x94] sm:$0xf] %v7609_v0 }
 0x416   : > { %v7618_v10 = vrot.slane %v7616_v47, 5  ;;  %v7772_v45 = vsel %vm12750_vm2, %v7770_v42, %v7771_v2  ;;  %v9022_v30 = vshll.u32 %v8875_v41, 16  ;;  %7314 = vst [vmem:[#allocation4 + $0xbc] sm:$0xf] %v7282_v17  ;;  %v7449_v12 = vld [vmem:[#allocation5 + $0x80] sm:$0xf] }
 0x417   : > { %v7450_v63 = vld [vmem:[#allocation5 + $0x84] sm:$0xf]  ;;  %v7146_v59 = vsel %vm13159_vm5, %v7141_v34, %v7145_v55  ;;  %v7621_v33 = vshrl.u32 %v7449_v12, 16  ;;  %v7624_v54 = vshll.u32 %v7449_v12, 16  ;;  %v7697_v4 = vld [vmem:[#allocation5 + $0x80] sm:$0xe]  ;;  %v9195_v55 = vsel %vm12750_vm2, %v9193_v15, %v9194_v16 }
 0x418   : > { %v7630_v8 = vshll.u32 %v7450_v63, 16  ;;  %7809 = vst [vmem:[#allocation4 + $0xa4] sm:$0xf] %v7772_v45  ;;  %v16390_v46 = vld [vmem:[#allocation4 + $0xa8] sm:$0xff]  ;;  %v7619_v42 = vsel %vm13159_vm5, %v7614_v44, %v7618_v10  ;;  %7178 = vst [vmem:[#allocation4 + $0xb8] sm:$0xf] %v7146_v59 }
 0x419   : > { %v7634_v36 = vshrl.u32 %v7450_v63, 16  ;;  %v16394_v41 = vld [vmem:[#allocation5 + $0x84] sm:$0xf]  ;;  %v10971_v0 = vrot.slane %v7697_v4, 9  ;;  %v8876_v47 = vld [vmem:[#allocation5 + $0x80] sm:$0xf] }
 0x41a   : > { %7426 = vst [vmem:[#allocation4 + $0xa8] sm:$0xf] %v7410_v62  ;;  %v7623_v34 = vrot.slane %v7621_v33, 4  ;;  %v7626_v20 = vrot.slane %v7624_v54, 5  ;;  %v7775_v2 = vrot.slane %v16394_v41, 5  ;;  %v9024_v44 = vrot.slane %v9022_v30, 5 }
 0x41b   : > { %v8877_v53 = vld [vmem:[#allocation5 + $0x84] sm:$0xf]  ;;  %7673 = vst [vmem:[#allocation4 + $0xa0] sm:$0xf] %v7619_v42  ;;  %v9027_v17 = vshrl.u32 %v8876_v47, 16  ;;  %v9030_v10 = vshll.u32 %v8876_v47, 16 }
 0x41c   : > { %v9036_v45 = vshll.u32 %v8877_v53, 16  ;;  %v7627_v58 = vor.u32 %v7626_v20, %v7623_v34  ;;  %v16409_v62 = vrot.slane %v7630_v8, 5  ;;  %v9040_v12 = vshrl.u32 %v8877_v53, 16  ;;  %v12375_v63 = vld [vmem:[#allocation4 + $0x80] ss:$12 sps:$4 sm:$0xff]   ;;  %v17231_v49 = vld [vmem:[#allocation48_spill] sm:$0xff] }
 0x41d   : > { %v12460_v15 = vld [vmem:[%s16939_s2] ss:$0 sm:$0xff]  ;;  %v16415_v30 = vrot.slane %v7634_v36, 4  ;;  %v16421_v13 = vsel %vm12750_vm2, %v10971_v0, %v7775_v2  ;;  %v9029_v59 = vrot.slane %v9027_v17, 4  ;;  %v9032_v33 = vrot.slane %v9030_v10, 5  ;;  %11997 = vmatmul.mubr.bf16.gmra.mxu1 %v12375_v63  ;;  %v12412_v21 = vld [vmem:[%s16940_s3 + $0x1d8] sm:$0xff]  }
 0x41e   : > { %v6396_v16 = vadd.f32 %v12460_v15, %v16357_v35  ;;  %9236 = vst [vmem:[#allocation4 + $0x80] sm:$0xf] %v9192_v3  ;;  %9237 = vst [vmem:[#allocation4 + $0x8c] sm:$0xf] %v9195_v55  ;;  %v8836_v35 = vld [vmem:[#allocation5 + $0x70] sm:$0xf]  ;;  %v9019_v34 = vor.u32 %v16378_v39, %v16374_v18 }
 0x41f   : > { %v7628_v8 = vrot.slane %v7627_v58, 4  ;;  %v16431_v4 = vrot.slane %v9036_v45, 5  ;;  %v6432_v42 = vmax.f32 %v16349_v28, 0.0  ;;  %v8837_v36 = vld [vmem:[#allocation5 + $0x74] sm:$0xf]  ;;  %v9010_v0 = vrot.slane %v9009_v9, 4 }
 0x420   : > { %8852 = vst [vmem:[#allocation4 + $0x78] sm:$0xf] %v8836_v35  ;;  %v7411_v3 = vld [vmem:[#allocation5 + $0x84] sm:$0xf]  ;;  %v16442_v47 = vrot.slane %v9040_v12, 4  ;;  %v6434_v28 = vmax.f32 %v16352_v7, 0.0  ;;  %v9033_v35 = vor.u32 %v9032_v33, %v9029_v59 }
 0x421   : > { %8853 = vst [vmem:[#allocation4 + $0x84] sm:$0xf] %v8837_v36  ;;  %v6435_v20 = vmax.f32 %v16362_v1, 0.0  ;;  %v7836_v9 = vld [vmem:[#allocation4 + $0x90] sm:$0xff]  ;;  %v7633_v53 = vsel %vm13159_vm5, %v7628_v8, %v16409_v62  ;;  %v6693_v39 = vsel %vm16427_vm4, %v6432_v42, 0.0  ;;  %v9015_v7 = vsel %vm13159_vm5, %v9010_v0, %v16374_v18  ;;  %v12413_v19 = vld [vmem:[%s16940_s3 + $0x198] sm:$0xff]  }
 0x422   : > { %v6436_v1 = vmax.f32 %v6396_v16, 0.0  ;;  %v12384_v26 = vld [vmem:[#allocation4 + $0x98] ss:$12 sps:$4 sm:$0xff]   ;;  %v11403_v55 = vpack.c.bf16 %v17102_v43, %v6693_v39  ;;  %v9020_v17 = vrot.slane %v9019_v34, 4  ;;  %9100 = vst [vmem:[#allocation4 + $0x7c] sm:$0xf] %v9015_v7 }
 0x423   : > { %v6695_v10 = vsel %vm16438_vm6, %v6434_v28, 0.0  ;;  %v6696_v45 = vsel %vm16405_vm3, %v6435_v20, 0.0  ;;  %v9124_v58 = vld [vmem:[#allocation5 + $0x80] sm:$0xe]  ;;  %7674 = vst [vmem:[#allocation4 + $0xac] sm:$0xf] %v7633_v53  ;;  %12000 = vmatprep.mubr.bf16.mxu1 %v12384_v26 }
 0x424   : > { %v7838_v12 = vld [vmem:[#allocation4 + $0x9c] sm:$0xff]  ;;  %v11408_v63 = vpack.c.bf16 %v6696_v45, %v6695_v10  ;;  %v6697_v15 = vsel %vm16452_vm7, %v6436_v1, 0.0  ;;  %v16471_v18 = vld [vmem:[#allocation5 + $0x84] sm:$0xf]  ;;  %v11122_v16 = vrot.slane %v9124_v58, 9  ;;  %11470 = vst [vmem:[#allocation5 + $0x88] sm:$0xff] %v11403_v55   ;;  %v9025_v8 = vsel %vm13159_vm5, %v9020_v17, %v9024_v44 }
 0x425   : > { %v12386_v54 = vld [vmem:[#allocation4 + $0x94] ss:$12 sps:$4 sm:$0xff]   ;;  %v11412_v48 = vpack.c.bf16 %v17102_v43, %v6697_v15  ;;  %v9198_v42 = vrot.slane %v16471_v18, 5  ;;  %v8839_v0 = vld [vmem:[#allocation5 + $0x84] sm:$0xf]  ;;  %v9034_v34 = vrot.slane %v9033_v35, 4  ;;  %v11038_v28 = vcombine.low %v7836_v9, %v7838_v12 }
 0x426   : > { %v8838_v36 = vld [vmem:[#allocation5 + $0x80] sm:$0xf]  ;;  %v16477_v23 = vld [vmem:[#allocation4 + $0xb4] sm:$0xff]  ;;  %9101 = vst [vmem:[#allocation4 + $0x88] sm:$0xf] %v9025_v8  ;;  %11471 = vst [vmem:[#allocation5 + $0x90] sm:$0xff] %v11408_v63   ;;  %8245 = vmatprep.mubr.bf16.mxu0 %v12386_v54  ;;  %v11085_v44 = vcombine.low %v16267_v25, %v16280_v22  ;;  %v7637_v43 = vor.u32 %v16415_v30, %v16409_v62  ;;  %v11084_v62 = vcombine.high %v16152_v6, %v16235_v40 }
 0x427   : > { %8854 = vst [vmem:[#allocation4 + $0x90] sm:$0xf] %v8838_v36  ;;  %8855 = vst [vmem:[#allocation4 + $0x9c] sm:$0xf] %v8839_v0  ;;  %v16479_v59 = vld [vmem:[#allocation4 + $0xb0] sm:$0xf]  ;;  %v9199_v33 = vsel %vm12750_vm2, %v11122_v16, %v9198_v42  ;;  %v9039_v20 = vsel %vm13159_vm5, %v9034_v34, %v16431_v4  ;;  %8246 = vmatmul.mubr.bf16.gmra.mxu0 %v11038_v28  ;;  %v11083_v30 = vcombine.low %v16152_v6, %v16235_v40 }
 0x428   : > { %7427 = vst [vmem:[#allocation4 + $0xb4] sm:$0xf] %v7411_v3  ;;  %11472 = vst [vmem:[#allocation5 + $0x98] sm:$0xff] %v11412_v48   ;;  %v9043_v3 = vor.u32 %v16442_v47, %v16431_v4  ;;  %v11090_v9 = vcombine.high %v16390_v46, %v16477_v23  ;;  %v11089_v53 = vcombine.low %v16390_v46, %v16477_v23  ;;  %v7638_v4 = vrot.slane %v7637_v43, 4  ;;  %v16509_v58 = vld [vmem:[#allocation4 + $0xbc] sm:$0xf] }
 0x429   : > { %7810 = vst [vmem:[#allocation4 + $0xb0] sm:$0xf] %v16421_v13  ;;  %9238 = vst [vmem:[#allocation4 + $0x98] sm:$0xf] %v9199_v33  ;;  %v11086_v13 = vcombine.low %v16321_v51, %v16334_v60  ;;  %v7777_v47 = vrot.slane %v7775_v2, 4  ;;  %v12417_v25 = vld [vmem:[%s16940_s3 + $0x1c8] sm:$0xff]  }
 0x42a   : > { %9102 = vst [vmem:[#allocation4 + $0x94] sm:$0xf] %v9039_v20  ;;  %v9044_v45 = vrot.slane %v9043_v3, 4  ;;  %v12418_v22 = vld [vmem:[%s16940_s3 + $0x188] sm:$0xff]   ;;  %v12446_v60 = vld [vmem:[#allocation4 + $0x38] ss:$12 sps:$4 sm:$0xff]  }
 0x42b   : > { %v7451_v39 = vld [vmem:[#allocation5 + $0x88] sm:$0x1]  ;;  %v12437_v40 = vld [vmem:[#allocation4 + $0x60] ss:$12 sps:$4 sm:$0xff]  }
 0x42c   : > { %v7699_v7 = vld [vmem:[#allocation5 + $0x88] sm:$0x1]  ;;  %v7640_v26 = vshll.u32 %v7451_v39, 16  ;;  %v12445_v51 = vld [vmem:[#allocation4 + $0x20] ss:$12 sps:$4 sm:$0xff]  }
 0x42d   : > { %v8878_v1 = vld [vmem:[#allocation5 + $0x88] sm:$0x1]  ;;  %v7778_v55 = vrot.slane %v7699_v7, 5  ;;  %v8879_v10 = vld [vmem:[#allocation5 + $0x90] sm:$0xf] }
 0x42e   : > { %v9046_v17 = vshll.u32 %v8878_v1, 16  ;;  %v8880_v12 = vld [vmem:[#allocation5 + $0x94] sm:$0xf]  ;;  %v9051_v63 = vshrl.u32 %v8879_v10, 16  ;;  %v9054_v15 = vshll.u32 %v8879_v10, 16  ;;  %v7642_v54 = vrot.slane %v7640_v26, 5 }
 0x42f   : > { %v9127_v16 = vld [vmem:[#allocation5 + $0x90] sm:$0xe]  ;;  %v7779_v35 = vsel %vm12750_vm2, %v7777_v47, %v7778_v55  ;;  %v9060_v2 = vshll.u32 %v8880_v12, 16  ;;  %v9128_v8 = vld [vmem:[#allocation5 + $0x94] sm:$0xf]  ;;  %v9064_v0 = vshrl.u32 %v8880_v12, 16 }
 0x430   : > { %v9048_v41 = vrot.slane %v9046_v17, 5  ;;  %v9053_v48 = vrot.slane %v9051_v63, 4  ;;  %v9056_v36 = vrot.slane %v9054_v15, 5  ;;  %v11123_v34 = vrot.slane %v9127_v16, 9  ;;  %v8881_v28 = vld [vmem:[#allocation5 + $0x98] sm:$0x1] }
 0x431   : > { %7811 = vst [vmem:[#allocation4 + $0xbc] sm:$0xf] %v7779_v35  ;;  %v7643_v43 = vsel %vm13159_vm5, %v7638_v4, %v7642_v54  ;;  %v9062_v33 = vrot.slane %v9060_v2, 5  ;;  %v9205_v20 = vrot.slane %v9128_v8, 5  ;;  %v9070_v3 = vshll.u32 %v8881_v28, 16  ;;  %v7840_v35 = vld [vmem:[#allocation4 + $0xa8] sm:$0xff] }
 0x432   : > { %v9129_v39 = vld [vmem:[#allocation5 + $0x98] sm:$0x1]  ;;  %v9066_v7 = vrot.slane %v9064_v0, 4  ;;  %v9126_v26 = vld [vmem:[#allocation5 + $0x88] sm:$0x1]  ;;  %v9049_v47 = vsel %vm13159_vm5, %v9044_v45, %v9048_v41  ;;  %v9057_v55 = vor.u32 %v9056_v36, %v9053_v48  ;;  %v9200_v10 = vrot.slane %v9198_v42, 4 }
 0x433   : > { %v9208_v1 = vrot.slane %v9129_v39, 5  ;;  %7675 = vst [vmem:[#allocation4 + $0xb8] sm:$0xf] %v7643_v43  ;;  %v9207_v17 = vrot.slane %v9205_v20, 4  ;;  %v9201_v12 = vrot.slane %v9126_v26, 5  ;;  %v9072_v63 = vrot.slane %v9070_v3, 5 }
 0x434   : > { %9103 = vst [vmem:[#allocation4 + $0xa0] sm:$0xf] %v9049_v47  ;;  %v9058_v4 = vrot.slane %v9057_v55, 4  ;;  %v9067_v15 = vor.u32 %v9066_v7, %v9062_v33  ;;  %v9206_v54 = vsel %vm12750_vm2, %v11123_v34, %v9205_v20  ;;  %v8840_v41 = vld [vmem:[#allocation5 + $0x90] sm:$0xf]  ;;  %v17224_v20 = vld [vmem:[#allocation30_spill] sm:$0xff] }
 0x435   : > { %v9202_v16 = vsel %vm12750_vm2, %v9200_v10, %v9201_v12  ;;  %v9209_v45 = vsel %vm12750_vm2, %v9207_v17, %v9208_v1  ;;  %v8841_v2 = vld [vmem:[#allocation5 + $0x94] sm:$0xf]  ;;  %8856 = vst [vmem:[#allocation4 + $0xa8] sm:$0xf] %v8840_v41  ;;  %v17227_v7 = vld [vmem:[#allocation40_spill] sm:$0xff]  ;;  %v17228_v10 = vld [vmem:[#allocation33_spill] sm:$0xff] }
 0x436   : > { %9239 = vst [vmem:[#allocation4 + $0xa4] sm:$0xf] %v9202_v16  ;;  %v9068_v18 = vrot.slane %v9067_v15, 4  ;;  %v9063_v8 = vsel %vm13159_vm5, %v9058_v4, %v9062_v33  ;;  %v17221_v34 = vld [vmem:[#allocation27_spill] sm:$0xff]  ;;  %v17225_v33 = vld [vmem:[#allocation38_spill] sm:$0xff]  ;;  %v12411_v15 = vld [vmem:[%s16940_s3 + $0x1a0] sm:$0xff]  }
 0x437   : > { %v17223_v28 = vcombine.low %v17221_v34, %v17222_v61  ;;  %v11069_v3 = vcombine.high %v17225_v33, %v17224_v20  ;;  %v17226_v39 = vld [vmem:[#allocation43_spill] sm:$0xff]  ;;  %v11068_v55 = vcombine.low %v17225_v33, %v17224_v20  ;;  %v12407_v4 = vld [vmem:[%s16940_s3 + $0x1e8] sm:$0xff]   ;;  %v12422_v16 = vld [vmem:[%s16940_s3 + $0x220] sm:$0xff]   ;;  %v11080_v34 = vcombine.low %v16034_v32, %v16052_v50 }
 0x438   : > { %v12395_v42 = vld [vmem:[#allocation4 + $0xb0] ss:$12 sps:$4 sm:$0xff]   ;;  %v9073_v48 = vsel %vm13159_vm5, %v9068_v18, %v9072_v63  ;;  %v11073_v1 = vcombine.low %v17227_v7, %v17226_v39  ;;  %v12423_v18 = vld [vmem:[%s16940_s3 + $0x1c0] sm:$0xff]   ;;  %v12435_v20 = vld [vmem:[#allocation4 + $0x4c] ss:$12 sps:$4 sm:$0xff]   ;;  %vm9877_vm2 = vcmask 1045504  }
 0x439   : > { %9240 = vst [vmem:[#allocation4 + $0xb0] sm:$0xf] %v9206_v54  ;;  %9241 = vst [vmem:[#allocation4 + $0xbc] sm:$0xf] %v9209_v45  ;;  %12001 = vmatmul.mubr.bf16.gmra.mxu1 %v12395_v42  ;;  %v12405_v26 = vld [vmem:[%s16940_s3 + $0x1f0] sm:$0xff]   ;;  %v17230_v54 = vld [vmem:[#allocation9_spill] sm:$0xff]  ;;  %v11088_v45 = vcombine.low %v16359_v31, %v16380_v57 }
 0x43a   : > { %v7842_v36 = vld [vmem:[#allocation4 + $0xb4] sm:$0xff]  ;;  %12020 = vmatprep.mubr.bf16.mxu1 %v17223_v28  ;;  %v11075_v5 = vcombine.high %v17231_v49, %v17230_v54  ;;  %v17232_v31 = vld [vmem:[#allocation10_spill] sm:$0xff]  ;;  %v12447_v33 = vld [vmem:[#allocation4 + $0x90] ss:$12 sps:$4 sm:$0xff]  }
 0x43b   : > { %v12397_v0 = vld [vmem:[#allocation4 + $0xac] ss:$12 sps:$4 sm:$0xff]   ;;  %8857 = vst [vmem:[#allocation4 + $0xb4] sm:$0xf] %v8841_v2  ;;  %v11041_v43 = vcombine.low %v7840_v35, %v7842_v36  ;;  %v12406_v47 = vld [vmem:[%s16940_s3 + $0x1b0] sm:$0xff]   ;;  %v11074_v35 = vcombine.low %v17231_v49, %v17230_v54  ;;  %v11078_v57 = vcombine.high %v17232_v31, %v15848_v37  ;;  %v11081_v36 = vcombine.high %v16034_v32, %v16052_v50 }
 0x43c   : > { %9104 = vst [vmem:[#allocation4 + $0xac] sm:$0xf] %v9063_v8  ;;  %9105 = vst [vmem:[#allocation4 + $0xb8] sm:$0xf] %v9073_v48  ;;  %8253 = vmatprep.mubr.bf16.mxu0 %v12397_v0  ;;  %v12409_v17 = vld [vmem:[%s16940_s3 + $0x230] sm:$0xff]   ;;  %v12436_v42 = vld [vmem:[%s16940_s3 + $0x208] sm:$0xff]   ;;  %v11077_v48 = vcombine.low %v17232_v31, %v15848_v37 }
 0x43d   : > { %8254 = vmatmul.mubr.bf16.gmra.mxu0 %v11041_v43  ;;  %v17229_v12 = vld [vmem:[#allocation31_spill] sm:$0xff]  ;;  %v12419_v0 = vld [vmem:[#allocation4] ss:$12 sps:$4 sm:$0xff]   ;;  %v12427_v37 = vld [vmem:[#allocation4 + $0x1c] ss:$12 sps:$4 sm:$0xff]  }
 0x43e   : > { %8663 = vmatprep.mubr.bf16.mxu0 %v11069_v3  ;;  %v11072_v63 = vcombine.high %v17229_v12, %v17228_v10  ;;  %v12416_v41 = vld [vmem:[%s16940_s3 + $0x190] sm:$0xff]   ;;  %v12425_v61 = vld [vmem:[#allocation4 + $0x18] ss:$12 sps:$4 sm:$0xff]   ;;  %v12455_v23 = vld [vmem:[#allocation4 + $0x80] ss:$12 sps:$4 sm:$0xff]  }
 0x43f   : > { %v12432_v2 = vld [vmem:[%s16940_s3 + $0x210] sm:$0xff]  }
 0x440   : > { %v12421_v8 = vld [vmem:[#allocation4 + $0x4] ss:$12 sps:$4 sm:$0xff]   ;;  %v12431_v28 = vld [vmem:[#allocation4 + $0x34] ss:$12 sps:$4 sm:$0xff]  }
 0x441   : > { %12021 = vmatmul.mubr.bf16.vlgmr.msra.gmra.mxu1 %v11073_v1  ;;  %v12429_v43 = vld [vmem:[#allocation4 + $0x30] ss:$12 sps:$4 sm:$0xff]   ;;  %v12433_v32 = vld [vmem:[#allocation4 + $0x48] ss:$12 sps:$4 sm:$0xff]  }
 0x442   : > { %12024 = vmatprep.mubr.bf16.mxu1 %v11076_v56  ;;  %11725 = vmatpush3.bf16.msra.mxu1 %v12403_v52  ;;  %v12414_v56 = vld [vmem:[%s16940_s3 + $0x228] sm:$0xff]   ;;  %v12439_v50 = vld [vmem:[#allocation4 + $0x64] ss:$12 sps:$4 sm:$0xff]  }
 0x443   : > { %11726 = vmatprep.subr.bf16.mxu1 %v12405_v26  ;;  %v12441_v6 = vld [vmem:[#allocation4 + $0x8] ss:$12 sps:$4 sm:$0xff]   ;;  %v12454_v46 = vld [vmem:[#allocation4 + $0xac] ss:$12 sps:$4 sm:$0xff]  }
 0x444   : > { %v12452_v1 = vld [vmem:[#allocation4 + $0xa8] ss:$12 sps:$4 sm:$0xff]  }
 0x445   : > { %8664 = vmatmul.mubr.bf16.vlgmr.msra.gmra.mxu0 %v11068_v55 }
 0x446   : > { %8671 = vmatprep.mubr.bf16.mxu0 %v11072_v63  ;;  %12037 = vmatpush3.bf16.msra.mxu0 %v16329_v14  ;;  %v11071_v14 = vcombine.low %v17229_v12, %v17228_v10  ;;  %v12457_v12 = vld [vmem:[#allocation4 + $0xb0] ss:$12 sps:$4 sm:$0xff]  }
 0x447   : > { %11727 = vmatpush3.bf16.msra.mxu1 %v12406_v47  ;;  %12038 = vmatprep.subr.bf16.mxu0 %v12409_v17 }
 0x448   : > { %11728 = vmatprep.subr.bf16.mxu1 %v12407_v4 }
 0x449   : > { %12025 = vmatmul.mubr.bf16.gmra.mxu1 %v11079_v29  ;;  %v12415_v29 = vld [vmem:[%s16940_s3 + $0x1d0] sm:$0xff]  }
 0x44a   : > { %12039 = vmatpush3.bf16.msra.mxu0 %v12409_v17  ;;  %12028 = vmatprep.mubr.bf16.mxu1 %v11082_v27  ;;  %v12428_v27 = vld [vmem:[%s16940_s3 + $0x218] sm:$0xff]  }
 0x44b   : > { %11729 = vmatpush3.bf16.msra.mxu1 %v12408_v38  ;;  %12040 = vmatprep.subr.bf16.mxu0 %v12414_v56 }
 0x44c   : > { %11730 = vmatprep.subr.bf16.mxu1 %v12410_v11 }
 0x44d   : > { %8672 = vmatmul.mubr.bf16.gmra.mxu0 %v11071_v14 }
 0x44e   : > { %8679 = vmatprep.mubr.bf16.mxu0 %v11075_v5  ;;  %12041 = vmatpush3.bf16.msra.mxu0 %v12414_v56 }
 0x44f   : > { %11731 = vmatpush3.bf16.msra.mxu1 %v12411_v15  ;;  %12042 = vmatprep.subr.bf16.mxu0 %v12422_v16 }
 0x450   : > { %11732 = vmatprep.subr.bf16.mxu1 %v12412_v21 }
 0x451   : > { %12029 = vmatmul.mubr.bf16.gmra.mxu1 %v11085_v44  ;;  %v11091_v44 = vcombine.low %v16479_v59, %v16509_v58  ;;  %v12424_v59 = vld [vmem:[%s16940_s3 + $0x180] sm:$0xff]  }
 0x452   : > { %12043 = vmatpush3.bf16.msra.mxu0 %v12422_v16  ;;  %12032 = vmatprep.mubr.bf16.mxu1 %v11088_v45  ;;  %v12440_v58 = vld [vmem:[%s16940_s3 + $0x200] sm:$0xff]  }
 0x453   : > { %11733 = vmatpush3.bf16.msra.mxu1 %v12413_v19  ;;  %12044 = vmatprep.subr.bf16.mxu0 %v12428_v27 }
 0x454   : > { %11734 = vmatprep.subr.bf16.mxu1 %v12415_v29 }
 0x455   : > { %8680 = vmatmul.mubr.bf16.gmra.mxu0 %v11074_v35 }
 0x456   : > { %8687 = vmatprep.mubr.bf16.mxu0 %v11078_v57  ;;  %12045 = vmatpush3.bf16.msra.mxu0 %v12428_v27 }
 0x457   : > { %11735 = vmatpush3.bf16.msra.mxu1 %v12416_v41  ;;  %12046 = vmatprep.subr.bf16.mxu0 %v12432_v2 }
 0x458   : > { %11736 = vmatprep.subr.bf16.mxu1 %v12417_v25 }
 0x459   : > { %12033 = vmatmul.mubr.bf16.gmra.mxu1 %v11091_v44 }
 0x45a   : > { %12047 = vmatpush3.bf16.msra.mxu0 %v12432_v2  ;;  %9627 = vmatprep.mubr.bf16.mxu1 %v12421_v8 }
 0x45b   : > { %11737 = vmatpush3.bf16.msra.mxu1 %v12418_v22  ;;  %12048 = vmatprep.subr.bf16.mxu0 %v12436_v42 }
 0x45c   : > { %11738 = vmatprep.subr.bf16.mxu1 %v12423_v18 }
 0x45d   : > { %8688 = vmatmul.mubr.bf16.gmra.mxu0 %v11077_v48 }
 0x45e   : > { %8695 = vmatprep.mubr.bf16.mxu0 %v11081_v36  ;;  %12049 = vmatpush3.bf16.msra.mxu0 %v12436_v42 }
 0x45f   : > { %11739 = vmatpush3.bf16.msra.mxu1 %v12424_v59  ;;  %12050 = vmatprep.subr.bf16.mxu0 %v12440_v58 }
 0x462   : > { %9628 = vmatmul.mubr.bf16.vlgmr.msra.gmra.mxu1 %v12419_v0  ;;  %12051 = vmatpush3.bf16.msra.mxu0 %v12440_v58 }
 0x463   : > { %9635 = vmatprep.mubr.bf16.mxu1 %v12427_v37 }
 0x465   : > { %8696 = vmatmul.mubr.bf16.gmra.mxu0 %v11080_v34 }
 0x466   : > { %8703 = vmatprep.mubr.bf16.mxu0 %v11084_v62  ;;  %v12444_v62 = vld [vmem:[#allocation4 + $0x7c] ss:$12 sps:$4 sm:$0xff]  }
 0x46a   : > { %9636 = vmatmul.mubr.bf16.gmra.mxu1 %v12425_v61 }
 0x46b   : > { %9643 = vmatprep.mubr.bf16.mxu1 %v12431_v28 }
 0x46d   : > { %8704 = vmatmul.mubr.bf16.gmra.mxu0 %v11083_v30  ;;  %v12442_v30 = vld [vmem:[#allocation4 + $0x78] ss:$12 sps:$4 sm:$0xff]  }
 0x46e   : > { %8711 = vmatprep.mubr.bf16.mxu0 %v11087_v24  ;;  %v12449_v24 = vld [vmem:[#allocation4 + $0x94] ss:$12 sps:$4 sm:$0xff]  }
 0x472   : > { %9644 = vmatmul.mubr.bf16.gmra.mxu1 %v12429_v43 }
 0x473   : > { %9651 = vmatprep.mubr.bf16.mxu1 %v12435_v20  ;;  %v11580_v3 = vpop.f32.mrf.mxu0 }
 0x475   : > { %8712 = vmatmul.mubr.bf16.gmra.mxu0 %v11086_v13  ;;  %v12450_v13 = vld [vmem:[#allocation4 + $0x50] ss:$12 sps:$4 sm:$0xff]   ;;  %v11581_v52 = vpop.f32.mrf.mxu0 }
 0x476   : > { %8719 = vmatprep.mubr.bf16.mxu0 %v11090_v9  ;;  %v12451_v9 = vld [vmem:[#allocation4 + $0x68] ss:$12 sps:$4 sm:$0xff]   ;;  %v11990_v39 = vpop.f32.mrf.mxu1  ;;  %v11582_v7 = vadd.f32 %v11581_v52, %v11580_v3 }
 0x477   : > { %v11583_v26 = vpop.f32.mrf.mxu0 }
 0x478   : > { %v8296_v47 = vpop.f32.mrf.mxu1 }
 0x479   : > { %v16655_v55 = vadd.f32 %v11582_v7, %v8296_v47  ;;  %v11584_v17 = vpop.f32.mrf.mxu0 }
 0x47a   : > { %9652 = vmatmul.mubr.bf16.gmra.mxu1 %v12433_v32  ;;  %v11991_v10 = vpop.f32.mrf.mxu1  ;;  %v11585_v63 = vadd.f32 %v11584_v17, %v11583_v26 }
 0x47b   : > { %9659 = vmatprep.mubr.bf16.mxu1 %v12439_v50 }
 0x47c   : > { %v8299_v38 = vpop.f32.mrf.mxu1 }
 0x47d   : > { %8720 = vmatmul.mubr.bf16.gmra.mxu0 %v11089_v53  ;;  %v12456_v53 = vld [vmem:[#allocation4 + $0x98] ss:$12 sps:$4 sm:$0xff]   ;;  %v16657_v11 = vadd.f32 %v11585_v63, %v8299_v38 }
 0x47e   : > { %12052 = vmatprep.mubr.bf16.mxu0 %v12441_v6  ;;  %v11586_v4 = vpop.f32.mrf.mxu0 }
 0x480   : > { %v11587_v56 = vpop.f32.mrf.mxu0 }
 0x481   : > { %v11588_v14 = vadd.f32 %v11587_v56, %v11586_v4 }
 0x482   : > { %9660 = vmatmul.mubr.bf16.gmra.mxu1 %v12437_v40  ;;  %v11589_v15 = vpop.f32.mrf.mxu0 }
 0x483   : > { %9667 = vmatprep.mubr.bf16.mxu1 %v12444_v62  ;;  %v16659_v16 = vadd.f32 %v11990_v39, %v11588_v14 }
 0x484   : > { %v11590_v54 = vpop.f32.mrf.mxu0 }
 0x485   : > { %12053 = vmatmul.mubr.bf16.vlgmr.msra.gmra.mxu0 %v12445_v51  ;;  %v11591_v49 = vadd.f32 %v11590_v54, %v11589_v15 }
 0x486   : > { %12056 = vmatprep.mubr.bf16.mxu0 %v12446_v60  ;;  %v11592_v5 = vpop.f32.mrf.mxu0 }
 0x487   : > { %v16661_v21 = vadd.f32 %v11991_v10, %v11591_v49 }
 0x488   : > { %v11593_v19 = vpop.f32.mrf.mxu0 }
 0x489   : > { %v11594_v29 = vadd.f32 %v11593_v19, %v11592_v5 }
 0x48a   : > { %9668 = vmatmul.mubr.bf16.gmra.mxu1 %v12442_v30  ;;  %v11595_v27 = vpop.f32.mrf.mxu0 }
 0x48b   : > { %9675 = vmatprep.mubr.bf16.mxu1 %v12449_v24 }
 0x48c   : > { %v11596_v45 = vpop.f32.mrf.mxu0 }
 0x48d   : > { %12057 = vmatmul.mubr.bf16.gmra.mxu0 %v12450_v13  ;;  %v11597_v35 = vadd.f32 %v11596_v45, %v11595_v27 }
 0x48e   : > { %12060 = vmatprep.mubr.bf16.mxu0 %v12451_v9  ;;  %v11598_v41 = vpop.f32.mrf.mxu0 }
 0x490   : > { %v11599_v2 = vpop.f32.mrf.mxu0 }
 0x491   : > { %v11600_v31 = vadd.f32 %v11599_v2, %v11598_v41 }
 0x492   : > { %9676 = vmatmul.mubr.bf16.gmra.mxu1 %v12447_v33  ;;  %v11601_v57 = vpop.f32.mrf.mxu0 }
 0x493   : > { %9683 = vmatprep.mubr.bf16.mxu1 %v12454_v46 }
 0x494   : > { %v11602_v25 = vpop.f32.mrf.mxu0 }
 0x495   : > { %12061 = vmatmul.mubr.bf16.gmra.mxu0 %v12455_v23  ;;  %v11603_v22 = vadd.f32 %v11602_v25, %v11601_v57 }
 0x496   : > { %12064 = vmatprep.mubr.bf16.mxu0 %v12456_v53 }
 0x49a   : > { %9684 = vmatmul.mubr.bf16.gmra.mxu1 %v12452_v1 }
 0x49d   : > { %12065 = vmatmul.mubr.bf16.gmra.mxu0 %v12457_v12 }
 0x4ae   : > { %v11994_v44 = vpop.f32.mrf.mxu1 }
 0x4af   : > { %v16663_v18 = vadd.f32 %v11994_v44, %v11600_v31 }
 0x4b0   : > { %v8312_v42 = vpop.f32.mrf.mxu1 }
 0x4b1   : > { %v16665_v8 = vadd.f32 %v11594_v29, %v8312_v42 }
 0x4b2   : > { %v11995_v48 = vpop.f32.mrf.mxu1 }
 0x4b3   : > { %v16667_v59 = vadd.f32 %v11995_v48, %v11603_v22 }
 0x4b4   : > { %v8315_v58 = vpop.f32.mrf.mxu1 }
 0x4b5   : > { %v16669_v36 = vadd.f32 %v11597_v35, %v8315_v58 }
 0x4b8   : > { %v11604_v0 = vpop.f32.mrf.mxu0 }
 0x4ba   : > { %v11605_v37 = vpop.f32.mrf.mxu0 }
 0x4bb   : > { %v11606_v34 = vadd.f32 %v11605_v37, %v11604_v0 }
 0x4bc   : > { %v11607_v61 = vpop.f32.mrf.mxu0 }
 0x4be   : > { %v11608_v28 = vpop.f32.mrf.mxu0 }
 0x4bf   : > { %v11609_v43 = vadd.f32 %v11608_v28, %v11607_v61 }
 0x4c3   : > { %v11610_v20 = vpop.f32.mrf.mxu0 }
 0x4c5   : > { %v11611_v32 = vpop.f32.mrf.mxu0 }
 0x4c6   : > { %v11612_v50 = vadd.f32 %v11611_v32, %v11610_v20 }
 0x4c7   : > { %v11613_v6 = vpop.f32.mrf.mxu0 }
 0x4c9   : > { %v11614_v40 = vpop.f32.mrf.mxu0 }
 0x4ca   : > { %v11615_v62 = vadd.f32 %v11614_v40, %v11613_v6 }
 0x4dd   : > { %v11998_v51 = vpop.f32.mrf.mxu1 }
 0x4de   : > { %v16671_v60 = vadd.f32 %v11998_v51, %v11612_v50 }
 0x4df   : > { %v8328_v30 = vpop.f32.mrf.mxu1 }
 0x4e0   : > { %v16673_v24 = vadd.f32 %v11606_v34, %v8328_v30 }
 0x4e1   : > { %v11999_v13 = vpop.f32.mrf.mxu1 }
 0x4e2   : > { %v16675_v9 = vadd.f32 %v11999_v13, %v11615_v62 }
 0x4e3   : > { %v8331_v33 = vpop.f32.mrf.mxu1 }
 0x4e4   : > { %v16677_v46 = vadd.f32 %v11609_v43, %v8331_v33 }
 0x4e7   : > { %v11616_v23 = vpop.f32.mrf.mxu0 }
 0x4e9   : > { %v11617_v53 = vpop.f32.mrf.mxu0 }
 0x4ea   : > { %v11618_v3 = vadd.f32 %v11617_v53, %v11616_v23 }
 0x4eb   : > { %v11619_v52 = vpop.f32.mrf.mxu0 }
 0x4ed   : > { %v11620_v39 = vpop.f32.mrf.mxu0 }
 0x4ee   : > { %v11621_v7 = vadd.f32 %v11620_v39, %v11619_v52 }
 0x4f9   : > { %v12002_v1 = vpop.f32.mrf.mxu1 }
 0x4fb   : > { %v8344_v26 = vpop.f32.mrf.mxu1 }
 0x4fc   : > { %v16679_v47 = vadd.f32 %v11618_v3, %v8344_v26 }
 0x4fd   : > { %v11622_v17 = vpop.f32.mrf.mxu0  ;;  %v12003_v10 = vpop.f32.mrf.mxu1 }
 0x4ff   : > { %v11623_v12 = vpop.f32.mrf.mxu0  ;;  %v8347_v4 = vpop.f32.mrf.mxu1 }
 0x500   : > { %v11624_v63 = vadd.f32 %v11623_v12, %v11622_v17  ;;  %v16681_v38 = vadd.f32 %v11621_v7, %v8347_v4 }
 0x501   : > { %v11625_v56 = vpop.f32.mrf.mxu0  ;;  %v12022_v15 = vpop.f32.mrf.mxu1 }
 0x502   : > { %v16683_v14 = vadd.f32 %v12002_v1, %v11624_v63 }
 0x503   : > { %v11626_v54 = vpop.f32.mrf.mxu0  ;;  %v8762_v5 = vpop.f32.mrf.mxu1 }
 0x504   : > { %v11627_v49 = vadd.f32 %v11626_v54, %v11625_v56 }
 0x505   : > { %v11660_v19 = vpop.f32.mrf.mxu0  ;;  %v12023_v27 = vpop.f32.mrf.mxu1 }
 0x506   : > { %v16685_v29 = vadd.f32 %v12003_v10, %v11627_v49 }
 0x507   : > { %v11661_v45 = vpop.f32.mrf.mxu0  ;;  %v8765_v41 = vpop.f32.mrf.mxu1 }
 0x508   : > { %v11662_v35 = vadd.f32 %v11661_v45, %v11660_v19 }
 0x509   : > { %v11663_v2 = vpop.f32.mrf.mxu0  ;;  %v12026_v57 = vpop.f32.mrf.mxu1 }
 0x50a   : > { %v8666_v31 = vadd.f32 %v11662_v35, %v16655_v55 }
 0x50b   : > { %v11664_v25 = vpop.f32.mrf.mxu0  ;;  %v8778_v44 = vpop.f32.mrf.mxu1 }
 0x50c   : > { %v11665_v22 = vadd.f32 %v11664_v25, %v11663_v2  ;;  %v16688_v42 = vadd.f32 %v8762_v5, %v8666_v31 }
 0x50d   : > { %v11666_v48 = vpop.f32.mrf.mxu0  ;;  %v12027_v0 = vpop.f32.mrf.mxu1 }
 0x50e   : > { %v8669_v58 = vadd.f32 %v11665_v22, %v16657_v11 }
 0x50f   : > { %v11667_v37 = vpop.f32.mrf.mxu0  ;;  %v8781_v61 = vpop.f32.mrf.mxu1 }
 0x510   : > { %v11668_v34 = vadd.f32 %v11667_v37, %v11666_v48  ;;  %v16691_v28 = vadd.f32 %v8765_v41, %v8669_v58 }
 0x511   : > { %v11669_v43 = vpop.f32.mrf.mxu0  ;;  %v12030_v32 = vpop.f32.mrf.mxu1 }
 0x512   : > { %v8674_v20 = vadd.f32 %v11668_v34, %v16659_v16 }
 0x513   : > { %v11670_v55 = vpop.f32.mrf.mxu0  ;;  %v8794_v6 = vpop.f32.mrf.mxu1 }
 0x514   : > { %v11671_v50 = vadd.f32 %v11670_v55, %v11669_v43  ;;  %v16694_v40 = vadd.f32 %v12022_v15, %v8674_v20 }
 0x515   : > { %v11672_v62 = vpop.f32.mrf.mxu0  ;;  %v16697_v30 = vpop.f32.mrf.mxu1 }
 0x516   : > { %v8677_v51 = vadd.f32 %v11671_v50, %v16661_v21 }
 0x517   : > { %v11673_v11 = vpop.f32.mrf.mxu0  ;;  %v8797_v33 = vpop.f32.mrf.mxu1 }
 0x518   : > { %v11674_v13 = vadd.f32 %v11673_v11, %v11672_v62  ;;  %v16699_v23 = vadd.f32 %v12023_v27, %v8677_v51 }
 0x519   : > { %v11675_v53 = vpop.f32.mrf.mxu0  ;;  %v16702_v16 = vpop.f32.mrf.mxu1 }
 0x51a   : > { %v8682_v3 = vadd.f32 %v11674_v13, %v16665_v8 }
 0x51b   : > { %v11676_v52 = vpop.f32.mrf.mxu0  ;;  %v16704_v7 = vpop.f32.mrf.mxu1 }
 0x51c   : > { %v11677_v39 = vadd.f32 %v11676_v52, %v11675_v53  ;;  %v16706_v1 = vadd.f32 %v8778_v44, %v8682_v3 }
 0x51d   : > { %v11678_v26 = vpop.f32.mrf.mxu0  ;;  %v16709_v17 = vpop.f32.mrf.mxu1 }
 0x51e   : > { %v8685_v21 = vadd.f32 %v11677_v39, %v16669_v36 }
 0x51f   : > { %v11679_v10 = vpop.f32.mrf.mxu0  ;;  %v16711_v63 = vpop.f32.mrf.mxu1 }
 0x520   : > { %v11680_v12 = vadd.f32 %v11679_v10, %v11678_v26  ;;  %v16713_v4 = vadd.f32 %v8781_v61, %v8685_v21  ;;  %v11220_v26 = vld [vmem:[%s12713_s27 + $0x30] sm:$0xe]  ;;  %v11225_v21 = vld [vmem:[%s12713_s27 + $0x50] sm:$0x1] }
 0x521   : > { %v11681_v8 = vpop.f32.mrf.mxu0 }
 0x522   : > { %v8690_v56 = vadd.f32 %v11680_v12, %v16663_v18  ;;  %v16716_v15 = vpop.f32.mrf.mxu1 }
 0x523   : > { %v11682_v54 = vpop.f32.mrf.mxu0 }
 0x524   : > { %v11683_v49 = vadd.f32 %v11682_v54, %v11681_v8  ;;  %v16718_v5 = vpop.f32.mrf.mxu1  ;;  %v16720_v19 = vadd.f32 %v12026_v57, %v8690_v56 }
 0x525   : > { %v11684_v36 = vpop.f32.mrf.mxu0 }
 0x526   : > { %v8693_v27 = vadd.f32 %v11683_v49, %v16667_v59  ;;  %v16723_v45 = vpop.f32.mrf.mxu1 }
 0x527   : > { %v11685_v35 = vpop.f32.mrf.mxu0 }
 0x528   : > { %v11686_v41 = vadd.f32 %v11685_v35, %v11684_v36  ;;  %v16725_v2 = vpop.f32.mrf.mxu1  ;;  %v16727_v31 = vadd.f32 %v12027_v0, %v8693_v27  ;;  %v9829_v36 = vunpack.c.l.bf16 %v11220_v26  ;;  %v9834_v35 = vunpack.c.l.bf16 %v11225_v21 }
 0x529   : > { %v11687_v18 = vpop.f32.mrf.mxu0 }
 0x52a   : > { %v8698_v25 = vadd.f32 %v11686_v41, %v16673_v24  ;;  %v16730_v22 = vpop.f32.mrf.mxu1 }
 0x52b   : > { %v11688_v44 = vpop.f32.mrf.mxu0 }
 0x52c   : > { %v11689_v48 = vadd.f32 %v11688_v44, %v11687_v18  ;;  %v16732_v57 = vpop.f32.mrf.mxu1  ;;  %v16734_v58 = vadd.f32 %v8794_v6, %v8698_v25 }
 0x52d   : > { %v11690_v59 = vpop.f32.mrf.mxu0 }
 0x52e   : > { %v8701_v37 = vadd.f32 %v11689_v48, %v16677_v46  ;;  %v16737_v34 = vpop.f32.mrf.mxu1 }
 0x52f   : > { %v11691_v61 = vpop.f32.mrf.mxu0 }
 0x530   : > { %v11692_v0 = vadd.f32 %v11691_v61, %v11690_v59  ;;  %v16739_v43 = vpop.f32.mrf.mxu1  ;;  %v16741_v24 = vadd.f32 %v8797_v33, %v8701_v37  ;;  %v11223_v33 = vld [vmem:[%s12713_s27 + $0x48] sm:$0xe]  ;;  %v11229_v37 = vld [vmem:[%s12713_s27 + $0x78] sm:$0xe]  ;;  %v11230_v61 = vld [vmem:[%s12713_s27 + $0x64] ss:$24 sps:$4 sm:$0xff]  }
 0x531   : > { %v11693_v20 = vpop.f32.mrf.mxu0  ;;  %v9832_v8 = vunpack.c.l.bf16 %v11223_v33  ;;  %v9839_v26 = vunpack.c.h.bf16 %v11230_v61 }
 0x532   : > { %v8706_v55 = vadd.f32 %v11692_v0, %v16671_v60  ;;  %v16744_v50 = vpop.f32.mrf.mxu1  ;;  %v11224_v60 = vld [vmem:[%s12713_s27 + $0x34] ss:$24 sps:$4 sm:$0xff]   ;;  %v11226_v0 = vld [vmem:[%s12713_s27 + $0x60] sm:$0xe] }
 0x533   : > { %v11694_v6 = vpop.f32.mrf.mxu0  ;;  %v9833_v49 = vunpack.c.h.bf16 %v11224_v60  ;;  %v9830_v27 = vunpack.c.l.bf16 %v11224_v60  ;;  %v9883_v48 = vrot.slane %v9832_v8, 2  ;;  %v9838_v60 = vunpack.c.l.bf16 %v11229_v37 }
 0x534   : > { %v11695_v62 = vadd.f32 %v11694_v6, %v11693_v20  ;;  %v16746_v46 = vpop.f32.mrf.mxu1  ;;  %v16748_v51 = vadd.f32 %v12030_v32, %v8706_v55  ;;  %v11222_v32 = vld [vmem:[%s12713_s27 + $0x38] sm:$0x1]  ;;  %v9878_v6 = vrot.slane %v9829_v36, 2  ;;  %v9835_v21 = vunpack.c.l.bf16 %v11226_v0 }
 0x535   : > { %v11696_v11 = vpop.f32.mrf.mxu0  ;;  %v9884_v55 = vrot.slane %v9833_v49, 2  ;;  %v9893_v0 = vrot.slane %v9838_v60, 2 }
 0x536   : > { %v8709_v13 = vadd.f32 %v11695_v62, %v16675_v9  ;;  %v16751_v53 = vpop.f32.mrf.mxu1  ;;  %v9879_v62 = vrot.slane %v9830_v27, 2 }
 0x537   : > { %v11697_v3 = vpop.f32.mrf.mxu0  ;;  %v9885_v49 = vsel %vm9877_vm2, %v9883_v48, %v9884_v55  ;;  %v11232_v48 = vld [vmem:[%s12713_s27 + $0x90] sm:$0xe] }
 0x538   : > { %v11698_v52 = vadd.f32 %v11697_v3, %v11696_v11  ;;  %v16754_v39 = vpop.f32.mrf.mxu1  ;;  %v16760_v10 = vadd.f32 %v16697_v30, %v8709_v13  ;;  %v9831_v30 = vunpack.c.l.bf16 %v11222_v32  ;;  %v9886_v11 = vrot.slane %v9834_v35, 2  ;;  %v11231_v3 = vld [vmem:[%s12713_s27 + $0x80] sm:$0x1] }
 0x539   : > { %v11699_v12 = vpop.f32.mrf.mxu0  ;;  %v9836_v32 = vunpack.c.l.bf16 %v11230_v61  ;;  %v16789_v36 = vsel %vm9877_vm2, %v9878_v6, %v9879_v62  ;;  %v9840_v27 = vunpack.c.l.bf16 %v11231_v3  ;;  %v11748_v35 = vadd.f32 %v16732_v57, %v16730_v22 }
 0x53a   : > { %v8714_v56 = vadd.f32 %v11698_v52, %v16679_v47  ;;  %v16764_v9 = vpop.f32.mrf.mxu1  ;;  %v11742_v22 = vadd.f32 %v16718_v5, %v16716_v15  ;;  %v11751_v15 = vadd.f32 %v16739_v43, %v16737_v34 }
 0x53b   : > { %v11700_v54 = vpop.f32.mrf.mxu0 }
 0x53c   : > { %v11701_v41 = vadd.f32 %v11700_v54, %v11699_v12  ;;  %v16766_v18 = vpop.f32.mrf.mxu1  ;;  %v16769_v25 = vadd.f32 %v16704_v7, %v8714_v56  ;;  %v9881_v7 = vrot.slane %v9831_v30, 2  ;;  %v11228_v56 = vld [vmem:[%s12713_s27 + $0x68] sm:$0x1] }
 0x53d   : > { %v11702_v44 = vpop.f32.mrf.mxu0  ;;  %v9837_v6 = vunpack.c.l.bf16 %v11228_v56 }
 0x53e   : > { %v8717_v47 = vadd.f32 %v11701_v41, %v16681_v38  ;;  %v16772_v59 = vpop.f32.mrf.mxu1 }
 0x53f   : > { %v11703_v20 = vpop.f32.mrf.mxu0 }
 0x540   : > { %v11704_v13 = vadd.f32 %v11703_v20, %v11702_v44  ;;  %v16777_v33 = vpop.f32.mrf.mxu1  ;;  %v16781_v52 = vadd.f32 %v16711_v63, %v8717_v47  ;;  %v16792_v63 = vsel %vm9877_vm2, %v9884_v55, %v9886_v11  ;;  %v11235_v44 = vld [vmem:[%s12713_s27 + $0xa8] sm:$0xe]  ;;  %v11236_v47 = vld [vmem:[%s12713_s27 + $0x94] ss:$24 sps:$4 sm:$0xff]   ;;  %v9894_v20 = vrot.slane %v9839_v26, 2 }
 0x541   : > { %v11705_v38 = vpop.f32.mrf.mxu0  ;;  %v9888_v55 = vrot.slane %v9835_v21, 2  ;;  %v9845_v60 = vunpack.c.h.bf16 %v11236_v47  ;;  %v9841_v26 = vunpack.c.l.bf16 %v11232_v48  ;;  %v9842_v21 = vunpack.c.l.bf16 %v11236_v47 }
 0x542   : > { %v8722_v12 = vadd.f32 %v11704_v13, %v16683_v14  ;;  %v16784_v8 = vpop.f32.mrf.mxu1  ;;  %v16799_v14 = vsel %vm9877_vm2, %v9879_v62, %v9881_v7  ;;  %v9889_v62 = vrot.slane %v9836_v32, 2  ;;  %v11237_v7 = vld [vmem:[%s12713_s27 + $0xb0] sm:$0x1]  ;;  %v11745_v47 = vadd.f32 %v16725_v2, %v16723_v45 }
 0x543   : > { %v11706_v54 = vpop.f32.mrf.mxu0 }
 0x544   : > { %v11707_v41 = vadd.f32 %v11706_v54, %v11705_v38  ;;  %v16796_v30 = vpop.f32.mrf.mxu1  ;;  %v16805_v37 = vadd.f32 %v16702_v16, %v8722_v12  ;;  %v16816_v16 = vld [vmem:[%s16941_s4] ss:$0 sm:$0xff]  ;;  %v9844_v38 = vunpack.c.l.bf16 %v11235_v44  ;;  %v9895_v54 = vsel %vm9877_vm2, %v9893_v0, %v9894_v20 }
 0x545   : > { %v12054_v61 = vpop.f32.mrf.mxu0  ;;  %v9846_v44 = vunpack.c.l.bf16 %v11237_v7  ;;  %v9890_v45 = vsel %vm9877_vm2, %v9888_v55, %v9889_v62  ;;  %v11234_v55 = vld [vmem:[%s12713_s27 + $0x98] sm:$0x1] }
 0x546   : > { %v8725_v57 = vadd.f32 %v11707_v41, %v16685_v29  ;;  %v9735_v11 = vadd.f32 %v12054_v61, %v11748_v35  ;;  %v16810_v13 = vpop.f32.mrf.mxu1  ;;  %v9896_v35 = vrot.slane %v9840_v27, 2  ;;  %v9891_v41 = vrot.slane %v9837_v6, 2 }
 0x547   : > { %v9726_v3 = vpop.f32.mrf.mxu0 }
 0x548   : > { %v9791_v29 = vadd.f32 %v9735_v11, %v16694_v40  ;;  %v9727_v5 = vadd.f32 %v11742_v22, %v9726_v3  ;;  %v16821_v12 = vpop.f32.mrf.mxu1  ;;  %v16824_v32 = vadd.f32 %v16709_v17, %v8725_v57  ;;  %v9903_v22 = vrot.slane %v9844_v38, 2 }
 0x549   : > { %v12055_v56 = vpop.f32.mrf.mxu0  ;;  %v9904_v11 = vrot.slane %v9845_v60, 2  ;;  %v9898_v17 = vrot.slane %v9841_v26, 2  ;;  %v16831_v57 = vrot.slane %v9842_v21, 2  ;;  %v9897_v38 = vsel %vm9877_vm2, %v9894_v20, %v9896_v35 }
 0x54a   : > { %v9943_v48 = vadd.f32 %v16816_v16, %v9791_v29  ;;  %v9789_v34 = vadd.f32 %v9727_v5, %v16688_v42  ;;  %v9738_v40 = vadd.f32 %v12055_v56, %v11751_v15  ;;  %v11770_v43 = vpop.f32.mrf.mxu1  ;;  %v11760_v42 = vadd.f32 %v16766_v18, %v16764_v9 }
 0x54b   : > { %v9729_v61 = vpop.f32.mrf.mxu0  ;;  %v9906_v60 = vrot.slane %v9846_v44, 2  ;;  %v11754_v26 = vadd.f32 %v16746_v46, %v16744_v50  ;;  %v16844_v29 = vsel %vm9877_vm2, %v9889_v62, %v9891_v41  ;;  %v16853_v20 = vsel %vm9877_vm2, %v9898_v17, %v16831_v57 }
 0x54c   : > { %v9941_v27 = vadd.f32 %v16816_v16, %v9789_v34  ;;  %v9792_v0 = vadd.f32 %v9738_v40, %v16699_v23  ;;  %v9730_v6 = vadd.f32 %v11745_v47, %v9729_v61  ;;  %v11771_v7 = vpop.f32.mrf.mxu1  ;;  %v9959_v2 = vadd.f32 %v9943_v48, %v9885_v49  ;;  %v11241_v40 = vld [vmem:[%s12713_s27 + $0xd8] sm:$0xe] }
 0x54d   : > { %v12058_v3 = vpop.f32.mrf.mxu0  ;;  %v16849_v49 = vsel %vm9877_vm2, %v9903_v22, %v9904_v11  ;;  %v16861_v44 = vsel %vm9877_vm2, %v9904_v11, %v9906_v60  ;;  %v9843_v47 = vunpack.c.l.bf16 %v11234_v55  ;;  %v11757_v61 = vadd.f32 %v16754_v39, %v16751_v53 }
 0x54e   : > { %v9944_v21 = vadd.f32 %v16816_v16, %v9792_v0  ;;  %v9790_v15 = vadd.f32 %v9730_v6, %v16691_v28  ;;  %v11773_v23 = vpop.f32.mrf.mxu1  ;;  %v9957_v5 = vadd.f32 %v9941_v27, %v16789_v36  ;;  %v9751_v9 = vadd.f32 %v12058_v3, %v11760_v42  ;;  %v11242_v42 = vld [vmem:[%s12713_s27 + $0xc4] ss:$24 sps:$4 sm:$0xff]  }
 0x54f   : > { %v9742_v18 = vpop.f32.mrf.mxu0  ;;  %v11763_v28 = vadd.f32 %v16777_v33, %v16772_v59  ;;  %v9975_v36 = vmax.f32 %v9959_v2, 0.0  ;;  %v9901_v53 = vrot.slane %v9843_v47, 2  ;;  %v9850_v39 = vunpack.c.l.bf16 %v11241_v40 }
 0x550   : > { %v9960_v50 = vadd.f32 %v9944_v21, %v16792_v63  ;;  %v9942_v46 = vadd.f32 %v16816_v16, %v9790_v15  ;;  %v9743_v62 = vadd.f32 %v11754_v26, %v9742_v18  ;;  %v11774_v56 = vpop.f32.mrf.mxu1  ;;  %v9795_v35 = vadd.f32 %v9751_v9, %v16720_v19 }
 0x551   : > { %v12059_v41 = vpop.f32.mrf.mxu0  ;;  %v9973_v22 = vmax.f32 %v9957_v5, 0.0  ;;  %v11772_v19 = vadd.f32 %v11771_v7, %v11770_v43  ;;  %v11766_v43 = vadd.f32 %v16796_v30, %v16784_v8  ;;  %v11775_v55 = vadd.f32 %v11774_v56, %v11773_v23 }
 0x552   : > { %v9976_v48 = vmax.f32 %v9960_v50, 0.0  ;;  %v9958_v34 = vadd.f32 %v9942_v46, %v16799_v14  ;;  %v9793_v59 = vadd.f32 %v9743_v62, %v16706_v1  ;;  %v9754_v33 = vadd.f32 %v12059_v41, %v11763_v28  ;;  %v16865_v63 = vpop.f32.mrf.mxu1  ;;  %v11243_v62 = vld [vmem:[%s12713_s27 + $0xe0] sm:$0x1] }
 0x553   : > { %v9947_v11 = vadd.f32 %v16816_v16, %v9795_v35  ;;  %v9745_v17 = vpop.f32.mrf.mxu0  ;;  %v9851_v9 = vunpack.c.h.bf16 %v11242_v42  ;;  %v9848_v18 = vunpack.c.l.bf16 %v11242_v42  ;;  %v9902_v23 = vsel %vm9877_vm2, %v16831_v57, %v9901_v53 }
 0x554   : > { %v11422_v27 = vpack.c.bf16 %v9976_v48, %v9975_v36  ;;  %v9974_v0 = vmax.f32 %v9958_v34, 0.0  ;;  %v9945_v14 = vadd.f32 %v16816_v16, %v9793_v59  ;;  %v9796_v1 = vadd.f32 %v9754_v33, %v16727_v31  ;;  %v11777_v6 = vpop.f32.mrf.mxu1  ;;  %v11238_v31 = vld [vmem:[%s12713_s27 + $0xc0] sm:$0xe] }
 0x555   : > { %v9963_v2 = vadd.f32 %v9947_v11, %v9895_v54  ;;  %v9746_v3 = vadd.f32 %v11757_v61, %v9745_v17  ;;  %v12062_v60 = vpop.f32.mrf.mxu0  ;;  %v9847_v56 = vunpack.c.l.bf16 %v11238_v31  ;;  %v9913_v33 = vrot.slane %v9850_v39, 2  ;;  %v11240_v17 = vld [vmem:[%s12713_s27 + $0xc8] sm:$0x1] }
 0x556   : > { %11473 = vst [vmem:[%s12579_s9 + $0x8] sm:$0xff] %v11422_v27   ;;  %v11417_v7 = vpack.c.bf16 %v9974_v0, %v9973_v22  ;;  %v9948_v26 = vadd.f32 %v16816_v16, %v9796_v1  ;;  %v9767_v21 = vadd.f32 %v12062_v60, %v11772_v19  ;;  %v16878_v15 = vpop.f32.mrf.mxu1  ;;  %v9961_v28 = vadd.f32 %v9945_v14, %v9890_v45 }
 0x557   : > { %v9794_v54 = vadd.f32 %v9746_v3, %v16713_v4  ;;  %v9758_v5 = vpop.f32.mrf.mxu0  ;;  %v9979_v36 = vmax.f32 %v9963_v2, 0.0  ;;  %v9852_v40 = vunpack.c.l.bf16 %v11243_v62  ;;  %v9914_v11 = vrot.slane %v9851_v9, 2 }
 0x558   : > { %11418 = vst [vmem:[%s12579_s9] sm:$0xff] %v11417_v7   ;;  %v9964_v50 = vadd.f32 %v9948_v26, %v9897_v38  ;;  %v9799_v8 = vadd.f32 %v9767_v21, %v16748_v51  ;;  %v9759_v30 = vadd.f32 %v11766_v43, %v9758_v5  ;;  %v11780_v46 = vpop.f32.mrf.mxu1  ;;  %v11769_v51 = vadd.f32 %v16821_v12, %v16810_v13 }
 0x559   : > { %v9946_v35 = vadd.f32 %v16816_v16, %v9794_v54  ;;  %v12063_v41 = vpop.f32.mrf.mxu0  ;;  %v9977_v61 = vmax.f32 %v9961_v28, 0.0  ;;  %v11778_v13 = vadd.f32 %v11777_v6, %v16865_v63  ;;  %v9909_v2 = vrot.slane %v9848_v18, 2 }
 0x55a   : > { %v9980_v4 = vmax.f32 %v9964_v50, 0.0  ;;  %v9951_v47 = vadd.f32 %v16816_v16, %v9799_v8  ;;  %v9797_v45 = vadd.f32 %v9759_v30, %v16734_v58  ;;  %v9770_v38 = vadd.f32 %v12063_v41, %v11775_v55  ;;  %v11782_v48 = vpop.f32.mrf.mxu1 }
 0x55b   : > { %v9962_v34 = vadd.f32 %v9946_v35, %v16844_v29  ;;  %v9761_v59 = vpop.f32.mrf.mxu0  ;;  %v9849_v39 = vunpack.c.l.bf16 %v11240_v17  ;;  %v9908_v26 = vrot.slane %v9847_v56, 2  ;;  %v9916_v31 = vrot.slane %v9852_v40, 2 }
 0x55c   : > { %v11432_v57 = vpack.c.bf16 %v9980_v4, %v9979_v36  ;;  %v9800_v22 = vadd.f32 %v9770_v38, %v16760_v10  ;;  %v11783_v19 = vpop.f32.mrf.mxu1  ;;  %v9949_v58 = vadd.f32 %v16816_v16, %v9797_v45  ;;  %v9762_v0 = vadd.f32 %v11769_v51, %v9761_v59 }
 0x55d   : > { %v9978_v27 = vmax.f32 %v9962_v34, 0.0  ;;  %v11784_v14 = vadd.f32 %v11783_v19, %v11782_v48  ;;  %v12066_v1 = vpop.f32.mrf.mxu0  ;;  %v9967_v12 = vadd.f32 %v9951_v47, %v16849_v49  ;;  %v9911_v30 = vrot.slane %v9849_v39, 2 }
 0x55e   : > { %11475 = vst [vmem:[%s12579_s9 + $0x18] sm:$0xff] %v11432_v57   ;;  %v9952_v29 = vadd.f32 %v16816_v16, %v9800_v22  ;;  %v11785_v42 = vpop.f32.mrf.mxu1  ;;  %v9798_v3 = vadd.f32 %v9762_v0, %v16741_v24  ;;  %v9965_v63 = vadd.f32 %v9949_v58, %v16853_v20  ;;  %v11781_v24 = vadd.f32 %v11780_v46, %v16878_v15 }
 0x55f   : > { %v11427_v10 = vpack.c.bf16 %v9978_v27, %v9977_v61  ;;  %v9783_v60 = vadd.f32 %v12066_v1, %v11784_v14  ;;  %v9774_v53 = vpop.f32.mrf.mxu0  ;;  %v9983_v5 = vmax.f32 %v9967_v12, 0.0  ;;  %v9915_v62 = vsel %vm9877_vm2, %v9913_v33, %v9914_v11 }
 0x560   : > { %v9968_v43 = vadd.f32 %v9952_v29, %v16861_v44  ;;  %v9775_v7 = vadd.f32 %v11778_v13, %v9774_v53  ;;  %v11786_v21 = vpop.f32.mrf.mxu1  ;;  %v9950_v49 = vadd.f32 %v16816_v16, %v9798_v3  ;;  %v9981_v35 = vmax.f32 %v9965_v63, 0.0 }
 0x561   : > { %11474 = vst [vmem:[%s12579_s9 + $0x10] sm:$0xff] %v11427_v10   ;;  %v9803_v6 = vadd.f32 %v9783_v60, %v16805_v37  ;;  %v11787_v55 = vadd.f32 %v11786_v21, %v11785_v42  ;;  %v12067_v54 = vpop.f32.mrf.mxu0  ;;  %v9910_v15 = vsel %vm9877_vm2, %v9908_v26, %v9909_v2  ;;  %v9912_v45 = vsel %vm9877_vm2, %v9909_v2, %v9911_v30 }
 0x562   : > { %v9984_v9 = vmax.f32 %v9968_v43, 0.0  ;;  %v9801_v44 = vadd.f32 %v9775_v7, %v16769_v25  ;;  %v9966_v18 = vadd.f32 %v9950_v49, %v9902_v23  ;;  %v9917_v25 = vsel %vm9877_vm2, %v9914_v11, %v9916_v31 }
 0x563   : > { %v9955_v28 = vadd.f32 %v16816_v16, %v9803_v6  ;;  %v9786_v50 = vadd.f32 %v12067_v54, %v11787_v55  ;;  %v9777_v8 = vpop.f32.mrf.mxu0 }
 0x564   : > { %v11442_v20 = vpack.c.bf16 %v9984_v9, %v9983_v5  ;;  %v9953_v37 = vadd.f32 %v16816_v16, %v9801_v44  ;;  %v9778_v36 = vadd.f32 %v11781_v24, %v9777_v8  ;;  %v9982_v41 = vmax.f32 %v9966_v18, 0.0 }
 0x565   : > { %v9804_v46 = vadd.f32 %v9786_v50, %v16824_v32  ;;  %v9971_v4 = vadd.f32 %v9955_v28, %v9915_v62 }
 0x566   : > { %11477 = vst [vmem:[%s12579_s9 + $0x28] sm:$0xff] %v11442_v20   ;;  %v9802_v23 = vadd.f32 %v9778_v36, %v16781_v52  ;;  %v11437_v56 = vpack.c.bf16 %v9982_v41, %v9981_v35  ;;  %v9969_v38 = vadd.f32 %v9953_v37, %v9910_v15 }
 0x567   : > { %v9956_v47 = vadd.f32 %v16816_v16, %v9804_v46  ;;  %v9987_v32 = vmax.f32 %v9971_v4, 0.0 }
 0x568   : > { %v9954_v48 = vadd.f32 %v16816_v16, %v9802_v23  ;;  %11476 = vst [vmem:[%s12579_s9 + $0x20] sm:$0xff] %v11437_v56   ;;  %v9985_v33 = vmax.f32 %v9969_v38, 0.0 }
 0x569   : > { %v9972_v51 = vadd.f32 %v9956_v47, %v9917_v25 }
 0x56a   : > { %v9970_v34 = vadd.f32 %v9954_v48, %v9912_v45 }
 0x56b   : > { %v9988_v59 = vmax.f32 %v9972_v51, 0.0 }
 0x56c   : > { %v9986_v40 = vmax.f32 %v9970_v34, 0.0 }
 0x56d   : > { %v11452_v61 = vpack.c.bf16 %v9988_v59, %v9987_v32 }
 0x56e   : > { %v11447_v52 = vpack.c.bf16 %v9986_v40, %v9985_v33 }
 0x56f   : > { %11479 = vst [vmem:[%s12579_s9 + $0x38] sm:$0xff] %v11452_v61  }
 0x570   : > { %11478 = vst [vmem:[%s12579_s9 + $0x30] sm:$0xff] %v11447_v52  }
 0x571 PF: > { %s15_s22 = sadd.s32 1, %s12501_s22   ;;  %s17233_s18 = smov %s12493_s20 }
 0x572   : > { %p12_p13 = scmp.ge.s32.totalorder %s15_s22, 6   ;;  %s17234_s19 = smov %s12497_s21 }
 0x573   : > { %s17235_s20 = smov %s17238_s23  ;;  %s17236_s21 = smov %s17242_s24 }
 0x574   :  { %14 = sbr.rel (!%p12_p13) target bundleno = 3 (0x3), region = 170 }
 0x579   :  { %10101 = vsyncmov [#allocation3] }
 0x57c   :  { %s10102_s9 = vpop.sfrf %10101 }
 0x57d   :  { %p11263_p0 = scmp.ne.s32.totalorder %s10102_s9, 0 }
 0x57f   :  { %10106 = shalt.err (%p11263_p0)  }
 0x580   :  { %10108 = vsyncmov [#allocation3 + $0x1] }
 0x583   :  { %s10109_s27 = vpop.sfrf %10108 }
 0x584   :  { %p11264_p1 = scmp.ne.s32.totalorder %s10109_s27, 0 }
 0x586   :  { %10113 = shalt.err (%p11264_p1)  }

</bundles_post_ra>
